<compile_context>
chip_gen: v5e
topology: v5e:2x2
jax: 0.10.0
libtpu: 0.0.40
codegen_flags: <defaults>
</compile_context>

<pallas_src>
import functools

import jax
import jax.numpy as jnp
from jax.experimental import pallas as pl
from jax.experimental.pallas import tpu as pltpu

nc, ndf = 3, 16
CP = 128          # out-channel lane padding
BN_EPS = 1e-5


def _round_up(x, m):
    return ((x + m - 1) // m) * m


def _apply_act(y, act):
    if act == "leaky":
        return jnp.where(y >= 0.0, y, 0.2 * y)
    if act == "sigmoid":
        return 1.0 / (1.0 + jnp.exp(-y))
    return y


# ----------------------------- Pallas kernels -----------------------------

def _conv_act_kernel(x_ref, w_ref, o_ref, *, act):
    """bf16 matmul (f32 accumulate) + activation, one M-tile per grid step."""
    y = jnp.dot(x_ref[...], w_ref[...], preferred_element_type=jnp.float32)
    o_ref[...] = _apply_act(y, act)


def _conv_bn_act_kernel(x_ref, w_ref, g_ref, b_ref, o_ref, *, act, m_valid):
    """Fused bf16 matmul (f32 acc) + train-mode BatchNorm + activation.

    The whole layer lives in one block. Padded X rows / W columns are zero,
    so the per-channel sums over the full (Mp, Cp) tile equal the sums over
    the valid (m_valid, Cout) region; stats and the epilogue stay in f32.
    """
    y = jnp.dot(x_ref[...], w_ref[...], preferred_element_type=jnp.float32)
    inv_m = 1.0 / float(m_valid)
    mean = jnp.sum(y, axis=0, keepdims=True) * inv_m
    var = jnp.sum(y * y, axis=0, keepdims=True) * inv_m - mean * mean
    scale = g_ref[...] * jax.lax.rsqrt(var + BN_EPS)
    shift = b_ref[...] - mean * scale
    o_ref[...] = _apply_act(y * scale + shift, act)


# ------------------------------ pallas_call wrappers -----------------------

def _fused_conv_call(x, w, gamma, beta, *, act, m_valid):
    Mp, Kp = x.shape
    Cp = w.shape[1]
    cost = pl.CostEstimate(
        flops=2 * Mp * Kp * Cp,
        transcendentals=Mp * Cp if act == "sigmoid" else 0,
        bytes_accessed=x.size * 2 + w.size * 2 + Mp * Cp * 4)

    if gamma is not None:
        # Single fused block: matmul + BN stats + normalize + activation.
        kern = functools.partial(_conv_bn_act_kernel, act=act, m_valid=m_valid)
        return pl.pallas_call(
            kern,
            out_shape=jax.ShapeDtypeStruct((Mp, Cp), jnp.float32),
            grid_spec=pltpu.PrefetchScalarGridSpec(
                num_scalar_prefetch=0,
                grid=(1,),
                in_specs=[pl.BlockSpec((Mp, Kp), lambda i: (0, 0)),
                          pl.BlockSpec((Kp, Cp), lambda i: (0, 0)),
                          pl.BlockSpec((1, Cp), lambda i: (0, 0)),
                          pl.BlockSpec((1, Cp), lambda i: (0, 0))],
                out_specs=pl.BlockSpec((Mp, Cp), lambda i: (0, 0)),
            ),
            compiler_params=pltpu.CompilerParams(
                dimension_semantics=("arbitrary",)),
            cost_estimate=cost,
        )(x, w, gamma, beta)

    # BN-free layer: grid over M ("parallel") so v7x megacore gets >= 2 steps
    # on the largest layer; small layers fall back to a single fat block.
    tm = Mp // 2 if Mp >= 1024 else Mp
    kern = functools.partial(_conv_act_kernel, act=act)
    return pl.pallas_call(
        kern,
        out_shape=jax.ShapeDtypeStruct((Mp, Cp), jnp.float32),
        grid_spec=pltpu.PrefetchScalarGridSpec(
            num_scalar_prefetch=0,
            grid=(Mp // tm,),
            in_specs=[pl.BlockSpec((tm, Kp), lambda i: (i, 0)),
                      pl.BlockSpec((Kp, Cp), lambda i: (0, 0))],
            out_specs=pl.BlockSpec((tm, Cp), lambda i: (i, 0)),
        ),
        compiler_params=pltpu.CompilerParams(
            dimension_semantics=("parallel",)),
        cost_estimate=cost,
    )(x, w)


# ------------------------------- glue layer --------------------------------

def _conv_layer(x_nhwc, w, gamma, beta, *, stride, padding, act):
    """Conv2d (no bias) + optional BN + activation. x: NHWC, w: (Cout,Cin,k,k)."""
    N, H, W, Cin = x_nhwc.shape
    Cout, _, k, _ = w.shape
    Ho = (H + 2 * padding - k) // stride + 1
    Wo = (W + 2 * padding - k) // stride + 1
    xp = jnp.pad(x_nhwc,
                 ((0, 0), (padding, padding), (padding, padding), (0, 0)))
    # im2col directly in NHWC / (ky,kx,ci) order -> (N*Ho*Wo, k*k*Cin)
    cols = [xp[:, ky:ky + stride * (Ho - 1) + 1:stride,
               kx:kx + stride * (Wo - 1) + 1:stride, :]
            for ky in range(k) for kx in range(k)]
    patches = jnp.stack(cols, axis=3).reshape(N * Ho * Wo, k * k * Cin)

    M, K = N * Ho * Wo, k * k * Cin
    Mp, Kp = _round_up(M, 128), _round_up(K, 128)
    patches = jnp.pad(patches, ((0, Mp - M), (0, Kp - K))).astype(jnp.bfloat16)

    # weight as (k*k*Cin, Cout), padded to (Kp, CP) lanes, bf16 for the MXU
    wmat = w.transpose(2, 3, 1, 0).reshape(K, Cout)
    wmat = jnp.pad(wmat, ((0, Kp - K), (0, CP - Cout))).astype(jnp.bfloat16)

    if gamma is not None:
        g = jnp.pad(gamma.astype(jnp.float32), (0, CP - Cout)).reshape(1, CP)
        b = jnp.pad(beta.astype(jnp.float32), (0, CP - Cout)).reshape(1, CP)
    else:
        g = b = None

    y = _fused_conv_call(patches, wmat, g, b, act=act, m_valid=M)
    return y[:M, :Cout].reshape(N, Ho, Wo, Cout)


def discriminator_forward(x_nchw, params):
    cfgs = [(2, 1, "leaky", False),
            (2, 1, "leaky", True),
            (2, 1, "leaky", True),
            (2, 1, "leaky", True),
            (1, 0, "sigmoid", False)]
    h = x_nchw.transpose(0, 2, 3, 1)          # NCHW -> NHWC, once
    for li, (stride, pad, act, has_bn) in enumerate(cfgs):
        gamma = params[f"g{li}"] if has_bn else None
        beta = params[f"b{li}"] if has_bn else None
        h = _conv_layer(h, params[f"w{li}"], gamma, beta,
                        stride=stride, padding=pad, act=act)
    return h.transpose(0, 3, 1, 2)            # back to NCHW -> (N, 1, 1, 1)


def init_params(key):
    shapes = [(ndf, nc, 4, 4), (ndf * 2, ndf, 4, 4), (ndf * 4, ndf * 2, 4, 4),
              (ndf * 8, ndf * 4, 4, 4), (1, ndf * 8, 4, 4)]
    bn_chans = {1: ndf * 2, 2: ndf * 4, 3: ndf * 8}
    ks = jax.random.split(key, len(shapes) + 2 * len(bn_chans))
    p = {}
    for i, s in enumerate(shapes):
        p[f"w{i}"] = 0.02 * jax.random.normal(ks[i], s, jnp.float32)
    j = len(shapes)
    for li, c in bn_chans.items():
        p[f"g{li}"] = 1.0 + 0.02 * jax.random.normal(ks[j], (c,), jnp.float32)
        j += 1
        p[f"b{li}"] = 0.02 * jax.random.normal(ks[j], (c,), jnp.float32)
        j += 1
    return p


if __name__ == "__main__":
    key = jax.random.PRNGKey(0)
    k_p, k_x = jax.random.split(key)
    params = init_params(k_p)
    # DCGAN discriminator expects 64x64 RGB input (required to reach 1x1).
    x = jax.random.normal(k_x, (2, nc, 64, 64), jnp.float32)

    fwd = jax.jit(discriminator_forward)
    out = jax.block_until_ready(fwd(x, params))

    assert out.shape == (2, 1, 1, 1), out.shape
    assert bool(jnp.all(jnp.isfinite(out)))
    assert bool(jnp.all((out >= 0.0) & (out <= 1.0)))          # sigmoid range
    print("KERNEL_OK")
</pallas_src>

<mosaic_0001>
module attributes {stable_mosaic.version = 11 : i64} {
  func.func @_conv_act_kernel(%arg0: i32, %arg1: memref<1024x128xbf16, #tpu.memory_space<vmem>>, %arg2: memref<128x128xbf16, #tpu.memory_space<vmem>>, %arg3: memref<1024x128xf32, #tpu.memory_space<vmem>>) attributes {dimension_semantics = [#tpu.dimension_semantics<parallel>], iteration_bounds = array<i64: 2>, scalar_prefetch = 0 : i64, scratch_operands = 0 : i64, tpu.core_type = #tpu.core_type<tc>, window_params = [{transform_indices = @transform_0, window_bounds = array<i64: 1024, 128>}, {pipeline_mode = #tpu.pipeline_mode<synchronous>, transform_indices = @transform_1, window_bounds = array<i64: 128, 128>}, {transform_indices = @transform_2, window_bounds = array<i64: 1024, 128>}]} {
    %c0 = arith.constant 0 : index
    %c0_0 = arith.constant 0 : index
    %0 = vector.load %arg1[%c0, %c0_0] : memref<1024x128xbf16, #tpu.memory_space<vmem>>, vector<1024x128xbf16>
    %c0_1 = arith.constant 0 : index
    %c0_2 = arith.constant 0 : index
    %1 = vector.load %arg2[%c0_1, %c0_2] : memref<128x128xbf16, #tpu.memory_space<vmem>>, vector<128x128xbf16>
    %cst = arith.constant dense<0.000000e+00> : vector<1024x128xf32>
    %2 = tpu.matmul %0, %1, %cst {dimension_numbers = #tpu.dot_dimension_numbers<[1], [0], [0], [1], [0, 0, 1, 1], [], []>} : vector<1024x128xbf16>, vector<128x128xbf16>, vector<1024x128xf32> -> vector<1024x128xf32>
    %cst_3 = arith.constant 0.000000e+00 : f32
    %3 = vector.broadcast %cst_3 : f32 to vector<1024x128xf32>
    %4 = arith.cmpf oge, %2, %3 : vector<1024x128xf32>
    %cst_4 = arith.constant 2.000000e-01 : f32
    %5 = vector.broadcast %cst_4 : f32 to vector<1024x128xf32>
    %6 = arith.mulf %5, %2 : vector<1024x128xf32>
    %7 = arith.select %4, %2, %6 : vector<1024x128xi1>, vector<1024x128xf32>
    %c0_5 = arith.constant 0 : index
    %c0_6 = arith.constant 0 : index
    %8 = vector.load %arg3[%c0_5, %c0_6] : memref<1024x128xf32, #tpu.memory_space<vmem>>, vector<1024x128xf32>
    tpu.vector_store %arg3[%c0_5, %c0_6], %7 {strides = array<i32>} : memref<1024x128xf32, #tpu.memory_space<vmem>>, vector<1024x128xf32>,
    return
  }
  func.func @transform_0(%arg0: i32) -> (i32, i32) {
    %c0_i32 = arith.constant 0 : i32
    %c0_i32_0 = arith.constant 0 : i32
    return %arg0, %c0_i32 : i32, i32
  }
  func.func @transform_1(%arg0: i32) -> (i32, i32) {
    %c0_i32 = arith.constant 0 : i32
    %c0_i32_0 = arith.constant 0 : i32
    %c0_i32_1 = arith.constant 0 : i32
    return %c0_i32, %c0_i32_0 : i32, i32
  }
  func.func @transform_2(%arg0: i32) -> (i32, i32) {
    %c0_i32 = arith.constant 0 : i32
    %c0_i32_0 = arith.constant 0 : i32
    return %arg0, %c0_i32 : i32, i32
  }
}

module attributes {stable_mosaic.version = 11 : i64} {
  func.func @_conv_bn_act_kernel(%arg0: i32, %arg1: memref<512x256xbf16, #tpu.memory_space<vmem>>, %arg2: memref<256x128xbf16, #tpu.memory_space<vmem>>, %arg3: memref<1x128xf32, #tpu.memory_space<vmem>>, %arg4: memref<1x128xf32, #tpu.memory_space<vmem>>, %arg5: memref<512x128xf32, #tpu.memory_space<vmem>>) attributes {dimension_semantics = [#tpu.dimension_semantics<arbitrary>], iteration_bounds = array<i64: 1>, scalar_prefetch = 0 : i64, scratch_operands = 0 : i64, tpu.core_type = #tpu.core_type<tc>, window_params = [{pipeline_mode = #tpu.pipeline_mode<synchronous>, transform_indices = @transform_0, window_bounds = array<i64: 512, 256>}, {pipeline_mode = #tpu.pipeline_mode<synchronous>, transform_indices = @transform_1, window_bounds = array<i64: 256, 128>}, {pipeline_mode = #tpu.pipeline_mode<synchronous>, transform_indices = @transform_2, window_bounds = array<i64: 1, 128>}, {pipeline_mode = #tpu.pipeline_mode<synchronous>, transform_indices = @transform_3, window_bounds = array<i64: 1, 128>}, {pipeline_mode = #tpu.pipeline_mode<synchronous>, transform_indices = @transform_4, window_bounds = array<i64: 512, 128>}]} {
    %c0 = arith.constant 0 : index
    %c0_0 = arith.constant 0 : index
    %0 = vector.load %arg1[%c0, %c0_0] : memref<512x256xbf16, #tpu.memory_space<vmem>>, vector<512x256xbf16>
    %c0_1 = arith.constant 0 : index
    %c0_2 = arith.constant 0 : index
    %1 = vector.load %arg2[%c0_1, %c0_2] : memref<256x128xbf16, #tpu.memory_space<vmem>>, vector<256x128xbf16>
    %cst = arith.constant dense<0.000000e+00> : vector<512x128xf32>
    %2 = tpu.matmul %0, %1, %cst {dimension_numbers = #tpu.dot_dimension_numbers<[1], [0], [0], [1], [0, 0, 1, 1], [], []>} : vector<512x256xbf16>, vector<256x128xbf16>, vector<512x128xf32> -> vector<512x128xf32>
    %cst_3 = arith.constant dense<0.000000e+00> : vector<128xf32>
    %3 = vector.multi_reduction <add>, %2, %cst_3 [0] : vector<512x128xf32> to vector<128xf32>
    %4 = vector.shape_cast %3 : vector<128xf32> to vector<1x128xf32>
    %cst_4 = arith.constant 0.001953125 : f32
    %5 = vector.broadcast %cst_4 : f32 to vector<1x128xf32>
    %6 = arith.mulf %4, %5 : vector<1x128xf32>
    %7 = arith.mulf %2, %2 : vector<512x128xf32>
    %cst_5 = arith.constant dense<0.000000e+00> : vector<128xf32>
    %8 = vector.multi_reduction <add>, %7, %cst_5 [0] : vector<512x128xf32> to vector<128xf32>
    %9 = vector.shape_cast %8 : vector<128xf32> to vector<1x128xf32>
    %cst_6 = arith.constant 0.001953125 : f32
    %10 = vector.broadcast %cst_6 : f32 to vector<1x128xf32>
    %11 = arith.mulf %9, %10 : vector<1x128xf32>
    %12 = arith.mulf %6, %6 : vector<1x128xf32>
    %13 = arith.subf %11, %12 : vector<1x128xf32>
    %c0_7 = arith.constant 0 : index
    %c0_8 = arith.constant 0 : index
    %14 = vector.load %arg3[%c0_7, %c0_8] : memref<1x128xf32, #tpu.memory_space<vmem>>, vector<1x128xf32>
    %cst_9 = arith.constant 9.99999974E-6 : f32
    %15 = vector.broadcast %cst_9 : f32 to vector<1x128xf32>
    %16 = arith.addf %13, %15 : vector<1x128xf32>
    %17 = math.rsqrt %16 : vector<1x128xf32>
    %18 = arith.mulf %14, %17 : vector<1x128xf32>
    %c0_10 = arith.constant 0 : index
    %c0_11 = arith.constant 0 : index
    %19 = vector.load %arg4[%c0_10, %c0_11] : memref<1x128xf32, #tpu.memory_space<vmem>>, vector<1x128xf32>
    %20 = arith.mulf %6, %18 : vector<1x128xf32>
    %21 = arith.subf %19, %20 : vector<1x128xf32>
    %22 = vector.broadcast %18 : vector<1x128xf32> to vector<512x128xf32>
    %23 = arith.mulf %2, %22 : vector<512x128xf32>
    %24 = vector.broadcast %21 : vector<1x128xf32> to vector<512x128xf32>
    %25 = arith.addf %23, %24 : vector<512x128xf32>
    %cst_12 = arith.constant 0.000000e+00 : f32
    %26 = vector.broadcast %cst_12 : f32 to vector<512x128xf32>
    %27 = arith.cmpf oge, %25, %26 : vector<512x128xf32>
    %cst_13 = arith.constant 2.000000e-01 : f32
    %28 = vector.broadcast %cst_13 : f32 to vector<512x128xf32>
    %29 = arith.mulf %28, %25 : vector<512x128xf32>
    %30 = arith.select %27, %25, %29 : vector<512x128xi1>, vector<512x128xf32>
    %c0_14 = arith.constant 0 : index
    %c0_15 = arith.constant 0 : index
    %31 = vector.load %arg5[%c0_14, %c0_15] : memref<512x128xf32, #tpu.memory_space<vmem>>, vector<512x128xf32>
    tpu.vector_store %arg5[%c0_14, %c0_15], %30 {strides = array<i32>} : memref<512x128xf32, #tpu.memory_space<vmem>>, vector<512x128xf32>,
    return
  }
  func.func @transform_0(%arg0: i32) -> (i32, i32) {
    %c0_i32 = arith.constant 0 : i32
    %c0_i32_0 = arith.constant 0 : i32
    %c0_i32_1 = arith.constant 0 : i32
    return %c0_i32, %c0_i32_0 : i32, i32
  }
  func.func @transform_1(%arg0: i32) -> (i32, i32) {
    %c0_i32 = arith.constant 0 : i32
    %c0_i32_0 = arith.constant 0 : i32
    %c0_i32_1 = arith.constant 0 : i32
    return %c0_i32, %c0_i32_0 : i32, i32
  }
  func.func @transform_2(%arg0: i32) -> (i32, i32) {
    %c0_i32 = arith.constant 0 : i32
    %c0_i32_0 = arith.constant 0 : i32
    %c0_i32_1 = arith.constant 0 : i32
    return %c0_i32, %c0_i32_0 : i32, i32
  }
  func.func @transform_3(%arg0: i32) -> (i32, i32) {
    %c0_i32 = arith.constant 0 : i32
    %c0_i32_0 = arith.constant 0 : i32
    %c0_i32_1 = arith.constant 0 : i32
    return %c0_i32, %c0_i32_0 : i32, i32
  }
  func.func @transform_4(%arg0: i32) -> (i32, i32) {
    %c0_i32 = arith.constant 0 : i32
    %c0_i32_0 = arith.constant 0 : i32
    %c0_i32_1 = arith.constant 0 : i32
    return %c0_i32, %c0_i32_0 : i32, i32
  }
}

module attributes {stable_mosaic.version = 11 : i64} {
  func.func @_conv_bn_act_kernel(%arg0: i32, %arg1: memref<128x512xbf16, #tpu.memory_space<vmem>>, %arg2: memref<512x128xbf16, #tpu.memory_space<vmem>>, %arg3: memref<1x128xf32, #tpu.memory_space<vmem>>, %arg4: memref<1x128xf32, #tpu.memory_space<vmem>>, %arg5: memref<128x128xf32, #tpu.memory_space<vmem>>) attributes {dimension_semantics = [#tpu.dimension_semantics<arbitrary>], iteration_bounds = array<i64: 1>, scalar_prefetch = 0 : i64, scratch_operands = 0 : i64, tpu.core_type = #tpu.core_type<tc>, window_params = [{pipeline_mode = #tpu.pipeline_mode<synchronous>, transform_indices = @transform_0, window_bounds = array<i64: 128, 512>}, {pipeline_mode = #tpu.pipeline_mode<synchronous>, transform_indices = @transform_1, window_bounds = array<i64: 512, 128>}, {pipeline_mode = #tpu.pipeline_mode<synchronous>, transform_indices = @transform_2, window_bounds = array<i64: 1, 128>}, {pipeline_mode = #tpu.pipeline_mode<synchronous>, transform_indices = @transform_3, window_bounds = array<i64: 1, 128>}, {pipeline_mode = #tpu.pipeline_mode<synchronous>, transform_indices = @transform_4, window_bounds = array<i64: 128, 128>}]} {
    %c0 = arith.constant 0 : index
    %c0_0 = arith.constant 0 : index
    %0 = vector.load %arg1[%c0, %c0_0] : memref<128x512xbf16, #tpu.memory_space<vmem>>, vector<128x512xbf16>
    %c0_1 = arith.constant 0 : index
    %c0_2 = arith.constant 0 : index
    %1 = vector.load %arg2[%c0_1, %c0_2] : memref<512x128xbf16, #tpu.memory_space<vmem>>, vector<512x128xbf16>
    %cst = arith.constant dense<0.000000e+00> : vector<128x128xf32>
    %2 = tpu.matmul %0, %1, %cst {dimension_numbers = #tpu.dot_dimension_numbers<[1], [0], [0], [1], [0, 0, 1, 1], [], []>} : vector<128x512xbf16>, vector<512x128xbf16>, vector<128x128xf32> -> vector<128x128xf32>
    %cst_3 = arith.constant dense<0.000000e+00> : vector<128xf32>
    %3 = vector.multi_reduction <add>, %2, %cst_3 [0] : vector<128x128xf32> to vector<128xf32>
    %4 = vector.shape_cast %3 : vector<128xf32> to vector<1x128xf32>
    %cst_4 = arith.constant 7.812500e-03 : f32
    %5 = vector.broadcast %cst_4 : f32 to vector<1x128xf32>
    %6 = arith.mulf %4, %5 : vector<1x128xf32>
    %7 = arith.mulf %2, %2 : vector<128x128xf32>
    %cst_5 = arith.constant dense<0.000000e+00> : vector<128xf32>
    %8 = vector.multi_reduction <add>, %7, %cst_5 [0] : vector<128x128xf32> to vector<128xf32>
    %9 = vector.shape_cast %8 : vector<128xf32> to vector<1x128xf32>
    %cst_6 = arith.constant 7.812500e-03 : f32
    %10 = vector.broadcast %cst_6 : f32 to vector<1x128xf32>
    %11 = arith.mulf %9, %10 : vector<1x128xf32>
    %12 = arith.mulf %6, %6 : vector<1x128xf32>
    %13 = arith.subf %11, %12 : vector<1x128xf32>
    %c0_7 = arith.constant 0 : index
    %c0_8 = arith.constant 0 : index
    %14 = vector.load %arg3[%c0_7, %c0_8] : memref<1x128xf32, #tpu.memory_space<vmem>>, vector<1x128xf32>
    %cst_9 = arith.constant 9.99999974E-6 : f32
    %15 = vector.broadcast %cst_9 : f32 to vector<1x128xf32>
    %16 = arith.addf %13, %15 : vector<1x128xf32>
    %17 = math.rsqrt %16 : vector<1x128xf32>
    %18 = arith.mulf %14, %17 : vector<1x128xf32>
    %c0_10 = arith.constant 0 : index
    %c0_11 = arith.constant 0 : index
    %19 = vector.load %arg4[%c0_10, %c0_11] : memref<1x128xf32, #tpu.memory_space<vmem>>, vector<1x128xf32>
    %20 = arith.mulf %6, %18 : vector<1x128xf32>
    %21 = arith.subf %19, %20 : vector<1x128xf32>
    %22 = vector.broadcast %18 : vector<1x128xf32> to vector<128x128xf32>
    %23 = arith.mulf %2, %22 : vector<128x128xf32>
    %24 = vector.broadcast %21 : vector<1x128xf32> to vector<128x128xf32>
    %25 = arith.addf %23, %24 : vector<128x128xf32>
    %cst_12 = arith.constant 0.000000e+00 : f32
    %26 = vector.broadcast %cst_12 : f32 to vector<128x128xf32>
    %27 = arith.cmpf oge, %25, %26 : vector<128x128xf32>
    %cst_13 = arith.constant 2.000000e-01 : f32
    %28 = vector.broadcast %cst_13 : f32 to vector<128x128xf32>
    %29 = arith.mulf %28, %25 : vector<128x128xf32>
    %30 = arith.select %27, %25, %29 : vector<128x128xi1>, vector<128x128xf32>
    %c0_14 = arith.constant 0 : index
    %c0_15 = arith.constant 0 : index
    %31 = vector.load %arg5[%c0_14, %c0_15] : memref<128x128xf32, #tpu.memory_space<vmem>>, vector<128x128xf32>
    tpu.vector_store %arg5[%c0_14, %c0_15], %30 {strides = array<i32>} : memref<128x128xf32, #tpu.memory_space<vmem>>, vector<128x128xf32>,
    return
  }
  func.func @transform_0(%arg0: i32) -> (i32, i32) {
    %c0_i32 = arith.constant 0 : i32
    %c0_i32_0 = arith.constant 0 : i32
    %c0_i32_1 = arith.constant 0 : i32
    return %c0_i32, %c0_i32_0 : i32, i32
  }
  func.func @transform_1(%arg0: i32) -> (i32, i32) {
    %c0_i32 = arith.constant 0 : i32
    %c0_i32_0 = arith.constant 0 : i32
    %c0_i32_1 = arith.constant 0 : i32
    return %c0_i32, %c0_i32_0 : i32, i32
  }
  func.func @transform_2(%arg0: i32) -> (i32, i32) {
    %c0_i32 = arith.constant 0 : i32
    %c0_i32_0 = arith.constant 0 : i32
    %c0_i32_1 = arith.constant 0 : i32
    return %c0_i32, %c0_i32_0 : i32, i32
  }
  func.func @transform_3(%arg0: i32) -> (i32, i32) {
    %c0_i32 = arith.constant 0 : i32
    %c0_i32_0 = arith.constant 0 : i32
    %c0_i32_1 = arith.constant 0 : i32
    return %c0_i32, %c0_i32_0 : i32, i32
  }
  func.func @transform_4(%arg0: i32) -> (i32, i32) {
    %c0_i32 = arith.constant 0 : i32
    %c0_i32_0 = arith.constant 0 : i32
    %c0_i32_1 = arith.constant 0 : i32
    return %c0_i32, %c0_i32_0 : i32, i32
  }
}

module attributes {stable_mosaic.version = 11 : i64} {
  func.func @_conv_bn_act_kernel(%arg0: i32, %arg1: memref<128x1024xbf16, #tpu.memory_space<vmem>>, %arg2: memref<1024x128xbf16, #tpu.memory_space<vmem>>, %arg3: memref<1x128xf32, #tpu.memory_space<vmem>>, %arg4: memref<1x128xf32, #tpu.memory_space<vmem>>, %arg5: memref<128x128xf32, #tpu.memory_space<vmem>>) attributes {dimension_semantics = [#tpu.dimension_semantics<arbitrary>], iteration_bounds = array<i64: 1>, scalar_prefetch = 0 : i64, scratch_operands = 0 : i64, tpu.core_type = #tpu.core_type<tc>, window_params = [{pipeline_mode = #tpu.pipeline_mode<synchronous>, transform_indices = @transform_0, window_bounds = array<i64: 128, 1024>}, {pipeline_mode = #tpu.pipeline_mode<synchronous>, transform_indices = @transform_1, window_bounds = array<i64: 1024, 128>}, {pipeline_mode = #tpu.pipeline_mode<synchronous>, transform_indices = @transform_2, window_bounds = array<i64: 1, 128>}, {pipeline_mode = #tpu.pipeline_mode<synchronous>, transform_indices = @transform_3, window_bounds = array<i64: 1, 128>}, {pipeline_mode = #tpu.pipeline_mode<synchronous>, transform_indices = @transform_4, window_bounds = array<i64: 128, 128>}]} {
    %c0 = arith.constant 0 : index
    %c0_0 = arith.constant 0 : index
    %0 = vector.load %arg1[%c0, %c0_0] : memref<128x1024xbf16, #tpu.memory_space<vmem>>, vector<128x1024xbf16>
    %c0_1 = arith.constant 0 : index
    %c0_2 = arith.constant 0 : index
    %1 = vector.load %arg2[%c0_1, %c0_2] : memref<1024x128xbf16, #tpu.memory_space<vmem>>, vector<1024x128xbf16>
    %cst = arith.constant dense<0.000000e+00> : vector<128x128xf32>
    %2 = tpu.matmul %0, %1, %cst {dimension_numbers = #tpu.dot_dimension_numbers<[1], [0], [0], [1], [0, 0, 1, 1], [], []>} : vector<128x1024xbf16>, vector<1024x128xbf16>, vector<128x128xf32> -> vector<128x128xf32>
    %cst_3 = arith.constant dense<0.000000e+00> : vector<128xf32>
    %3 = vector.multi_reduction <add>, %2, %cst_3 [0] : vector<128x128xf32> to vector<128xf32>
    %4 = vector.shape_cast %3 : vector<128xf32> to vector<1x128xf32>
    %cst_4 = arith.constant 3.125000e-02 : f32
    %5 = vector.broadcast %cst_4 : f32 to vector<1x128xf32>
    %6 = arith.mulf %4, %5 : vector<1x128xf32>
    %7 = arith.mulf %2, %2 : vector<128x128xf32>
    %cst_5 = arith.constant dense<0.000000e+00> : vector<128xf32>
    %8 = vector.multi_reduction <add>, %7, %cst_5 [0] : vector<128x128xf32> to vector<128xf32>
    %9 = vector.shape_cast %8 : vector<128xf32> to vector<1x128xf32>
    %cst_6 = arith.constant 3.125000e-02 : f32
    %10 = vector.broadcast %cst_6 : f32 to vector<1x128xf32>
    %11 = arith.mulf %9, %10 : vector<1x128xf32>
    %12 = arith.mulf %6, %6 : vector<1x128xf32>
    %13 = arith.subf %11, %12 : vector<1x128xf32>
    %c0_7 = arith.constant 0 : index
    %c0_8 = arith.constant 0 : index
    %14 = vector.load %arg3[%c0_7, %c0_8] : memref<1x128xf32, #tpu.memory_space<vmem>>, vector<1x128xf32>
    %cst_9 = arith.constant 9.99999974E-6 : f32
    %15 = vector.broadcast %cst_9 : f32 to vector<1x128xf32>
    %16 = arith.addf %13, %15 : vector<1x128xf32>
    %17 = math.rsqrt %16 : vector<1x128xf32>
    %18 = arith.mulf %14, %17 : vector<1x128xf32>
    %c0_10 = arith.constant 0 : index
    %c0_11 = arith.constant 0 : index
    %19 = vector.load %arg4[%c0_10, %c0_11] : memref<1x128xf32, #tpu.memory_space<vmem>>, vector<1x128xf32>
    %20 = arith.mulf %6, %18 : vector<1x128xf32>
    %21 = arith.subf %19, %20 : vector<1x128xf32>
    %22 = vector.broadcast %18 : vector<1x128xf32> to vector<128x128xf32>
    %23 = arith.mulf %2, %22 : vector<128x128xf32>
    %24 = vector.broadcast %21 : vector<1x128xf32> to vector<128x128xf32>
    %25 = arith.addf %23, %24 : vector<128x128xf32>
    %cst_12 = arith.constant 0.000000e+00 : f32
    %26 = vector.broadcast %cst_12 : f32 to vector<128x128xf32>
    %27 = arith.cmpf oge, %25, %26 : vector<128x128xf32>
    %cst_13 = arith.constant 2.000000e-01 : f32
    %28 = vector.broadcast %cst_13 : f32 to vector<128x128xf32>
    %29 = arith.mulf %28, %25 : vector<128x128xf32>
    %30 = arith.select %27, %25, %29 : vector<128x128xi1>, vector<128x128xf32>
    %c0_14 = arith.constant 0 : index
    %c0_15 = arith.constant 0 : index
    %31 = vector.load %arg5[%c0_14, %c0_15] : memref<128x128xf32, #tpu.memory_space<vmem>>, vector<128x128xf32>
    tpu.vector_store %arg5[%c0_14, %c0_15], %30 {strides = array<i32>} : memref<128x128xf32, #tpu.memory_space<vmem>>, vector<128x128xf32>,
    return
  }
  func.func @transform_0(%arg0: i32) -> (i32, i32) {
    %c0_i32 = arith.constant 0 : i32
    %c0_i32_0 = arith.constant 0 : i32
    %c0_i32_1 = arith.constant 0 : i32
    return %c0_i32, %c0_i32_0 : i32, i32
  }
  func.func @transform_1(%arg0: i32) -> (i32, i32) {
    %c0_i32 = arith.constant 0 : i32
    %c0_i32_0 = arith.constant 0 : i32
    %c0_i32_1 = arith.constant 0 : i32
    return %c0_i32, %c0_i32_0 : i32, i32
  }
  func.func @transform_2(%arg0: i32) -> (i32, i32) {
    %c0_i32 = arith.constant 0 : i32
    %c0_i32_0 = arith.constant 0 : i32
    %c0_i32_1 = arith.constant 0 : i32
    return %c0_i32, %c0_i32_0 : i32, i32
  }
  func.func @transform_3(%arg0: i32) -> (i32, i32) {
    %c0_i32 = arith.constant 0 : i32
    %c0_i32_0 = arith.constant 0 : i32
    %c0_i32_1 = arith.constant 0 : i32
    return %c0_i32, %c0_i32_0 : i32, i32
  }
  func.func @transform_4(%arg0: i32) -> (i32, i32) {
    %c0_i32 = arith.constant 0 : i32
    %c0_i32_0 = arith.constant 0 : i32
    %c0_i32_1 = arith.constant 0 : i32
    return %c0_i32, %c0_i32_0 : i32, i32
  }
}

module attributes {stable_mosaic.version = 11 : i64} {
  func.func @_conv_act_kernel(%arg0: i32, %arg1: memref<128x2048xbf16, #tpu.memory_space<vmem>>, %arg2: memref<2048x128xbf16, #tpu.memory_space<vmem>>, %arg3: memref<128x128xf32, #tpu.memory_space<vmem>>) attributes {dimension_semantics = [#tpu.dimension_semantics<parallel>], iteration_bounds = array<i64: 1>, scalar_prefetch = 0 : i64, scratch_operands = 0 : i64, tpu.core_type = #tpu.core_type<tc>, window_params = [{transform_indices = @transform_0, window_bounds = array<i64: 128, 2048>}, {pipeline_mode = #tpu.pipeline_mode<synchronous>, transform_indices = @transform_1, window_bounds = array<i64: 2048, 128>}, {transform_indices = @transform_2, window_bounds = array<i64: 128, 128>}]} {
    %c0 = arith.constant 0 : index
    %c0_0 = arith.constant 0 : index
    %0 = vector.load %arg1[%c0, %c0_0] : memref<128x2048xbf16, #tpu.memory_space<vmem>>, vector<128x2048xbf16>
    %c0_1 = arith.constant 0 : index
    %c0_2 = arith.constant 0 : index
    %1 = vector.load %arg2[%c0_1, %c0_2] : memref<2048x128xbf16, #tpu.memory_space<vmem>>, vector<2048x128xbf16>
    %cst = arith.constant dense<0.000000e+00> : vector<128x128xf32>
    %2 = tpu.matmul %0, %1, %cst {dimension_numbers = #tpu.dot_dimension_numbers<[1], [0], [0], [1], [0, 0, 1, 1], [], []>} : vector<128x2048xbf16>, vector<2048x128xbf16>, vector<128x128xf32> -> vector<128x128xf32>
    %cst_3 = arith.constant 0.000000e+00 : f32
    %3 = vector.broadcast %cst_3 : f32 to vector<128x128xf32>
    %4 = arith.subf %3, %2 : vector<128x128xf32>
    %5 = math.exp %4 : vector<128x128xf32>
    %cst_4 = arith.constant 1.000000e+00 : f32
    %6 = vector.broadcast %cst_4 : f32 to vector<128x128xf32>
    %7 = arith.addf %6, %5 : vector<128x128xf32>
    %cst_5 = arith.constant 1.000000e+00 : f32
    %8 = vector.broadcast %cst_5 : f32 to vector<128x128xf32>
    %9 = arith.divf %8, %7 : vector<128x128xf32>
    %c0_6 = arith.constant 0 : index
    %c0_7 = arith.constant 0 : index
    %10 = vector.load %arg3[%c0_6, %c0_7] : memref<128x128xf32, #tpu.memory_space<vmem>>, vector<128x128xf32>
    tpu.vector_store %arg3[%c0_6, %c0_7], %9 {strides = array<i32>} : memref<128x128xf32, #tpu.memory_space<vmem>>, vector<128x128xf32>,
    return
  }
  func.func @transform_0(%arg0: i32) -> (i32, i32) {
    %c0_i32 = arith.constant 0 : i32
    %c0_i32_0 = arith.constant 0 : i32
    return %arg0, %c0_i32 : i32, i32
  }
  func.func @transform_1(%arg0: i32) -> (i32, i32) {
    %c0_i32 = arith.constant 0 : i32
    %c0_i32_0 = arith.constant 0 : i32
    %c0_i32_1 = arith.constant 0 : i32
    return %c0_i32, %c0_i32_0 : i32, i32
  }
  func.func @transform_2(%arg0: i32) -> (i32, i32) {
    %c0_i32 = arith.constant 0 : i32
    %c0_i32_0 = arith.constant 0 : i32
    return %arg0, %c0_i32 : i32, i32
  }
}

</mosaic_0001>

<bundles_post_ra>
// kernel: discriminator_forward.5
= control target key start
LH: loop header
LB: loop body
LE: loop exit
PB: predicated region body
PF: predicated region fallthrough
CT: control target
= control target key end

     0   :  { %s2046_s9 = smov 0   ;;  %s2287_s0 = inlined_call_operand.vmem [shape: bf16[2048,128], index: 0, kind: input, shape index: {}]   ;;  %s2288_s1 = inlined_call_operand.vmem [shape: bf16[128,128], index: 1, kind: input, shape index: {}]   ;;  %s2289_s2 = inlined_call_operand.vmem [shape: f32[2048,128], index: 2, kind: output, shape index: {}]  }
   0x1 LB: > { %s1620_s10 = sadd.s32 4294967295, %s2029_s9   ;;  %p1624_p0 = scmp.ge.s32.totalorder %s2029_s9, 1  ;;  %s2029_s9 = sphi %s2046_s9, %s12_s9  }
   0x2   : > { %p113_p1 = scmp.lt.s32.totalorder %s2029_s9, 3 }
   0x4   : > { %p114_p2 = pnand %p1624_p0, %p113_p1 }
   0x5   : > { %s1625_s19 = sshll.u32 (!%p114_p2), %s1620_s10, 7 }
   0x6   : > { %117 = sbr.rel (%p114_p2) target bundleno = 429 (0x1ad), region = 28  ;;  %p136_p3 = scmp.lt.s32.totalorder (!%p114_p2), %s1625_s19, 255 }
   0xb   : > { %v1990_v0 = vld [vmem:[%s2288_s1 + $0x38] sm:$0xff]  ;;  %v1989_v1 = vld [vmem:[%s2288_s1 + $0x30] sm:$0xff]  ;;  %v1988_v2 = vld [vmem:[%s2288_s1 + $0x28] sm:$0xff]  ;;  %s2291_s19 = smov (!%p136_p3, %s1625_s19), 255 }
   0xc   : > { %723 = vmatpush.bf16.msra.mxu0 %v1990_v0  ;;  %1991 = vmatpush.bf16.msra.mxu1 %v1990_v0  ;;  %v1987_v3 = vld [vmem:[%s2288_s1 + $0x20] sm:$0xff]  ;;  %v1986_v4 = vld [vmem:[%s2288_s1 + $0x18] sm:$0xff]  ;;  %v1985_v5 = vld [vmem:[%s2288_s1 + $0x10] sm:$0xff]  ;;  %s1626_s26 = sshll.u32 %s2291_s19, 2  ;;  %s1628_s4 = sshll.u32 %s2291_s19, 3 }
   0xd   : > { %1992 = vmatpush.bf16.msra.mxu2 %v1990_v0  ;;  %1993 = vmatpush.bf16.msra.mxu3 %v1990_v0  ;;  %v1984_v6 = vld [vmem:[%s2288_s1 + $0x8] sm:$0xff]  ;;  %v1983_v7 = vld [vmem:[%s2288_s1] sm:$0xff]  ;;  %s2084_s3 = scalar_lea.vmem %s2287_s0, %s1626_s26  ;;  %s2126_s7 = scalar_lea.vmem %s2289_s2, %s1628_s4 }
   0xe   : > { %v1919_v8 = vld [vmem:[%s2084_s3] sm:$0xff]  ;;  %v1920_v12 = vld [vmem:[%s2084_s3 + $0x8] sm:$0xff]  ;;  %v1921_v16 = vld [vmem:[%s2084_s3 + $0x10] sm:$0xff] }
   0xf   : > { %v1935_v9 = vld [vmem:[%s2084_s3 + $0x80] sm:$0xff]  ;;  %v1936_v13 = vld [vmem:[%s2084_s3 + $0x88] sm:$0xff]  ;;  %v1937_v17 = vld [vmem:[%s2084_s3 + $0x90] sm:$0xff] }
  0x10   : > { %724 = vmatpush.bf16.msra.mxu0 %v1989_v1  ;;  %1994 = vmatpush.bf16.msra.mxu1 %v1989_v1  ;;  %v1951_v10 = vld [vmem:[%s2084_s3 + $0x100] sm:$0xff]  ;;  %v1952_v14 = vld [vmem:[%s2084_s3 + $0x108] sm:$0xff]  ;;  %v1953_v18 = vld [vmem:[%s2084_s3 + $0x110] sm:$0xff] }
  0x11   : > { %1995 = vmatpush.bf16.msra.mxu2 %v1989_v1  ;;  %1996 = vmatpush.bf16.msra.mxu3 %v1989_v1  ;;  %v1967_v11 = vld [vmem:[%s2084_s3 + $0x180] sm:$0xff]  ;;  %v1968_v15 = vld [vmem:[%s2084_s3 + $0x188] sm:$0xff]  ;;  %v1969_v19 = vld [vmem:[%s2084_s3 + $0x190] sm:$0xff] }
  0x12   : > { %v1922_v20 = vld [vmem:[%s2084_s3 + $0x18] sm:$0xff]  ;;  %v1923_v24 = vld [vmem:[%s2084_s3 + $0x20] sm:$0xff]  ;;  %v1924_v28 = vld [vmem:[%s2084_s3 + $0x28] sm:$0xff] }
  0x13   : > { %v1938_v21 = vld [vmem:[%s2084_s3 + $0x98] sm:$0xff]  ;;  %v1939_v25 = vld [vmem:[%s2084_s3 + $0xa0] sm:$0xff]  ;;  %v1940_v29 = vld [vmem:[%s2084_s3 + $0xa8] sm:$0xff] }
  0x14   : > { %725 = vmatpush.bf16.msra.mxu0 %v1988_v2  ;;  %1997 = vmatpush.bf16.msra.mxu1 %v1988_v2  ;;  %v1954_v22 = vld [vmem:[%s2084_s3 + $0x118] sm:$0xff]  ;;  %v1955_v26 = vld [vmem:[%s2084_s3 + $0x120] sm:$0xff]  ;;  %v1956_v30 = vld [vmem:[%s2084_s3 + $0x128] sm:$0xff] }
  0x15   : > { %1998 = vmatpush.bf16.msra.mxu2 %v1988_v2  ;;  %1999 = vmatpush.bf16.msra.mxu3 %v1988_v2  ;;  %v1970_v23 = vld [vmem:[%s2084_s3 + $0x198] sm:$0xff]  ;;  %v1971_v27 = vld [vmem:[%s2084_s3 + $0x1a0] sm:$0xff]  ;;  %v1972_v31 = vld [vmem:[%s2084_s3 + $0x1a8] sm:$0xff] }
  0x16   : > { %v1925_v32 = vld [vmem:[%s2084_s3 + $0x30] sm:$0xff]  ;;  %v1926_v36 = vld [vmem:[%s2084_s3 + $0x38] sm:$0xff]  ;;  %v1927_v40 = vld [vmem:[%s2084_s3 + $0x40] sm:$0xff] }
  0x17   : > { %v1941_v33 = vld [vmem:[%s2084_s3 + $0xb0] sm:$0xff]  ;;  %v1942_v37 = vld [vmem:[%s2084_s3 + $0xb8] sm:$0xff]  ;;  %v1943_v41 = vld [vmem:[%s2084_s3 + $0xc0] sm:$0xff] }
  0x18   : > { %726 = vmatpush.bf16.msra.mxu0 %v1987_v3  ;;  %2000 = vmatpush.bf16.msra.mxu1 %v1987_v3  ;;  %v1957_v34 = vld [vmem:[%s2084_s3 + $0x130] sm:$0xff]  ;;  %v1958_v38 = vld [vmem:[%s2084_s3 + $0x138] sm:$0xff]  ;;  %v1959_v44 = vld [vmem:[%s2084_s3 + $0x140] sm:$0xff] }
  0x19   : > { %2001 = vmatpush.bf16.msra.mxu2 %v1987_v3  ;;  %2002 = vmatpush.bf16.msra.mxu3 %v1987_v3  ;;  %v1973_v35 = vld [vmem:[%s2084_s3 + $0x1b0] sm:$0xff]  ;;  %v1974_v39 = vld [vmem:[%s2084_s3 + $0x1b8] sm:$0xff]  ;;  %v1975_v45 = vld [vmem:[%s2084_s3 + $0x1c0] sm:$0xff] }
  0x1a   : > { %v1928_v62 = vld [vmem:[%s2084_s3 + $0x48] sm:$0xff] }
  0x1b   : > { %v1944_v1 = vld [vmem:[%s2084_s3 + $0xc8] sm:$0xff] }
  0x1c   : > { %727 = vmatpush.bf16.msra.mxu0 %v1986_v4  ;;  %2003 = vmatpush.bf16.msra.mxu1 %v1986_v4  ;;  %v1960_v2 = vld [vmem:[%s2084_s3 + $0x148] sm:$0xff] }
  0x1d   : > { %2004 = vmatpush.bf16.msra.mxu2 %v1986_v4  ;;  %2005 = vmatpush.bf16.msra.mxu3 %v1986_v4  ;;  %v1976_v3 = vld [vmem:[%s2084_s3 + $0x1c8] sm:$0xff] }
  0x20   : > { %728 = vmatpush.bf16.msra.mxu0 %v1985_v5  ;;  %2006 = vmatpush.bf16.msra.mxu1 %v1985_v5 }
  0x21   : > { %2007 = vmatpush.bf16.msra.mxu2 %v1985_v5  ;;  %2008 = vmatpush.bf16.msra.mxu3 %v1985_v5 }
  0x24   : > { %729 = vmatpush.bf16.msra.mxu0 %v1984_v6  ;;  %2009 = vmatpush.bf16.msra.mxu1 %v1984_v6 }
  0x25   : > { %2010 = vmatpush.bf16.msra.mxu2 %v1984_v6  ;;  %2011 = vmatpush.bf16.msra.mxu3 %v1984_v6 }
  0x28   : > { %730 = vmatpush.bf16.msra.mxu0 %v1983_v7  ;;  %2012 = vmatpush.bf16.msra.mxu1 %v1983_v7 }
  0x29   : > { %2013 = vmatpush.bf16.msra.mxu2 %v1983_v7  ;;  %2014 = vmatpush.bf16.msra.mxu3 %v1983_v7 }
  0x2b   : > { %731 = vmatmul.bf16.vlgmr.msra.gmra.mxu0 %v1919_v8  ;;  %811 = vmatmul.bf16.vlgmr.msra.gmra.mxu1 %v1935_v9 }
  0x2c   : > { %891 = vmatmul.bf16.vlgmr.msra.gmra.mxu2 %v1951_v10  ;;  %971 = vmatmul.bf16.vlgmr.msra.gmra.mxu3 %v1967_v11 }
  0x3b   : > { %736 = vmatmul.bf16.gmra.mxu0 %v1920_v12  ;;  %816 = vmatmul.bf16.gmra.mxu1 %v1936_v13 }
  0x3c   : > { %896 = vmatmul.bf16.gmra.mxu2 %v1952_v14  ;;  %976 = vmatmul.bf16.gmra.mxu3 %v1968_v15 }
  0x4b   : > { %741 = vmatmul.bf16.gmra.mxu0 %v1921_v16  ;;  %821 = vmatmul.bf16.gmra.mxu1 %v1937_v17 }
  0x4c   : > { %901 = vmatmul.bf16.gmra.mxu2 %v1953_v18  ;;  %981 = vmatmul.bf16.gmra.mxu3 %v1969_v19 }
  0x5b   : > { %746 = vmatmul.bf16.gmra.mxu0 %v1922_v20  ;;  %826 = vmatmul.bf16.gmra.mxu1 %v1938_v21 }
  0x5c   : > { %906 = vmatmul.bf16.gmra.mxu2 %v1954_v22  ;;  %986 = vmatmul.bf16.gmra.mxu3 %v1970_v23 }
  0x6b   : > { %751 = vmatmul.bf16.gmra.mxu0 %v1923_v24  ;;  %831 = vmatmul.bf16.gmra.mxu1 %v1939_v25 }
  0x6c   : > { %911 = vmatmul.bf16.gmra.mxu2 %v1955_v26  ;;  %991 = vmatmul.bf16.gmra.mxu3 %v1971_v27  ;;  %v1929_v26 = vld [vmem:[%s2084_s3 + $0x50] sm:$0xff] }
  0x7b   : > { %756 = vmatmul.bf16.gmra.mxu0 %v1924_v28  ;;  %836 = vmatmul.bf16.gmra.mxu1 %v1940_v29  ;;  %v1945_v29 = vld [vmem:[%s2084_s3 + $0xd0] sm:$0xff] }
  0x7c   : > { %916 = vmatmul.bf16.gmra.mxu2 %v1956_v30  ;;  %996 = vmatmul.bf16.gmra.mxu3 %v1972_v31  ;;  %v1961_v30 = vld [vmem:[%s2084_s3 + $0x150] sm:$0xff] }
  0x7d   : > { %v1977_v31 = vld [vmem:[%s2084_s3 + $0x1d0] sm:$0xff] }
  0x8b   : > { %761 = vmatmul.bf16.gmra.mxu0 %v1925_v32  ;;  %841 = vmatmul.bf16.gmra.mxu1 %v1941_v33 }
  0x8c   : > { %921 = vmatmul.bf16.gmra.mxu2 %v1957_v34  ;;  %1001 = vmatmul.bf16.gmra.mxu3 %v1973_v35 }
  0x9b   : > { %766 = vmatmul.bf16.gmra.mxu0 %v1926_v36  ;;  %846 = vmatmul.bf16.gmra.mxu1 %v1942_v37 }
  0x9c   : > { %926 = vmatmul.bf16.gmra.mxu2 %v1958_v38  ;;  %1006 = vmatmul.bf16.gmra.mxu3 %v1974_v39 }
  0xa8   : > { %v732_v42 = vpop.f32.mrf.mxu0  ;;  %v812_v43 = vpop.f32.mrf.mxu1 }
  0xa9   : > { %vm1052_vm0 = vcmp.ge.f32.partialorder %v732_v42, 0.0  ;;  %v1180_v46 = vmul.f32 0.2, %v732_v42  ;;  %vm1084_vm1 = vcmp.ge.f32.partialorder %v812_v43, 0.0  ;;  %v1212_v47 = vmul.f32 0.2, %v812_v43 }
  0xab   : > { %v1308_v48 = vsel %vm1052_vm0, %v732_v42, %v1180_v46  ;;  %v1340_v49 = vsel %vm1084_vm1, %v812_v43, %v1212_v47  ;;  %771 = vmatmul.bf16.gmra.mxu0 %v1927_v40  ;;  %851 = vmatmul.bf16.gmra.mxu1 %v1943_v41 }
  0xac   : > { %1436 = vst [vmem:[%s2126_s7] sm:$0xff] %v1308_v48  ;;  %931 = vmatmul.bf16.gmra.mxu2 %v1959_v44  ;;  %1011 = vmatmul.bf16.gmra.mxu3 %v1975_v45 }
  0xad   : > { %1468 = vst [vmem:[%s2126_s7 + $0x100] sm:$0xff] %v1340_v49 }
  0xaf   : > { %v892_v50 = vpop.f32.mrf.mxu2  ;;  %v972_v51 = vpop.f32.mrf.mxu3 }
  0xb0   : > { %vm1116_vm2 = vcmp.ge.f32.partialorder %v892_v50, 0.0  ;;  %v1244_v52 = vmul.f32 0.2, %v892_v50  ;;  %vm1148_vm3 = vcmp.ge.f32.partialorder %v972_v51, 0.0  ;;  %v1276_v53 = vmul.f32 0.2, %v972_v51  ;;  %v734_v54 = vpop.f32.mrf.mxu0  ;;  %v814_v55 = vpop.f32.mrf.mxu1 }
  0xb1   : > { %vm1053_vm4 = vcmp.ge.f32.partialorder %v734_v54, 0.0  ;;  %v1181_v56 = vmul.f32 0.2, %v734_v54  ;;  %vm1085_vm5 = vcmp.ge.f32.partialorder %v814_v55, 0.0  ;;  %v1213_v57 = vmul.f32 0.2, %v814_v55 }
  0xb2   : > { %v1372_v58 = vsel %vm1116_vm2, %v892_v50, %v1244_v52  ;;  %v1404_v59 = vsel %vm1148_vm3, %v972_v51, %v1276_v53 }
  0xb3   : > { %1500 = vst [vmem:[%s2126_s7 + $0x200] sm:$0xff] %v1372_v58  ;;  %v1309_v60 = vsel %vm1053_vm4, %v734_v54, %v1181_v56  ;;  %v1341_v61 = vsel %vm1085_vm5, %v814_v55, %v1213_v57  ;;  %v1930_v54 = vld [vmem:[%s2084_s3 + $0x58] sm:$0xff] }
  0xb4   : > { %1532 = vst [vmem:[%s2126_s7 + $0x300] sm:$0xff] %v1404_v59  ;;  %v1946_v57 = vld [vmem:[%s2084_s3 + $0xd8] sm:$0xff] }
  0xb5   : > { %1437 = vst [vmem:[%s2126_s7 + $0x8] sm:$0xff] %v1309_v60  ;;  %v1962_v58 = vld [vmem:[%s2084_s3 + $0x158] sm:$0xff] }
  0xb6   : > { %1469 = vst [vmem:[%s2126_s7 + $0x108] sm:$0xff] %v1341_v61  ;;  %v1978_v59 = vld [vmem:[%s2084_s3 + $0x1d8] sm:$0xff] }
  0xb7   : > { %v894_v63 = vpop.f32.mrf.mxu2  ;;  %v974_v0 = vpop.f32.mrf.mxu3 }
  0xb8   : > { %vm1117_vm6 = vcmp.ge.f32.partialorder %v894_v63, 0.0  ;;  %v1245_v4 = vmul.f32 0.2, %v894_v63  ;;  %vm1149_vm7 = vcmp.ge.f32.partialorder %v974_v0, 0.0  ;;  %v1277_v5 = vmul.f32 0.2, %v974_v0  ;;  %v737_v6 = vpop.f32.mrf.mxu0  ;;  %v817_v7 = vpop.f32.mrf.mxu1 }
  0xb9   : > { %vm1054_vm8 = vcmp.ge.f32.partialorder %v737_v6, 0.0  ;;  %v1182_v8 = vmul.f32 0.2, %v737_v6  ;;  %vm1086_vm9 = vcmp.ge.f32.partialorder %v817_v7, 0.0  ;;  %v1214_v9 = vmul.f32 0.2, %v817_v7 }
  0xba   : > { %v1373_v10 = vsel %vm1117_vm6, %v894_v63, %v1245_v4  ;;  %v1405_v11 = vsel %vm1149_vm7, %v974_v0, %v1277_v5 }
  0xbb   : > { %1501 = vst [vmem:[%s2126_s7 + $0x208] sm:$0xff] %v1373_v10  ;;  %v1310_v12 = vsel %vm1054_vm8, %v737_v6, %v1182_v8  ;;  %v1342_v13 = vsel %vm1086_vm9, %v817_v7, %v1214_v9  ;;  %776 = vmatmul.bf16.gmra.mxu0 %v1928_v62  ;;  %856 = vmatmul.bf16.gmra.mxu1 %v1944_v1 }
  0xbc   : > { %1533 = vst [vmem:[%s2126_s7 + $0x308] sm:$0xff] %v1405_v11  ;;  %936 = vmatmul.bf16.gmra.mxu2 %v1960_v2  ;;  %1016 = vmatmul.bf16.gmra.mxu3 %v1976_v3 }
  0xbd   : > { %1438 = vst [vmem:[%s2126_s7 + $0x10] sm:$0xff] %v1310_v12 }
  0xbe   : > { %1470 = vst [vmem:[%s2126_s7 + $0x110] sm:$0xff] %v1342_v13 }
  0xbf   : > { %v897_v14 = vpop.f32.mrf.mxu2  ;;  %v977_v15 = vpop.f32.mrf.mxu3 }
  0xc0   : > { %vm1118_vm10 = vcmp.ge.f32.partialorder %v897_v14, 0.0  ;;  %v1246_v16 = vmul.f32 0.2, %v897_v14  ;;  %vm1150_vm11 = vcmp.ge.f32.partialorder %v977_v15, 0.0  ;;  %v1278_v17 = vmul.f32 0.2, %v977_v15  ;;  %v739_v18 = vpop.f32.mrf.mxu0  ;;  %v819_v19 = vpop.f32.mrf.mxu1 }
  0xc1   : > { %vm1055_vm12 = vcmp.ge.f32.partialorder %v739_v18, 0.0  ;;  %v1183_v20 = vmul.f32 0.2, %v739_v18  ;;  %vm1087_vm13 = vcmp.ge.f32.partialorder %v819_v19, 0.0  ;;  %v1215_v21 = vmul.f32 0.2, %v819_v19 }
  0xc2   : > { %v1374_v22 = vsel %vm1118_vm10, %v897_v14, %v1246_v16  ;;  %v1406_v23 = vsel %vm1150_vm11, %v977_v15, %v1278_v17 }
  0xc3   : > { %1502 = vst [vmem:[%s2126_s7 + $0x210] sm:$0xff] %v1374_v22  ;;  %v1311_v24 = vsel %vm1055_vm12, %v739_v18, %v1183_v20  ;;  %v1343_v25 = vsel %vm1087_vm13, %v819_v19, %v1215_v21  ;;  %v1931_v18 = vld [vmem:[%s2084_s3 + $0x60] sm:$0xff] }
  0xc4   : > { %1534 = vst [vmem:[%s2126_s7 + $0x310] sm:$0xff] %v1406_v23  ;;  %v1947_v21 = vld [vmem:[%s2084_s3 + $0xe0] sm:$0xff] }
  0xc5   : > { %1439 = vst [vmem:[%s2126_s7 + $0x18] sm:$0xff] %v1311_v24  ;;  %v1963_v22 = vld [vmem:[%s2084_s3 + $0x160] sm:$0xff] }
  0xc6   : > { %1471 = vst [vmem:[%s2126_s7 + $0x118] sm:$0xff] %v1343_v25  ;;  %v1979_v23 = vld [vmem:[%s2084_s3 + $0x1e0] sm:$0xff] }
  0xc7   : > { %v899_v27 = vpop.f32.mrf.mxu2  ;;  %v979_v28 = vpop.f32.mrf.mxu3 }
  0xc8   : > { %vm1119_vm14 = vcmp.ge.f32.partialorder %v899_v27, 0.0  ;;  %v1247_v32 = vmul.f32 0.2, %v899_v27  ;;  %vm1151_vm15 = vcmp.ge.f32.partialorder %v979_v28, 0.0  ;;  %v1279_v33 = vmul.f32 0.2, %v979_v28  ;;  %v742_v34 = vpop.f32.mrf.mxu0  ;;  %v822_v35 = vpop.f32.mrf.mxu1 }
  0xc9   : > { %vm1056_vm0 = vcmp.ge.f32.partialorder %v742_v34, 0.0  ;;  %v1184_v36 = vmul.f32 0.2, %v742_v34  ;;  %vm1088_vm1 = vcmp.ge.f32.partialorder %v822_v35, 0.0  ;;  %v1216_v37 = vmul.f32 0.2, %v822_v35 }
  0xca   : > { %v1375_v38 = vsel %vm1119_vm14, %v899_v27, %v1247_v32  ;;  %v1407_v39 = vsel %vm1151_vm15, %v979_v28, %v1279_v33 }
  0xcb   : > { %1503 = vst [vmem:[%s2126_s7 + $0x218] sm:$0xff] %v1375_v38  ;;  %v1312_v40 = vsel %vm1056_vm0, %v742_v34, %v1184_v36  ;;  %v1344_v41 = vsel %vm1088_vm1, %v822_v35, %v1216_v37  ;;  %781 = vmatmul.bf16.gmra.mxu0 %v1929_v26  ;;  %861 = vmatmul.bf16.gmra.mxu1 %v1945_v29 }
  0xcc   : > { %1535 = vst [vmem:[%s2126_s7 + $0x318] sm:$0xff] %v1407_v39  ;;  %941 = vmatmul.bf16.gmra.mxu2 %v1961_v30  ;;  %1021 = vmatmul.bf16.gmra.mxu3 %v1977_v31 }
  0xcd   : > { %1440 = vst [vmem:[%s2126_s7 + $0x20] sm:$0xff] %v1312_v40 }
  0xce   : > { %1472 = vst [vmem:[%s2126_s7 + $0x120] sm:$0xff] %v1344_v41 }
  0xcf   : > { %v902_v42 = vpop.f32.mrf.mxu2  ;;  %v982_v43 = vpop.f32.mrf.mxu3 }
  0xd0   : > { %vm1120_vm2 = vcmp.ge.f32.partialorder %v902_v42, 0.0  ;;  %v1248_v44 = vmul.f32 0.2, %v902_v42  ;;  %vm1152_vm3 = vcmp.ge.f32.partialorder %v982_v43, 0.0  ;;  %v1280_v45 = vmul.f32 0.2, %v982_v43  ;;  %v744_v46 = vpop.f32.mrf.mxu0  ;;  %v824_v47 = vpop.f32.mrf.mxu1 }
  0xd1   : > { %vm1057_vm4 = vcmp.ge.f32.partialorder %v744_v46, 0.0  ;;  %v1185_v48 = vmul.f32 0.2, %v744_v46  ;;  %vm1089_vm5 = vcmp.ge.f32.partialorder %v824_v47, 0.0  ;;  %v1217_v49 = vmul.f32 0.2, %v824_v47 }
  0xd2   : > { %v1376_v50 = vsel %vm1120_vm2, %v902_v42, %v1248_v44  ;;  %v1408_v51 = vsel %vm1152_vm3, %v982_v43, %v1280_v45 }
  0xd3   : > { %1504 = vst [vmem:[%s2126_s7 + $0x220] sm:$0xff] %v1376_v50  ;;  %v1313_v52 = vsel %vm1057_vm4, %v744_v46, %v1185_v48  ;;  %v1345_v53 = vsel %vm1089_vm5, %v824_v47, %v1217_v49  ;;  %v1932_v46 = vld [vmem:[%s2084_s3 + $0x68] sm:$0xff] }
  0xd4   : > { %1536 = vst [vmem:[%s2126_s7 + $0x320] sm:$0xff] %v1408_v51  ;;  %v1948_v49 = vld [vmem:[%s2084_s3 + $0xe8] sm:$0xff] }
  0xd5   : > { %1441 = vst [vmem:[%s2126_s7 + $0x28] sm:$0xff] %v1313_v52  ;;  %v1964_v50 = vld [vmem:[%s2084_s3 + $0x168] sm:$0xff] }
  0xd6   : > { %1473 = vst [vmem:[%s2126_s7 + $0x128] sm:$0xff] %v1345_v53  ;;  %v1980_v51 = vld [vmem:[%s2084_s3 + $0x1e8] sm:$0xff] }
  0xd7   : > { %v904_v55 = vpop.f32.mrf.mxu2  ;;  %v984_v56 = vpop.f32.mrf.mxu3 }
  0xd8   : > { %vm1121_vm6 = vcmp.ge.f32.partialorder %v904_v55, 0.0  ;;  %v1249_v60 = vmul.f32 0.2, %v904_v55  ;;  %vm1153_vm7 = vcmp.ge.f32.partialorder %v984_v56, 0.0  ;;  %v1281_v61 = vmul.f32 0.2, %v984_v56  ;;  %v747_v62 = vpop.f32.mrf.mxu0  ;;  %v827_v63 = vpop.f32.mrf.mxu1 }
  0xd9   : > { %vm1058_vm8 = vcmp.ge.f32.partialorder %v747_v62, 0.0  ;;  %v1186_v0 = vmul.f32 0.2, %v747_v62  ;;  %vm1090_vm9 = vcmp.ge.f32.partialorder %v827_v63, 0.0  ;;  %v1218_v1 = vmul.f32 0.2, %v827_v63 }
  0xda   : > { %v1377_v2 = vsel %vm1121_vm6, %v904_v55, %v1249_v60  ;;  %v1409_v3 = vsel %vm1153_vm7, %v984_v56, %v1281_v61 }
  0xdb   : > { %1505 = vst [vmem:[%s2126_s7 + $0x228] sm:$0xff] %v1377_v2  ;;  %v1314_v4 = vsel %vm1058_vm8, %v747_v62, %v1186_v0  ;;  %v1346_v5 = vsel %vm1090_vm9, %v827_v63, %v1218_v1  ;;  %786 = vmatmul.bf16.gmra.mxu0 %v1930_v54  ;;  %866 = vmatmul.bf16.gmra.mxu1 %v1946_v57 }
  0xdc   : > { %1537 = vst [vmem:[%s2126_s7 + $0x328] sm:$0xff] %v1409_v3  ;;  %946 = vmatmul.bf16.gmra.mxu2 %v1962_v58  ;;  %1026 = vmatmul.bf16.gmra.mxu3 %v1978_v59 }
  0xdd   : > { %1442 = vst [vmem:[%s2126_s7 + $0x30] sm:$0xff] %v1314_v4 }
  0xde   : > { %1474 = vst [vmem:[%s2126_s7 + $0x130] sm:$0xff] %v1346_v5 }
  0xdf   : > { %v907_v6 = vpop.f32.mrf.mxu2  ;;  %v987_v7 = vpop.f32.mrf.mxu3 }
  0xe0   : > { %vm1122_vm10 = vcmp.ge.f32.partialorder %v907_v6, 0.0  ;;  %v1250_v8 = vmul.f32 0.2, %v907_v6  ;;  %vm1154_vm11 = vcmp.ge.f32.partialorder %v987_v7, 0.0  ;;  %v1282_v9 = vmul.f32 0.2, %v987_v7  ;;  %v749_v10 = vpop.f32.mrf.mxu0  ;;  %v829_v11 = vpop.f32.mrf.mxu1 }
  0xe1   : > { %vm1059_vm12 = vcmp.ge.f32.partialorder %v749_v10, 0.0  ;;  %v1187_v12 = vmul.f32 0.2, %v749_v10  ;;  %vm1091_vm13 = vcmp.ge.f32.partialorder %v829_v11, 0.0  ;;  %v1219_v13 = vmul.f32 0.2, %v829_v11 }
  0xe2   : > { %v1378_v14 = vsel %vm1122_vm10, %v907_v6, %v1250_v8  ;;  %v1410_v15 = vsel %vm1154_vm11, %v987_v7, %v1282_v9 }
  0xe3   : > { %1506 = vst [vmem:[%s2126_s7 + $0x230] sm:$0xff] %v1378_v14  ;;  %v1315_v16 = vsel %vm1059_vm12, %v749_v10, %v1187_v12  ;;  %v1347_v17 = vsel %vm1091_vm13, %v829_v11, %v1219_v13  ;;  %v1933_v10 = vld [vmem:[%s2084_s3 + $0x70] sm:$0xff] }
  0xe4   : > { %1538 = vst [vmem:[%s2126_s7 + $0x330] sm:$0xff] %v1410_v15  ;;  %v1949_v13 = vld [vmem:[%s2084_s3 + $0xf0] sm:$0xff] }
  0xe5   : > { %1443 = vst [vmem:[%s2126_s7 + $0x38] sm:$0xff] %v1315_v16  ;;  %v1965_v14 = vld [vmem:[%s2084_s3 + $0x170] sm:$0xff] }
  0xe6   : > { %1475 = vst [vmem:[%s2126_s7 + $0x138] sm:$0xff] %v1347_v17  ;;  %v1981_v15 = vld [vmem:[%s2084_s3 + $0x1f0] sm:$0xff] }
  0xe7   : > { %v909_v19 = vpop.f32.mrf.mxu2  ;;  %v989_v20 = vpop.f32.mrf.mxu3 }
  0xe8   : > { %vm1123_vm14 = vcmp.ge.f32.partialorder %v909_v19, 0.0  ;;  %v1251_v24 = vmul.f32 0.2, %v909_v19  ;;  %vm1155_vm15 = vcmp.ge.f32.partialorder %v989_v20, 0.0  ;;  %v1283_v25 = vmul.f32 0.2, %v989_v20  ;;  %v752_v26 = vpop.f32.mrf.mxu0  ;;  %v832_v27 = vpop.f32.mrf.mxu1 }
  0xe9   : > { %vm1060_vm0 = vcmp.ge.f32.partialorder %v752_v26, 0.0  ;;  %v1188_v28 = vmul.f32 0.2, %v752_v26  ;;  %vm1092_vm1 = vcmp.ge.f32.partialorder %v832_v27, 0.0  ;;  %v1220_v29 = vmul.f32 0.2, %v832_v27 }
  0xea   : > { %v1379_v30 = vsel %vm1123_vm14, %v909_v19, %v1251_v24  ;;  %v1411_v31 = vsel %vm1155_vm15, %v989_v20, %v1283_v25 }
  0xeb   : > { %1507 = vst [vmem:[%s2126_s7 + $0x238] sm:$0xff] %v1379_v30  ;;  %v1316_v32 = vsel %vm1060_vm0, %v752_v26, %v1188_v28  ;;  %v1348_v33 = vsel %vm1092_vm1, %v832_v27, %v1220_v29  ;;  %791 = vmatmul.bf16.gmra.mxu0 %v1931_v18  ;;  %871 = vmatmul.bf16.gmra.mxu1 %v1947_v21 }
  0xec   : > { %1539 = vst [vmem:[%s2126_s7 + $0x338] sm:$0xff] %v1411_v31  ;;  %951 = vmatmul.bf16.gmra.mxu2 %v1963_v22  ;;  %1031 = vmatmul.bf16.gmra.mxu3 %v1979_v23 }
  0xed   : > { %1444 = vst [vmem:[%s2126_s7 + $0x40] sm:$0xff] %v1316_v32 }
  0xee   : > { %1476 = vst [vmem:[%s2126_s7 + $0x140] sm:$0xff] %v1348_v33 }
  0xef   : > { %v912_v34 = vpop.f32.mrf.mxu2  ;;  %v992_v35 = vpop.f32.mrf.mxu3 }
  0xf0   : > { %vm1124_vm2 = vcmp.ge.f32.partialorder %v912_v34, 0.0  ;;  %v1252_v36 = vmul.f32 0.2, %v912_v34  ;;  %vm1156_vm3 = vcmp.ge.f32.partialorder %v992_v35, 0.0  ;;  %v1284_v37 = vmul.f32 0.2, %v992_v35  ;;  %v754_v38 = vpop.f32.mrf.mxu0  ;;  %v834_v39 = vpop.f32.mrf.mxu1 }
  0xf1   : > { %vm1061_vm4 = vcmp.ge.f32.partialorder %v754_v38, 0.0  ;;  %v1189_v40 = vmul.f32 0.2, %v754_v38  ;;  %vm1093_vm5 = vcmp.ge.f32.partialorder %v834_v39, 0.0  ;;  %v1221_v41 = vmul.f32 0.2, %v834_v39 }
  0xf2   : > { %v1380_v42 = vsel %vm1124_vm2, %v912_v34, %v1252_v36  ;;  %v1412_v43 = vsel %vm1156_vm3, %v992_v35, %v1284_v37 }
  0xf3   : > { %1508 = vst [vmem:[%s2126_s7 + $0x240] sm:$0xff] %v1380_v42  ;;  %v1317_v44 = vsel %vm1061_vm4, %v754_v38, %v1189_v40  ;;  %v1349_v45 = vsel %vm1093_vm5, %v834_v39, %v1221_v41  ;;  %v1934_v38 = vld [vmem:[%s2084_s3 + $0x78] sm:$0xff] }
  0xf4   : > { %1540 = vst [vmem:[%s2126_s7 + $0x340] sm:$0xff] %v1412_v43  ;;  %v1950_v41 = vld [vmem:[%s2084_s3 + $0xf8] sm:$0xff] }
  0xf5   : > { %1445 = vst [vmem:[%s2126_s7 + $0x48] sm:$0xff] %v1317_v44  ;;  %v1966_v42 = vld [vmem:[%s2084_s3 + $0x178] sm:$0xff] }
  0xf6   : > { %1477 = vst [vmem:[%s2126_s7 + $0x148] sm:$0xff] %v1349_v45  ;;  %v1982_v43 = vld [vmem:[%s2084_s3 + $0x1f8] sm:$0xff] }
  0xf7   : > { %v914_v47 = vpop.f32.mrf.mxu2  ;;  %v994_v48 = vpop.f32.mrf.mxu3 }
  0xf8   : > { %vm1125_vm6 = vcmp.ge.f32.partialorder %v914_v47, 0.0  ;;  %v1253_v52 = vmul.f32 0.2, %v914_v47  ;;  %vm1157_vm7 = vcmp.ge.f32.partialorder %v994_v48, 0.0  ;;  %v1285_v53 = vmul.f32 0.2, %v994_v48  ;;  %v757_v54 = vpop.f32.mrf.mxu0  ;;  %v837_v55 = vpop.f32.mrf.mxu1 }
  0xf9   : > { %vm1062_vm8 = vcmp.ge.f32.partialorder %v757_v54, 0.0  ;;  %v1190_v56 = vmul.f32 0.2, %v757_v54  ;;  %vm1094_vm9 = vcmp.ge.f32.partialorder %v837_v55, 0.0  ;;  %v1222_v57 = vmul.f32 0.2, %v837_v55 }
  0xfa   : > { %v1381_v58 = vsel %vm1125_vm6, %v914_v47, %v1253_v52  ;;  %v1413_v59 = vsel %vm1157_vm7, %v994_v48, %v1285_v53 }
  0xfb   : > { %1509 = vst [vmem:[%s2126_s7 + $0x248] sm:$0xff] %v1381_v58  ;;  %v1318_v60 = vsel %vm1062_vm8, %v757_v54, %v1190_v56  ;;  %v1350_v61 = vsel %vm1094_vm9, %v837_v55, %v1222_v57  ;;  %796 = vmatmul.bf16.gmra.mxu0 %v1932_v46  ;;  %876 = vmatmul.bf16.gmra.mxu1 %v1948_v49 }
  0xfc   : > { %1541 = vst [vmem:[%s2126_s7 + $0x348] sm:$0xff] %v1413_v59  ;;  %956 = vmatmul.bf16.gmra.mxu2 %v1964_v50  ;;  %1036 = vmatmul.bf16.gmra.mxu3 %v1980_v51 }
  0xfd   : > { %1446 = vst [vmem:[%s2126_s7 + $0x50] sm:$0xff] %v1318_v60 }
  0xfe   : > { %1478 = vst [vmem:[%s2126_s7 + $0x150] sm:$0xff] %v1350_v61 }
  0xff   : > { %v917_v62 = vpop.f32.mrf.mxu2  ;;  %v997_v63 = vpop.f32.mrf.mxu3 }
 0x100   : > { %vm1126_vm10 = vcmp.ge.f32.partialorder %v917_v62, 0.0  ;;  %v1254_v0 = vmul.f32 0.2, %v917_v62  ;;  %vm1158_vm11 = vcmp.ge.f32.partialorder %v997_v63, 0.0  ;;  %v1286_v1 = vmul.f32 0.2, %v997_v63  ;;  %v759_v2 = vpop.f32.mrf.mxu0  ;;  %v839_v3 = vpop.f32.mrf.mxu1 }
 0x101   : > { %vm1063_vm12 = vcmp.ge.f32.partialorder %v759_v2, 0.0  ;;  %v1191_v4 = vmul.f32 0.2, %v759_v2  ;;  %vm1095_vm13 = vcmp.ge.f32.partialorder %v839_v3, 0.0  ;;  %v1223_v5 = vmul.f32 0.2, %v839_v3 }
 0x102   : > { %v1382_v6 = vsel %vm1126_vm10, %v917_v62, %v1254_v0  ;;  %v1414_v7 = vsel %vm1158_vm11, %v997_v63, %v1286_v1 }
 0x103   : > { %1510 = vst [vmem:[%s2126_s7 + $0x250] sm:$0xff] %v1382_v6  ;;  %v1319_v8 = vsel %vm1063_vm12, %v759_v2, %v1191_v4  ;;  %v1351_v9 = vsel %vm1095_vm13, %v839_v3, %v1223_v5 }
 0x104   : > { %1542 = vst [vmem:[%s2126_s7 + $0x350] sm:$0xff] %v1414_v7 }
 0x105   : > { %1447 = vst [vmem:[%s2126_s7 + $0x58] sm:$0xff] %v1319_v8 }
 0x106   : > { %1479 = vst [vmem:[%s2126_s7 + $0x158] sm:$0xff] %v1351_v9 }
 0x107   : > { %v919_v11 = vpop.f32.mrf.mxu2  ;;  %v999_v12 = vpop.f32.mrf.mxu3 }
 0x108   : > { %vm1127_vm14 = vcmp.ge.f32.partialorder %v919_v11, 0.0  ;;  %v1255_v16 = vmul.f32 0.2, %v919_v11  ;;  %vm1159_vm15 = vcmp.ge.f32.partialorder %v999_v12, 0.0  ;;  %v1287_v17 = vmul.f32 0.2, %v999_v12  ;;  %v762_v18 = vpop.f32.mrf.mxu0  ;;  %v842_v19 = vpop.f32.mrf.mxu1 }
 0x109   : > { %vm1064_vm0 = vcmp.ge.f32.partialorder %v762_v18, 0.0  ;;  %v1192_v20 = vmul.f32 0.2, %v762_v18  ;;  %vm1096_vm1 = vcmp.ge.f32.partialorder %v842_v19, 0.0  ;;  %v1224_v21 = vmul.f32 0.2, %v842_v19 }
 0x10a   : > { %v1383_v22 = vsel %vm1127_vm14, %v919_v11, %v1255_v16  ;;  %v1415_v23 = vsel %vm1159_vm15, %v999_v12, %v1287_v17 }
 0x10b   : > { %1511 = vst [vmem:[%s2126_s7 + $0x258] sm:$0xff] %v1383_v22  ;;  %v1320_v24 = vsel %vm1064_vm0, %v762_v18, %v1192_v20  ;;  %v1352_v25 = vsel %vm1096_vm1, %v842_v19, %v1224_v21  ;;  %801 = vmatmul.bf16.gmra.mxu0 %v1933_v10  ;;  %881 = vmatmul.bf16.gmra.mxu1 %v1949_v13 }
 0x10c   : > { %1543 = vst [vmem:[%s2126_s7 + $0x358] sm:$0xff] %v1415_v23  ;;  %961 = vmatmul.bf16.gmra.mxu2 %v1965_v14  ;;  %1041 = vmatmul.bf16.gmra.mxu3 %v1981_v15 }
 0x10d   : > { %1448 = vst [vmem:[%s2126_s7 + $0x60] sm:$0xff] %v1320_v24 }
 0x10e   : > { %1480 = vst [vmem:[%s2126_s7 + $0x160] sm:$0xff] %v1352_v25 }
 0x10f   : > { %v922_v26 = vpop.f32.mrf.mxu2  ;;  %v1002_v27 = vpop.f32.mrf.mxu3 }
 0x110   : > { %vm1128_vm2 = vcmp.ge.f32.partialorder %v922_v26, 0.0  ;;  %v1256_v28 = vmul.f32 0.2, %v922_v26  ;;  %vm1160_vm3 = vcmp.ge.f32.partialorder %v1002_v27, 0.0  ;;  %v1288_v29 = vmul.f32 0.2, %v1002_v27  ;;  %v764_v30 = vpop.f32.mrf.mxu0  ;;  %v844_v31 = vpop.f32.mrf.mxu1 }
 0x111   : > { %vm1065_vm4 = vcmp.ge.f32.partialorder %v764_v30, 0.0  ;;  %v1193_v32 = vmul.f32 0.2, %v764_v30  ;;  %vm1097_vm5 = vcmp.ge.f32.partialorder %v844_v31, 0.0  ;;  %v1225_v33 = vmul.f32 0.2, %v844_v31 }
 0x112   : > { %v1384_v34 = vsel %vm1128_vm2, %v922_v26, %v1256_v28  ;;  %v1416_v35 = vsel %vm1160_vm3, %v1002_v27, %v1288_v29 }
 0x113   : > { %1512 = vst [vmem:[%s2126_s7 + $0x260] sm:$0xff] %v1384_v34  ;;  %v1321_v36 = vsel %vm1065_vm4, %v764_v30, %v1193_v32  ;;  %v1353_v37 = vsel %vm1097_vm5, %v844_v31, %v1225_v33 }
 0x114   : > { %1544 = vst [vmem:[%s2126_s7 + $0x360] sm:$0xff] %v1416_v35 }
 0x115   : > { %1449 = vst [vmem:[%s2126_s7 + $0x68] sm:$0xff] %v1321_v36 }
 0x116   : > { %1481 = vst [vmem:[%s2126_s7 + $0x168] sm:$0xff] %v1353_v37 }
 0x117   : > { %v924_v39 = vpop.f32.mrf.mxu2  ;;  %v1004_v40 = vpop.f32.mrf.mxu3 }
 0x118   : > { %vm1129_vm6 = vcmp.ge.f32.partialorder %v924_v39, 0.0  ;;  %v1257_v44 = vmul.f32 0.2, %v924_v39  ;;  %vm1161_vm7 = vcmp.ge.f32.partialorder %v1004_v40, 0.0  ;;  %v1289_v45 = vmul.f32 0.2, %v1004_v40  ;;  %v767_v46 = vpop.f32.mrf.mxu0  ;;  %v847_v47 = vpop.f32.mrf.mxu1 }
 0x119   : > { %vm1066_vm8 = vcmp.ge.f32.partialorder %v767_v46, 0.0  ;;  %v1194_v48 = vmul.f32 0.2, %v767_v46  ;;  %vm1098_vm9 = vcmp.ge.f32.partialorder %v847_v47, 0.0  ;;  %v1226_v49 = vmul.f32 0.2, %v847_v47 }
 0x11a   : > { %v1385_v50 = vsel %vm1129_vm6, %v924_v39, %v1257_v44  ;;  %v1417_v51 = vsel %vm1161_vm7, %v1004_v40, %v1289_v45 }
 0x11b   : > { %1513 = vst [vmem:[%s2126_s7 + $0x268] sm:$0xff] %v1385_v50  ;;  %v1322_v52 = vsel %vm1066_vm8, %v767_v46, %v1194_v48  ;;  %v1354_v53 = vsel %vm1098_vm9, %v847_v47, %v1226_v49  ;;  %806 = vmatmul.bf16.gmra.mxu0 %v1934_v38  ;;  %886 = vmatmul.bf16.gmra.mxu1 %v1950_v41 }
 0x11c   : > { %1545 = vst [vmem:[%s2126_s7 + $0x368] sm:$0xff] %v1417_v51  ;;  %966 = vmatmul.bf16.gmra.mxu2 %v1966_v42  ;;  %1046 = vmatmul.bf16.gmra.mxu3 %v1982_v43 }
 0x11d   : > { %1450 = vst [vmem:[%s2126_s7 + $0x70] sm:$0xff] %v1322_v52 }
 0x11e   : > { %1482 = vst [vmem:[%s2126_s7 + $0x170] sm:$0xff] %v1354_v53 }
 0x11f   : > { %v927_v54 = vpop.f32.mrf.mxu2  ;;  %v1007_v55 = vpop.f32.mrf.mxu3 }
 0x120   : > { %vm1130_vm10 = vcmp.ge.f32.partialorder %v927_v54, 0.0  ;;  %v1258_v56 = vmul.f32 0.2, %v927_v54  ;;  %vm1162_vm11 = vcmp.ge.f32.partialorder %v1007_v55, 0.0  ;;  %v1290_v57 = vmul.f32 0.2, %v1007_v55  ;;  %v769_v58 = vpop.f32.mrf.mxu0  ;;  %v849_v59 = vpop.f32.mrf.mxu1 }
 0x121   : > { %vm1067_vm12 = vcmp.ge.f32.partialorder %v769_v58, 0.0  ;;  %v1195_v60 = vmul.f32 0.2, %v769_v58  ;;  %vm1099_vm13 = vcmp.ge.f32.partialorder %v849_v59, 0.0  ;;  %v1227_v61 = vmul.f32 0.2, %v849_v59 }
 0x122   : > { %v1386_v62 = vsel %vm1130_vm10, %v927_v54, %v1258_v56  ;;  %v1418_v63 = vsel %vm1162_vm11, %v1007_v55, %v1290_v57 }
 0x123   : > { %1514 = vst [vmem:[%s2126_s7 + $0x270] sm:$0xff] %v1386_v62  ;;  %v1323_v0 = vsel %vm1067_vm12, %v769_v58, %v1195_v60  ;;  %v1355_v1 = vsel %vm1099_vm13, %v849_v59, %v1227_v61 }
 0x124   : > { %1546 = vst [vmem:[%s2126_s7 + $0x370] sm:$0xff] %v1418_v63 }
 0x125   : > { %1451 = vst [vmem:[%s2126_s7 + $0x78] sm:$0xff] %v1323_v0 }
 0x126   : > { %1483 = vst [vmem:[%s2126_s7 + $0x178] sm:$0xff] %v1355_v1 }
 0x127   : > { %v929_v2 = vpop.f32.mrf.mxu2  ;;  %v1009_v3 = vpop.f32.mrf.mxu3 }
 0x128   : > { %vm1131_vm14 = vcmp.ge.f32.partialorder %v929_v2, 0.0  ;;  %v1259_v4 = vmul.f32 0.2, %v929_v2  ;;  %vm1163_vm15 = vcmp.ge.f32.partialorder %v1009_v3, 0.0  ;;  %v1291_v5 = vmul.f32 0.2, %v1009_v3  ;;  %v772_v6 = vpop.f32.mrf.mxu0  ;;  %v852_v7 = vpop.f32.mrf.mxu1 }
 0x129   : > { %vm1068_vm0 = vcmp.ge.f32.partialorder %v772_v6, 0.0  ;;  %v1196_v8 = vmul.f32 0.2, %v772_v6  ;;  %vm1100_vm1 = vcmp.ge.f32.partialorder %v852_v7, 0.0  ;;  %v1228_v9 = vmul.f32 0.2, %v852_v7 }
 0x12a   : > { %v1387_v10 = vsel %vm1131_vm14, %v929_v2, %v1259_v4  ;;  %v1419_v11 = vsel %vm1163_vm15, %v1009_v3, %v1291_v5 }
 0x12b   : > { %1515 = vst [vmem:[%s2126_s7 + $0x278] sm:$0xff] %v1387_v10  ;;  %v1324_v12 = vsel %vm1068_vm0, %v772_v6, %v1196_v8  ;;  %v1356_v13 = vsel %vm1100_vm1, %v852_v7, %v1228_v9 }
 0x12c   : > { %1547 = vst [vmem:[%s2126_s7 + $0x378] sm:$0xff] %v1419_v11 }
 0x12d   : > { %1452 = vst [vmem:[%s2126_s7 + $0x80] sm:$0xff] %v1324_v12 }
 0x12e   : > { %1484 = vst [vmem:[%s2126_s7 + $0x180] sm:$0xff] %v1356_v13 }
 0x12f   : > { %v932_v14 = vpop.f32.mrf.mxu2  ;;  %v1012_v15 = vpop.f32.mrf.mxu3 }
 0x130   : > { %vm1132_vm2 = vcmp.ge.f32.partialorder %v932_v14, 0.0  ;;  %v1260_v16 = vmul.f32 0.2, %v932_v14  ;;  %vm1164_vm3 = vcmp.ge.f32.partialorder %v1012_v15, 0.0  ;;  %v1292_v17 = vmul.f32 0.2, %v1012_v15  ;;  %v774_v18 = vpop.f32.mrf.mxu0  ;;  %v854_v19 = vpop.f32.mrf.mxu1 }
 0x131   : > { %vm1069_vm4 = vcmp.ge.f32.partialorder %v774_v18, 0.0  ;;  %v1197_v20 = vmul.f32 0.2, %v774_v18  ;;  %vm1101_vm5 = vcmp.ge.f32.partialorder %v854_v19, 0.0  ;;  %v1229_v21 = vmul.f32 0.2, %v854_v19 }
 0x132   : > { %v1388_v22 = vsel %vm1132_vm2, %v932_v14, %v1260_v16  ;;  %v1420_v23 = vsel %vm1164_vm3, %v1012_v15, %v1292_v17 }
 0x133   : > { %1516 = vst [vmem:[%s2126_s7 + $0x280] sm:$0xff] %v1388_v22  ;;  %v1325_v24 = vsel %vm1069_vm4, %v774_v18, %v1197_v20  ;;  %v1357_v25 = vsel %vm1101_vm5, %v854_v19, %v1229_v21 }
 0x134   : > { %1548 = vst [vmem:[%s2126_s7 + $0x380] sm:$0xff] %v1420_v23 }
 0x135   : > { %1453 = vst [vmem:[%s2126_s7 + $0x88] sm:$0xff] %v1325_v24 }
 0x136   : > { %1485 = vst [vmem:[%s2126_s7 + $0x188] sm:$0xff] %v1357_v25 }
 0x137   : > { %v934_v26 = vpop.f32.mrf.mxu2  ;;  %v1014_v27 = vpop.f32.mrf.mxu3 }
 0x138   : > { %vm1133_vm6 = vcmp.ge.f32.partialorder %v934_v26, 0.0  ;;  %v1261_v28 = vmul.f32 0.2, %v934_v26  ;;  %vm1165_vm7 = vcmp.ge.f32.partialorder %v1014_v27, 0.0  ;;  %v1293_v29 = vmul.f32 0.2, %v1014_v27  ;;  %v777_v30 = vpop.f32.mrf.mxu0  ;;  %v857_v31 = vpop.f32.mrf.mxu1 }
 0x139   : > { %vm1070_vm8 = vcmp.ge.f32.partialorder %v777_v30, 0.0  ;;  %v1198_v32 = vmul.f32 0.2, %v777_v30  ;;  %vm1102_vm9 = vcmp.ge.f32.partialorder %v857_v31, 0.0  ;;  %v1230_v33 = vmul.f32 0.2, %v857_v31 }
 0x13a   : > { %v1389_v34 = vsel %vm1133_vm6, %v934_v26, %v1261_v28  ;;  %v1421_v35 = vsel %vm1165_vm7, %v1014_v27, %v1293_v29 }
 0x13b   : > { %1517 = vst [vmem:[%s2126_s7 + $0x288] sm:$0xff] %v1389_v34  ;;  %v1326_v36 = vsel %vm1070_vm8, %v777_v30, %v1198_v32  ;;  %v1358_v37 = vsel %vm1102_vm9, %v857_v31, %v1230_v33 }
 0x13c   : > { %1549 = vst [vmem:[%s2126_s7 + $0x388] sm:$0xff] %v1421_v35 }
 0x13d   : > { %1454 = vst [vmem:[%s2126_s7 + $0x90] sm:$0xff] %v1326_v36 }
 0x13e   : > { %1486 = vst [vmem:[%s2126_s7 + $0x190] sm:$0xff] %v1358_v37 }
 0x13f   : > { %v937_v38 = vpop.f32.mrf.mxu2  ;;  %v1017_v39 = vpop.f32.mrf.mxu3 }
 0x140   : > { %vm1134_vm10 = vcmp.ge.f32.partialorder %v937_v38, 0.0  ;;  %v1262_v40 = vmul.f32 0.2, %v937_v38  ;;  %vm1166_vm11 = vcmp.ge.f32.partialorder %v1017_v39, 0.0  ;;  %v1294_v41 = vmul.f32 0.2, %v1017_v39  ;;  %v779_v42 = vpop.f32.mrf.mxu0  ;;  %v859_v43 = vpop.f32.mrf.mxu1 }
 0x141   : > { %vm1071_vm12 = vcmp.ge.f32.partialorder %v779_v42, 0.0  ;;  %v1199_v44 = vmul.f32 0.2, %v779_v42  ;;  %vm1103_vm13 = vcmp.ge.f32.partialorder %v859_v43, 0.0  ;;  %v1231_v45 = vmul.f32 0.2, %v859_v43 }
 0x142   : > { %v1390_v46 = vsel %vm1134_vm10, %v937_v38, %v1262_v40  ;;  %v1422_v47 = vsel %vm1166_vm11, %v1017_v39, %v1294_v41 }
 0x143   : > { %1518 = vst [vmem:[%s2126_s7 + $0x290] sm:$0xff] %v1390_v46  ;;  %v1327_v48 = vsel %vm1071_vm12, %v779_v42, %v1199_v44  ;;  %v1359_v49 = vsel %vm1103_vm13, %v859_v43, %v1231_v45 }
 0x144   : > { %1550 = vst [vmem:[%s2126_s7 + $0x390] sm:$0xff] %v1422_v47 }
 0x145   : > { %1455 = vst [vmem:[%s2126_s7 + $0x98] sm:$0xff] %v1327_v48 }
 0x146   : > { %1487 = vst [vmem:[%s2126_s7 + $0x198] sm:$0xff] %v1359_v49 }
 0x147   : > { %v939_v50 = vpop.f32.mrf.mxu2  ;;  %v1019_v51 = vpop.f32.mrf.mxu3 }
 0x148   : > { %vm1135_vm14 = vcmp.ge.f32.partialorder %v939_v50, 0.0  ;;  %v1263_v52 = vmul.f32 0.2, %v939_v50  ;;  %vm1167_vm15 = vcmp.ge.f32.partialorder %v1019_v51, 0.0  ;;  %v1295_v53 = vmul.f32 0.2, %v1019_v51  ;;  %v782_v54 = vpop.f32.mrf.mxu0  ;;  %v862_v55 = vpop.f32.mrf.mxu1 }
 0x149   : > { %vm1072_vm0 = vcmp.ge.f32.partialorder %v782_v54, 0.0  ;;  %v1200_v56 = vmul.f32 0.2, %v782_v54  ;;  %vm1104_vm1 = vcmp.ge.f32.partialorder %v862_v55, 0.0  ;;  %v1232_v57 = vmul.f32 0.2, %v862_v55 }
 0x14a   : > { %v1391_v58 = vsel %vm1135_vm14, %v939_v50, %v1263_v52  ;;  %v1423_v59 = vsel %vm1167_vm15, %v1019_v51, %v1295_v53 }
 0x14b   : > { %1519 = vst [vmem:[%s2126_s7 + $0x298] sm:$0xff] %v1391_v58  ;;  %v1328_v60 = vsel %vm1072_vm0, %v782_v54, %v1200_v56  ;;  %v1360_v61 = vsel %vm1104_vm1, %v862_v55, %v1232_v57 }
 0x14c   : > { %1551 = vst [vmem:[%s2126_s7 + $0x398] sm:$0xff] %v1423_v59 }
 0x14d   : > { %1456 = vst [vmem:[%s2126_s7 + $0xa0] sm:$0xff] %v1328_v60 }
 0x14e   : > { %1488 = vst [vmem:[%s2126_s7 + $0x1a0] sm:$0xff] %v1360_v61 }
 0x14f   : > { %v942_v62 = vpop.f32.mrf.mxu2  ;;  %v1022_v63 = vpop.f32.mrf.mxu3 }
 0x150   : > { %vm1136_vm2 = vcmp.ge.f32.partialorder %v942_v62, 0.0  ;;  %v1264_v0 = vmul.f32 0.2, %v942_v62  ;;  %vm1168_vm3 = vcmp.ge.f32.partialorder %v1022_v63, 0.0  ;;  %v1296_v1 = vmul.f32 0.2, %v1022_v63  ;;  %v784_v2 = vpop.f32.mrf.mxu0  ;;  %v864_v3 = vpop.f32.mrf.mxu1 }
 0x151   : > { %vm1073_vm4 = vcmp.ge.f32.partialorder %v784_v2, 0.0  ;;  %v1201_v4 = vmul.f32 0.2, %v784_v2  ;;  %vm1105_vm5 = vcmp.ge.f32.partialorder %v864_v3, 0.0  ;;  %v1233_v5 = vmul.f32 0.2, %v864_v3 }
 0x152   : > { %v1392_v6 = vsel %vm1136_vm2, %v942_v62, %v1264_v0  ;;  %v1424_v7 = vsel %vm1168_vm3, %v1022_v63, %v1296_v1 }
 0x153   : > { %1520 = vst [vmem:[%s2126_s7 + $0x2a0] sm:$0xff] %v1392_v6  ;;  %v1329_v8 = vsel %vm1073_vm4, %v784_v2, %v1201_v4  ;;  %v1361_v9 = vsel %vm1105_vm5, %v864_v3, %v1233_v5 }
 0x154   : > { %1552 = vst [vmem:[%s2126_s7 + $0x3a0] sm:$0xff] %v1424_v7 }
 0x155   : > { %1457 = vst [vmem:[%s2126_s7 + $0xa8] sm:$0xff] %v1329_v8 }
 0x156   : > { %1489 = vst [vmem:[%s2126_s7 + $0x1a8] sm:$0xff] %v1361_v9 }
 0x157   : > { %v944_v10 = vpop.f32.mrf.mxu2  ;;  %v1024_v11 = vpop.f32.mrf.mxu3 }
 0x158   : > { %vm1137_vm6 = vcmp.ge.f32.partialorder %v944_v10, 0.0  ;;  %v1265_v12 = vmul.f32 0.2, %v944_v10  ;;  %vm1169_vm7 = vcmp.ge.f32.partialorder %v1024_v11, 0.0  ;;  %v1297_v13 = vmul.f32 0.2, %v1024_v11  ;;  %v787_v14 = vpop.f32.mrf.mxu0  ;;  %v867_v15 = vpop.f32.mrf.mxu1 }
 0x159   : > { %vm1074_vm8 = vcmp.ge.f32.partialorder %v787_v14, 0.0  ;;  %v1202_v16 = vmul.f32 0.2, %v787_v14  ;;  %vm1106_vm9 = vcmp.ge.f32.partialorder %v867_v15, 0.0  ;;  %v1234_v17 = vmul.f32 0.2, %v867_v15 }
 0x15a   : > { %v1393_v18 = vsel %vm1137_vm6, %v944_v10, %v1265_v12  ;;  %v1425_v19 = vsel %vm1169_vm7, %v1024_v11, %v1297_v13 }
 0x15b   : > { %1521 = vst [vmem:[%s2126_s7 + $0x2a8] sm:$0xff] %v1393_v18  ;;  %v1330_v20 = vsel %vm1074_vm8, %v787_v14, %v1202_v16  ;;  %v1362_v21 = vsel %vm1106_vm9, %v867_v15, %v1234_v17 }
 0x15c   : > { %1553 = vst [vmem:[%s2126_s7 + $0x3a8] sm:$0xff] %v1425_v19 }
 0x15d   : > { %1458 = vst [vmem:[%s2126_s7 + $0xb0] sm:$0xff] %v1330_v20 }
 0x15e   : > { %1490 = vst [vmem:[%s2126_s7 + $0x1b0] sm:$0xff] %v1362_v21 }
 0x15f   : > { %v947_v22 = vpop.f32.mrf.mxu2  ;;  %v1027_v23 = vpop.f32.mrf.mxu3 }
 0x160   : > { %vm1138_vm10 = vcmp.ge.f32.partialorder %v947_v22, 0.0  ;;  %v1266_v24 = vmul.f32 0.2, %v947_v22  ;;  %vm1170_vm11 = vcmp.ge.f32.partialorder %v1027_v23, 0.0  ;;  %v1298_v25 = vmul.f32 0.2, %v1027_v23  ;;  %v789_v26 = vpop.f32.mrf.mxu0  ;;  %v869_v27 = vpop.f32.mrf.mxu1 }
 0x161   : > { %vm1075_vm12 = vcmp.ge.f32.partialorder %v789_v26, 0.0  ;;  %v1203_v28 = vmul.f32 0.2, %v789_v26  ;;  %vm1107_vm13 = vcmp.ge.f32.partialorder %v869_v27, 0.0  ;;  %v1235_v29 = vmul.f32 0.2, %v869_v27 }
 0x162   : > { %v1394_v30 = vsel %vm1138_vm10, %v947_v22, %v1266_v24  ;;  %v1426_v31 = vsel %vm1170_vm11, %v1027_v23, %v1298_v25 }
 0x163   : > { %1522 = vst [vmem:[%s2126_s7 + $0x2b0] sm:$0xff] %v1394_v30  ;;  %v1331_v32 = vsel %vm1075_vm12, %v789_v26, %v1203_v28  ;;  %v1363_v33 = vsel %vm1107_vm13, %v869_v27, %v1235_v29 }
 0x164   : > { %1554 = vst [vmem:[%s2126_s7 + $0x3b0] sm:$0xff] %v1426_v31 }
 0x165   : > { %1459 = vst [vmem:[%s2126_s7 + $0xb8] sm:$0xff] %v1331_v32 }
 0x166   : > { %1491 = vst [vmem:[%s2126_s7 + $0x1b8] sm:$0xff] %v1363_v33 }
 0x167   : > { %v949_v34 = vpop.f32.mrf.mxu2  ;;  %v1029_v35 = vpop.f32.mrf.mxu3 }
 0x168   : > { %vm1139_vm14 = vcmp.ge.f32.partialorder %v949_v34, 0.0  ;;  %v1267_v36 = vmul.f32 0.2, %v949_v34  ;;  %vm1171_vm15 = vcmp.ge.f32.partialorder %v1029_v35, 0.0  ;;  %v1299_v37 = vmul.f32 0.2, %v1029_v35  ;;  %v792_v38 = vpop.f32.mrf.mxu0  ;;  %v872_v39 = vpop.f32.mrf.mxu1 }
 0x169   : > { %vm1076_vm0 = vcmp.ge.f32.partialorder %v792_v38, 0.0  ;;  %v1204_v40 = vmul.f32 0.2, %v792_v38  ;;  %vm1108_vm1 = vcmp.ge.f32.partialorder %v872_v39, 0.0  ;;  %v1236_v41 = vmul.f32 0.2, %v872_v39 }
 0x16a   : > { %v1395_v42 = vsel %vm1139_vm14, %v949_v34, %v1267_v36  ;;  %v1427_v43 = vsel %vm1171_vm15, %v1029_v35, %v1299_v37 }
 0x16b   : > { %1523 = vst [vmem:[%s2126_s7 + $0x2b8] sm:$0xff] %v1395_v42  ;;  %v1332_v44 = vsel %vm1076_vm0, %v792_v38, %v1204_v40  ;;  %v1364_v45 = vsel %vm1108_vm1, %v872_v39, %v1236_v41 }
 0x16c   : > { %1555 = vst [vmem:[%s2126_s7 + $0x3b8] sm:$0xff] %v1427_v43 }
 0x16d   : > { %1460 = vst [vmem:[%s2126_s7 + $0xc0] sm:$0xff] %v1332_v44 }
 0x16e   : > { %1492 = vst [vmem:[%s2126_s7 + $0x1c0] sm:$0xff] %v1364_v45 }
 0x16f   : > { %v952_v46 = vpop.f32.mrf.mxu2  ;;  %v1032_v47 = vpop.f32.mrf.mxu3 }
 0x170   : > { %vm1140_vm2 = vcmp.ge.f32.partialorder %v952_v46, 0.0  ;;  %v1268_v48 = vmul.f32 0.2, %v952_v46  ;;  %vm1172_vm3 = vcmp.ge.f32.partialorder %v1032_v47, 0.0  ;;  %v1300_v49 = vmul.f32 0.2, %v1032_v47  ;;  %v794_v50 = vpop.f32.mrf.mxu0  ;;  %v874_v51 = vpop.f32.mrf.mxu1 }
 0x171   : > { %vm1077_vm4 = vcmp.ge.f32.partialorder %v794_v50, 0.0  ;;  %v1205_v52 = vmul.f32 0.2, %v794_v50  ;;  %vm1109_vm5 = vcmp.ge.f32.partialorder %v874_v51, 0.0  ;;  %v1237_v53 = vmul.f32 0.2, %v874_v51 }
 0x172   : > { %v1396_v54 = vsel %vm1140_vm2, %v952_v46, %v1268_v48  ;;  %v1428_v55 = vsel %vm1172_vm3, %v1032_v47, %v1300_v49 }
 0x173   : > { %1524 = vst [vmem:[%s2126_s7 + $0x2c0] sm:$0xff] %v1396_v54  ;;  %v1333_v56 = vsel %vm1077_vm4, %v794_v50, %v1205_v52  ;;  %v1365_v57 = vsel %vm1109_vm5, %v874_v51, %v1237_v53 }
 0x174   : > { %1556 = vst [vmem:[%s2126_s7 + $0x3c0] sm:$0xff] %v1428_v55 }
 0x175   : > { %1461 = vst [vmem:[%s2126_s7 + $0xc8] sm:$0xff] %v1333_v56 }
 0x176   : > { %1493 = vst [vmem:[%s2126_s7 + $0x1c8] sm:$0xff] %v1365_v57 }
 0x177   : > { %v954_v58 = vpop.f32.mrf.mxu2  ;;  %v1034_v59 = vpop.f32.mrf.mxu3 }
 0x178   : > { %vm1141_vm6 = vcmp.ge.f32.partialorder %v954_v58, 0.0  ;;  %v1269_v60 = vmul.f32 0.2, %v954_v58  ;;  %vm1173_vm7 = vcmp.ge.f32.partialorder %v1034_v59, 0.0  ;;  %v1301_v61 = vmul.f32 0.2, %v1034_v59  ;;  %v797_v62 = vpop.f32.mrf.mxu0  ;;  %v877_v63 = vpop.f32.mrf.mxu1 }
 0x179   : > { %vm1078_vm8 = vcmp.ge.f32.partialorder %v797_v62, 0.0  ;;  %v1206_v0 = vmul.f32 0.2, %v797_v62  ;;  %vm1110_vm9 = vcmp.ge.f32.partialorder %v877_v63, 0.0  ;;  %v1238_v1 = vmul.f32 0.2, %v877_v63 }
 0x17a   : > { %v1397_v2 = vsel %vm1141_vm6, %v954_v58, %v1269_v60  ;;  %v1429_v3 = vsel %vm1173_vm7, %v1034_v59, %v1301_v61 }
 0x17b   : > { %1525 = vst [vmem:[%s2126_s7 + $0x2c8] sm:$0xff] %v1397_v2  ;;  %v1334_v4 = vsel %vm1078_vm8, %v797_v62, %v1206_v0  ;;  %v1366_v5 = vsel %vm1110_vm9, %v877_v63, %v1238_v1 }
 0x17c   : > { %1557 = vst [vmem:[%s2126_s7 + $0x3c8] sm:$0xff] %v1429_v3 }
 0x17d   : > { %1462 = vst [vmem:[%s2126_s7 + $0xd0] sm:$0xff] %v1334_v4 }
 0x17e   : > { %1494 = vst [vmem:[%s2126_s7 + $0x1d0] sm:$0xff] %v1366_v5 }
 0x17f   : > { %v957_v6 = vpop.f32.mrf.mxu2  ;;  %v1037_v7 = vpop.f32.mrf.mxu3 }
 0x180   : > { %vm1142_vm10 = vcmp.ge.f32.partialorder %v957_v6, 0.0  ;;  %v1270_v8 = vmul.f32 0.2, %v957_v6  ;;  %vm1174_vm11 = vcmp.ge.f32.partialorder %v1037_v7, 0.0  ;;  %v1302_v9 = vmul.f32 0.2, %v1037_v7  ;;  %v799_v10 = vpop.f32.mrf.mxu0  ;;  %v879_v11 = vpop.f32.mrf.mxu1 }
 0x181   : > { %vm1079_vm12 = vcmp.ge.f32.partialorder %v799_v10, 0.0  ;;  %v1207_v12 = vmul.f32 0.2, %v799_v10  ;;  %vm1111_vm13 = vcmp.ge.f32.partialorder %v879_v11, 0.0  ;;  %v1239_v13 = vmul.f32 0.2, %v879_v11 }
 0x182   : > { %v1398_v14 = vsel %vm1142_vm10, %v957_v6, %v1270_v8  ;;  %v1430_v15 = vsel %vm1174_vm11, %v1037_v7, %v1302_v9 }
 0x183   : > { %1526 = vst [vmem:[%s2126_s7 + $0x2d0] sm:$0xff] %v1398_v14  ;;  %v1335_v16 = vsel %vm1079_vm12, %v799_v10, %v1207_v12  ;;  %v1367_v17 = vsel %vm1111_vm13, %v879_v11, %v1239_v13 }
 0x184   : > { %1558 = vst [vmem:[%s2126_s7 + $0x3d0] sm:$0xff] %v1430_v15 }
 0x185   : > { %1463 = vst [vmem:[%s2126_s7 + $0xd8] sm:$0xff] %v1335_v16 }
 0x186   : > { %1495 = vst [vmem:[%s2126_s7 + $0x1d8] sm:$0xff] %v1367_v17 }
 0x187   : > { %v959_v18 = vpop.f32.mrf.mxu2  ;;  %v1039_v19 = vpop.f32.mrf.mxu3 }
 0x188   : > { %vm1143_vm14 = vcmp.ge.f32.partialorder %v959_v18, 0.0  ;;  %v1271_v20 = vmul.f32 0.2, %v959_v18  ;;  %vm1175_vm15 = vcmp.ge.f32.partialorder %v1039_v19, 0.0  ;;  %v1303_v21 = vmul.f32 0.2, %v1039_v19  ;;  %v802_v22 = vpop.f32.mrf.mxu0  ;;  %v882_v23 = vpop.f32.mrf.mxu1 }
 0x189   : > { %vm1080_vm0 = vcmp.ge.f32.partialorder %v802_v22, 0.0  ;;  %v1208_v24 = vmul.f32 0.2, %v802_v22  ;;  %vm1112_vm1 = vcmp.ge.f32.partialorder %v882_v23, 0.0  ;;  %v1240_v25 = vmul.f32 0.2, %v882_v23 }
 0x18a   : > { %v1399_v26 = vsel %vm1143_vm14, %v959_v18, %v1271_v20  ;;  %v1431_v27 = vsel %vm1175_vm15, %v1039_v19, %v1303_v21 }
 0x18b   : > { %1527 = vst [vmem:[%s2126_s7 + $0x2d8] sm:$0xff] %v1399_v26  ;;  %v1336_v28 = vsel %vm1080_vm0, %v802_v22, %v1208_v24  ;;  %v1368_v29 = vsel %vm1112_vm1, %v882_v23, %v1240_v25 }
 0x18c   : > { %1559 = vst [vmem:[%s2126_s7 + $0x3d8] sm:$0xff] %v1431_v27 }
 0x18d   : > { %1464 = vst [vmem:[%s2126_s7 + $0xe0] sm:$0xff] %v1336_v28 }
 0x18e   : > { %1496 = vst [vmem:[%s2126_s7 + $0x1e0] sm:$0xff] %v1368_v29 }
 0x18f   : > { %v962_v30 = vpop.f32.mrf.mxu2  ;;  %v1042_v31 = vpop.f32.mrf.mxu3 }
 0x190   : > { %vm1144_vm2 = vcmp.ge.f32.partialorder %v962_v30, 0.0  ;;  %v1272_v32 = vmul.f32 0.2, %v962_v30  ;;  %vm1176_vm3 = vcmp.ge.f32.partialorder %v1042_v31, 0.0  ;;  %v1304_v33 = vmul.f32 0.2, %v1042_v31  ;;  %v804_v34 = vpop.f32.mrf.mxu0  ;;  %v884_v35 = vpop.f32.mrf.mxu1 }
 0x191   : > { %vm1081_vm4 = vcmp.ge.f32.partialorder %v804_v34, 0.0  ;;  %v1209_v36 = vmul.f32 0.2, %v804_v34  ;;  %vm1113_vm5 = vcmp.ge.f32.partialorder %v884_v35, 0.0  ;;  %v1241_v37 = vmul.f32 0.2, %v884_v35 }
 0x192   : > { %v1400_v38 = vsel %vm1144_vm2, %v962_v30, %v1272_v32  ;;  %v1432_v39 = vsel %vm1176_vm3, %v1042_v31, %v1304_v33 }
 0x193   : > { %1528 = vst [vmem:[%s2126_s7 + $0x2e0] sm:$0xff] %v1400_v38  ;;  %v1337_v40 = vsel %vm1081_vm4, %v804_v34, %v1209_v36  ;;  %v1369_v41 = vsel %vm1113_vm5, %v884_v35, %v1241_v37 }
 0x194   : > { %1560 = vst [vmem:[%s2126_s7 + $0x3e0] sm:$0xff] %v1432_v39 }
 0x195   : > { %1465 = vst [vmem:[%s2126_s7 + $0xe8] sm:$0xff] %v1337_v40 }
 0x196   : > { %1497 = vst [vmem:[%s2126_s7 + $0x1e8] sm:$0xff] %v1369_v41 }
 0x197   : > { %v964_v42 = vpop.f32.mrf.mxu2  ;;  %v1044_v43 = vpop.f32.mrf.mxu3 }
 0x198   : > { %vm1145_vm6 = vcmp.ge.f32.partialorder %v964_v42, 0.0  ;;  %v1273_v44 = vmul.f32 0.2, %v964_v42  ;;  %vm1177_vm7 = vcmp.ge.f32.partialorder %v1044_v43, 0.0  ;;  %v1305_v45 = vmul.f32 0.2, %v1044_v43  ;;  %v807_v46 = vpop.f32.mrf.mxu0  ;;  %v887_v47 = vpop.f32.mrf.mxu1 }
 0x199   : > { %vm1082_vm8 = vcmp.ge.f32.partialorder %v807_v46, 0.0  ;;  %v1210_v48 = vmul.f32 0.2, %v807_v46  ;;  %vm1114_vm9 = vcmp.ge.f32.partialorder %v887_v47, 0.0  ;;  %v1242_v49 = vmul.f32 0.2, %v887_v47 }
 0x19a   : > { %v1401_v50 = vsel %vm1145_vm6, %v964_v42, %v1273_v44  ;;  %v1433_v51 = vsel %vm1177_vm7, %v1044_v43, %v1305_v45 }
 0x19b   : > { %1529 = vst [vmem:[%s2126_s7 + $0x2e8] sm:$0xff] %v1401_v50  ;;  %v1338_v52 = vsel %vm1082_vm8, %v807_v46, %v1210_v48  ;;  %v1370_v53 = vsel %vm1114_vm9, %v887_v47, %v1242_v49 }
 0x19c   : > { %1561 = vst [vmem:[%s2126_s7 + $0x3e8] sm:$0xff] %v1433_v51 }
 0x19d   : > { %1466 = vst [vmem:[%s2126_s7 + $0xf0] sm:$0xff] %v1338_v52 }
 0x19e   : > { %1498 = vst [vmem:[%s2126_s7 + $0x1f0] sm:$0xff] %v1370_v53 }
 0x19f   : > { %v967_v54 = vpop.f32.mrf.mxu2  ;;  %v1047_v55 = vpop.f32.mrf.mxu3 }
 0x1a0   : > { %vm1146_vm10 = vcmp.ge.f32.partialorder %v967_v54, 0.0  ;;  %v1274_v56 = vmul.f32 0.2, %v967_v54  ;;  %vm1178_vm11 = vcmp.ge.f32.partialorder %v1047_v55, 0.0  ;;  %v1306_v57 = vmul.f32 0.2, %v1047_v55  ;;  %v809_v58 = vpop.f32.mrf.mxu0  ;;  %v889_v59 = vpop.f32.mrf.mxu1 }
 0x1a1   : > { %vm1083_vm12 = vcmp.ge.f32.partialorder %v809_v58, 0.0  ;;  %v1211_v60 = vmul.f32 0.2, %v809_v58  ;;  %vm1115_vm13 = vcmp.ge.f32.partialorder %v889_v59, 0.0  ;;  %v1243_v61 = vmul.f32 0.2, %v889_v59 }
 0x1a2   : > { %v1402_v62 = vsel %vm1146_vm10, %v967_v54, %v1274_v56  ;;  %v1434_v63 = vsel %vm1178_vm11, %v1047_v55, %v1306_v57 }
 0x1a3   : > { %1530 = vst [vmem:[%s2126_s7 + $0x2f0] sm:$0xff] %v1402_v62  ;;  %v1339_v0 = vsel %vm1083_vm12, %v809_v58, %v1211_v60  ;;  %v1371_v1 = vsel %vm1115_vm13, %v889_v59, %v1243_v61 }
 0x1a4   : > { %1562 = vst [vmem:[%s2126_s7 + $0x3f0] sm:$0xff] %v1434_v63 }
 0x1a5   : > { %1467 = vst [vmem:[%s2126_s7 + $0xf8] sm:$0xff] %v1339_v0 }
 0x1a6   : > { %1499 = vst [vmem:[%s2126_s7 + $0x1f8] sm:$0xff] %v1371_v1 }
 0x1a7   : > { %v969_v2 = vpop.f32.mrf.mxu2  ;;  %v1049_v3 = vpop.f32.mrf.mxu3 }
 0x1a8   : > { %vm1147_vm14 = vcmp.ge.f32.partialorder %v969_v2, 0.0  ;;  %v1275_v4 = vmul.f32 0.2, %v969_v2  ;;  %vm1179_vm15 = vcmp.ge.f32.partialorder %v1049_v3, 0.0  ;;  %v1307_v5 = vmul.f32 0.2, %v1049_v3 }
 0x1aa   : > { %v1403_v6 = vsel %vm1147_vm14, %v969_v2, %v1275_v4  ;;  %v1435_v7 = vsel %vm1179_vm15, %v1049_v3, %v1307_v5 }
 0x1ab   : > { %1531 = vst [vmem:[%s2126_s7 + $0x2f8] sm:$0xff] %v1403_v6 }
 0x1ac   : > { %1563 = vst [vmem:[%s2126_s7 + $0x3f8] sm:$0xff] %v1435_v7 }
 0x1ad PF: > { %s12_s9 = sadd.s32 1, %s2029_s9  }
 0x1ae   : > { %p9_p4 = scmp.ge.s32.totalorder %s12_s9, 4  }
 0x1b0   :  { %11 = sbr.rel (!%p9_p4) target bundleno = 1 (0x1), region = 58 }

// kernel: discriminator_forward.6
= control target key start
LH: loop header
LB: loop body
LE: loop exit
PB: predicated region body
PF: predicated region fallthrough
CT: control target
= control target key end

     0   :  { %s3360_s1 = inlined_call_operand.vmem [shape: bf16[256,128], index: 1, kind: input, shape index: {}]   ;;  %s3361_s0 = inlined_call_operand.vmem [shape: bf16[512,256], index: 0, kind: input, shape index: {}]   ;;  %s3362_s2 = inlined_call_operand.vmem [shape: f32[1,128], index: 2, kind: input, shape index: {}]   ;;  %s3363_s3 = inlined_call_operand.vmem [shape: f32[1,128], index: 3, kind: input, shape index: {}]   ;;  %s3364_s4 = inlined_call_operand.vmem [shape: f32[512,128], index: 4, kind: output, shape index: {}]  }
   0x1   :  { %v1874_v0 = vld [vmem:[%s3360_s1 + $0x38] sm:$0xff]  ;;  %v1873_v2 = vld [vmem:[%s3360_s1 + $0x30] sm:$0xff]  ;;  %v1872_v4 = vld [vmem:[%s3360_s1 + $0x28] sm:$0xff] }
   0x2   :  { %v1882_v1 = vld [vmem:[%s3360_s1 + $0x78] sm:$0xff]  ;;  %529 = vmatpush.bf16.msra.mxu0 %v1874_v0  ;;  %v1881_v3 = vld [vmem:[%s3360_s1 + $0x70] sm:$0xff]  ;;  %1883 = vmatpush.bf16.msra.mxu2 %v1874_v0  ;;  %v1880_v5 = vld [vmem:[%s3360_s1 + $0x68] sm:$0xff] }
   0x3   :  { %698 = vmatpush.bf16.msra.mxu1 %v1882_v1  ;;  %1891 = vmatpush.bf16.msra.mxu3 %v1882_v1  ;;  %v1871_v6 = vld [vmem:[%s3360_s1 + $0x20] sm:$0xff]  ;;  %v1870_v8 = vld [vmem:[%s3360_s1 + $0x18] sm:$0xff]  ;;  %v1869_v10 = vld [vmem:[%s3360_s1 + $0x10] sm:$0xff] }
   0x4   :  { %v1879_v7 = vld [vmem:[%s3360_s1 + $0x60] sm:$0xff]  ;;  %v1878_v9 = vld [vmem:[%s3360_s1 + $0x58] sm:$0xff]  ;;  %v1877_v11 = vld [vmem:[%s3360_s1 + $0x50] sm:$0xff] }
   0x5   :  { %v1868_v12 = vld [vmem:[%s3360_s1 + $0x8] sm:$0xff]  ;;  %v1867_v14 = vld [vmem:[%s3360_s1] sm:$0xff]  ;;  %v1493_v22 = vld [vmem:[%s3361_s0 + $0x10] sm:$0xf] }
   0x6   :  { %530 = vmatpush.bf16.msra.mxu0 %v1873_v2  ;;  %1884 = vmatpush.bf16.msra.mxu2 %v1873_v2  ;;  %v1876_v13 = vld [vmem:[%s3360_s1 + $0x48] sm:$0xff]  ;;  %v1875_v15 = vld [vmem:[%s3360_s1 + $0x40] sm:$0xff]  ;;  %v1806_v23 = vld [vmem:[%s3361_s0 + $0x14] sm:$0xf0] }
   0x7   :  { %699 = vmatpush.bf16.msra.mxu1 %v1881_v3  ;;  %1892 = vmatpush.bf16.msra.mxu3 %v1881_v3  ;;  %v1485_v16 = vld [vmem:[%s3361_s0] sm:$0xf]  ;;  %v1804_v17 = vld [vmem:[%s3361_s0 + $0x4] sm:$0xf0]  ;;  %v1803_v18 = vld [vmem:[%s3361_s0 + $0x4] sm:$0xf]  ;;  %v1494_v26 = vor.u32 %v1806_v23, %v1493_v22 }
   0x8   :  { %v1487_v19 = vld [vmem:[%s3361_s0 + $0x8] sm:$0xf0]  ;;  %v1486_v20 = vor.u32 %v1804_v17, %v1485_v16  ;;  %v1805_v24 = vld [vmem:[%s3361_s0 + $0x14] sm:$0xf]  ;;  %v1495_v25 = vld [vmem:[%s3361_s0 + $0x18] sm:$0xf0] }
   0x9   :  { %v1490_v21 = vor.u32 %v1803_v18, %v1487_v19  ;;  %v1498_v27 = vor.u32 %v1805_v24, %v1495_v25  ;;  %v1613_v28 = vld [vmem:[%s3361_s0 + $0x100] sm:$0xf]  ;;  %v1836_v29 = vld [vmem:[%s3361_s0 + $0x104] sm:$0xf0]  ;;  %v1835_v30 = vld [vmem:[%s3361_s0 + $0x104] sm:$0xf] }
   0xa   :  { %531 = vmatpush.bf16.msra.mxu0 %v1872_v4  ;;  %1885 = vmatpush.bf16.msra.mxu2 %v1872_v4  ;;  %v1614_v31 = vor.u32 %v1836_v29, %v1613_v28  ;;  %v1615_v32 = vld [vmem:[%s3361_s0 + $0x108] sm:$0xf0]  ;;  %v1501_v34 = vld [vmem:[%s3361_s0 + $0x20] sm:$0xf]  ;;  %v1808_v35 = vld [vmem:[%s3361_s0 + $0x24] sm:$0xf0] }
   0xb   :  { %700 = vmatpush.bf16.msra.mxu1 %v1880_v5  ;;  %1893 = vmatpush.bf16.msra.mxu3 %v1880_v5  ;;  %v1618_v33 = vor.u32 %v1835_v30, %v1615_v32  ;;  %v1807_v36 = vld [vmem:[%s3361_s0 + $0x24] sm:$0xf]  ;;  %v1503_v37 = vld [vmem:[%s3361_s0 + $0x28] sm:$0xf0]  ;;  %v1502_v38 = vor.u32 %v1808_v35, %v1501_v34  ;;  %v1621_v40 = vld [vmem:[%s3361_s0 + $0x110] sm:$0xf] }
   0xc   :  { %v1506_v39 = vor.u32 %v1807_v36, %v1503_v37  ;;  %v1838_v41 = vld [vmem:[%s3361_s0 + $0x114] sm:$0xf0]  ;;  %v1837_v42 = vld [vmem:[%s3361_s0 + $0x114] sm:$0xf]  ;;  %v1623_v44 = vld [vmem:[%s3361_s0 + $0x118] sm:$0xf0] }
   0xd   :  { %v1622_v43 = vor.u32 %v1838_v41, %v1621_v40  ;;  %v1626_v45 = vor.u32 %v1837_v42, %v1623_v44  ;;  %v1509_v46 = vld [vmem:[%s3361_s0 + $0x30] sm:$0xf]  ;;  %v1810_v47 = vld [vmem:[%s3361_s0 + $0x34] sm:$0xf0]  ;;  %v1809_v48 = vld [vmem:[%s3361_s0 + $0x34] sm:$0xf] }
   0xe   :  { %532 = vmatpush.bf16.msra.mxu0 %v1871_v6  ;;  %1886 = vmatpush.bf16.msra.mxu2 %v1871_v6  ;;  %v1511_v49 = vld [vmem:[%s3361_s0 + $0x38] sm:$0xf0]  ;;  %v1510_v50 = vor.u32 %v1810_v47, %v1509_v46  ;;  %v1629_v52 = vld [vmem:[%s3361_s0 + $0x120] sm:$0xf]  ;;  %v1840_v53 = vld [vmem:[%s3361_s0 + $0x124] sm:$0xf0] }
   0xf   :  { %701 = vmatpush.bf16.msra.mxu1 %v1879_v7  ;;  %1894 = vmatpush.bf16.msra.mxu3 %v1879_v7  ;;  %v1514_v51 = vor.u32 %v1809_v48, %v1511_v49  ;;  %v1839_v54 = vld [vmem:[%s3361_s0 + $0x124] sm:$0xf]  ;;  %v1630_v55 = vor.u32 %v1840_v53, %v1629_v52  ;;  %v1631_v56 = vld [vmem:[%s3361_s0 + $0x128] sm:$0xf0]  ;;  %v1517_v58 = vld [vmem:[%s3361_s0 + $0x40] sm:$0xf] }
  0x10   :  { %v1634_v57 = vor.u32 %v1839_v54, %v1631_v56  ;;  %v1812_v59 = vld [vmem:[%s3361_s0 + $0x44] sm:$0xf0]  ;;  %v1811_v60 = vld [vmem:[%s3361_s0 + $0x44] sm:$0xf]  ;;  %v1519_v61 = vld [vmem:[%s3361_s0 + $0x48] sm:$0xf0] }
  0x11   :  { %v1518_v62 = vor.u32 %v1812_v59, %v1517_v58  ;;  %v1522_v63 = vor.u32 %v1811_v60, %v1519_v61  ;;  %v1637_v0 = vld [vmem:[%s3361_s0 + $0x130] sm:$0xf]  ;;  %v1842_v1 = vld [vmem:[%s3361_s0 + $0x134] sm:$0xf0]  ;;  %v1841_v2 = vld [vmem:[%s3361_s0 + $0x134] sm:$0xf] }
  0x12   :  { %533 = vmatpush.bf16.msra.mxu0 %v1870_v8  ;;  %1887 = vmatpush.bf16.msra.mxu2 %v1870_v8  ;;  %v1638_v3 = vor.u32 %v1842_v1, %v1637_v0  ;;  %v1639_v4 = vld [vmem:[%s3361_s0 + $0x138] sm:$0xf0]  ;;  %v1525_v6 = vld [vmem:[%s3361_s0 + $0x50] sm:$0xf]  ;;  %v1814_v7 = vld [vmem:[%s3361_s0 + $0x54] sm:$0xf0] }
  0x13   :  { %702 = vmatpush.bf16.msra.mxu1 %v1878_v9  ;;  %1895 = vmatpush.bf16.msra.mxu3 %v1878_v9  ;;  %v1642_v5 = vor.u32 %v1841_v2, %v1639_v4  ;;  %v1813_v8 = vld [vmem:[%s3361_s0 + $0x54] sm:$0xf]  ;;  %v1527_v9 = vld [vmem:[%s3361_s0 + $0x58] sm:$0xf0]  ;;  %v1647_v16 = vld [vmem:[%s3361_s0 + $0x148] sm:$0xf0] }
  0x14   :  { %v1533_v18 = vld [vmem:[%s3361_s0 + $0x60] sm:$0xf]  ;;  %v1816_v19 = vld [vmem:[%s3361_s0 + $0x64] sm:$0xf0]  ;;  %v1653_v24 = vld [vmem:[%s3361_s0 + $0x150] sm:$0xf] }
  0x15   :  { %v1534_v22 = vor.u32 %v1816_v19, %v1533_v18  ;;  %v1846_v25 = vld [vmem:[%s3361_s0 + $0x154] sm:$0xf0]  ;;  %v1655_v28 = vld [vmem:[%s3361_s0 + $0x158] sm:$0xf0]  ;;  %v1541_v30 = vld [vmem:[%s3361_s0 + $0x70] sm:$0xf] }
  0x16   :  { %534 = vmatpush.bf16.msra.mxu0 %v1869_v10  ;;  %1888 = vmatpush.bf16.msra.mxu2 %v1869_v10  ;;  %v1526_v10 = vor.u32 %v1814_v7, %v1525_v6  ;;  %v1817_v32 = vld [vmem:[%s3361_s0 + $0x74] sm:$0xf]  ;;  %v1661_v36 = vld [vmem:[%s3361_s0 + $0x160] sm:$0xf]  ;;  %v1848_v37 = vld [vmem:[%s3361_s0 + $0x164] sm:$0xf0] }
  0x17   :  { %703 = vmatpush.bf16.msra.mxu1 %v1877_v11  ;;  %1896 = vmatpush.bf16.msra.mxu3 %v1877_v11  ;;  %v1530_v11 = vor.u32 %v1813_v8, %v1527_v9  ;;  %v1663_v40 = vld [vmem:[%s3361_s0 + $0x168] sm:$0xf0]  ;;  %v1549_v42 = vld [vmem:[%s3361_s0 + $0x80] sm:$0xf]  ;;  %v1819_v44 = vld [vmem:[%s3361_s0 + $0x84] sm:$0xf] }
  0x18   :  { %v1850_v52 = vld [vmem:[%s3361_s0 + $0x174] sm:$0xf0]  ;;  %v1849_v53 = vld [vmem:[%s3361_s0 + $0x174] sm:$0xf]  ;;  %v1557_v60 = vld [vmem:[%s3361_s0 + $0x90] sm:$0xf] }
  0x19   :  { %v1822_v61 = vld [vmem:[%s3361_s0 + $0x94] sm:$0xf0]  ;;  %v1852_v6 = vld [vmem:[%s3361_s0 + $0x184] sm:$0xf0]  ;;  %v1851_v7 = vld [vmem:[%s3361_s0 + $0x184] sm:$0xf] }
  0x1a   :  { %535 = vmatpush.bf16.msra.mxu0 %v1868_v12  ;;  %1889 = vmatpush.bf16.msra.mxu2 %v1868_v12  ;;  %v1645_v12 = vld [vmem:[%s3361_s0 + $0x140] sm:$0xf]  ;;  %v1558_v0 = vor.u32 %v1822_v61, %v1557_v60  ;;  %v1679_v9 = vld [vmem:[%s3361_s0 + $0x188] sm:$0xf0]  ;;  %v1823_v18 = vld [vmem:[%s3361_s0 + $0xa4] sm:$0xf] }
  0x1b   :  { %704 = vmatpush.bf16.msra.mxu1 %v1876_v13  ;;  %1897 = vmatpush.bf16.msra.mxu3 %v1876_v13  ;;  %v1844_v13 = vld [vmem:[%s3361_s0 + $0x144] sm:$0xf0]  ;;  %v1567_v19 = vld [vmem:[%s3361_s0 + $0xa8] sm:$0xf0] }
  0x1e   :  { %536 = vmatpush.bf16.msra.mxu0 %v1867_v14  ;;  %1890 = vmatpush.bf16.msra.mxu2 %v1867_v14  ;;  %v1843_v14 = vld [vmem:[%s3361_s0 + $0x144] sm:$0xf] }
  0x1f   :  { %705 = vmatpush.bf16.msra.mxu1 %v1875_v15  ;;  %1898 = vmatpush.bf16.msra.mxu3 %v1875_v15  ;;  %v1646_v15 = vor.u32 %v1844_v13, %v1645_v12  ;;  %v1650_v17 = vor.u32 %v1843_v14, %v1647_v16  ;;  %v1565_v16 = vld [vmem:[%s3361_s0 + $0xa0] sm:$0xf] }
  0x21   :  { %537 = vmatmul.bf16.vlgmr.msra.gmra.mxu0 %v1486_v20  ;;  %617 = vmatmul.bf16.vlgmr.msra.gmra.mxu2 %v1614_v31  ;;  %v1815_v20 = vld [vmem:[%s3361_s0 + $0x64] sm:$0xf]  ;;  %v1818_v31 = vld [vmem:[%s3361_s0 + $0x74] sm:$0xf0] }
  0x22   :  { %706 = vmatmul.bf16.vlgmr.msra.gmra.mxu1 %v1490_v21  ;;  %786 = vmatmul.bf16.vlgmr.msra.gmra.mxu3 %v1618_v33  ;;  %v1535_v21 = vld [vmem:[%s3361_s0 + $0x68] sm:$0xf0]  ;;  %v1543_v33 = vld [vmem:[%s3361_s0 + $0x78] sm:$0xf0]  ;;  %v1542_v34 = vor.u32 %v1818_v31, %v1541_v30  ;;  %v1854_v30 = vld [vmem:[%s3361_s0 + $0x194] sm:$0xf0] }
  0x23   :  { %v1538_v23 = vor.u32 %v1815_v20, %v1535_v21  ;;  %v1546_v35 = vor.u32 %v1817_v32, %v1543_v33  ;;  %v1853_v31 = vld [vmem:[%s3361_s0 + $0x194] sm:$0xf]  ;;  %v1687_v33 = vld [vmem:[%s3361_s0 + $0x198] sm:$0xf0] }
  0x31   :  { %542 = vmatmul.bf16.gmra.mxu0 %v1494_v26  ;;  %622 = vmatmul.bf16.gmra.mxu2 %v1622_v43  ;;  %v1845_v26 = vld [vmem:[%s3361_s0 + $0x154] sm:$0xf]  ;;  %v1820_v43 = vld [vmem:[%s3361_s0 + $0x84] sm:$0xf0] }
  0x32   :  { %711 = vmatmul.bf16.gmra.mxu1 %v1498_v27  ;;  %791 = vmatmul.bf16.gmra.mxu3 %v1626_v45  ;;  %v1654_v27 = vor.u32 %v1846_v25, %v1653_v24  ;;  %v1658_v29 = vor.u32 %v1845_v26, %v1655_v28  ;;  %v1551_v45 = vld [vmem:[%s3361_s0 + $0x88] sm:$0xf0]  ;;  %v1550_v46 = vor.u32 %v1820_v43, %v1549_v42  ;;  %v1825_v42 = vld [vmem:[%s3361_s0 + $0xb4] sm:$0xf]  ;;  %v1575_v43 = vld [vmem:[%s3361_s0 + $0xb8] sm:$0xf0] }
  0x33   :  { %v1554_v47 = vor.u32 %v1819_v44, %v1551_v45 }
  0x41   :  { %547 = vmatmul.bf16.gmra.mxu0 %v1502_v38  ;;  %627 = vmatmul.bf16.gmra.mxu2 %v1630_v55  ;;  %v1847_v38 = vld [vmem:[%s3361_s0 + $0x164] sm:$0xf]  ;;  %v1671_v55 = vld [vmem:[%s3361_s0 + $0x178] sm:$0xf0] }
  0x42   :  { %716 = vmatmul.bf16.gmra.mxu1 %v1506_v39  ;;  %796 = vmatmul.bf16.gmra.mxu3 %v1634_v57  ;;  %v1662_v39 = vor.u32 %v1848_v37, %v1661_v36  ;;  %v1666_v41 = vor.u32 %v1847_v38, %v1663_v40  ;;  %v1674_v56 = vor.u32 %v1849_v53, %v1671_v55  ;;  %v1573_v40 = vld [vmem:[%s3361_s0 + $0xb0] sm:$0xf]  ;;  %v1856_v55 = vld [vmem:[%s3361_s0 + $0x1a4] sm:$0xf0] }
  0x51   :  { %552 = vmatmul.bf16.gmra.mxu0 %v1510_v50  ;;  %632 = vmatmul.bf16.gmra.mxu2 %v1638_v3 }
  0x52   :  { %721 = vmatmul.bf16.gmra.mxu1 %v1514_v51  ;;  %801 = vmatmul.bf16.gmra.mxu3 %v1642_v5  ;;  %v1669_v51 = vld [vmem:[%s3361_s0 + $0x170] sm:$0xf]  ;;  %v1677_v5 = vld [vmem:[%s3361_s0 + $0x180] sm:$0xf] }
  0x53   :  { %v1670_v54 = vor.u32 %v1850_v52, %v1669_v51  ;;  %v1678_v8 = vor.u32 %v1852_v6, %v1677_v5  ;;  %v1827_v5 = vld [vmem:[%s3361_s0 + $0xc4] sm:$0xf]  ;;  %v1583_v6 = vld [vmem:[%s3361_s0 + $0xc8] sm:$0xf0] }
  0x61   :  { %557 = vmatmul.bf16.gmra.mxu0 %v1518_v62  ;;  %637 = vmatmul.bf16.gmra.mxu2 %v1646_v15  ;;  %v1821_v62 = vld [vmem:[%s3361_s0 + $0x94] sm:$0xf] }
  0x62   :  { %726 = vmatmul.bf16.gmra.mxu1 %v1522_v63  ;;  %806 = vmatmul.bf16.gmra.mxu3 %v1650_v17  ;;  %v1559_v63 = vld [vmem:[%s3361_s0 + $0x98] sm:$0xf0]  ;;  %v1824_v17 = vld [vmem:[%s3361_s0 + $0xa4] sm:$0xf0] }
  0x63   :  { %v1562_v1 = vor.u32 %v1821_v62, %v1559_v63  ;;  %v1566_v21 = vor.u32 %v1824_v17, %v1565_v16  ;;  %v1701_v17 = vld [vmem:[%s3361_s0 + $0x1b0] sm:$0xf] }
  0x71   :  { %562 = vmatmul.bf16.gmra.mxu0 %v1526_v10  ;;  %642 = vmatmul.bf16.gmra.mxu2 %v1654_v27  ;;  %v1682_v10 = vor.u32 %v1851_v7, %v1679_v9  ;;  %v1586_v9 = vor.u32 %v1827_v5, %v1583_v6 }
  0x72   :  { %731 = vmatmul.bf16.gmra.mxu1 %v1530_v11  ;;  %811 = vmatmul.bf16.gmra.mxu3 %v1658_v29  ;;  %v1685_v29 = vld [vmem:[%s3361_s0 + $0x190] sm:$0xf] }
  0x73   :  { %v1686_v32 = vor.u32 %v1854_v30, %v1685_v29 }
  0x81   :  { %567 = vmatmul.bf16.gmra.mxu0 %v1534_v22  ;;  %647 = vmatmul.bf16.gmra.mxu2 %v1662_v39  ;;  %v1570_v22 = vor.u32 %v1823_v18, %v1567_v19  ;;  %v1858_v18 = vld [vmem:[%s3361_s0 + $0x1b4] sm:$0xf0]  ;;  %v1857_v19 = vld [vmem:[%s3361_s0 + $0x1b4] sm:$0xf] }
  0x82   :  { %736 = vmatmul.bf16.gmra.mxu1 %v1538_v23  ;;  %816 = vmatmul.bf16.gmra.mxu3 %v1666_v41  ;;  %v1826_v41 = vld [vmem:[%s3361_s0 + $0xb4] sm:$0xf0] }
  0x83   :  { %v1574_v45 = vor.u32 %v1826_v41, %v1573_v40 }
  0x91   :  { %572 = vmatmul.bf16.gmra.mxu0 %v1542_v34  ;;  %652 = vmatmul.bf16.gmra.mxu2 %v1670_v54  ;;  %v1690_v34 = vor.u32 %v1853_v31, %v1687_v33  ;;  %v1693_v54 = vld [vmem:[%s3361_s0 + $0x1a0] sm:$0xf]  ;;  %v1589_v31 = vld [vmem:[%s3361_s0 + $0xd0] sm:$0xf]  ;;  %v1829_v33 = vld [vmem:[%s3361_s0 + $0xd4] sm:$0xf] }
  0x92   :  { %741 = vmatmul.bf16.gmra.mxu1 %v1546_v35  ;;  %821 = vmatmul.bf16.gmra.mxu3 %v1674_v56  ;;  %v1855_v56 = vld [vmem:[%s3361_s0 + $0x1a4] sm:$0xf] }
  0x9e   :  { %v538_v48 = vpop.f32.mrf.mxu0 }
  0x9f   :  { %v707_v49 = vpop.f32.mrf.mxu1 }
  0xa0   :  { %v2166_v50 = vadd.f32 %v707_v49, %v538_v48 }
  0xa1   :  { %577 = vmatmul.bf16.gmra.mxu0 %v1550_v46  ;;  %657 = vmatmul.bf16.gmra.mxu2 %v1678_v8  ;;  %v1578_v46 = vor.u32 %v1825_v42, %v1575_v43 }
  0xa2   :  { %746 = vmatmul.bf16.gmra.mxu1 %v1554_v47  ;;  %826 = vmatmul.bf16.gmra.mxu3 %v1682_v10 }
  0xa4   :  { %v618_v14 = vpop.f32.mrf.mxu2 }
  0xa5   :  { %v787_v15 = vpop.f32.mrf.mxu3 }
  0xa6   :  { %v540_v57 = vpop.f32.mrf.mxu0  ;;  %v2222_v20 = vadd.f32 %v787_v15, %v618_v14 }
  0xa7   :  { %v709_v58 = vpop.f32.mrf.mxu1 }
  0xa8   :  { %v2180_v59 = vadd.f32 %v709_v58, %v540_v57  ;;  %v1694_v57 = vor.u32 %v1856_v55, %v1693_v54  ;;  %v1695_v58 = vld [vmem:[%s3361_s0 + $0x1a8] sm:$0xf0] }
  0xa9   :  { %v1698_v60 = vor.u32 %v1855_v56, %v1695_v58 }
  0xac   :  { %v620_v26 = vpop.f32.mrf.mxu2 }
  0xad   :  { %v789_v27 = vpop.f32.mrf.mxu3 }
  0xae   :  { %v543_v2 = vpop.f32.mrf.mxu0  ;;  %v2226_v28 = vadd.f32 %v789_v27, %v620_v26 }
  0xaf   :  { %v712_v3 = vpop.f32.mrf.mxu1 }
  0xb0   :  { %v2194_v4 = vadd.f32 %v712_v3, %v543_v2  ;;  %3405 = vst [vmem:[#allocation3_spill] sm:$0xff] %v2226_v28  ;;  %v1581_v2 = vld [vmem:[%s3361_s0 + $0xc0] sm:$0xf]  ;;  %v1828_v3 = vld [vmem:[%s3361_s0 + $0xc4] sm:$0xf0] }
  0xb1   :  { %582 = vmatmul.bf16.gmra.mxu0 %v1558_v0  ;;  %662 = vmatmul.bf16.gmra.mxu2 %v1686_v32  ;;  %v1582_v8 = vor.u32 %v1828_v3, %v1581_v2  ;;  %v1830_v32 = vld [vmem:[%s3361_s0 + $0xd4] sm:$0xf0] }
  0xb2   :  { %751 = vmatmul.bf16.gmra.mxu1 %v1562_v1  ;;  %831 = vmatmul.bf16.gmra.mxu3 %v1690_v34  ;;  %v1591_v34 = vld [vmem:[%s3361_s0 + $0xd8] sm:$0xf0] }
  0xb4   :  { %v623_v38 = vpop.f32.mrf.mxu2 }
  0xb5   :  { %v792_v39 = vpop.f32.mrf.mxu3 }
  0xb6   :  { %v545_v11 = vpop.f32.mrf.mxu0  ;;  %v2254_v44 = vadd.f32 %v792_v39, %v623_v38  ;;  %v1594_v38 = vor.u32 %v1829_v33, %v1591_v34  ;;  %v1833_v33 = vld [vmem:[%s3361_s0 + $0xf4] sm:$0xf]  ;;  %v1607_v34 = vld [vmem:[%s3361_s0 + $0xf8] sm:$0xf0] }
  0xb7   :  { %v714_v12 = vpop.f32.mrf.mxu1 }
  0xb8   :  { %v2208_v13 = vadd.f32 %v714_v12, %v545_v11  ;;  %3407 = vst [vmem:[#allocation5_spill] sm:$0xff] %v2254_v44 }
  0xbc   :  { %v625_v51 = vpop.f32.mrf.mxu2 }
  0xbd   :  { %v794_v52 = vpop.f32.mrf.mxu3 }
  0xbe   :  { %v548_v23 = vpop.f32.mrf.mxu0  ;;  %v2258_v53 = vadd.f32 %v794_v52, %v625_v51  ;;  %v1711_v52 = vld [vmem:[%s3361_s0 + $0x1c8] sm:$0xf0] }
  0xbf   :  { %v717_v24 = vpop.f32.mrf.mxu1 }
  0xc0   :  { %v2224_v25 = vadd.f32 %v717_v24, %v548_v23 }
  0xc1   :  { %587 = vmatmul.bf16.gmra.mxu0 %v1566_v21  ;;  %667 = vmatmul.bf16.gmra.mxu2 %v1694_v57  ;;  %v1702_v21 = vor.u32 %v1858_v18, %v1701_v17  ;;  %v1862_v17 = vld [vmem:[%s3361_s0 + $0x1d4] sm:$0xf0]  ;;  %v1861_v18 = vld [vmem:[%s3361_s0 + $0x1d4] sm:$0xf] }
  0xc2   :  { %3404 = vst [vmem:[#allocation2_spill] sm:$0xff] %v2224_v25  ;;  %756 = vmatmul.bf16.gmra.mxu1 %v1570_v22  ;;  %836 = vmatmul.bf16.gmra.mxu3 %v1698_v60  ;;  %v1703_v22 = vld [vmem:[%s3361_s0 + $0x1b8] sm:$0xf0] }
  0xc3   :  { %v1706_v23 = vor.u32 %v1857_v19, %v1703_v22 }
  0xc4   :  { %v628_v0 = vpop.f32.mrf.mxu2 }
  0xc5   :  { %v797_v1 = vpop.f32.mrf.mxu3 }
  0xc6   :  { %v550_v35 = vpop.f32.mrf.mxu0  ;;  %v2286_v7 = vadd.f32 %v797_v1, %v628_v0  ;;  %v1831_v0 = vld [vmem:[%s3361_s0 + $0xe4] sm:$0xf]  ;;  %v1599_v1 = vld [vmem:[%s3361_s0 + $0xe8] sm:$0xf0] }
  0xc7   :  { %v719_v36 = vpop.f32.mrf.mxu1  ;;  %v1602_v5 = vor.u32 %v1831_v0, %v1599_v1 }
  0xc8   :  { %v2240_v37 = vadd.f32 %v719_v36, %v550_v35  ;;  %v1590_v36 = vor.u32 %v1830_v32, %v1589_v31  ;;  %v1605_v31 = vld [vmem:[%s3361_s0 + $0xf0] sm:$0xf]  ;;  %v1834_v32 = vld [vmem:[%s3361_s0 + $0xf4] sm:$0xf0] }
  0xca   :  { %3406 = vst [vmem:[#allocation4_spill] sm:$0xff] %v2240_v37 }
  0xcc   :  { %v630_v14 = vpop.f32.mrf.mxu2 }
  0xcd   :  { %v799_v15 = vpop.f32.mrf.mxu3 }
  0xce   :  { %v553_v47 = vpop.f32.mrf.mxu0  ;;  %v2290_v16 = vadd.f32 %v799_v15, %v630_v14  ;;  %v1717_v15 = vld [vmem:[%s3361_s0 + $0x1d0] sm:$0xf] }
  0xcf   :  { %v722_v48 = vpop.f32.mrf.mxu1  ;;  %v1718_v19 = vor.u32 %v1862_v17, %v1717_v15  ;;  %v1733_v17 = vld [vmem:[%s3361_s0 + $0x1f0] sm:$0xf] }
  0xd0   :  { %v2256_v49 = vadd.f32 %v722_v48, %v553_v47  ;;  %v1860_v47 = vld [vmem:[%s3361_s0 + $0x1c4] sm:$0xf0]  ;;  %v1859_v48 = vld [vmem:[%s3361_s0 + $0x1c4] sm:$0xf] }
  0xd1   :  { %592 = vmatmul.bf16.gmra.mxu0 %v1574_v45  ;;  %672 = vmatmul.bf16.gmra.mxu2 %v1702_v21  ;;  %v1714_v54 = vor.u32 %v1859_v48, %v1711_v52  ;;  %v1719_v21 = vld [vmem:[%s3361_s0 + $0x1d8] sm:$0xf0]  ;;  %v1864_v52 = vld [vmem:[%s3361_s0 + $0x1e4] sm:$0xf0] }
  0xd2   :  { %3408 = vst [vmem:[#allocation6_spill] sm:$0xff] %v2256_v49  ;;  %761 = vmatmul.bf16.gmra.mxu1 %v1578_v46  ;;  %841 = vmatmul.bf16.gmra.mxu3 %v1706_v23  ;;  %v1709_v46 = vld [vmem:[%s3361_s0 + $0x1c0] sm:$0xf]  ;;  %v1722_v22 = vor.u32 %v1861_v18, %v1719_v21  ;;  %v1866_v18 = vld [vmem:[%s3361_s0 + $0x1f4] sm:$0xf0] }
  0xd3   :  { %v1710_v51 = vor.u32 %v1860_v47, %v1709_v46  ;;  %v1734_v21 = vor.u32 %v1866_v18, %v1733_v17 }
  0xd4   :  { %v633_v29 = vpop.f32.mrf.mxu2 }
  0xd5   :  { %v802_v30 = vpop.f32.mrf.mxu3 }
  0xd6   :  { %v555_v61 = vpop.f32.mrf.mxu0  ;;  %v2318_v35 = vadd.f32 %v802_v30, %v633_v29 }
  0xd7   :  { %v724_v62 = vpop.f32.mrf.mxu1 }
  0xd8   :  { %v2272_v63 = vadd.f32 %v724_v62, %v555_v61  ;;  %3412 = vst [vmem:[#allocation10_spill] sm:$0xff] %v2318_v35  ;;  %v1597_v61 = vld [vmem:[%s3361_s0 + $0xe0] sm:$0xf]  ;;  %v1832_v62 = vld [vmem:[%s3361_s0 + $0xe4] sm:$0xf0] }
  0xd9   :  { %v1598_v3 = vor.u32 %v1832_v62, %v1597_v61 }
  0xda   :  { %3409 = vst [vmem:[#allocation7_spill] sm:$0xff] %v2272_v63 }
  0xdc   :  { %v635_v42 = vpop.f32.mrf.mxu2 }
  0xdd   :  { %v804_v43 = vpop.f32.mrf.mxu3 }
  0xde   :  { %v558_v10 = vpop.f32.mrf.mxu0  ;;  %v2322_v45 = vadd.f32 %v804_v43, %v635_v42 }
  0xdf   :  { %v727_v11 = vpop.f32.mrf.mxu1 }
  0xe0   :  { %v2288_v12 = vadd.f32 %v727_v11, %v558_v10  ;;  %3414 = vst [vmem:[#allocation12_spill] sm:$0xff] %v2322_v45 }
  0xe1   :  { %597 = vmatmul.bf16.gmra.mxu0 %v1582_v8  ;;  %677 = vmatmul.bf16.gmra.mxu2 %v1710_v51  ;;  %v1725_v51 = vld [vmem:[%s3361_s0 + $0x1e0] sm:$0xf] }
  0xe2   :  { %3410 = vst [vmem:[#allocation8_spill] sm:$0xff] %v2288_v12  ;;  %766 = vmatmul.bf16.gmra.mxu1 %v1586_v9  ;;  %846 = vmatmul.bf16.gmra.mxu3 %v1714_v54  ;;  %v1863_v54 = vld [vmem:[%s3361_s0 + $0x1e4] sm:$0xf] }
  0xe4   :  { %v638_v58 = vpop.f32.mrf.mxu2 }
  0xe5   :  { %v807_v60 = vpop.f32.mrf.mxu3 }
  0xe6   :  { %v560_v24 = vpop.f32.mrf.mxu0  ;;  %v2350_v2 = vadd.f32 %v807_v60, %v638_v58 }
  0xe7   :  { %v729_v26 = vpop.f32.mrf.mxu1 }
  0xe8   :  { %v2304_v27 = vadd.f32 %v729_v26, %v560_v24 }
  0xea   :  { %3411 = vst [vmem:[#allocation9_spill] sm:$0xff] %v2304_v27 }
  0xec   :  { %v640_v10 = vpop.f32.mrf.mxu2 }
  0xed   :  { %v809_v11 = vpop.f32.mrf.mxu3 }
  0xee   :  { %v563_v39 = vpop.f32.mrf.mxu0  ;;  %v2354_v14 = vadd.f32 %v809_v11, %v640_v10 }
  0xef   :  { %v732_v40 = vpop.f32.mrf.mxu1 }
  0xf0   :  { %v2320_v41 = vadd.f32 %v732_v40, %v563_v39  ;;  %3417 = vst [vmem:[#allocation15_spill] sm:$0xff] %v2354_v14  ;;  %v1610_v39 = vor.u32 %v1833_v33, %v1607_v34 }
  0xf1   :  { %602 = vmatmul.bf16.gmra.mxu0 %v1590_v36  ;;  %682 = vmatmul.bf16.gmra.mxu2 %v1718_v19  ;;  %v1865_v19 = vld [vmem:[%s3361_s0 + $0x1f4] sm:$0xf] }
  0xf2   :  { %3413 = vst [vmem:[#allocation11_spill] sm:$0xff] %v2320_v41  ;;  %771 = vmatmul.bf16.gmra.mxu1 %v1594_v38  ;;  %851 = vmatmul.bf16.gmra.mxu3 %v1722_v22  ;;  %v1606_v38 = vor.u32 %v1834_v32, %v1605_v31  ;;  %v1735_v22 = vld [vmem:[%s3361_s0 + $0x1f8] sm:$0xf0] }
  0xf4   :  { %v643_v29 = vpop.f32.mrf.mxu2 }
  0xf5   :  { %v812_v30 = vpop.f32.mrf.mxu3 }
  0xf6   :  { %v565_v55 = vpop.f32.mrf.mxu0  ;;  %v2382_v36 = vadd.f32 %v812_v30, %v643_v29 }
  0xf7   :  { %v734_v56 = vpop.f32.mrf.mxu1 }
  0xf8   :  { %v2336_v57 = vadd.f32 %v734_v56, %v565_v55  ;;  %3419 = vst [vmem:[#allocation17_spill] sm:$0xff] %v2382_v36  ;;  %v1726_v55 = vor.u32 %v1864_v52, %v1725_v51  ;;  %v1727_v56 = vld [vmem:[%s3361_s0 + $0x1e8] sm:$0xf0] }
  0xf9   :  { %v1730_v58 = vor.u32 %v1863_v54, %v1727_v56 }
  0xfa   :  { %3415 = vst [vmem:[#allocation13_spill] sm:$0xff] %v2336_v57 }
  0xfc   :  { %v645_v46 = vpop.f32.mrf.mxu2 }
  0xfd   :  { %v814_v47 = vpop.f32.mrf.mxu3 }
  0xfe   :  { %v568_v6 = vpop.f32.mrf.mxu0  ;;  %v2386_v48 = vadd.f32 %v814_v47, %v645_v46 }
  0xff   :  { %v737_v8 = vpop.f32.mrf.mxu1 }
 0x100   :  { %v2352_v9 = vadd.f32 %v737_v8, %v568_v6  ;;  %3421 = vst [vmem:[#allocation19_spill] sm:$0xff] %v2386_v48 }
 0x101   :  { %607 = vmatmul.bf16.gmra.mxu0 %v1598_v3  ;;  %687 = vmatmul.bf16.gmra.mxu2 %v1726_v55 }
 0x102   :  { %3416 = vst [vmem:[#allocation14_spill] sm:$0xff] %v2352_v9  ;;  %776 = vmatmul.bf16.gmra.mxu1 %v1602_v5  ;;  %856 = vmatmul.bf16.gmra.mxu3 %v1730_v58 }
 0x104   :  { %v648_v0 = vpop.f32.mrf.mxu2 }
 0x105   :  { %v817_v1 = vpop.f32.mrf.mxu3 }
 0x106   :  { %v570_v23 = vpop.f32.mrf.mxu0  ;;  %v2402_v3 = vadd.f32 %v817_v1, %v648_v0 }
 0x107   :  { %v739_v24 = vpop.f32.mrf.mxu1 }
 0x108   :  { %v2368_v26 = vadd.f32 %v739_v24, %v570_v23  ;;  %3422 = vst [vmem:[#allocation20_spill] sm:$0xff] %v2402_v3  ;;  %v1738_v23 = vor.u32 %v1865_v19, %v1735_v22 }
 0x10a   :  { %3418 = vst [vmem:[#allocation16_spill] sm:$0xff] %v2368_v26 }
 0x10c   :  { %v650_v10 = vpop.f32.mrf.mxu2 }
 0x10d   :  { %v819_v11 = vpop.f32.mrf.mxu3 }
 0x10e   :  { %v573_v40 = vpop.f32.mrf.mxu0  ;;  %v2406_v15 = vadd.f32 %v819_v11, %v650_v10 }
 0x10f   :  { %v742_v42 = vpop.f32.mrf.mxu1 }
 0x110   :  { %v2384_v43 = vadd.f32 %v742_v42, %v573_v40  ;;  %3423 = vst [vmem:[#allocation21_spill] sm:$0xff] %v2406_v15 }
 0x111   :  { %612 = vmatmul.bf16.gmra.mxu0 %v1606_v38  ;;  %692 = vmatmul.bf16.gmra.mxu2 %v1734_v21 }
 0x112   :  { %3420 = vst [vmem:[#allocation18_spill] sm:$0xff] %v2384_v43  ;;  %781 = vmatmul.bf16.gmra.mxu1 %v1610_v39  ;;  %861 = vmatmul.bf16.gmra.mxu3 %v1738_v23 }
 0x114   :  { %v653_v31 = vpop.f32.mrf.mxu2 }
 0x115   :  { %v822_v32 = vpop.f32.mrf.mxu3 }
 0x116   :  { %v575_v60 = vpop.f32.mrf.mxu0  ;;  %v2422_v33 = vadd.f32 %v822_v32, %v653_v31 }
 0x117   :  { %v744_v61 = vpop.f32.mrf.mxu1 }
 0x118   :  { %v2400_v62 = vadd.f32 %v744_v61, %v575_v60 }
 0x11c   :  { %v655_v40 = vpop.f32.mrf.mxu2 }
 0x11d   :  { %v824_v42 = vpop.f32.mrf.mxu3 }
 0x11e   :  { %v578_v5 = vpop.f32.mrf.mxu0  ;;  %v2426_v46 = vadd.f32 %v824_v42, %v655_v40  ;;  %v937_v42 = vmul.f32 %v2166_v50, %v2166_v50 }
 0x11f   :  { %v747_v6 = vpop.f32.mrf.mxu1 }
 0x120   :  { %v2404_v8 = vadd.f32 %v747_v6, %v578_v5 }
 0x124   :  { %v658_v54 = vpop.f32.mrf.mxu2 }
 0x125   :  { %v827_v55 = vpop.f32.mrf.mxu3 }
 0x126   :  { %v580_v24 = vpop.f32.mrf.mxu0  ;;  %v2430_v56 = vadd.f32 %v827_v55, %v658_v54 }
 0x127   :  { %v749_v29 = vpop.f32.mrf.mxu1 }
 0x128   :  { %v2420_v30 = vadd.f32 %v749_v29, %v580_v24 }
 0x12c   :  { %v660_v0 = vpop.f32.mrf.mxu2 }
 0x12d   :  { %v829_v1 = vpop.f32.mrf.mxu3 }
 0x12e   :  { %v583_v34 = vpop.f32.mrf.mxu0  ;;  %v2434_v5 = vadd.f32 %v829_v1, %v660_v0  ;;  %v940_v0 = vmul.f32 %v2208_v13, %v2208_v13 }
 0x12f   :  { %v752_v38 = vpop.f32.mrf.mxu1 }
 0x130   :  { %v2424_v39 = vadd.f32 %v752_v38, %v583_v34  ;;  %v938_v38 = vmul.f32 %v2180_v59, %v2180_v59 }
 0x134   :  { %v663_v11 = vpop.f32.mrf.mxu2 }
 0x135   :  { %v832_v17 = vpop.f32.mrf.mxu3 }
 0x136   :  { %v585_v47 = vpop.f32.mrf.mxu0  ;;  %v2440_v18 = vadd.f32 %v832_v17, %v663_v11  ;;  %v941_v17 = vmul.f32 %v2224_v25, %v2224_v25 }
 0x137   :  { %v754_v51 = vpop.f32.mrf.mxu1 }
 0x138   :  { %v2428_v52 = vadd.f32 %v754_v51, %v585_v47  ;;  %v867_v47 = vadd.f32 %v2180_v59, %v2166_v50  ;;  %v939_v51 = vmul.f32 %v2194_v4, %v2194_v4 }
 0x13c   :  { %v665_v22 = vpop.f32.mrf.mxu2 }
 0x13d   :  { %v834_v23 = vpop.f32.mrf.mxu3 }
 0x13e   :  { %v588_v58 = vpop.f32.mrf.mxu0  ;;  %v2446_v24 = vadd.f32 %v834_v23, %v665_v22 }
 0x13f   :  { %v757_v60 = vpop.f32.mrf.mxu1 }
 0x140   :  { %v2432_v61 = vadd.f32 %v757_v60, %v588_v58  ;;  %v1001_v58 = vadd.f32 %v938_v38, %v937_v42  ;;  %v868_v60 = vadd.f32 %v867_v47, %v2194_v4  ;;  %v943_v42 = vmul.f32 %v2256_v49, %v2256_v49 }
 0x142   :  { %3424 = vst [vmem:[#allocation22_spill] sm:$0xff] %v2432_v61  ;;  %v1002_v1 = vadd.f32 %v1001_v58, %v939_v51  ;;  %v869_v11 = vadd.f32 %v868_v60, %v2208_v13 }
 0x144   :  { %v668_v32 = vpop.f32.mrf.mxu2  ;;  %v1003_v22 = vadd.f32 %v1002_v1, %v940_v0  ;;  %v870_v23 = vadd.f32 %v869_v11, %v2224_v25  ;;  %v944_v0 = vmul.f32 %v2272_v63, %v2272_v63 }
 0x145   :  { %v837_v34 = vpop.f32.mrf.mxu3 }
 0x146   :  { %v2436_v6 = vpop.f32.mrf.mxu0  ;;  %v2454_v40 = vadd.f32 %v837_v34, %v668_v32  ;;  %v942_v32 = vmul.f32 %v2240_v37, %v2240_v37  ;;  %v1004_v34 = vadd.f32 %v1003_v22, %v941_v17  ;;  %v871_v38 = vadd.f32 %v870_v23, %v2240_v37 }
 0x147   :  { %v2438_v10 = vpop.f32.mrf.mxu1  ;;  %v945_v17 = vmul.f32 %v2288_v12, %v2288_v12  ;;  %v946_v37 = vmul.f32 %v2304_v27, %v2304_v27 }
 0x148   :  { %v1005_v58 = vadd.f32 %v1004_v34, %v942_v32  ;;  %v872_v60 = vadd.f32 %v871_v38, %v2256_v49  ;;  %v947_v34 = vmul.f32 %v2320_v41, %v2320_v41 }
 0x14a   :  { %v1006_v1 = vadd.f32 %v1005_v58, %v943_v42  ;;  %v873_v11 = vadd.f32 %v872_v60, %v2272_v63 }
 0x14c   :  { %v1007_v22 = vadd.f32 %v1006_v1, %v944_v0  ;;  %v874_v23 = vadd.f32 %v873_v11, %v2288_v12  ;;  %v2494_v38 = vpop.f32.mrf.mxu2  ;;  %v948_v1 = vmul.f32 %v2336_v57, %v2336_v57  ;;  %v950_v12 = vmul.f32 %v2368_v26, %v2368_v26 }
 0x14d   :  { %v2496_v42 = vpop.f32.mrf.mxu3 }
 0x14e   :  { %v2442_v19 = vpop.f32.mrf.mxu0  ;;  %v1008_v25 = vadd.f32 %v1007_v22, %v945_v17  ;;  %v875_v32 = vadd.f32 %v874_v23, %v2304_v27  ;;  %v949_v22 = vmul.f32 %v2352_v9, %v2352_v9 }
 0x14f   :  { %v2444_v21 = vpop.f32.mrf.mxu1 }
 0x150   :  { %v1009_v63 = vadd.f32 %v1008_v25, %v946_v37  ;;  %v876_v0 = vadd.f32 %v875_v32, %v2320_v41  ;;  %v951_v37 = vmul.f32 %v2384_v43, %v2384_v43 }
 0x152   :  { %v1010_v11 = vadd.f32 %v1009_v63, %v947_v34  ;;  %v877_v17 = vadd.f32 %v876_v0, %v2336_v57  ;;  %v952_v0 = vmul.f32 %v2400_v62, %v2400_v62 }
 0x154   :  { %v1011_v23 = vadd.f32 %v1010_v11, %v948_v1  ;;  %v878_v27 = vadd.f32 %v877_v17, %v2352_v9  ;;  %v2513_v1 = vpop.f32.mrf.mxu2 }
 0x155   :  { %v2515_v11 = vpop.f32.mrf.mxu3 }
 0x156   :  { %v2448_v29 = vpop.f32.mrf.mxu0  ;;  %v1012_v49 = vadd.f32 %v1011_v23, %v949_v22  ;;  %v879_v25 = vadd.f32 %v878_v27, %v2368_v26  ;;  %v953_v27 = vmul.f32 %v2404_v8, %v2404_v8 }
 0x157   :  { %v2450_v31 = vpop.f32.mrf.mxu1 }
 0x158   :  { %v1013_v63 = vadd.f32 %v1012_v49, %v950_v12  ;;  %v880_v34 = vadd.f32 %v879_v25, %v2384_v43  ;;  %v954_v49 = vmul.f32 %v2420_v30, %v2420_v30  ;;  %v955_v43 = vmul.f32 %v2424_v39, %v2424_v39 }
 0x15a   :  { %v1014_v17 = vadd.f32 %v1013_v63, %v951_v37  ;;  %v881_v22 = vadd.f32 %v880_v34, %v2400_v62  ;;  %v956_v34 = vmul.f32 %v2428_v52, %v2428_v52 }
 0x15c   :  { %v1015_v23 = vadd.f32 %v1014_v17, %v952_v0  ;;  %v882_v26 = vadd.f32 %v881_v22, %v2404_v8  ;;  %v2531_v0 = vadd.f32 %v2438_v10, %v2436_v6 }
 0x15e   :  { %v2462_v54 = vpop.f32.mrf.mxu0  ;;  %v1016_v12 = vadd.f32 %v1015_v23, %v953_v27  ;;  %v883_v25 = vadd.f32 %v882_v26, %v2420_v30  ;;  %v957_v26 = vmul.f32 %v2432_v61, %v2432_v61  ;;  %v2538_v27 = vadd.f32 %v2444_v21, %v2442_v19  ;;  %v2540_v23 = vpop.f32.mrf.mxu2 }
 0x15f   :  { %v2464_v55 = vpop.f32.mrf.mxu1  ;;  %v958_v6 = vmul.f32 %v2531_v0, %v2531_v0 }
 0x160   :  { %v1017_v37 = vadd.f32 %v1016_v12, %v954_v49  ;;  %v884_v63 = vadd.f32 %v883_v25, %v2424_v39  ;;  %v2542_v49 = vpop.f32.mrf.mxu3  ;;  %v959_v19 = vmul.f32 %v2538_v27, %v2538_v27  ;;  %v2556_v21 = vadd.f32 %v2464_v55, %v2462_v54 }
 0x162   :  { %v1018_v17 = vadd.f32 %v1017_v37, %v955_v43  ;;  %v885_v22 = vadd.f32 %v884_v63, %v2428_v52  ;;  %v2549_v43 = vadd.f32 %v2450_v31, %v2448_v29 }
 0x164   :  { %v1019_v12 = vadd.f32 %v1018_v17, %v956_v34  ;;  %v886_v25 = vadd.f32 %v885_v22, %v2432_v61  ;;  %v960_v61 = vmul.f32 %v2549_v43, %v2549_v43 }
 0x166   :  { %v2478_v47 = vpop.f32.mrf.mxu0  ;;  %v1020_v10 = vadd.f32 %v1019_v12, %v957_v26  ;;  %v887_v37 = vadd.f32 %v886_v25, %v2531_v0  ;;  %v961_v12 = vmul.f32 %v2556_v21, %v2556_v21 }
 0x167   :  { %v2480_v51 = vpop.f32.mrf.mxu1 }
 0x168   :  { %v1021_v17 = vadd.f32 %v1020_v10, %v958_v6  ;;  %v888_v22 = vadd.f32 %v887_v37, %v2538_v27  ;;  %v2563_v29 = vadd.f32 %v2480_v51, %v2478_v47  ;;  %v2575_v37 = vpop.f32.mrf.mxu2  ;;  %v2577_v47 = vpop.f32.mrf.mxu3 }
 0x16a   :  { %v1022_v31 = vadd.f32 %v1021_v17, %v959_v19  ;;  %v889_v26 = vadd.f32 %v888_v22, %v2549_v43  ;;  %v962_v6 = vmul.f32 %v2563_v29, %v2563_v29 }
 0x16c   :  { %v1023_v55 = vadd.f32 %v1022_v31, %v960_v61  ;;  %v890_v25 = vadd.f32 %v889_v26, %v2556_v21 }
 0x16e   :  { %v603_v58 = vpop.f32.mrf.mxu0  ;;  %v1024_v51 = vadd.f32 %v1023_v55, %v961_v12  ;;  %v891_v19 = vadd.f32 %v890_v25, %v2563_v29 }
 0x16f   :  { %v772_v60 = vpop.f32.mrf.mxu1 }
 0x170   :  { %v2568_v54 = vadd.f32 %v772_v60, %v603_v58  ;;  %v1025_v22 = vadd.f32 %v1024_v51, %v962_v6 }
 0x172   :  { %v963_v17 = vmul.f32 %v2568_v54, %v2568_v54  ;;  %v892_v31 = vadd.f32 %v891_v19, %v2568_v54 }
 0x174   :  { %v1026_v26 = vadd.f32 %v1025_v22, %v963_v17  ;;  %v2602_v17 = vpop.f32.mrf.mxu3 }
 0x176   :  { %v605_v32 = vpop.f32.mrf.mxu0 }
 0x177   :  { %v774_v41 = vpop.f32.mrf.mxu1 }
 0x178   :  { %v2573_v10 = vadd.f32 %v774_v41, %v605_v32 }
 0x17a   :  { %v964_v41 = vmul.f32 %v2573_v10, %v2573_v10  ;;  %v893_v12 = vadd.f32 %v892_v31, %v2573_v10 }
 0x17e   :  { %v608_v9 = vpop.f32.mrf.mxu0 }
 0x17f   :  { %v777_v57 = vpop.f32.mrf.mxu1 }
 0x180   :  { %v2582_v58 = vadd.f32 %v777_v57, %v608_v9  ;;  %v1027_v57 = vadd.f32 %v1026_v26, %v964_v41 }
 0x182   :  { %3425 = vst [vmem:[#allocation23_spill] sm:$0xff] %v2582_v58  ;;  %v965_v55 = vmul.f32 %v2582_v58, %v2582_v58  ;;  %v894_v9 = vadd.f32 %v893_v12, %v2582_v58  ;;  %v970_v58 = vmul.f32 %v2226_v28, %v2226_v28 }
 0x184   :  { %v1028_v51 = vadd.f32 %v1027_v57, %v965_v55  ;;  %v969_v57 = vmul.f32 %v2222_v20, %v2222_v20 }
 0x186   :  { %v610_v63 = vpop.f32.mrf.mxu0 }
 0x187   :  { %v779_v34 = vpop.f32.mrf.mxu1 }
 0x188   :  { %v2587_v32 = vadd.f32 %v779_v34, %v610_v63  ;;  %v2600_v34 = vpop.f32.mrf.mxu2 }
 0x18a   :  { %3426 = vst [vmem:[#allocation24_spill] sm:$0xff] %v2587_v32  ;;  %v966_v6 = vmul.f32 %v2587_v32, %v2587_v32  ;;  %v895_v19 = vadd.f32 %v894_v9, %v2587_v32 }
 0x18e   :  { %v613_v61 = vpop.f32.mrf.mxu0 }
 0x18f   :  { %v782_v60 = vpop.f32.mrf.mxu1 }
 0x190   :  { %v2592_v25 = vadd.f32 %v782_v60, %v613_v61  ;;  %v1029_v61 = vadd.f32 %v1028_v51, %v966_v6 }
 0x192   :  { %v967_v63 = vmul.f32 %v2592_v25, %v2592_v25  ;;  %v896_v60 = vadd.f32 %v895_v19, %v2592_v25  ;;  %v971_v19 = vmul.f32 %v2254_v44, %v2254_v44 }
 0x194   :  { %v1030_v26 = vadd.f32 %v1029_v61, %v967_v63  ;;  %v2621_v61 = vpop.f32.mrf.mxu3 }
 0x196   :  { %v615_v22 = vpop.f32.mrf.mxu0 }
 0x197   :  { %v784_v31 = vpop.f32.mrf.mxu1 }
 0x198   :  { %v2605_v41 = vadd.f32 %v784_v31, %v615_v22  ;;  %v2619_v31 = vpop.f32.mrf.mxu2 }
 0x19a   :  { %v897_v12 = vadd.f32 %v896_v60, %v2605_v41  ;;  %v968_v55 = vmul.f32 %v2605_v41, %v2605_v41  ;;  %v972_v60 = vmul.f32 %v2258_v53, %v2258_v53 }
 0x19c   :  { %v898_v9 = vadd.f32 %v897_v12, %v2222_v20  ;;  %v1031_v32 = vadd.f32 %v1030_v26, %v968_v55  ;;  %v973_v55 = vmul.f32 %v2286_v7, %v2286_v7 }
 0x19e   :  { %v899_v6 = vadd.f32 %v898_v9, %v2226_v28  ;;  %v1032_v51 = vadd.f32 %v1031_v32, %v969_v57  ;;  %v974_v9 = vmul.f32 %v2290_v16, %v2290_v16 }
 0x1a0   :  { %v900_v63 = vadd.f32 %v899_v6, %v2254_v44  ;;  %v1033_v22 = vadd.f32 %v1032_v51, %v970_v58  ;;  %v975_v51 = vmul.f32 %v2318_v35, %v2318_v35 }
 0x1a2   :  { %v901_v26 = vadd.f32 %v900_v63, %v2258_v53  ;;  %v1034_v12 = vadd.f32 %v1033_v22, %v971_v19  ;;  %v976_v19 = vmul.f32 %v2322_v45, %v2322_v45 }
 0x1a4   :  { %v902_v32 = vadd.f32 %v901_v26, %v2286_v7  ;;  %v1035_v57 = vadd.f32 %v1034_v12, %v972_v60  ;;  %v2638_v26 = vpop.f32.mrf.mxu2  ;;  %v2640_v60 = vpop.f32.mrf.mxu3  ;;  %v977_v12 = vmul.f32 %v2350_v2, %v2350_v2 }
 0x1a6   :  { %v903_v58 = vadd.f32 %v902_v32, %v2290_v16  ;;  %v1036_v6 = vadd.f32 %v1035_v57, %v973_v55  ;;  %v978_v57 = vmul.f32 %v2354_v14, %v2354_v14 }
 0x1a8   :  { %v904_v44 = vadd.f32 %v903_v58, %v2318_v35  ;;  %v1037_v28 = vadd.f32 %v1036_v6, %v974_v9 }
 0x1aa   :  { %v905_v63 = vadd.f32 %v904_v44, %v2322_v45  ;;  %v1038_v22 = vadd.f32 %v1037_v28, %v975_v51  ;;  %v979_v44 = vmul.f32 %v2382_v36, %v2382_v36  ;;  %v980_v51 = vmul.f32 %v2386_v48, %v2386_v48 }
 0x1ac   :  { %v906_v55 = vadd.f32 %v905_v63, %v2350_v2  ;;  %v1039_v32 = vadd.f32 %v1038_v22, %v976_v19  ;;  %v981_v19 = vmul.f32 %v2402_v3, %v2402_v3 }
 0x1ae   :  { %v907_v9 = vadd.f32 %v906_v55, %v2354_v14  ;;  %v1040_v58 = vadd.f32 %v1039_v32, %v977_v12  ;;  %v688_v55 = vpop.f32.mrf.mxu2  ;;  %v857_v12 = vpop.f32.mrf.mxu3  ;;  %v982_v32 = vmul.f32 %v2406_v15, %v2406_v15 }
 0x1b0   :  { %v908_v28 = vadd.f32 %v907_v9, %v2382_v36  ;;  %v1041_v6 = vadd.f32 %v1040_v58, %v978_v57  ;;  %v983_v58 = vmul.f32 %v2422_v33, %v2422_v33 }
 0x1b2   :  { %v909_v45 = vadd.f32 %v908_v28, %v2386_v48  ;;  %v1042_v35 = vadd.f32 %v1041_v6, %v979_v44  ;;  %v984_v6 = vmul.f32 %v2426_v46, %v2426_v46 }
 0x1b4   :  { %v1043_v63 = vadd.f32 %v1042_v35, %v980_v51  ;;  %v910_v22 = vadd.f32 %v909_v45, %v2402_v3  ;;  %v985_v51 = vmul.f32 %v2430_v56, %v2430_v56 }
 0x1b6   :  { %v911_v9 = vadd.f32 %v910_v22, %v2406_v15  ;;  %v1044_v57 = vadd.f32 %v1043_v63, %v981_v19  ;;  %v986_v19 = vmul.f32 %v2434_v5, %v2434_v5 }
 0x1b8   :  { %v912_v28 = vadd.f32 %v911_v9, %v2422_v33  ;;  %v1045_v44 = vadd.f32 %v1044_v57, %v982_v32  ;;  %v690_v9 = vpop.f32.mrf.mxu2  ;;  %v859_v32 = vpop.f32.mrf.mxu3  ;;  %v987_v57 = vmul.f32 %v2440_v18, %v2440_v18 }
 0x1ba   :  { %v913_v35 = vadd.f32 %v912_v28, %v2426_v46  ;;  %v1046_v45 = vadd.f32 %v1045_v44, %v983_v58  ;;  %v988_v44 = vmul.f32 %v2446_v24, %v2446_v24 }
 0x1bc   :  { %v914_v3 = vadd.f32 %v913_v35, %v2430_v56  ;;  %v1047_v48 = vadd.f32 %v1046_v45, %v984_v6  ;;  %v2679_v6 = vadd.f32 %v2496_v42, %v2494_v38  ;;  %v2693_v38 = vadd.f32 %v2542_v49, %v2540_v23 }
 0x1be   :  { %v915_v63 = vadd.f32 %v914_v3, %v2434_v5  ;;  %v1048_v22 = vadd.f32 %v1047_v48, %v985_v51  ;;  %v989_v48 = vmul.f32 %v2454_v40, %v2454_v40  ;;  %v2686_v3 = vadd.f32 %v2515_v11, %v2513_v1 }
 0x1bf   :  { %v2700_v1 = vadd.f32 %v2577_v47, %v2575_v37 }
 0x1c0   :  { %v916_v28 = vadd.f32 %v915_v63, %v2440_v18  ;;  %v1049_v58 = vadd.f32 %v1048_v22, %v986_v19  ;;  %v990_v63 = vmul.f32 %v2679_v6, %v2679_v6 }
 0x1c1   :  { %v993_v37 = vmul.f32 %v2700_v1, %v2700_v1 }
 0x1c2   :  { %v917_v35 = vadd.f32 %v916_v28, %v2446_v24  ;;  %v1050_v45 = vadd.f32 %v1049_v58, %v987_v57  ;;  %v991_v57 = vmul.f32 %v2686_v3, %v2686_v3  ;;  %v693_v58 = vpop.f32.mrf.mxu2 }
 0x1c4   :  { %v918_v51 = vadd.f32 %v917_v35, %v2454_v40  ;;  %v1051_v19 = vadd.f32 %v1050_v45, %v988_v44  ;;  %v862_v44 = vpop.f32.mrf.mxu3  ;;  %v992_v35 = vmul.f32 %v2693_v38, %v2693_v38  ;;  %v2708_v45 = vadd.f32 %v2602_v17, %v2600_v34 }
 0x1c5   :  { %v2722_v34 = vadd.f32 %v2640_v60, %v2638_v26 }
 0x1c6   :  { %v919_v42 = vadd.f32 %v918_v51, %v2679_v6  ;;  %v1052_v22 = vadd.f32 %v1051_v19, %v989_v48  ;;  %v2715_v51 = vadd.f32 %v2621_v61, %v2619_v31 }
 0x1c8   :  { %v920_v11 = vadd.f32 %v919_v42, %v2686_v3  ;;  %v1053_v28 = vadd.f32 %v1052_v22, %v990_v63  ;;  %v994_v42 = vmul.f32 %v2708_v45, %v2708_v45 }
 0x1ca   :  { %v921_v23 = vadd.f32 %v920_v11, %v2693_v38  ;;  %v1054_v49 = vadd.f32 %v1053_v28, %v991_v57  ;;  %v995_v57 = vmul.f32 %v2715_v51, %v2715_v51  ;;  %v2727_v11 = vadd.f32 %v857_v12, %v688_v55 }
 0x1cb   :  { %v996_v28 = vmul.f32 %v2722_v34, %v2722_v34 }
 0x1cc   :  { %v922_v48 = vadd.f32 %v921_v23, %v2700_v1  ;;  %v1055_v47 = vadd.f32 %v1054_v49, %v992_v35  ;;  %v2732_v35 = vadd.f32 %v859_v32, %v690_v9  ;;  %v695_v23 = vpop.f32.mrf.mxu2  ;;  %v864_v49 = vpop.f32.mrf.mxu3 }
 0x1ce   :  { %v1056_v19 = vadd.f32 %v1055_v47, %v993_v37  ;;  %v923_v63 = vadd.f32 %v922_v48, %v2708_v45  ;;  %v997_v48 = vmul.f32 %v2727_v11, %v2727_v11  ;;  %v2737_v37 = vadd.f32 %v862_v44, %v693_v58 }
 0x1cf   :  { %v998_v47 = vmul.f32 %v2732_v35, %v2732_v35 }
 0x1d0   :  { %v1057_v17 = vadd.f32 %v1056_v19, %v994_v42  ;;  %v924_v22 = vadd.f32 %v923_v63, %v2715_v51  ;;  %v865_v19 = vadd.f32 %v864_v49, %v695_v23  ;;  %v999_v32 = vmul.f32 %v2737_v37, %v2737_v37 }
 0x1d2   :  { %v1058_v31 = vadd.f32 %v1057_v17, %v995_v57  ;;  %v925_v61 = vadd.f32 %v924_v22, %v2722_v34  ;;  %v1000_v22 = vmul.f32 %v865_v19, %v865_v19 }
 0x1d4   :  { %v1059_v26 = vadd.f32 %v1058_v31, %v996_v28  ;;  %v926_v60 = vadd.f32 %v925_v61, %v2727_v11 }
 0x1d6   :  { %v1060_v55 = vadd.f32 %v1059_v26, %v997_v48  ;;  %v927_v12 = vadd.f32 %v926_v60, %v2732_v35 }
 0x1d8   :  { %v1061_v63 = vadd.f32 %v1060_v55, %v998_v47  ;;  %v928_v9 = vadd.f32 %v927_v12, %v2737_v37 }
 0x1da   :  { %v1062_v42 = vadd.f32 %v1061_v63, %v999_v32  ;;  %v929_v17 = vadd.f32 %v928_v9, %v865_v19 }
 0x1dc   :  { %v930_v57 = vrot.slane %v929_v17, 4  ;;  %v1063_v31 = vadd.f32 %v1062_v42, %v1000_v22 }
 0x1de   :  { %v931_v58 = vadd.f32 %v930_v57, %v929_v17  ;;  %v1064_v44 = vrot.slane %v1063_v31, 4 }
 0x1e0   :  { %v932_v61 = vrot.slane %v931_v58, 2  ;;  %v1065_v28 = vadd.f32 %v1064_v44, %v1063_v31  ;;  %v1073_v31 = vld [vmem:[%s3362_s2] sm:$0x1] }
 0x1e2   :  { %v933_v26 = vadd.f32 %v932_v61, %v931_v58  ;;  %v1066_v60 = vrot.slane %v1065_v28, 2 }
 0x1e4   :  { %v934_v48 = vrot.slane %v933_v26, 1  ;;  %v1067_v15 = vadd.f32 %v1066_v60, %v1065_v28 }
 0x1e6   :  { %v935_v23 = vadd.f32 %v934_v48, %v933_v26  ;;  %v1068_v49 = vrot.slane %v1067_v15, 1 }
 0x1e8   :  { %v936_v55 = vmul.f32 0.001953125, %v935_v23  ;;  %v1069_v12 = vadd.f32 %v1068_v49, %v1067_v15 }
 0x1ea   :  { %v1070_v47 = vmul.f32 0.001953125, %v1069_v12  ;;  %v1071_v36 = vmul.f32 %v936_v55, %v936_v55 }
 0x1ec   :  { %v1072_v14 = vsub.f32 %v1070_v47, %v1071_v36 }
 0x1ee   :  { %v1074_v63 = vadd.f32 1e-05, %v1072_v14  ;;  %v1086_v14 = vld [vmem:[%s3363_s3] sm:$0x1] }
 0x1f0   :  { %1899 = vrsqrt.f32 %v1074_v63  ;;  %vm1081_vm1 = vweird.f32 %v1074_v63 }
 0x1f6   :  { %v1900_v9 = vpop.eup %1899 }
 0x1f7   :  { %v1076_v32 = vmul.f32 %v1900_v9, %v1074_v63  ;;  %vm1082_vm0 = vweird.f32 %v1900_v9 }
 0x1f8   :  { %vm1083_vm2 = vmor %vm1081_vm1, %vm1082_vm0 }
 0x1f9   :  { %v1077_v42 = vmul.f32 %v1900_v9, %v1076_v32 }
 0x1fb   :  { %v1078_v17 = vmul.f32 0.5, %v1077_v42 }
 0x1fd   :  { %v1079_v22 = vsub.f32 1.5, %v1078_v17 }
 0x1ff   :  { %v1080_v57 = vmul.f32 %v1900_v9, %v1079_v22 }
 0x201   :  { %v1084_v58 = vsel %vm1083_vm2, %v1900_v9, %v1080_v57 }
 0x202   :  { %v1085_v15 = vmul.f32 %v1084_v58, %v1073_v31 }
 0x204   :  { %v1087_v44 = vmul.f32 %v1085_v15, %v936_v55  ;;  %v2751_v36 = vperm.slane %v1085_v15, 0 }
 0x206   :  { %v1088_v61 = vsub.f32 %v1086_v14, %v1087_v44  ;;  %v1138_v28 = vmul.f32 %v2751_v36, %v2422_v33  ;;  %v1139_v26 = vmul.f32 %v2751_v36, %v2426_v46  ;;  %v1140_v60 = vmul.f32 %v2751_v36, %v2430_v56 }
 0x207   :  { %v1141_v48 = vmul.f32 %v2751_v36, %v2434_v5  ;;  %v1142_v49 = vmul.f32 %v2751_v36, %v2440_v18  ;;  %v1143_v55 = vmul.f32 %v2751_v36, %v2446_v24  ;;  %v1144_v33 = vmul.f32 %v2751_v36, %v2454_v40 }
 0x208   :  { %v2761_v23 = vperm.slane %v1088_v61, 0  ;;  %v1145_v46 = vmul.f32 %v2751_v36, %v2679_v6  ;;  %v1146_v56 = vmul.f32 %v2751_v36, %v2686_v3  ;;  %v1147_v5 = vmul.f32 %v2751_v36, %v2693_v38 }
 0x209   :  { %v1148_v12 = vmul.f32 %v2751_v36, %v2700_v1  ;;  %v1149_v18 = vmul.f32 %v2751_v36, %v2708_v45  ;;  %v1150_v24 = vmul.f32 %v2751_v36, %v2715_v51  ;;  %v1151_v40 = vmul.f32 %v2751_v36, %v2722_v34 }
 0x20a   :  { %v1152_v6 = vmul.f32 %v2751_v36, %v2727_v11  ;;  %v1153_v3 = vmul.f32 %v2751_v36, %v2732_v35  ;;  %v1154_v38 = vmul.f32 %v2751_v36, %v2737_v37  ;;  %v1155_v1 = vmul.f32 %v2751_v36, %v865_v19 }
 0x20b   :  { %v2791_v47 = vadd.f32 %v2761_v23, %v1138_v28  ;;  %v2794_v45 = vadd.f32 %v2761_v23, %v1139_v26  ;;  %v2797_v51 = vadd.f32 %v2761_v23, %v1140_v60  ;;  %v2800_v34 = vadd.f32 %v2761_v23, %v1141_v48 }
 0x20c   :  { %v2803_v11 = vadd.f32 %v2761_v23, %v1142_v49  ;;  %v2806_v35 = vadd.f32 %v2761_v23, %v1143_v55  ;;  %v2809_v37 = vadd.f32 %v2761_v23, %v1144_v33  ;;  %v2812_v19 = vadd.f32 %v2761_v23, %v1145_v46  ;;  %v3443_v49 = vld [vmem:[#allocation2_spill] sm:$0xff] }
 0x20d   :  { %3427 = vst [vmem:[#allocation25_spill] sm:$0xff] %v2797_v51  ;;  %v2815_v63 = vadd.f32 %v2761_v23, %v1146_v56  ;;  %v2818_v9 = vadd.f32 %v2761_v23, %v1147_v5  ;;  %v2821_v32 = vadd.f32 %v2761_v23, %v1148_v12  ;;  %v2824_v42 = vadd.f32 %v2761_v23, %v1149_v18  ;;  %v3445_v46 = vld [vmem:[#allocation6_spill] sm:$0xff] }
 0x20e   :  { %3428 = vst [vmem:[#allocation26_spill] sm:$0xff] %v2800_v34  ;;  %v2827_v17 = vadd.f32 %v2761_v23, %v1150_v24  ;;  %v2830_v22 = vadd.f32 %v2761_v23, %v1151_v40  ;;  %v2833_v57 = vadd.f32 %v2761_v23, %v1152_v6  ;;  %v2836_v31 = vadd.f32 %v2761_v23, %v1153_v3  ;;  %v3449_v24 = vld [vmem:[#allocation11_spill] sm:$0xff]  ;;  %v3450_v6 = vld [vmem:[#allocation13_spill] sm:$0xff] }
 0x20f   :  { %3429 = vst [vmem:[#allocation27_spill] sm:$0xff] %v2803_v11  ;;  %v2839_v58 = vadd.f32 %v2761_v23, %v1154_v38  ;;  %v2842_v15 = vadd.f32 %v2761_v23, %v1155_v1  ;;  %v1092_v44 = vmul.f32 %v2751_v36, %v2166_v50  ;;  %v1093_v26 = vmul.f32 %v2751_v36, %v2180_v59  ;;  %v3444_v50 = vld [vmem:[#allocation4_spill] sm:$0xff]  ;;  %v3446_v59 = vld [vmem:[#allocation7_spill] sm:$0xff]  ;;  %v3451_v38 = vld [vmem:[#allocation14_spill] sm:$0xff] }
 0x210   :  { %3430 = vst [vmem:[#allocation28_spill] sm:$0xff] %v2806_v35  ;;  %v1094_v60 = vmul.f32 %v2751_v36, %v2194_v4  ;;  %v1095_v48 = vmul.f32 %v2751_v36, %v2208_v13  ;;  %v1096_v55 = vmul.f32 %v2751_v36, %v3443_v49  ;;  %v1097_v33 = vmul.f32 %v2751_v36, %v3444_v50  ;;  %v3447_v4 = vld [vmem:[#allocation8_spill] sm:$0xff]  ;;  %v3448_v13 = vld [vmem:[#allocation9_spill] sm:$0xff] }
 0x211   :  { %3431 = vst [vmem:[#allocation29_spill] sm:$0xff] %v2809_v37  ;;  %v1159_v14 = vadd.f32 %v2761_v23, %v1092_v44  ;;  %v1098_v56 = vmul.f32 %v2751_v36, %v3445_v46  ;;  %v1099_v5 = vmul.f32 %v2751_v36, %v3446_v59  ;;  %v1100_v12 = vmul.f32 %v2751_v36, %v3447_v4  ;;  %v3452_v44 = vld [vmem:[#allocation16_spill] sm:$0xff] }
 0x212   :  { %3432 = vst [vmem:[#allocation30_spill] sm:$0xff] %v2812_v19  ;;  %v1101_v18 = vmul.f32 %v2751_v36, %v3448_v13  ;;  %v1102_v40 = vmul.f32 %v2751_v36, %v3449_v24  ;;  %v1103_v3 = vmul.f32 %v2751_v36, %v3450_v6  ;;  %v1104_v1 = vmul.f32 %v2751_v36, %v3451_v38  ;;  %v3454_v13 = vld [vmem:[#allocation22_spill] sm:$0xff]  ;;  %v3455_v6 = vld [vmem:[#allocation23_spill] sm:$0xff]  ;;  %v3456_v38 = vld [vmem:[#allocation24_spill] sm:$0xff] }
 0x213   :  { %3433 = vst [vmem:[#allocation31_spill] sm:$0xff] %v2815_v63  ;;  %vm1223_vm3 = vcmp.ge.f32.partialorder %v1159_v14, 0.0  ;;  %v1287_v61 = vmul.f32 0.2, %v1159_v14  ;;  %v2884_v49 = vmul.f32 %v2751_v36, %v2400_v62  ;;  %v2888_v50 = vmul.f32 %v2751_v36, %v2404_v8 }
 0x214   :  { %3434 = vst [vmem:[#allocation32_spill] sm:$0xff] %v2818_v9  ;;  %v2892_v46 = vmul.f32 %v2751_v36, %v2420_v30  ;;  %v2896_v59 = vmul.f32 %v2751_v36, %v2424_v39  ;;  %v2900_v4 = vmul.f32 %v2751_v36, %v2428_v52  ;;  %v2904_v62 = vmul.f32 %v2751_v36, %v3454_v13  ;;  %v3465_v9 = vld [vmem:[#allocation21_spill] sm:$0xff] }
 0x215   :  { %3435 = vst [vmem:[#allocation33_spill] sm:$0xff] %v2821_v32  ;;  %v1351_v28 = vsel %vm1223_vm3, %v1159_v14, %v1287_v61  ;;  %v2876_v14 = vmul.f32 %v2751_v36, %v3452_v44  ;;  %v3453_v61 = vld [vmem:[#allocation18_spill] sm:$0xff]  ;;  %v2908_v8 = vmul.f32 %v2751_v36, %v2531_v0  ;;  %v2912_v30 = vmul.f32 %v2751_v36, %v2538_v27 }
 0x216   :  { %3436 = vst [vmem:[#allocation34_spill] sm:$0xff] %v2824_v42  ;;  %v2916_v39 = vmul.f32 %v2751_v36, %v2549_v43  ;;  %v2920_v52 = vmul.f32 %v2751_v36, %v2556_v21  ;;  %v2924_v24 = vmul.f32 %v2751_v36, %v2563_v29  ;;  %v2928_v0 = vmul.f32 %v2751_v36, %v2568_v54 }
 0x217   :  { %3437 = vst [vmem:[#allocation35_spill] sm:$0xff] %v2827_v17  ;;  %v2932_v27 = vmul.f32 %v2751_v36, %v2573_v10  ;;  %v2936_v43 = vmul.f32 %v2751_v36, %v3455_v6  ;;  %v2940_v21 = vmul.f32 %v2751_v36, %v3456_v38  ;;  %v2944_v29 = vmul.f32 %v2751_v36, %v2592_v25  ;;  %v3458_v6 = vld [vmem:[#allocation5_spill] sm:$0xff]  ;;  %v3463_v17 = vld [vmem:[#allocation19_spill] sm:$0xff] }
 0x218   :  { %3438 = vst [vmem:[#allocation36_spill] sm:$0xff] %v2830_v22  ;;  %v2948_v54 = vmul.f32 %v2751_v36, %v2605_v41  ;;  %v1160_v44 = vadd.f32 %v2761_v23, %v1093_v26  ;;  %v2953_v10 = vmul.f32 %v2751_v36, %v2222_v20  ;;  %v2961_v38 = vmul.f32 %v2751_v36, %v3458_v6 }
 0x219   :  { %3439 = vst [vmem:[#allocation37_spill] sm:$0xff] %v2833_v57  ;;  %v1161_v25 = vadd.f32 %v2761_v23, %v1094_v60  ;;  %v2966_v41 = vmul.f32 %v2751_v36, %v2258_v53  ;;  %v2970_v26 = vmul.f32 %v2751_v36, %v2286_v7  ;;  %v2974_v20 = vmul.f32 %v2751_v36, %v2290_v16  ;;  %v3462_v57 = vld [vmem:[#allocation17_spill] sm:$0xff] }
 0x21a   :  { %3440 = vst [vmem:[#allocation38_spill] sm:$0xff] %v2836_v31  ;;  %v2987_v53 = vmul.f32 %v2751_v36, %v2350_v2  ;;  %v1163_v7 = vadd.f32 %v2761_v23, %v1096_v55  ;;  %v3461_v31 = vld [vmem:[#allocation15_spill] sm:$0xff]  ;;  %v1288_v22 = vmul.f32 0.2, %v1160_v44  ;;  %v1165_v2 = vadd.f32 %v2761_v23, %v1098_v56  ;;  %v3464_v55 = vld [vmem:[#allocation20_spill] sm:$0xff] }
 0x21b   :  { %3441 = vst [vmem:[#allocation39_spill] sm:$0xff] %v2839_v58  ;;  %v3460_v58 = vld [vmem:[#allocation12_spill] sm:$0xff]  ;;  %v2992_v16 = vmul.f32 %v2751_v36, %v3461_v31  ;;  %vm1224_vm4 = vcmp.ge.f32.partialorder %v1160_v44, 0.0  ;;  %v1289_v42 = vmul.f32 0.2, %v1161_v25  ;;  %v3006_v32 = vmul.f32 %v2751_v36, %v3464_v55 }
 0x21c   :  { %3442 = vst [vmem:[#allocation40_spill] sm:$0xff] %v2842_v15  ;;  %v3459_v15 = vld [vmem:[#allocation10_spill] sm:$0xff]  ;;  %v2983_v60 = vmul.f32 %v2751_v36, %v3460_v58  ;;  %v3001_v58 = vmul.f32 %v2751_v36, %v3463_v17  ;;  %v1166_v31 = vadd.f32 %v2761_v23, %v1099_v5  ;;  %vm1225_vm5 = vcmp.ge.f32.partialorder %v1161_v25, 0.0 }
 0x21d   :  { %1415 = vst [vmem:[%s3364_s4] sm:$0xff] %v1351_v28  ;;  %v2880_v28 = vmul.f32 %v2751_v36, %v3453_v61  ;;  %v3457_v61 = vld [vmem:[#allocation3_spill] sm:$0xff]  ;;  %v2979_v6 = vmul.f32 %v2751_v36, %v3459_v15  ;;  %v1164_v15 = vadd.f32 %v2761_v23, %v1097_v33  ;;  %v3011_v33 = vmul.f32 %v2751_v36, %v3465_v9 }
 0x21e   :  { %v2957_v13 = vmul.f32 %v2751_v36, %v3457_v61  ;;  %v1162_v61 = vadd.f32 %v2761_v23, %v1095_v48  ;;  %v2996_v48 = vmul.f32 %v2751_v36, %v3462_v57  ;;  %v1167_v63 = vadd.f32 %v2761_v23, %v1100_v12 }
 0x21f   :  { %v1291_v17 = vmul.f32 0.2, %v1163_v7  ;;  %v1168_v56 = vadd.f32 %v2761_v23, %v1101_v18  ;;  %vm1227_vm7 = vcmp.ge.f32.partialorder %v1163_v7, 0.0  ;;  %v1292_v19 = vmul.f32 0.2, %v1164_v15 }
 0x220   :  { %v1290_v57 = vmul.f32 0.2, %v1162_v61  ;;  %vm1226_vm6 = vcmp.ge.f32.partialorder %v1162_v61, 0.0  ;;  %v1352_v37 = vsel %vm1224_vm4, %v1160_v44, %v1288_v22  ;;  %v1169_v55 = vadd.f32 %v2761_v23, %v1102_v40 }
 0x221   :  { %vm1228_vm8 = vcmp.ge.f32.partialorder %v1164_v15, 0.0  ;;  %v1293_v35 = vmul.f32 0.2, %v1165_v2  ;;  %v1353_v5 = vsel %vm1225_vm5, %v1161_v25, %v1289_v42  ;;  %v1170_v11 = vadd.f32 %v2761_v23, %v1103_v3  ;;  %1416 = vst [vmem:[%s3364_s4 + $0x8] sm:$0xff] %v1352_v37 }
 0x222   :  { %vm1229_vm9 = vcmp.ge.f32.partialorder %v1165_v2, 0.0  ;;  %v1294_v34 = vmul.f32 0.2, %v1166_v31  ;;  %v1354_v36 = vsel %vm1226_vm6, %v1162_v61, %v1290_v57  ;;  %v1171_v9 = vadd.f32 %v2761_v23, %v1104_v1  ;;  %1417 = vst [vmem:[%s3364_s4 + $0x10] sm:$0xff] %v1353_v5 }
 0x223   :  { %vm1230_vm10 = vcmp.ge.f32.partialorder %v1166_v31, 0.0  ;;  %v1295_v12 = vmul.f32 0.2, %v1167_v63  ;;  %v1355_v51 = vsel %vm1227_vm7, %v1163_v7, %v1291_v17  ;;  %v1172_v22 = vadd.f32 %v2761_v23, %v2876_v14  ;;  %1418 = vst [vmem:[%s3364_s4 + $0x18] sm:$0xff] %v1354_v36 }
 0x224   :  { %vm1231_vm11 = vcmp.ge.f32.partialorder %v1167_v63, 0.0  ;;  %v1296_v18 = vmul.f32 0.2, %v1168_v56  ;;  %v1356_v42 = vsel %vm1228_vm8, %v1164_v15, %v1292_v19  ;;  %v1173_v40 = vadd.f32 %v2761_v23, %v2880_v28  ;;  %1419 = vst [vmem:[%s3364_s4 + $0x20] sm:$0xff] %v1355_v51 }
 0x225   :  { %vm1232_vm12 = vcmp.ge.f32.partialorder %v1168_v56, 0.0  ;;  %v1297_v3 = vmul.f32 0.2, %v1169_v55  ;;  %v1357_v1 = vsel %vm1229_vm9, %v1165_v2, %v1293_v35  ;;  %v1174_v37 = vadd.f32 %v2761_v23, %v2884_v49  ;;  %1420 = vst [vmem:[%s3364_s4 + $0x28] sm:$0xff] %v1356_v42 }
 0x226   :  { %vm1233_vm13 = vcmp.ge.f32.partialorder %v1169_v55, 0.0  ;;  %v1298_v19 = vmul.f32 0.2, %v1170_v11  ;;  %v1358_v14 = vsel %vm1230_vm10, %v1166_v31, %v1294_v34  ;;  %v1175_v28 = vadd.f32 %v2761_v23, %v2888_v50  ;;  %1421 = vst [vmem:[%s3364_s4 + $0x30] sm:$0xff] %v1357_v1 }
 0x227   :  { %vm1234_vm14 = vcmp.ge.f32.partialorder %v1170_v11, 0.0  ;;  %v1299_v35 = vmul.f32 0.2, %v1171_v9  ;;  %v1359_v44 = vsel %vm1231_vm11, %v1167_v63, %v1295_v12  ;;  %v1176_v49 = vadd.f32 %v2761_v23, %v2892_v46  ;;  %1422 = vst [vmem:[%s3364_s4 + $0x38] sm:$0xff] %v1358_v14 }
 0x228   :  { %vm1235_vm15 = vcmp.ge.f32.partialorder %v1171_v9, 0.0  ;;  %v1300_v34 = vmul.f32 0.2, %v1172_v22  ;;  %v1360_v25 = vsel %vm1232_vm12, %v1168_v56, %v1296_v18  ;;  %v1177_v51 = vadd.f32 %v2761_v23, %v2896_v59  ;;  %1423 = vst [vmem:[%s3364_s4 + $0x40] sm:$0xff] %v1359_v44 }
 0x229   :  { %vm1236_vm0 = vcmp.ge.f32.partialorder %v1172_v22, 0.0  ;;  %v1301_v63 = vmul.f32 0.2, %v1173_v40  ;;  %v1361_v50 = vsel %vm1233_vm13, %v1169_v55, %v1297_v3  ;;  %v1178_v46 = vadd.f32 %v2761_v23, %v2900_v4  ;;  %1424 = vst [vmem:[%s3364_s4 + $0x48] sm:$0xff] %v1360_v25 }
 0x22a   :  { %vm1237_vm1 = vcmp.ge.f32.partialorder %v1173_v40, 0.0  ;;  %v1302_v61 = vmul.f32 0.2, %v1174_v37  ;;  %v1362_v7 = vsel %vm1234_vm14, %v1170_v11, %v1298_v19  ;;  %v1179_v59 = vadd.f32 %v2761_v23, %v2904_v62  ;;  %1425 = vst [vmem:[%s3364_s4 + $0x50] sm:$0xff] %v1361_v50 }
 0x22b   :  { %vm1238_vm2 = vcmp.ge.f32.partialorder %v1174_v37, 0.0  ;;  %v1303_v15 = vmul.f32 0.2, %v1175_v28  ;;  %v1363_v2 = vsel %vm1235_vm15, %v1171_v9, %v1299_v35  ;;  %v1180_v4 = vadd.f32 %v2761_v23, %v2908_v8  ;;  %1426 = vst [vmem:[%s3364_s4 + $0x58] sm:$0xff] %v1362_v7 }
 0x22c   :  { %vm1239_vm3 = vcmp.ge.f32.partialorder %v1175_v28, 0.0  ;;  %v1304_v11 = vmul.f32 0.2, %v1176_v49  ;;  %v1364_v31 = vsel %vm1236_vm0, %v1172_v22, %v1300_v34  ;;  %v1181_v62 = vadd.f32 %v2761_v23, %v2912_v30  ;;  %1427 = vst [vmem:[%s3364_s4 + $0x60] sm:$0xff] %v1363_v2 }
 0x22d   :  { %vm1240_vm4 = vcmp.ge.f32.partialorder %v1176_v49, 0.0  ;;  %v1305_v57 = vmul.f32 0.2, %v1177_v51  ;;  %v1365_v17 = vsel %vm1237_vm1, %v1173_v40, %v1301_v63  ;;  %v1182_v8 = vadd.f32 %v2761_v23, %v2916_v39  ;;  %1428 = vst [vmem:[%s3364_s4 + $0x68] sm:$0xff] %v1364_v31 }
 0x22e   :  { %vm1241_vm5 = vcmp.ge.f32.partialorder %v1177_v51, 0.0  ;;  %v1306_v56 = vmul.f32 0.2, %v1178_v46  ;;  %v1366_v55 = vsel %vm1238_vm2, %v1174_v37, %v1302_v61  ;;  %v1183_v30 = vadd.f32 %v2761_v23, %v2920_v52  ;;  %1429 = vst [vmem:[%s3364_s4 + $0x70] sm:$0xff] %v1365_v17 }
 0x22f   :  { %vm1242_vm6 = vcmp.ge.f32.partialorder %v1178_v46, 0.0  ;;  %v1307_v5 = vmul.f32 0.2, %v1179_v59  ;;  %v1367_v36 = vsel %vm1239_vm3, %v1175_v28, %v1303_v15  ;;  %v1184_v39 = vadd.f32 %v2761_v23, %v2924_v24  ;;  %1430 = vst [vmem:[%s3364_s4 + $0x78] sm:$0xff] %v1366_v55 }
 0x230   :  { %vm1243_vm7 = vcmp.ge.f32.partialorder %v1179_v59, 0.0  ;;  %v1308_v9 = vmul.f32 0.2, %v1180_v4  ;;  %v1368_v12 = vsel %vm1240_vm4, %v1176_v49, %v1304_v11  ;;  %v1185_v52 = vadd.f32 %v2761_v23, %v2928_v0  ;;  %1431 = vst [vmem:[%s3364_s4 + $0x80] sm:$0xff] %v1367_v36 }
 0x231   :  { %vm1244_vm8 = vcmp.ge.f32.partialorder %v1180_v4, 0.0  ;;  %v1309_v22 = vmul.f32 0.2, %v1181_v62  ;;  %v1369_v18 = vsel %vm1241_vm5, %v1177_v51, %v1305_v57  ;;  %v1186_v24 = vadd.f32 %v2761_v23, %v2932_v27  ;;  %1432 = vst [vmem:[%s3364_s4 + $0x88] sm:$0xff] %v1368_v12 }
 0x232   :  { %vm1245_vm9 = vcmp.ge.f32.partialorder %v1181_v62, 0.0  ;;  %v1310_v42 = vmul.f32 0.2, %v1182_v8  ;;  %v1370_v40 = vsel %vm1242_vm6, %v1178_v46, %v1306_v56  ;;  %v1187_v0 = vadd.f32 %v2761_v23, %v2936_v43  ;;  %1433 = vst [vmem:[%s3364_s4 + $0x90] sm:$0xff] %v1369_v18 }
 0x233   :  { %vm1246_vm10 = vcmp.ge.f32.partialorder %v1182_v8, 0.0  ;;  %v1311_v3 = vmul.f32 0.2, %v1183_v30  ;;  %v1371_v1 = vsel %vm1243_vm7, %v1179_v59, %v1307_v5  ;;  %v1188_v27 = vadd.f32 %v2761_v23, %v2940_v21  ;;  %1434 = vst [vmem:[%s3364_s4 + $0x98] sm:$0xff] %v1370_v40 }
 0x234   :  { %vm1247_vm11 = vcmp.ge.f32.partialorder %v1183_v30, 0.0  ;;  %v1312_v37 = vmul.f32 0.2, %v1184_v39  ;;  %v1372_v19 = vsel %vm1244_vm8, %v1180_v4, %v1308_v9  ;;  %v1189_v43 = vadd.f32 %v2761_v23, %v2944_v29  ;;  %1435 = vst [vmem:[%s3364_s4 + $0xa0] sm:$0xff] %v1371_v1 }
 0x235   :  { %vm1248_vm12 = vcmp.ge.f32.partialorder %v1184_v39, 0.0  ;;  %v1313_v14 = vmul.f32 0.2, %v1185_v52  ;;  %v1373_v28 = vsel %vm1245_vm9, %v1181_v62, %v1309_v22  ;;  %v1190_v21 = vadd.f32 %v2761_v23, %v2948_v54  ;;  %1436 = vst [vmem:[%s3364_s4 + $0xa8] sm:$0xff] %v1372_v19 }
 0x236   :  { %vm1249_vm13 = vcmp.ge.f32.partialorder %v1185_v52, 0.0  ;;  %v1314_v35 = vmul.f32 0.2, %v1186_v24  ;;  %v1374_v44 = vsel %vm1246_vm10, %v1182_v8, %v1310_v42  ;;  %v1191_v29 = vadd.f32 %v2761_v23, %v2953_v10  ;;  %1437 = vst [vmem:[%s3364_s4 + $0xb0] sm:$0xff] %v1373_v28 }
 0x237   :  { %vm1250_vm14 = vcmp.ge.f32.partialorder %v1186_v24, 0.0  ;;  %v1315_v49 = vmul.f32 0.2, %v1187_v0  ;;  %v1375_v34 = vsel %vm1247_vm11, %v1183_v30, %v1311_v3  ;;  %v1192_v54 = vadd.f32 %v2761_v23, %v2957_v13  ;;  %1438 = vst [vmem:[%s3364_s4 + $0xb8] sm:$0xff] %v1374_v44 }
 0x238   :  { %vm1251_vm15 = vcmp.ge.f32.partialorder %v1187_v0, 0.0  ;;  %v1316_v25 = vmul.f32 0.2, %v1188_v27  ;;  %v1376_v51 = vsel %vm1248_vm12, %v1184_v39, %v1312_v37  ;;  %v1193_v10 = vadd.f32 %v2761_v23, %v2961_v38  ;;  %1439 = vst [vmem:[%s3364_s4 + $0xc0] sm:$0xff] %v1375_v34  ;;  %v3466_v37 = vld [vmem:[#allocation25_spill] sm:$0xff] }
 0x239   :  { %vm1252_vm0 = vcmp.ge.f32.partialorder %v1188_v27, 0.0  ;;  %v1317_v63 = vmul.f32 0.2, %v1189_v43  ;;  %v1377_v50 = vsel %vm1249_vm13, %v1185_v52, %v1313_v14  ;;  %v1194_v13 = vadd.f32 %v2761_v23, %v2966_v41  ;;  %1440 = vst [vmem:[%s3364_s4 + $0xc8] sm:$0xff] %v1376_v51  ;;  %v3467_v14 = vld [vmem:[#allocation26_spill] sm:$0xff] }
 0x23a   :  { %vm1253_vm1 = vcmp.ge.f32.partialorder %v1189_v43, 0.0  ;;  %v1318_v46 = vmul.f32 0.2, %v1190_v21  ;;  %v1378_v61 = vsel %vm1250_vm14, %v1186_v24, %v1314_v35  ;;  %v1195_v38 = vadd.f32 %v2761_v23, %v2970_v26  ;;  %1441 = vst [vmem:[%s3364_s4 + $0xd0] sm:$0xff] %v1377_v50  ;;  %v3468_v35 = vld [vmem:[#allocation27_spill] sm:$0xff] }
 0x23b   :  { %vm1254_vm2 = vcmp.ge.f32.partialorder %v1190_v21, 0.0  ;;  %v1319_v7 = vmul.f32 0.2, %v1191_v29  ;;  %v1379_v59 = vsel %vm1251_vm15, %v1187_v0, %v1315_v49  ;;  %v1196_v41 = vadd.f32 %v2761_v23, %v2974_v20  ;;  %1442 = vst [vmem:[%s3364_s4 + $0xd8] sm:$0xff] %v1378_v61  ;;  %v3469_v49 = vld [vmem:[#allocation28_spill] sm:$0xff]  ;;  %v3472_v50 = vld [vmem:[#allocation31_spill] sm:$0xff] }
 0x23c   :  { %vm1255_vm3 = vcmp.ge.f32.partialorder %v1191_v29, 0.0  ;;  %v1320_v15 = vmul.f32 0.2, %v1192_v54  ;;  %v1380_v2 = vsel %vm1252_vm0, %v1188_v27, %v1316_v25  ;;  %v1197_v26 = vadd.f32 %v2761_v23, %v2979_v6  ;;  %1443 = vst [vmem:[%s3364_s4 + $0xe0] sm:$0xff] %v1379_v59  ;;  %v3470_v25 = vld [vmem:[#allocation29_spill] sm:$0xff]  ;;  %v3473_v61 = vld [vmem:[#allocation32_spill] sm:$0xff] }
 0x23d   :  { %vm1256_vm4 = vcmp.ge.f32.partialorder %v1192_v54, 0.0  ;;  %v1321_v4 = vmul.f32 0.2, %v1193_v10  ;;  %v1381_v11 = vsel %vm1253_vm1, %v1189_v43, %v1317_v63  ;;  %v1198_v20 = vadd.f32 %v2761_v23, %v2983_v60  ;;  %1444 = vst [vmem:[%s3364_s4 + $0xe8] sm:$0xff] %v1380_v2  ;;  %v3474_v59 = vld [vmem:[#allocation33_spill] sm:$0xff]  ;;  %v3475_v2 = vld [vmem:[#allocation34_spill] sm:$0xff] }
 0x23e   :  { %vm1257_vm5 = vcmp.ge.f32.partialorder %v1193_v10, 0.0  ;;  %v1322_v31 = vmul.f32 0.2, %v1194_v13  ;;  %v1382_v62 = vsel %vm1254_vm2, %v1190_v21, %v1318_v46  ;;  %v1199_v6 = vadd.f32 %v2761_v23, %v2987_v53  ;;  %1445 = vst [vmem:[%s3364_s4 + $0xf0] sm:$0xff] %v1381_v11  ;;  %v3476_v11 = vld [vmem:[#allocation35_spill] sm:$0xff] }
 0x23f   :  { %vm1258_vm6 = vcmp.ge.f32.partialorder %v1194_v13, 0.0  ;;  %v1323_v57 = vmul.f32 0.2, %v1195_v38  ;;  %v1383_v17 = vsel %vm1255_vm3, %v1191_v29, %v1319_v7  ;;  %v1200_v60 = vadd.f32 %v2761_v23, %v2992_v16  ;;  %1446 = vst [vmem:[%s3364_s4 + $0xf8] sm:$0xff] %v1382_v62  ;;  %v3477_v62 = vld [vmem:[#allocation36_spill] sm:$0xff] }
 0x240   :  { %vm1259_vm7 = vcmp.ge.f32.partialorder %v1195_v38, 0.0  ;;  %v1324_v8 = vmul.f32 0.2, %v1196_v41  ;;  %v1384_v56 = vsel %vm1256_vm4, %v1192_v54, %v1320_v15  ;;  %v1201_v53 = vadd.f32 %v2761_v23, %v2996_v48  ;;  %1447 = vst [vmem:[%s3364_s4 + $0x100] sm:$0xff] %v1383_v17  ;;  %v3478_v17 = vld [vmem:[#allocation37_spill] sm:$0xff] }
 0x241   :  { %vm1260_vm8 = vcmp.ge.f32.partialorder %v1196_v41, 0.0  ;;  %v1325_v55 = vmul.f32 0.2, %v1197_v26  ;;  %v1385_v30 = vsel %vm1257_vm5, %v1193_v10, %v1321_v4  ;;  %v1202_v16 = vadd.f32 %v2761_v23, %v3001_v58  ;;  %1448 = vst [vmem:[%s3364_s4 + $0x108] sm:$0xff] %v1384_v56  ;;  %v3471_v10 = vld [vmem:[#allocation30_spill] sm:$0xff] }
 0x242   :  { %vm1261_vm9 = vcmp.ge.f32.partialorder %v1197_v26, 0.0  ;;  %v1326_v5 = vmul.f32 0.2, %v1198_v20  ;;  %v1386_v36 = vsel %vm1258_vm6, %v1194_v13, %v1322_v31  ;;  %v1203_v48 = vadd.f32 %v2761_v23, %v3006_v32  ;;  %1449 = vst [vmem:[%s3364_s4 + $0x110] sm:$0xff] %v1385_v30  ;;  %v3479_v56 = vld [vmem:[#allocation38_spill] sm:$0xff]  ;;  %v3480_v30 = vld [vmem:[#allocation39_spill] sm:$0xff] }
 0x243   :  { %vm1262_vm10 = vcmp.ge.f32.partialorder %v1198_v20, 0.0  ;;  %v1327_v39 = vmul.f32 0.2, %v1199_v6  ;;  %v1387_v9 = vsel %vm1259_vm7, %v1195_v38, %v1323_v57  ;;  %v1204_v58 = vadd.f32 %v2761_v23, %v3011_v33  ;;  %1450 = vst [vmem:[%s3364_s4 + $0x118] sm:$0xff] %v1386_v36  ;;  %v3481_v36 = vld [vmem:[#allocation40_spill] sm:$0xff] }
 0x244   :  { %vm1263_vm11 = vcmp.ge.f32.partialorder %v1199_v6, 0.0  ;;  %v1328_v12 = vmul.f32 0.2, %v1200_v60  ;;  %v1388_v52 = vsel %vm1260_vm8, %v1196_v41, %v1324_v8  ;;  %vm1264_vm12 = vcmp.ge.f32.partialorder %v1200_v60, 0.0  ;;  %1451 = vst [vmem:[%s3364_s4 + $0x120] sm:$0xff] %v1387_v9 }
 0x245   :  { %v1329_v32 = vmul.f32 0.2, %v1201_v53  ;;  %v1389_v22 = vsel %vm1261_vm9, %v1197_v26, %v1325_v55  ;;  %vm1265_vm13 = vcmp.ge.f32.partialorder %v1201_v53, 0.0  ;;  %v1330_v18 = vmul.f32 0.2, %v1202_v16  ;;  %1452 = vst [vmem:[%s3364_s4 + $0x128] sm:$0xff] %v1388_v52 }
 0x246   :  { %v1390_v24 = vsel %vm1262_vm10, %v1198_v20, %v1326_v5  ;;  %vm1266_vm14 = vcmp.ge.f32.partialorder %v1202_v16, 0.0  ;;  %v1331_v23 = vmul.f32 0.2, %v1203_v48  ;;  %v1391_v33 = vsel %vm1263_vm11, %v1199_v6, %v1327_v39  ;;  %1453 = vst [vmem:[%s3364_s4 + $0x130] sm:$0xff] %v1389_v22 }
 0x247   :  { %vm1267_vm15 = vcmp.ge.f32.partialorder %v1203_v48, 0.0  ;;  %v1332_v42 = vmul.f32 0.2, %v1204_v58  ;;  %v1392_v40 = vsel %vm1264_vm12, %v1200_v60, %v1328_v12  ;;  %vm1268_vm0 = vcmp.ge.f32.partialorder %v1204_v58, 0.0  ;;  %1454 = vst [vmem:[%s3364_s4 + $0x138] sm:$0xff] %v1390_v24 }
 0x248   :  { %v1333_v0 = vmul.f32 0.2, %v2791_v47  ;;  %v1393_v3 = vsel %vm1265_vm13, %v1201_v53, %v1329_v32  ;;  %vm1269_vm1 = vcmp.ge.f32.partialorder %v2791_v47, 0.0  ;;  %v1334_v1 = vmul.f32 0.2, %v2794_v45  ;;  %1455 = vst [vmem:[%s3364_s4 + $0x140] sm:$0xff] %v1391_v33 }
 0x249   :  { %v1394_v27 = vsel %vm1266_vm14, %v1202_v16, %v1330_v18  ;;  %vm1270_vm2 = vcmp.ge.f32.partialorder %v2794_v45, 0.0  ;;  %v1335_v19 = vmul.f32 0.2, %v3466_v37  ;;  %v1395_v43 = vsel %vm1267_vm15, %v1203_v48, %v1331_v23  ;;  %1456 = vst [vmem:[%s3364_s4 + $0x148] sm:$0xff] %v1392_v40 }
 0x24a   :  { %vm1271_vm3 = vcmp.ge.f32.partialorder %v3466_v37, 0.0  ;;  %v1336_v28 = vmul.f32 0.2, %v3467_v14  ;;  %v1396_v21 = vsel %vm1268_vm0, %v1204_v58, %v1332_v42  ;;  %1457 = vst [vmem:[%s3364_s4 + $0x150] sm:$0xff] %v1393_v3  ;;  %vm1272_vm4 = vcmp.ge.f32.partialorder %v3467_v14, 0.0 }
 0x24b   :  { %v1337_v44 = vmul.f32 0.2, %v3468_v35  ;;  %v1397_v29 = vsel %vm1269_vm1, %v2791_v47, %v1333_v0  ;;  %1458 = vst [vmem:[%s3364_s4 + $0x158] sm:$0xff] %v1394_v27  ;;  %vm1273_vm5 = vcmp.ge.f32.partialorder %v3468_v35, 0.0  ;;  %v1338_v34 = vmul.f32 0.2, %v3469_v49 }
 0x24c   :  { %v1398_v54 = vsel %vm1270_vm2, %v2794_v45, %v1334_v1  ;;  %1459 = vst [vmem:[%s3364_s4 + $0x160] sm:$0xff] %v1395_v43  ;;  %vm1274_vm6 = vcmp.ge.f32.partialorder %v3469_v49, 0.0  ;;  %v1339_v51 = vmul.f32 0.2, %v3470_v25  ;;  %v1399_v47 = vsel %vm1271_vm3, %v3466_v37, %v1335_v19 }
 0x24d   :  { %1460 = vst [vmem:[%s3364_s4 + $0x168] sm:$0xff] %v1396_v21  ;;  %vm1275_vm7 = vcmp.ge.f32.partialorder %v3470_v25, 0.0  ;;  %v1340_v63 = vmul.f32 0.2, %v3471_v10  ;;  %v1400_v45 = vsel %vm1272_vm4, %v3467_v14, %v1336_v28  ;;  %vm1276_vm8 = vcmp.ge.f32.partialorder %v3471_v10, 0.0 }
 0x24e   :  { %1461 = vst [vmem:[%s3364_s4 + $0x170] sm:$0xff] %v1397_v29  ;;  %v1341_v13 = vmul.f32 0.2, %v3472_v50  ;;  %v1401_v46 = vsel %vm1273_vm5, %v3468_v35, %v1337_v44  ;;  %vm1277_vm9 = vcmp.ge.f32.partialorder %v3472_v50, 0.0  ;;  %v1342_v38 = vmul.f32 0.2, %v3473_v61 }
 0x24f   :  { %1462 = vst [vmem:[%s3364_s4 + $0x178] sm:$0xff] %v1398_v54  ;;  %v1402_v7 = vsel %vm1274_vm6, %v3469_v49, %v1338_v34  ;;  %vm1278_vm10 = vcmp.ge.f32.partialorder %v3473_v61, 0.0  ;;  %v1343_v41 = vmul.f32 0.2, %v3474_v59  ;;  %v1403_v15 = vsel %vm1275_vm7, %v3470_v25, %v1339_v51 }
 0x250   :  { %1463 = vst [vmem:[%s3364_s4 + $0x180] sm:$0xff] %v1399_v47  ;;  %vm1279_vm11 = vcmp.ge.f32.partialorder %v3474_v59, 0.0  ;;  %v1344_v26 = vmul.f32 0.2, %v3475_v2  ;;  %v1404_v4 = vsel %vm1276_vm8, %v3471_v10, %v1340_v63  ;;  %vm1280_vm12 = vcmp.ge.f32.partialorder %v3475_v2, 0.0 }
 0x251   :  { %1464 = vst [vmem:[%s3364_s4 + $0x188] sm:$0xff] %v1400_v45  ;;  %v1345_v20 = vmul.f32 0.2, %v3476_v11  ;;  %v1405_v31 = vsel %vm1277_vm9, %v3472_v50, %v1341_v13  ;;  %vm1281_vm13 = vcmp.ge.f32.partialorder %v3476_v11, 0.0  ;;  %v1346_v6 = vmul.f32 0.2, %v3477_v62 }
 0x252   :  { %1465 = vst [vmem:[%s3364_s4 + $0x190] sm:$0xff] %v1401_v46  ;;  %v1406_v57 = vsel %vm1278_vm10, %v3473_v61, %v1342_v38  ;;  %vm1282_vm14 = vcmp.ge.f32.partialorder %v3477_v62, 0.0  ;;  %v1347_v60 = vmul.f32 0.2, %v3478_v17  ;;  %v1407_v8 = vsel %vm1279_vm11, %v3474_v59, %v1343_v41 }
 0x253   :  { %1466 = vst [vmem:[%s3364_s4 + $0x198] sm:$0xff] %v1402_v7  ;;  %vm1283_vm15 = vcmp.ge.f32.partialorder %v3478_v17, 0.0  ;;  %v1348_v53 = vmul.f32 0.2, %v3479_v56  ;;  %v1408_v55 = vsel %vm1280_vm12, %v3475_v2, %v1344_v26  ;;  %vm1284_vm0 = vcmp.ge.f32.partialorder %v3479_v56, 0.0 }
 0x254   :  { %1467 = vst [vmem:[%s3364_s4 + $0x1a0] sm:$0xff] %v1403_v15  ;;  %v1349_v16 = vmul.f32 0.2, %v3480_v30  ;;  %v1409_v5 = vsel %vm1281_vm13, %v3476_v11, %v1345_v20  ;;  %vm1285_vm1 = vcmp.ge.f32.partialorder %v3480_v30, 0.0  ;;  %v1350_v48 = vmul.f32 0.2, %v3481_v36 }
 0x255   :  { %1468 = vst [vmem:[%s3364_s4 + $0x1a8] sm:$0xff] %v1404_v4  ;;  %v1410_v39 = vsel %vm1282_vm14, %v3477_v62, %v1346_v6  ;;  %vm1286_vm2 = vcmp.ge.f32.partialorder %v3481_v36, 0.0  ;;  %v1411_v9 = vsel %vm1283_vm15, %v3478_v17, %v1347_v60  ;;  %v1412_v58 = vsel %vm1284_vm0, %v3479_v56, %v1348_v53 }
 0x256   :  { %1469 = vst [vmem:[%s3364_s4 + $0x1b0] sm:$0xff] %v1405_v31  ;;  %v1413_v12 = vsel %vm1285_vm1, %v3480_v30, %v1349_v16  ;;  %v1414_v52 = vsel %vm1286_vm2, %v3481_v36, %v1350_v48 }
 0x257   :  { %1470 = vst [vmem:[%s3364_s4 + $0x1b8] sm:$0xff] %v1406_v57 }
 0x258   :  { %1471 = vst [vmem:[%s3364_s4 + $0x1c0] sm:$0xff] %v1407_v8 }
 0x259   :  { %1472 = vst [vmem:[%s3364_s4 + $0x1c8] sm:$0xff] %v1408_v55 }
 0x25a   :  { %1473 = vst [vmem:[%s3364_s4 + $0x1d0] sm:$0xff] %v1409_v5 }
 0x25b   :  { %1474 = vst [vmem:[%s3364_s4 + $0x1d8] sm:$0xff] %v1410_v39 }
 0x25c   :  { %1475 = vst [vmem:[%s3364_s4 + $0x1e0] sm:$0xff] %v1411_v9 }
 0x25d   :  { %1476 = vst [vmem:[%s3364_s4 + $0x1e8] sm:$0xff] %v1412_v58 }
 0x25e   :  { %1477 = vst [vmem:[%s3364_s4 + $0x1f0] sm:$0xff] %v1413_v12 }
 0x25f   :  { %1478 = vst [vmem:[%s3364_s4 + $0x1f8] sm:$0xff] %v1414_v52 }

// kernel: discriminator_forward.7
= control target key start
LH: loop header
LB: loop body
LE: loop exit
PB: predicated region body
PF: predicated region fallthrough
CT: control target
= control target key end

     0   :  { %s1647_s1 = inlined_call_operand.vmem [shape: bf16[512,128], index: 1, kind: input, shape index: {}]   ;;  %s1648_s0 = inlined_call_operand.vmem [shape: bf16[128,512], index: 0, kind: input, shape index: {}]   ;;  %s1649_s2 = inlined_call_operand.vmem [shape: f32[1,128], index: 2, kind: input, shape index: {}]   ;;  %s1650_s3 = inlined_call_operand.vmem [shape: f32[1,128], index: 3, kind: input, shape index: {}]   ;;  %s1651_s4 = inlined_call_operand.vmem [shape: f32[128,128], index: 4, kind: output, shape index: {}]  }
   0x1   :  { %v1140_v0 = vld [vmem:[%s1647_s1 + $0x38] sm:$0xff]  ;;  %v1139_v4 = vld [vmem:[%s1647_s1 + $0x30] sm:$0xff]  ;;  %v1138_v8 = vld [vmem:[%s1647_s1 + $0x28] sm:$0xff] }
   0x2   :  { %v1148_v1 = vld [vmem:[%s1647_s1 + $0x78] sm:$0xff]  ;;  %465 = vmatpush.bf16.msra.mxu0 %v1140_v0  ;;  %v1147_v5 = vld [vmem:[%s1647_s1 + $0x70] sm:$0xff]  ;;  %v1146_v9 = vld [vmem:[%s1647_s1 + $0x68] sm:$0xff] }
   0x3   :  { %v1156_v2 = vld [vmem:[%s1647_s1 + $0xb8] sm:$0xff]  ;;  %514 = vmatpush.bf16.msra.mxu1 %v1148_v1  ;;  %v1155_v6 = vld [vmem:[%s1647_s1 + $0xb0] sm:$0xff]  ;;  %v1154_v10 = vld [vmem:[%s1647_s1 + $0xa8] sm:$0xff] }
   0x4   :  { %v1164_v3 = vld [vmem:[%s1647_s1 + $0xf8] sm:$0xff]  ;;  %563 = vmatpush.bf16.msra.mxu2 %v1156_v2  ;;  %v1163_v7 = vld [vmem:[%s1647_s1 + $0xf0] sm:$0xff]  ;;  %v1162_v11 = vld [vmem:[%s1647_s1 + $0xe8] sm:$0xff] }
   0x5   :  { %612 = vmatpush.bf16.msra.mxu3 %v1164_v3  ;;  %v1137_v12 = vld [vmem:[%s1647_s1 + $0x20] sm:$0xff]  ;;  %v1136_v16 = vld [vmem:[%s1647_s1 + $0x18] sm:$0xff]  ;;  %v1135_v20 = vld [vmem:[%s1647_s1 + $0x10] sm:$0xff] }
   0x6   :  { %466 = vmatpush.bf16.msra.mxu0 %v1139_v4  ;;  %v1145_v13 = vld [vmem:[%s1647_s1 + $0x60] sm:$0xff]  ;;  %v1144_v17 = vld [vmem:[%s1647_s1 + $0x58] sm:$0xff]  ;;  %v1143_v21 = vld [vmem:[%s1647_s1 + $0x50] sm:$0xff] }
   0x7   :  { %515 = vmatpush.bf16.msra.mxu1 %v1147_v5  ;;  %v1153_v14 = vld [vmem:[%s1647_s1 + $0xa0] sm:$0xff]  ;;  %v1152_v18 = vld [vmem:[%s1647_s1 + $0x98] sm:$0xff]  ;;  %v1151_v22 = vld [vmem:[%s1647_s1 + $0x90] sm:$0xff] }
   0x8   :  { %564 = vmatpush.bf16.msra.mxu2 %v1155_v6  ;;  %v1161_v15 = vld [vmem:[%s1647_s1 + $0xe0] sm:$0xff]  ;;  %v1160_v19 = vld [vmem:[%s1647_s1 + $0xd8] sm:$0xff]  ;;  %v1159_v23 = vld [vmem:[%s1647_s1 + $0xd0] sm:$0xff] }
   0x9   :  { %613 = vmatpush.bf16.msra.mxu3 %v1163_v7  ;;  %v1134_v24 = vld [vmem:[%s1647_s1 + $0x8] sm:$0xff]  ;;  %v1133_v28 = vld [vmem:[%s1647_s1] sm:$0xff]  ;;  %v1103_v33 = vld [vmem:[%s1648_s0 + $0xc] sm:$0xf0] }
   0xa   :  { %467 = vmatpush.bf16.msra.mxu0 %v1138_v8  ;;  %v1142_v25 = vld [vmem:[%s1647_s1 + $0x48] sm:$0xff]  ;;  %v1141_v29 = vld [vmem:[%s1647_s1 + $0x40] sm:$0xff]  ;;  %v849_v35 = vld [vmem:[%s1648_s0 + $0x10] sm:$0xf0] }
   0xb   :  { %516 = vmatpush.bf16.msra.mxu1 %v1146_v9  ;;  %v1150_v26 = vld [vmem:[%s1647_s1 + $0x88] sm:$0xff]  ;;  %v1149_v30 = vld [vmem:[%s1647_s1 + $0x80] sm:$0xff]  ;;  %v1104_v37 = vld [vmem:[%s1648_s0 + $0x14] sm:$0xf0] }
   0xc   :  { %565 = vmatpush.bf16.msra.mxu2 %v1154_v10  ;;  %v1158_v27 = vld [vmem:[%s1647_s1 + $0xc8] sm:$0xff]  ;;  %v1157_v31 = vld [vmem:[%s1647_s1 + $0xc0] sm:$0xff]  ;;  %v857_v39 = vld [vmem:[%s1648_s0 + $0x18] sm:$0xf0] }
   0xd   :  { %614 = vmatpush.bf16.msra.mxu3 %v1162_v11  ;;  %v847_v32 = vld [vmem:[%s1648_s0] sm:$0xf]  ;;  %v1101_v34 = vld [vmem:[%s1648_s0 + $0x4] sm:$0xf]  ;;  %v855_v36 = vld [vmem:[%s1648_s0 + $0x8] sm:$0xf] }
   0xe   :  { %468 = vmatpush.bf16.msra.mxu0 %v1137_v12  ;;  %v1102_v38 = vld [vmem:[%s1648_s0 + $0xc] sm:$0xf]  ;;  %v848_v40 = vor.u32 %v1103_v33, %v847_v32  ;;  %v852_v41 = vor.u32 %v1101_v34, %v849_v35  ;;  %v856_v42 = vor.u32 %v1104_v37, %v855_v36  ;;  %v863_v44 = vld [vmem:[%s1648_s0 + $0x20] sm:$0xf]  ;;  %v1107_v45 = vld [vmem:[%s1648_s0 + $0x2c] sm:$0xf0] }
   0xf   :  { %517 = vmatpush.bf16.msra.mxu1 %v1145_v13  ;;  %v860_v43 = vor.u32 %v1102_v38, %v857_v39  ;;  %v1105_v46 = vld [vmem:[%s1648_s0 + $0x24] sm:$0xf]  ;;  %v865_v47 = vld [vmem:[%s1648_s0 + $0x30] sm:$0xf0]  ;;  %v871_v48 = vld [vmem:[%s1648_s0 + $0x28] sm:$0xf]  ;;  %v864_v52 = vor.u32 %v1107_v45, %v863_v44 }
  0x10   :  { %566 = vmatpush.bf16.msra.mxu2 %v1153_v14  ;;  %v1108_v49 = vld [vmem:[%s1648_s0 + $0x34] sm:$0xf0]  ;;  %v1106_v50 = vld [vmem:[%s1648_s0 + $0x2c] sm:$0xf]  ;;  %v873_v51 = vld [vmem:[%s1648_s0 + $0x38] sm:$0xf0]  ;;  %v868_v53 = vor.u32 %v1105_v46, %v865_v47 }
  0x11   :  { %615 = vmatpush.bf16.msra.mxu3 %v1161_v15  ;;  %v872_v54 = vor.u32 %v1108_v49, %v871_v48  ;;  %v876_v55 = vor.u32 %v1106_v50, %v873_v51  ;;  %v879_v56 = vld [vmem:[%s1648_s0 + $0x40] sm:$0xf]  ;;  %v1111_v57 = vld [vmem:[%s1648_s0 + $0x4c] sm:$0xf0]  ;;  %v1109_v58 = vld [vmem:[%s1648_s0 + $0x44] sm:$0xf] }
  0x12   :  { %469 = vmatpush.bf16.msra.mxu0 %v1136_v16  ;;  %v881_v59 = vld [vmem:[%s1648_s0 + $0x50] sm:$0xf0]  ;;  %v887_v60 = vld [vmem:[%s1648_s0 + $0x48] sm:$0xf]  ;;  %v1112_v61 = vld [vmem:[%s1648_s0 + $0x54] sm:$0xf0]  ;;  %v880_v0 = vor.u32 %v1111_v57, %v879_v56 }
  0x13   :  { %518 = vmatpush.bf16.msra.mxu1 %v1144_v17  ;;  %v1110_v62 = vld [vmem:[%s1648_s0 + $0x4c] sm:$0xf]  ;;  %v889_v63 = vld [vmem:[%s1648_s0 + $0x58] sm:$0xf0]  ;;  %v884_v1 = vor.u32 %v1109_v58, %v881_v59  ;;  %v888_v2 = vor.u32 %v1112_v61, %v887_v60  ;;  %v895_v4 = vld [vmem:[%s1648_s0 + $0x60] sm:$0xf] }
  0x14   :  { %567 = vmatpush.bf16.msra.mxu2 %v1152_v18  ;;  %v892_v3 = vor.u32 %v1110_v62, %v889_v63  ;;  %v1115_v5 = vld [vmem:[%s1648_s0 + $0x6c] sm:$0xf0]  ;;  %v1113_v6 = vld [vmem:[%s1648_s0 + $0x64] sm:$0xf]  ;;  %v897_v7 = vld [vmem:[%s1648_s0 + $0x70] sm:$0xf0] }
  0x15   :  { %616 = vmatpush.bf16.msra.mxu3 %v1160_v19  ;;  %v903_v8 = vld [vmem:[%s1648_s0 + $0x68] sm:$0xf]  ;;  %v1116_v9 = vld [vmem:[%s1648_s0 + $0x74] sm:$0xf0]  ;;  %v1114_v10 = vld [vmem:[%s1648_s0 + $0x6c] sm:$0xf]  ;;  %v896_v12 = vor.u32 %v1115_v5, %v895_v4  ;;  %v900_v13 = vor.u32 %v1113_v6, %v897_v7 }
  0x16   :  { %470 = vmatpush.bf16.msra.mxu0 %v1135_v20  ;;  %v905_v11 = vld [vmem:[%s1648_s0 + $0x78] sm:$0xf0]  ;;  %v904_v14 = vor.u32 %v1116_v9, %v903_v8  ;;  %v911_v16 = vld [vmem:[%s1648_s0 + $0x80] sm:$0xf]  ;;  %v1119_v17 = vld [vmem:[%s1648_s0 + $0x8c] sm:$0xf0] }
  0x17   :  { %519 = vmatpush.bf16.msra.mxu1 %v1143_v21  ;;  %v908_v15 = vor.u32 %v1114_v10, %v905_v11  ;;  %v1117_v18 = vld [vmem:[%s1648_s0 + $0x84] sm:$0xf]  ;;  %v913_v19 = vld [vmem:[%s1648_s0 + $0x90] sm:$0xf0]  ;;  %v919_v20 = vld [vmem:[%s1648_s0 + $0x88] sm:$0xf] }
  0x18   :  { %568 = vmatpush.bf16.msra.mxu2 %v1151_v22  ;;  %v1120_v21 = vld [vmem:[%s1648_s0 + $0x94] sm:$0xf0]  ;;  %v1118_v22 = vld [vmem:[%s1648_s0 + $0x8c] sm:$0xf]  ;;  %v935_v32 = vld [vmem:[%s1648_s0 + $0xa8] sm:$0xf] }
  0x19   :  { %617 = vmatpush.bf16.msra.mxu3 %v1159_v23  ;;  %v921_v23 = vld [vmem:[%s1648_s0 + $0x98] sm:$0xf0]  ;;  %v1124_v33 = vld [vmem:[%s1648_s0 + $0xb4] sm:$0xf0]  ;;  %v1122_v34 = vld [vmem:[%s1648_s0 + $0xac] sm:$0xf] }
  0x1a   :  { %471 = vmatpush.bf16.msra.mxu0 %v1134_v24  ;;  %v912_v24 = vor.u32 %v1119_v17, %v911_v16  ;;  %v937_v35 = vld [vmem:[%s1648_s0 + $0xb8] sm:$0xf0]  ;;  %v936_v38 = vor.u32 %v1124_v33, %v935_v32  ;;  %v951_v44 = vld [vmem:[%s1648_s0 + $0xc8] sm:$0xf]  ;;  %v1128_v45 = vld [vmem:[%s1648_s0 + $0xd4] sm:$0xf0] }
  0x1b   :  { %520 = vmatpush.bf16.msra.mxu1 %v1142_v25  ;;  %v916_v25 = vor.u32 %v1117_v18, %v913_v19  ;;  %v940_v39 = vor.u32 %v1122_v34, %v937_v35  ;;  %v1126_v46 = vld [vmem:[%s1648_s0 + $0xcc] sm:$0xf]  ;;  %v953_v47 = vld [vmem:[%s1648_s0 + $0xd8] sm:$0xf0]  ;;  %v952_v50 = vor.u32 %v1128_v45, %v951_v44  ;;  %v967_v56 = vld [vmem:[%s1648_s0 + $0xe8] sm:$0xf] }
  0x1c   :  { %569 = vmatpush.bf16.msra.mxu2 %v1150_v26  ;;  %v920_v26 = vor.u32 %v1120_v21, %v919_v20  ;;  %v956_v51 = vor.u32 %v1126_v46, %v953_v47  ;;  %v1132_v57 = vld [vmem:[%s1648_s0 + $0xf4] sm:$0xf0]  ;;  %v1130_v58 = vld [vmem:[%s1648_s0 + $0xec] sm:$0xf]  ;;  %v969_v59 = vld [vmem:[%s1648_s0 + $0xf8] sm:$0xf0] }
  0x1d   :  { %618 = vmatpush.bf16.msra.mxu3 %v1158_v27  ;;  %v924_v27 = vor.u32 %v1118_v22, %v921_v23  ;;  %v968_v62 = vor.u32 %v1132_v57, %v967_v56  ;;  %v972_v63 = vor.u32 %v1130_v58, %v969_v59 }
  0x1e   :  { %472 = vmatpush.bf16.msra.mxu0 %v1133_v28  ;;  %v927_v28 = vld [vmem:[%s1648_s0 + $0xa0] sm:$0xf] }
  0x1f   :  { %521 = vmatpush.bf16.msra.mxu1 %v1141_v29  ;;  %v1123_v29 = vld [vmem:[%s1648_s0 + $0xac] sm:$0xf0] }
  0x20   :  { %570 = vmatpush.bf16.msra.mxu2 %v1149_v30  ;;  %v1121_v30 = vld [vmem:[%s1648_s0 + $0xa4] sm:$0xf]  ;;  %v928_v36 = vor.u32 %v1123_v29, %v927_v28 }
  0x21   :  { %619 = vmatpush.bf16.msra.mxu3 %v1157_v31  ;;  %473 = vmatmul.bf16.vlgmr.msra.gmra.mxu0 %v848_v40  ;;  %v929_v31 = vld [vmem:[%s1648_s0 + $0xb0] sm:$0xf0]  ;;  %v943_v40 = vld [vmem:[%s1648_s0 + $0xc0] sm:$0xf] }
  0x22   :  { %522 = vmatmul.bf16.vlgmr.msra.gmra.mxu1 %v852_v41  ;;  %v932_v37 = vor.u32 %v1121_v30, %v929_v31  ;;  %v1127_v41 = vld [vmem:[%s1648_s0 + $0xcc] sm:$0xf0] }
  0x23   :  { %571 = vmatmul.bf16.vlgmr.msra.gmra.mxu2 %v856_v42  ;;  %v1125_v42 = vld [vmem:[%s1648_s0 + $0xc4] sm:$0xf]  ;;  %v944_v48 = vor.u32 %v1127_v41, %v943_v40 }
  0x24   :  { %620 = vmatmul.bf16.vlgmr.msra.gmra.mxu3 %v860_v43  ;;  %v945_v43 = vld [vmem:[%s1648_s0 + $0xd0] sm:$0xf0] }
  0x25   :  { %v948_v49 = vor.u32 %v1125_v42, %v945_v43 }
  0x31   :  { %478 = vmatmul.bf16.gmra.mxu0 %v864_v52  ;;  %v959_v52 = vld [vmem:[%s1648_s0 + $0xe0] sm:$0xf] }
  0x32   :  { %527 = vmatmul.bf16.gmra.mxu1 %v868_v53  ;;  %v1131_v53 = vld [vmem:[%s1648_s0 + $0xec] sm:$0xf0] }
  0x33   :  { %576 = vmatmul.bf16.gmra.mxu2 %v872_v54  ;;  %v1129_v54 = vld [vmem:[%s1648_s0 + $0xe4] sm:$0xf]  ;;  %v960_v60 = vor.u32 %v1131_v53, %v959_v52 }
  0x34   :  { %625 = vmatmul.bf16.gmra.mxu3 %v876_v55  ;;  %v961_v55 = vld [vmem:[%s1648_s0 + $0xf0] sm:$0xf0] }
  0x35   :  { %v964_v61 = vor.u32 %v1129_v54, %v961_v55 }
  0x41   :  { %483 = vmatmul.bf16.gmra.mxu0 %v880_v0 }
  0x42   :  { %532 = vmatmul.bf16.gmra.mxu1 %v884_v1 }
  0x43   :  { %581 = vmatmul.bf16.gmra.mxu2 %v888_v2 }
  0x44   :  { %630 = vmatmul.bf16.gmra.mxu3 %v892_v3 }
  0x51   :  { %488 = vmatmul.bf16.gmra.mxu0 %v896_v12 }
  0x52   :  { %537 = vmatmul.bf16.gmra.mxu1 %v900_v13 }
  0x53   :  { %586 = vmatmul.bf16.gmra.mxu2 %v904_v14 }
  0x54   :  { %635 = vmatmul.bf16.gmra.mxu3 %v908_v15 }
  0x61   :  { %493 = vmatmul.bf16.gmra.mxu0 %v912_v24 }
  0x62   :  { %542 = vmatmul.bf16.gmra.mxu1 %v916_v25 }
  0x63   :  { %591 = vmatmul.bf16.gmra.mxu2 %v920_v26 }
  0x64   :  { %640 = vmatmul.bf16.gmra.mxu3 %v924_v27 }
  0x71   :  { %498 = vmatmul.bf16.gmra.mxu0 %v928_v36 }
  0x72   :  { %547 = vmatmul.bf16.gmra.mxu1 %v932_v37 }
  0x73   :  { %596 = vmatmul.bf16.gmra.mxu2 %v936_v38 }
  0x74   :  { %645 = vmatmul.bf16.gmra.mxu3 %v940_v39 }
  0x81   :  { %503 = vmatmul.bf16.gmra.mxu0 %v944_v48 }
  0x82   :  { %552 = vmatmul.bf16.gmra.mxu1 %v948_v49 }
  0x83   :  { %601 = vmatmul.bf16.gmra.mxu2 %v952_v50 }
  0x84   :  { %650 = vmatmul.bf16.gmra.mxu3 %v956_v51 }
  0x91   :  { %508 = vmatmul.bf16.gmra.mxu0 %v960_v60 }
  0x92   :  { %557 = vmatmul.bf16.gmra.mxu1 %v964_v61 }
  0x93   :  { %606 = vmatmul.bf16.gmra.mxu2 %v968_v62 }
  0x94   :  { %655 = vmatmul.bf16.gmra.mxu3 %v972_v63 }
  0x9e   :  { %v474_v0 = vpop.f32.mrf.mxu0 }
  0x9f   :  { %v523_v1 = vpop.f32.mrf.mxu1 }
  0xa0   :  { %v524_v2 = vadd.f32 %v523_v1, %v474_v0 }
  0xa6   :  { %v572_v3 = vpop.f32.mrf.mxu2  ;;  %v476_v6 = vpop.f32.mrf.mxu0 }
  0xa7   :  { %v621_v4 = vpop.f32.mrf.mxu3  ;;  %v573_v5 = vadd.f32 %v572_v3, %v524_v2  ;;  %v525_v7 = vpop.f32.mrf.mxu1 }
  0xa8   :  { %v526_v8 = vadd.f32 %v525_v7, %v476_v6 }
  0xa9   :  { %v1480_v9 = vadd.f32 %v621_v4, %v573_v5 }
  0xab   :  { %v683_v5 = vmul.f32 %v1480_v9, %v1480_v9 }
  0xae   :  { %v574_v10 = vpop.f32.mrf.mxu2  ;;  %v479_v13 = vpop.f32.mrf.mxu0 }
  0xaf   :  { %v623_v11 = vpop.f32.mrf.mxu3  ;;  %v575_v12 = vadd.f32 %v574_v10, %v526_v8  ;;  %v528_v14 = vpop.f32.mrf.mxu1 }
  0xb0   :  { %v529_v15 = vadd.f32 %v528_v14, %v479_v13 }
  0xb1   :  { %v1482_v16 = vadd.f32 %v623_v11, %v575_v12 }
  0xb3   :  { %v684_v3 = vmul.f32 %v1482_v16, %v1482_v16  ;;  %v661_v7 = vadd.f32 %v1482_v16, %v1480_v9 }
  0xb5   :  { %v699_v14 = vadd.f32 %v684_v3, %v683_v5 }
  0xb6   :  { %v577_v17 = vpop.f32.mrf.mxu2  ;;  %v481_v20 = vpop.f32.mrf.mxu0 }
  0xb7   :  { %v626_v18 = vpop.f32.mrf.mxu3  ;;  %v578_v19 = vadd.f32 %v577_v17, %v529_v15  ;;  %v530_v21 = vpop.f32.mrf.mxu1 }
  0xb8   :  { %v531_v22 = vadd.f32 %v530_v21, %v481_v20 }
  0xb9   :  { %v1484_v23 = vadd.f32 %v626_v18, %v578_v19 }
  0xbb   :  { %v685_v6 = vmul.f32 %v1484_v23, %v1484_v23  ;;  %v662_v18 = vadd.f32 %v661_v7, %v1484_v23 }
  0xbe   :  { %v579_v24 = vpop.f32.mrf.mxu2  ;;  %v484_v27 = vpop.f32.mrf.mxu0 }
  0xbf   :  { %v628_v25 = vpop.f32.mrf.mxu3  ;;  %v580_v26 = vadd.f32 %v579_v24, %v531_v22  ;;  %v533_v28 = vpop.f32.mrf.mxu1  ;;  %v700_v22 = vadd.f32 %v699_v14, %v685_v6 }
  0xc0   :  { %v534_v29 = vadd.f32 %v533_v28, %v484_v27 }
  0xc1   :  { %v1486_v30 = vadd.f32 %v628_v25, %v580_v26 }
  0xc3   :  { %v686_v19 = vmul.f32 %v1486_v30, %v1486_v30  ;;  %v663_v24 = vadd.f32 %v662_v18, %v1486_v30 }
  0xc6   :  { %v582_v31 = vpop.f32.mrf.mxu2  ;;  %v486_v34 = vpop.f32.mrf.mxu0 }
  0xc7   :  { %v631_v32 = vpop.f32.mrf.mxu3  ;;  %v583_v33 = vadd.f32 %v582_v31, %v534_v29  ;;  %v535_v35 = vpop.f32.mrf.mxu1  ;;  %v701_v31 = vadd.f32 %v700_v22, %v686_v19 }
  0xc8   :  { %v536_v1 = vadd.f32 %v535_v35, %v486_v34 }
  0xc9   :  { %v1488_v36 = vadd.f32 %v631_v32, %v583_v33 }
  0xcb   :  { %v687_v25 = vmul.f32 %v1488_v36, %v1488_v36  ;;  %v664_v32 = vadd.f32 %v663_v24, %v1488_v36 }
  0xce   :  { %v584_v37 = vpop.f32.mrf.mxu2  ;;  %v489_v39 = vpop.f32.mrf.mxu0 }
  0xcf   :  { %v633_v38 = vpop.f32.mrf.mxu3  ;;  %v538_v40 = vpop.f32.mrf.mxu1  ;;  %v585_v4 = vadd.f32 %v584_v37, %v536_v1  ;;  %v702_v37 = vadd.f32 %v701_v31, %v687_v25 }
  0xd0   :  { %v539_v2 = vadd.f32 %v538_v40, %v489_v39 }
  0xd1   :  { %v1501_v20 = vadd.f32 %v633_v38, %v585_v4 }
  0xd3   :  { %v688_v33 = vmul.f32 %v1501_v20, %v1501_v20  ;;  %v665_v38 = vadd.f32 %v664_v32, %v1501_v20 }
  0xd6   :  { %v587_v41 = vpop.f32.mrf.mxu2  ;;  %v491_v43 = vpop.f32.mrf.mxu0 }
  0xd7   :  { %v636_v42 = vpop.f32.mrf.mxu3  ;;  %v540_v44 = vpop.f32.mrf.mxu1  ;;  %v588_v8 = vadd.f32 %v587_v41, %v539_v2 }
  0xd8   :  { %v541_v10 = vadd.f32 %v540_v44, %v491_v43 }
  0xd9   :  { %v1506_v26 = vadd.f32 %v636_v42, %v588_v8 }
  0xdb   :  { %v689_v39 = vmul.f32 %v1506_v26, %v1506_v26 }
  0xde   :  { %v589_v45 = vpop.f32.mrf.mxu2  ;;  %v494_v47 = vpop.f32.mrf.mxu0 }
  0xdf   :  { %v638_v46 = vpop.f32.mrf.mxu3  ;;  %v543_v48 = vpop.f32.mrf.mxu1  ;;  %v590_v21 = vadd.f32 %v589_v45, %v541_v10 }
  0xe0   :  { %v544_v11 = vadd.f32 %v543_v48, %v494_v47  ;;  %v703_v47 = vadd.f32 %v702_v37, %v688_v33  ;;  %v666_v48 = vadd.f32 %v665_v38, %v1506_v26 }
  0xe1   :  { %v1511_v34 = vadd.f32 %v638_v46, %v590_v21 }
  0xe3   :  { %v690_v46 = vmul.f32 %v1511_v34, %v1511_v34 }
  0xe6   :  { %v592_v49 = vpop.f32.mrf.mxu2  ;;  %v496_v51 = vpop.f32.mrf.mxu0 }
  0xe7   :  { %v641_v50 = vpop.f32.mrf.mxu3  ;;  %v545_v52 = vpop.f32.mrf.mxu1  ;;  %v593_v27 = vadd.f32 %v592_v49, %v544_v11 }
  0xe8   :  { %v546_v28 = vadd.f32 %v545_v52, %v496_v51 }
  0xe9   :  { %v1516_v40 = vadd.f32 %v641_v50, %v593_v27  ;;  %v667_v50 = vadd.f32 %v666_v48, %v1511_v34 }
  0xeb   :  { %v668_v1 = vadd.f32 %v667_v50, %v1516_v40 }
  0xee   :  { %v594_v53 = vpop.f32.mrf.mxu2  ;;  %v499_v55 = vpop.f32.mrf.mxu0 }
  0xef   :  { %v643_v54 = vpop.f32.mrf.mxu3  ;;  %v548_v56 = vpop.f32.mrf.mxu1  ;;  %v595_v35 = vadd.f32 %v594_v53, %v546_v28 }
  0xf0   :  { %v549_v29 = vadd.f32 %v548_v56, %v499_v55  ;;  %v704_v55 = vadd.f32 %v703_v47, %v689_v39  ;;  %v691_v56 = vmul.f32 %v1516_v40, %v1516_v40 }
  0xf1   :  { %v1521_v52 = vadd.f32 %v643_v54, %v595_v35 }
  0xf3   :  { %v692_v2 = vmul.f32 %v1521_v52, %v1521_v52  ;;  %v669_v6 = vadd.f32 %v668_v1, %v1521_v52 }
  0xf6   :  { %v597_v57 = vpop.f32.mrf.mxu2  ;;  %v501_v59 = vpop.f32.mrf.mxu0 }
  0xf7   :  { %v646_v58 = vpop.f32.mrf.mxu3  ;;  %v550_v60 = vpop.f32.mrf.mxu1  ;;  %v598_v43 = vadd.f32 %v597_v57, %v549_v29 }
  0xf8   :  { %v551_v44 = vadd.f32 %v550_v60, %v501_v59 }
  0xf9   :  { %v1526_v57 = vadd.f32 %v646_v58, %v598_v43 }
  0xfb   :  { %v693_v58 = vmul.f32 %v1526_v57, %v1526_v57  ;;  %v670_v11 = vadd.f32 %v669_v6, %v1526_v57 }
  0xfe   :  { %v599_v61 = vpop.f32.mrf.mxu2  ;;  %v504_v63 = vpop.f32.mrf.mxu0 }
  0xff   :  { %v648_v62 = vpop.f32.mrf.mxu3  ;;  %v553_v0 = vpop.f32.mrf.mxu1  ;;  %v600_v53 = vadd.f32 %v599_v61, %v551_v44 }
 0x100   :  { %v554_v45 = vadd.f32 %v553_v0, %v504_v63  ;;  %v705_v0 = vadd.f32 %v704_v55, %v690_v46 }
 0x101   :  { %v1531_v54 = vadd.f32 %v648_v62, %v600_v53 }
 0x102   :  { %v706_v3 = vadd.f32 %v705_v0, %v691_v56 }
 0x103   :  { %v671_v18 = vadd.f32 %v670_v11, %v1531_v54 }
 0x104   :  { %v707_v10 = vadd.f32 %v706_v3, %v692_v2 }
 0x106   :  { %v602_v12 = vpop.f32.mrf.mxu2  ;;  %v506_v15 = vpop.f32.mrf.mxu0 }
 0x107   :  { %v651_v13 = vpop.f32.mrf.mxu3  ;;  %v555_v17 = vpop.f32.mrf.mxu1  ;;  %v603_v59 = vadd.f32 %v602_v12, %v554_v45  ;;  %v694_v12 = vmul.f32 %v1531_v54, %v1531_v54 }
 0x108   :  { %v556_v60 = vadd.f32 %v555_v17, %v506_v15  ;;  %v708_v17 = vadd.f32 %v707_v10, %v693_v58  ;;  %v723_v58 = vld [vmem:[%s1649_s2] sm:$0x1] }
 0x109   :  { %v1536_v7 = vadd.f32 %v651_v13, %v603_v59 }
 0x10a   :  { %v709_v13 = vadd.f32 %v708_v17, %v694_v12  ;;  %v736_v12 = vld [vmem:[%s1650_s3] sm:$0x1] }
 0x10b   :  { %v695_v19 = vmul.f32 %v1536_v7, %v1536_v7  ;;  %v672_v22 = vadd.f32 %v671_v18, %v1536_v7 }
 0x10d   :  { %v710_v28 = vadd.f32 %v709_v13, %v695_v19 }
 0x10e   :  { %v604_v41 = vpop.f32.mrf.mxu2  ;;  %v509_v49 = vpop.f32.mrf.mxu0 }
 0x10f   :  { %v653_v42 = vpop.f32.mrf.mxu3  ;;  %v558_v51 = vpop.f32.mrf.mxu1  ;;  %v605_v61 = vadd.f32 %v604_v41, %v556_v60 }
 0x110   :  { %v559_v63 = vadd.f32 %v558_v51, %v509_v49 }
 0x111   :  { %v1541_v62 = vadd.f32 %v653_v42, %v605_v61 }
 0x113   :  { %v696_v24 = vmul.f32 %v1541_v62, %v1541_v62  ;;  %v673_v29 = vadd.f32 %v672_v22, %v1541_v62 }
 0x115   :  { %v711_v35 = vadd.f32 %v710_v28, %v696_v24 }
 0x116   :  { %v607_v4 = vpop.f32.mrf.mxu2  ;;  %v511_v14 = vpop.f32.mrf.mxu0 }
 0x117   :  { %v656_v5 = vpop.f32.mrf.mxu3  ;;  %v608_v8 = vadd.f32 %v607_v4, %v559_v63  ;;  %v560_v15 = vpop.f32.mrf.mxu1 }
 0x118   :  { %v561_v25 = vadd.f32 %v560_v15, %v511_v14 }
 0x119   :  { %v1546_v21 = vadd.f32 %v656_v5, %v608_v8 }
 0x11b   :  { %v697_v31 = vmul.f32 %v1546_v21, %v1546_v21  ;;  %v674_v37 = vadd.f32 %v673_v29, %v1546_v21 }
 0x11d   :  { %v712_v39 = vadd.f32 %v711_v35, %v697_v31 }
 0x11e   :  { %v609_v27 = vpop.f32.mrf.mxu2 }
 0x11f   :  { %v610_v32 = vadd.f32 %v609_v27, %v561_v25  ;;  %v658_v33 = vpop.f32.mrf.mxu3 }
 0x121   :  { %v659_v38 = vadd.f32 %v658_v33, %v610_v32 }
 0x123   :  { %v675_v41 = vadd.f32 %v674_v37, %v659_v38  ;;  %v698_v42 = vmul.f32 %v659_v38, %v659_v38 }
 0x125   :  { %v676_v43 = vrot.slane %v675_v41, 4  ;;  %v713_v44 = vadd.f32 %v712_v39, %v698_v42 }
 0x127   :  { %v677_v45 = vadd.f32 %v676_v43, %v675_v41  ;;  %v714_v47 = vrot.slane %v713_v44, 4 }
 0x129   :  { %v678_v48 = vrot.slane %v677_v45, 2  ;;  %v715_v46 = vadd.f32 %v714_v47, %v713_v44 }
 0x12b   :  { %v679_v49 = vadd.f32 %v678_v48, %v677_v45  ;;  %v716_v51 = vrot.slane %v715_v46, 2 }
 0x12d   :  { %v680_v53 = vrot.slane %v679_v49, 1  ;;  %v717_v55 = vadd.f32 %v716_v51, %v715_v46 }
 0x12f   :  { %v681_v50 = vadd.f32 %v680_v53, %v679_v49  ;;  %v718_v56 = vrot.slane %v717_v55, 1 }
 0x131   :  { %v682_v59 = vmul.f32 0.0078125, %v681_v50  ;;  %v719_v60 = vadd.f32 %v718_v56, %v717_v55 }
 0x133   :  { %v720_v63 = vmul.f32 0.0078125, %v719_v60  ;;  %v721_v0 = vmul.f32 %v682_v59, %v682_v59 }
 0x135   :  { %v722_v1 = vsub.f32 %v720_v63, %v721_v0 }
 0x137   :  { %v724_v2 = vadd.f32 1e-05, %v722_v1 }
 0x139   :  { %1165 = vrsqrt.f32 %v724_v2  ;;  %vm731_vm1 = vweird.f32 %v724_v2 }
 0x13f   :  { %v1166_v61 = vpop.eup %1165 }
 0x140   :  { %v726_v3 = vmul.f32 %v1166_v61, %v724_v2  ;;  %vm732_vm0 = vweird.f32 %v1166_v61 }
 0x141   :  { %vm733_vm2 = vmor %vm731_vm1, %vm732_vm0 }
 0x142   :  { %v727_v4 = vmul.f32 %v1166_v61, %v726_v3 }
 0x144   :  { %v728_v5 = vmul.f32 0.5, %v727_v4 }
 0x146   :  { %v729_v6 = vsub.f32 1.5, %v728_v5 }
 0x148   :  { %v730_v8 = vmul.f32 %v1166_v61, %v729_v6 }
 0x14a   :  { %v734_v10 = vsel %vm733_vm2, %v1166_v61, %v730_v8 }
 0x14b   :  { %v735_v11 = vmul.f32 %v734_v10, %v723_v58 }
 0x14d   :  { %v737_v14 = vmul.f32 %v735_v11, %v682_v59  ;;  %v740_v17 = vperm.slane %v735_v11, 0 }
 0x14f   :  { %v738_v15 = vsub.f32 %v736_v12, %v737_v14  ;;  %v742_v19 = vmul.f32 %v740_v17, %v1480_v9  ;;  %v743_v13 = vmul.f32 %v740_v17, %v1482_v16  ;;  %v744_v22 = vmul.f32 %v740_v17, %v1484_v23 }
 0x150   :  { %v745_v24 = vmul.f32 %v740_v17, %v1486_v30  ;;  %v746_v25 = vmul.f32 %v740_v17, %v1488_v36  ;;  %v747_v27 = vmul.f32 %v740_v17, %v1501_v20  ;;  %v748_v28 = vmul.f32 %v740_v17, %v1506_v26 }
 0x151   :  { %v1561_v18 = vperm.slane %v738_v15, 0  ;;  %v749_v29 = vmul.f32 %v740_v17, %v1511_v34  ;;  %v750_v31 = vmul.f32 %v740_v17, %v1516_v40  ;;  %v751_v16 = vmul.f32 %v740_v17, %v1521_v52 }
 0x152   :  { %v752_v23 = vmul.f32 %v740_v17, %v1526_v57  ;;  %v753_v30 = vmul.f32 %v740_v17, %v1531_v54  ;;  %v754_v20 = vmul.f32 %v740_v17, %v1536_v7  ;;  %v755_v26 = vmul.f32 %v740_v17, %v1541_v62 }
 0x153   :  { %v761_v32 = vadd.f32 %v1561_v18, %v742_v19  ;;  %v762_v9 = vadd.f32 %v1561_v18, %v743_v13  ;;  %v763_v36 = vadd.f32 %v1561_v18, %v744_v22  ;;  %v764_v34 = vadd.f32 %v1561_v18, %v745_v24 }
 0x154   :  { %v765_v40 = vadd.f32 %v1561_v18, %v746_v25  ;;  %v756_v33 = vmul.f32 %v740_v17, %v1546_v21  ;;  %v757_v35 = vmul.f32 %v740_v17, %v659_v38  ;;  %v766_v37 = vadd.f32 %v1561_v18, %v747_v27 }
 0x155   :  { %v767_v52 = vadd.f32 %v1561_v18, %v748_v28  ;;  %v768_v57 = vadd.f32 %v1561_v18, %v749_v29  ;;  %v769_v54 = vadd.f32 %v1561_v18, %v750_v31  ;;  %vm777_vm3 = vcmp.ge.f32.partialorder %v761_v32, 0.0 }
 0x156   :  { %vm778_vm4 = vcmp.ge.f32.partialorder %v762_v9, 0.0  ;;  %v770_v7 = vadd.f32 %v1561_v18, %v751_v16  ;;  %v793_v62 = vmul.f32 0.2, %v761_v32  ;;  %v794_v39 = vmul.f32 0.2, %v762_v9 }
 0x157   :  { %v795_v41 = vmul.f32 0.2, %v763_v36  ;;  %v771_v42 = vadd.f32 %v1561_v18, %v752_v23  ;;  %vm779_vm5 = vcmp.ge.f32.partialorder %v763_v36, 0.0  ;;  %v796_v21 = vmul.f32 0.2, %v764_v34 }
 0x158   :  { %v797_v38 = vmul.f32 0.2, %v765_v40  ;;  %vm780_vm6 = vcmp.ge.f32.partialorder %v764_v34, 0.0  ;;  %vm781_vm7 = vcmp.ge.f32.partialorder %v765_v40, 0.0  ;;  %v798_v43 = vmul.f32 0.2, %v766_v37 }
 0x159   :  { %v809_v44 = vsel %vm777_vm3, %v761_v32, %v793_v62  ;;  %v772_v45 = vadd.f32 %v1561_v18, %v753_v30  ;;  %vm782_vm8 = vcmp.ge.f32.partialorder %v766_v37, 0.0  ;;  %v799_v47 = vmul.f32 0.2, %v767_v52 }
 0x15a   :  { %v810_v48 = vsel %vm778_vm4, %v762_v9, %v794_v39  ;;  %825 = vst [vmem:[%s1651_s4] sm:$0xff] %v809_v44  ;;  %v773_v46 = vadd.f32 %v1561_v18, %v754_v20  ;;  %vm783_vm9 = vcmp.ge.f32.partialorder %v767_v52, 0.0  ;;  %v800_v49 = vmul.f32 0.2, %v768_v57 }
 0x15b   :  { %v811_v51 = vsel %vm779_vm5, %v763_v36, %v795_v41  ;;  %vm784_vm10 = vcmp.ge.f32.partialorder %v768_v57, 0.0  ;;  %v801_v53 = vmul.f32 0.2, %v769_v54  ;;  %v812_v55 = vsel %vm780_vm6, %v764_v34, %v796_v21  ;;  %826 = vst [vmem:[%s1651_s4 + $0x8] sm:$0xff] %v810_v48 }
 0x15c   :  { %v813_v50 = vsel %vm781_vm7, %v765_v40, %v797_v38  ;;  %v774_v56 = vadd.f32 %v1561_v18, %v755_v26  ;;  %vm785_vm11 = vcmp.ge.f32.partialorder %v769_v54, 0.0  ;;  %v802_v59 = vmul.f32 0.2, %v770_v7  ;;  %827 = vst [vmem:[%s1651_s4 + $0x10] sm:$0xff] %v811_v51 }
 0x15d   :  { %v814_v60 = vsel %vm782_vm8, %v766_v37, %v798_v43  ;;  %v775_v63 = vadd.f32 %v1561_v18, %v756_v33  ;;  %vm786_vm12 = vcmp.ge.f32.partialorder %v770_v7, 0.0  ;;  %v803_v0 = vmul.f32 0.2, %v771_v42  ;;  %828 = vst [vmem:[%s1651_s4 + $0x18] sm:$0xff] %v812_v55 }
 0x15e   :  { %v815_v1 = vsel %vm783_vm9, %v767_v52, %v799_v47  ;;  %v776_v2 = vadd.f32 %v1561_v18, %v757_v35  ;;  %vm787_vm13 = vcmp.ge.f32.partialorder %v771_v42, 0.0  ;;  %v804_v61 = vmul.f32 0.2, %v772_v45  ;;  %829 = vst [vmem:[%s1651_s4 + $0x20] sm:$0xff] %v813_v50 }
 0x15f   :  { %v816_v3 = vsel %vm784_vm10, %v768_v57, %v800_v49  ;;  %vm788_vm14 = vcmp.ge.f32.partialorder %v772_v45, 0.0  ;;  %v805_v4 = vmul.f32 0.2, %v773_v46  ;;  %v817_v5 = vsel %vm785_vm11, %v769_v54, %v801_v53  ;;  %830 = vst [vmem:[%s1651_s4 + $0x28] sm:$0xff] %v814_v60 }
 0x160   :  { %vm789_vm15 = vcmp.ge.f32.partialorder %v773_v46, 0.0  ;;  %v806_v6 = vmul.f32 0.2, %v774_v56  ;;  %v818_v58 = vsel %vm786_vm12, %v770_v7, %v802_v59  ;;  %831 = vst [vmem:[%s1651_s4 + $0x30] sm:$0xff] %v815_v1  ;;  %vm790_vm0 = vcmp.ge.f32.partialorder %v774_v56, 0.0 }
 0x161   :  { %v807_v8 = vmul.f32 0.2, %v775_v63  ;;  %v819_v10 = vsel %vm787_vm13, %v771_v42, %v803_v0  ;;  %832 = vst [vmem:[%s1651_s4 + $0x38] sm:$0xff] %v816_v3  ;;  %vm791_vm1 = vcmp.ge.f32.partialorder %v775_v63, 0.0  ;;  %v808_v11 = vmul.f32 0.2, %v776_v2 }
 0x162   :  { %v820_v12 = vsel %vm788_vm14, %v772_v45, %v804_v61  ;;  %833 = vst [vmem:[%s1651_s4 + $0x40] sm:$0xff] %v817_v5  ;;  %vm792_vm2 = vcmp.ge.f32.partialorder %v776_v2, 0.0  ;;  %v821_v14 = vsel %vm789_vm15, %v773_v46, %v805_v4  ;;  %v822_v15 = vsel %vm790_vm0, %v774_v56, %v806_v6 }
 0x163   :  { %834 = vst [vmem:[%s1651_s4 + $0x48] sm:$0xff] %v818_v58  ;;  %v823_v17 = vsel %vm791_vm1, %v775_v63, %v807_v8  ;;  %v824_v18 = vsel %vm792_vm2, %v776_v2, %v808_v11 }
 0x164   :  { %835 = vst [vmem:[%s1651_s4 + $0x50] sm:$0xff] %v819_v10 }
 0x165   :  { %836 = vst [vmem:[%s1651_s4 + $0x58] sm:$0xff] %v820_v12 }
 0x166   :  { %837 = vst [vmem:[%s1651_s4 + $0x60] sm:$0xff] %v821_v14 }
 0x167   :  { %838 = vst [vmem:[%s1651_s4 + $0x68] sm:$0xff] %v822_v15 }
 0x168   :  { %839 = vst [vmem:[%s1651_s4 + $0x70] sm:$0xff] %v823_v17 }
 0x169   :  { %840 = vst [vmem:[%s1651_s4 + $0x78] sm:$0xff] %v824_v18 }

// kernel: discriminator_forward.8
= control target key start
LH: loop header
LB: loop body
LE: loop exit
PB: predicated region body
PF: predicated region fallthrough
CT: control target
= control target key end

     0   :  { %s2918_s1 = inlined_call_operand.vmem [shape: bf16[1024,128], index: 1, kind: input, shape index: {}]   ;;  %s2919_s0 = inlined_call_operand.vmem [shape: bf16[128,1024], index: 0, kind: input, shape index: {}]   ;;  %s2920_s2 = inlined_call_operand.vmem [shape: f32[1,128], index: 2, kind: input, shape index: {}]   ;;  %s2921_s3 = inlined_call_operand.vmem [shape: f32[1,128], index: 3, kind: input, shape index: {}]   ;;  %s2922_s4 = inlined_call_operand.vmem [shape: f32[128,128], index: 4, kind: output, shape index: {}]  }
   0x1   :  { %v2072_v0 = vld [vmem:[%s2918_s1 + $0x38] sm:$0xff]  ;;  %v2071_v4 = vld [vmem:[%s2918_s1 + $0x30] sm:$0xff]  ;;  %v2070_v8 = vld [vmem:[%s2918_s1 + $0x28] sm:$0xff] }
   0x2   :  { %v2080_v1 = vld [vmem:[%s2918_s1 + $0x78] sm:$0xff]  ;;  %913 = vmatpush.bf16.msra.mxu0 %v2072_v0  ;;  %v2079_v5 = vld [vmem:[%s2918_s1 + $0x70] sm:$0xff]  ;;  %v2078_v9 = vld [vmem:[%s2918_s1 + $0x68] sm:$0xff] }
   0x3   :  { %v2088_v2 = vld [vmem:[%s2918_s1 + $0xb8] sm:$0xff]  ;;  %962 = vmatpush.bf16.msra.mxu1 %v2080_v1  ;;  %v2087_v6 = vld [vmem:[%s2918_s1 + $0xb0] sm:$0xff]  ;;  %v2086_v10 = vld [vmem:[%s2918_s1 + $0xa8] sm:$0xff] }
   0x4   :  { %v2096_v3 = vld [vmem:[%s2918_s1 + $0xf8] sm:$0xff]  ;;  %1011 = vmatpush.bf16.msra.mxu2 %v2088_v2  ;;  %v2095_v7 = vld [vmem:[%s2918_s1 + $0xf0] sm:$0xff]  ;;  %v2094_v11 = vld [vmem:[%s2918_s1 + $0xe8] sm:$0xff] }
   0x5   :  { %1060 = vmatpush.bf16.msra.mxu3 %v2096_v3  ;;  %v2069_v12 = vld [vmem:[%s2918_s1 + $0x20] sm:$0xff]  ;;  %v2068_v16 = vld [vmem:[%s2918_s1 + $0x18] sm:$0xff]  ;;  %v2067_v20 = vld [vmem:[%s2918_s1 + $0x10] sm:$0xff] }
   0x6   :  { %914 = vmatpush.bf16.msra.mxu0 %v2071_v4  ;;  %v2077_v13 = vld [vmem:[%s2918_s1 + $0x60] sm:$0xff]  ;;  %v2076_v17 = vld [vmem:[%s2918_s1 + $0x58] sm:$0xff]  ;;  %v2075_v21 = vld [vmem:[%s2918_s1 + $0x50] sm:$0xff] }
   0x7   :  { %963 = vmatpush.bf16.msra.mxu1 %v2079_v5  ;;  %v2085_v14 = vld [vmem:[%s2918_s1 + $0xa0] sm:$0xff]  ;;  %v2084_v18 = vld [vmem:[%s2918_s1 + $0x98] sm:$0xff]  ;;  %v2083_v22 = vld [vmem:[%s2918_s1 + $0x90] sm:$0xff] }
   0x8   :  { %1012 = vmatpush.bf16.msra.mxu2 %v2087_v6  ;;  %v2093_v15 = vld [vmem:[%s2918_s1 + $0xe0] sm:$0xff]  ;;  %v2092_v19 = vld [vmem:[%s2918_s1 + $0xd8] sm:$0xff]  ;;  %v2091_v23 = vld [vmem:[%s2918_s1 + $0xd0] sm:$0xff] }
   0x9   :  { %1061 = vmatpush.bf16.msra.mxu3 %v2095_v7  ;;  %v2066_v24 = vld [vmem:[%s2918_s1 + $0x8] sm:$0xff]  ;;  %v2065_v28 = vld [vmem:[%s2918_s1] sm:$0xff]  ;;  %v2120_v40 = vld [vmem:[%s2918_s1 + $0x1b8] sm:$0xff] }
   0xa   :  { %915 = vmatpush.bf16.msra.mxu0 %v2070_v8  ;;  %v2074_v25 = vld [vmem:[%s2918_s1 + $0x48] sm:$0xff]  ;;  %v2073_v29 = vld [vmem:[%s2918_s1 + $0x40] sm:$0xff]  ;;  %v2104_v41 = vld [vmem:[%s2918_s1 + $0x138] sm:$0xff] }
   0xb   :  { %964 = vmatpush.bf16.msra.mxu1 %v2078_v9  ;;  %v2082_v26 = vld [vmem:[%s2918_s1 + $0x88] sm:$0xff]  ;;  %v2081_v30 = vld [vmem:[%s2918_s1 + $0x80] sm:$0xff]  ;;  %v2128_v46 = vld [vmem:[%s2918_s1 + $0x1f8] sm:$0xff] }
   0xc   :  { %1013 = vmatpush.bf16.msra.mxu2 %v2086_v10  ;;  %v2090_v27 = vld [vmem:[%s2918_s1 + $0xc8] sm:$0xff]  ;;  %v2089_v31 = vld [vmem:[%s2918_s1 + $0xc0] sm:$0xff]  ;;  %v2112_v47 = vld [vmem:[%s2918_s1 + $0x178] sm:$0xff] }
   0xd   :  { %1062 = vmatpush.bf16.msra.mxu3 %v2094_v11  ;;  %v1491_v32 = vld [vmem:[%s2919_s0] sm:$0xf]  ;;  %v2001_v34 = vld [vmem:[%s2919_s0 + $0x4] sm:$0xf]  ;;  %v1499_v36 = vld [vmem:[%s2919_s0 + $0x8] sm:$0xf] }
   0xe   :  { %916 = vmatpush.bf16.msra.mxu0 %v2069_v12  ;;  %v2005_v33 = vld [vmem:[%s2919_s0 + $0x1c] sm:$0xf0]  ;;  %v1493_v35 = vld [vmem:[%s2919_s0 + $0x20] sm:$0xf0]  ;;  %v2006_v37 = vld [vmem:[%s2919_s0 + $0x24] sm:$0xf0] }
   0xf   :  { %965 = vmatpush.bf16.msra.mxu1 %v2077_v13  ;;  %v2002_v38 = vld [vmem:[%s2919_s0 + $0xc] sm:$0xf]  ;;  %v1492_v42 = vor.u32 %v2005_v33, %v1491_v32  ;;  %v1496_v43 = vor.u32 %v2001_v34, %v1493_v35  ;;  %v1500_v44 = vor.u32 %v2006_v37, %v1499_v36  ;;  %v2119_v48 = vld [vmem:[%s2918_s1 + $0x1b0] sm:$0xff]  ;;  %v1523_v56 = vld [vmem:[%s2919_s0 + $0x40] sm:$0xf] }
  0x10   :  { %1014 = vmatpush.bf16.msra.mxu2 %v2085_v14  ;;  %v1501_v39 = vld [vmem:[%s2919_s0 + $0x28] sm:$0xf0]  ;;  %v2103_v49 = vld [vmem:[%s2918_s1 + $0x130] sm:$0xff]  ;;  %v2013_v57 = vld [vmem:[%s2919_s0 + $0x5c] sm:$0xf0] }
  0x11   :  { %1063 = vmatpush.bf16.msra.mxu3 %v2093_v15  ;;  %v1504_v45 = vor.u32 %v2002_v38, %v1501_v39  ;;  %v2127_v50 = vld [vmem:[%s2918_s1 + $0x1f0] sm:$0xff]  ;;  %v2118_v52 = vld [vmem:[%s2918_s1 + $0x1a8] sm:$0xff]  ;;  %v2009_v58 = vld [vmem:[%s2919_s0 + $0x44] sm:$0xf]  ;;  %v1524_v0 = vor.u32 %v2013_v57, %v1523_v56 }
  0x12   :  { %917 = vmatpush.bf16.msra.mxu0 %v2068_v16  ;;  %v2111_v51 = vld [vmem:[%s2918_s1 + $0x170] sm:$0xff]  ;;  %v2102_v53 = vld [vmem:[%s2918_s1 + $0x128] sm:$0xff]  ;;  %v1525_v59 = vld [vmem:[%s2919_s0 + $0x60] sm:$0xf0] }
  0x13   :  { %966 = vmatpush.bf16.msra.mxu1 %v2076_v17  ;;  %v2126_v54 = vld [vmem:[%s2918_s1 + $0x1e8] sm:$0xff]  ;;  %v1528_v1 = vor.u32 %v2009_v58, %v1525_v59  ;;  %v2117_v4 = vld [vmem:[%s2918_s1 + $0x1a0] sm:$0xff]  ;;  %v2115_v36 = vld [vmem:[%s2918_s1 + $0x190] sm:$0xff] }
  0x14   :  { %1015 = vmatpush.bf16.msra.mxu2 %v2084_v18  ;;  %v2110_v55 = vld [vmem:[%s2918_s1 + $0x168] sm:$0xff]  ;;  %v2101_v5 = vld [vmem:[%s2918_s1 + $0x120] sm:$0xff]  ;;  %v2099_v37 = vld [vmem:[%s2918_s1 + $0x110] sm:$0xff] }
  0x15   :  { %1064 = vmatpush.bf16.msra.mxu3 %v2092_v19  ;;  %v1531_v60 = vld [vmem:[%s2919_s0 + $0x48] sm:$0xf]  ;;  %v2010_v62 = vld [vmem:[%s2919_s0 + $0x4c] sm:$0xf]  ;;  %v2125_v6 = vld [vmem:[%s2918_s1 + $0x1e0] sm:$0xff] }
  0x16   :  { %918 = vmatpush.bf16.msra.mxu0 %v2067_v20  ;;  %v2014_v61 = vld [vmem:[%s2919_s0 + $0x64] sm:$0xf0]  ;;  %v1533_v63 = vld [vmem:[%s2919_s0 + $0x68] sm:$0xf0]  ;;  %v2109_v7 = vld [vmem:[%s2918_s1 + $0x160] sm:$0xff] }
  0x17   :  { %967 = vmatpush.bf16.msra.mxu1 %v2075_v21  ;;  %v1532_v2 = vor.u32 %v2014_v61, %v1531_v60  ;;  %v1536_v3 = vor.u32 %v2010_v62, %v1533_v63  ;;  %v1555_v8 = vld [vmem:[%s2919_s0 + $0x80] sm:$0xf]  ;;  %v2017_v10 = vld [vmem:[%s2919_s0 + $0x84] sm:$0xf]  ;;  %v1563_v12 = vld [vmem:[%s2919_s0 + $0x88] sm:$0xf] }
  0x18   :  { %1016 = vmatpush.bf16.msra.mxu2 %v2083_v22  ;;  %v2021_v9 = vld [vmem:[%s2919_s0 + $0x9c] sm:$0xf0]  ;;  %v1557_v11 = vld [vmem:[%s2919_s0 + $0xa0] sm:$0xf0]  ;;  %v2022_v13 = vld [vmem:[%s2919_s0 + $0xa4] sm:$0xf0] }
  0x19   :  { %1065 = vmatpush.bf16.msra.mxu3 %v2091_v23  ;;  %v2018_v14 = vld [vmem:[%s2919_s0 + $0x8c] sm:$0xf]  ;;  %v1556_v16 = vor.u32 %v2021_v9, %v1555_v8  ;;  %v1560_v17 = vor.u32 %v2017_v10, %v1557_v11  ;;  %v1564_v18 = vor.u32 %v2022_v13, %v1563_v12  ;;  %v2116_v20 = vld [vmem:[%s2918_s1 + $0x198] sm:$0xff]  ;;  %v2123_v38 = vld [vmem:[%s2918_s1 + $0x1d0] sm:$0xff] }
  0x1a   :  { %919 = vmatpush.bf16.msra.mxu0 %v2066_v24  ;;  %v1565_v15 = vld [vmem:[%s2919_s0 + $0xa8] sm:$0xf0]  ;;  %v2100_v21 = vld [vmem:[%s2918_s1 + $0x118] sm:$0xff]  ;;  %v1587_v24 = vld [vmem:[%s2919_s0 + $0xc0] sm:$0xf] }
  0x1b   :  { %968 = vmatpush.bf16.msra.mxu1 %v2074_v25  ;;  %v1568_v19 = vor.u32 %v2018_v14, %v1565_v15  ;;  %v2124_v22 = vld [vmem:[%s2918_s1 + $0x1d8] sm:$0xff]  ;;  %v2029_v25 = vld [vmem:[%s2919_s0 + $0xdc] sm:$0xf0]  ;;  %v2107_v39 = vld [vmem:[%s2918_s1 + $0x150] sm:$0xff] }
  0x1c   :  { %1017 = vmatpush.bf16.msra.mxu2 %v2082_v26  ;;  %v2108_v23 = vld [vmem:[%s2918_s1 + $0x158] sm:$0xff]  ;;  %v2025_v26 = vld [vmem:[%s2919_s0 + $0xc4] sm:$0xf]  ;;  %v1588_v32 = vor.u32 %v2029_v25, %v1587_v24  ;;  %v1651_v56 = vld [vmem:[%s2919_s0 + $0x140] sm:$0xf] }
  0x1d   :  { %1066 = vmatpush.bf16.msra.mxu3 %v2090_v27  ;;  %v1589_v27 = vld [vmem:[%s2919_s0 + $0xe0] sm:$0xf0]  ;;  %v2045_v57 = vld [vmem:[%s2919_s0 + $0x15c] sm:$0xf0]  ;;  %v1659_v60 = vld [vmem:[%s2919_s0 + $0x148] sm:$0xf] }
  0x1e   :  { %920 = vmatpush.bf16.msra.mxu0 %v2065_v28  ;;  %v1595_v28 = vld [vmem:[%s2919_s0 + $0xc8] sm:$0xf]  ;;  %v1592_v33 = vor.u32 %v2025_v26, %v1589_v27  ;;  %v2041_v58 = vld [vmem:[%s2919_s0 + $0x144] sm:$0xf]  ;;  %v2042_v62 = vld [vmem:[%s2919_s0 + $0x14c] sm:$0xf] }
  0x1f   :  { %969 = vmatpush.bf16.msra.mxu1 %v2073_v29  ;;  %v2030_v29 = vld [vmem:[%s2919_s0 + $0xe4] sm:$0xf0]  ;;  %v1653_v59 = vld [vmem:[%s2919_s0 + $0x160] sm:$0xf0]  ;;  %v1661_v63 = vld [vmem:[%s2919_s0 + $0x168] sm:$0xf0] }
  0x20   :  { %1018 = vmatpush.bf16.msra.mxu2 %v2081_v30  ;;  %v2026_v30 = vld [vmem:[%s2919_s0 + $0xcc] sm:$0xf]  ;;  %v1596_v34 = vor.u32 %v2030_v29, %v1595_v28  ;;  %v2046_v61 = vld [vmem:[%s2919_s0 + $0x164] sm:$0xf0]  ;;  %v1683_v8 = vld [vmem:[%s2919_s0 + $0x180] sm:$0xf] }
  0x21   :  { %1067 = vmatpush.bf16.msra.mxu3 %v2089_v31  ;;  %921 = vmatmul.bf16.vlgmr.msra.gmra.mxu0 %v1492_v42  ;;  %v1597_v31 = vld [vmem:[%s2919_s0 + $0xe8] sm:$0xf0]  ;;  %v2033_v42 = vld [vmem:[%s2919_s0 + $0x104] sm:$0xf]  ;;  %v2053_v9 = vld [vmem:[%s2919_s0 + $0x19c] sm:$0xf0] }
  0x22   :  { %1109 = vmatpush.bf16.msrb.mxu0 %v2104_v41  ;;  %970 = vmatmul.bf16.vlgmr.msra.gmra.mxu1 %v1496_v43  ;;  %v1600_v35 = vor.u32 %v2026_v30, %v1597_v31  ;;  %v2037_v41 = vld [vmem:[%s2919_s0 + $0x11c] sm:$0xf0]  ;;  %v1621_v43 = vld [vmem:[%s2919_s0 + $0x120] sm:$0xf0]  ;;  %v1691_v12 = vld [vmem:[%s2919_s0 + $0x188] sm:$0xf] }
  0x23   :  { %1019 = vmatmul.bf16.vlgmr.msra.gmra.mxu2 %v1500_v44  ;;  %1158 = vmatpush.bf16.msrb.mxu1 %v2112_v47  ;;  %v1627_v44 = vld [vmem:[%s2919_s0 + $0x108] sm:$0xf]  ;;  %v1629_v47 = vld [vmem:[%s2919_s0 + $0x128] sm:$0xf0]  ;;  %v2049_v10 = vld [vmem:[%s2919_s0 + $0x184] sm:$0xf] }
  0x24   :  { %1207 = vmatpush.bf16.msrb.mxu2 %v2120_v40  ;;  %1068 = vmatmul.bf16.vlgmr.msra.gmra.mxu3 %v1504_v45  ;;  %v1619_v40 = vld [vmem:[%s2919_s0 + $0x100] sm:$0xf]  ;;  %v2038_v45 = vld [vmem:[%s2919_s0 + $0x124] sm:$0xf0]  ;;  %v1685_v11 = vld [vmem:[%s2919_s0 + $0x1a0] sm:$0xf0] }
  0x25   :  { %1256 = vmatpush.bf16.msrb.mxu3 %v2128_v46  ;;  %v2034_v46 = vld [vmem:[%s2919_s0 + $0x10c] sm:$0xf]  ;;  %v2054_v13 = vld [vmem:[%s2919_s0 + $0x1a4] sm:$0xf0] }
  0x26   :  { %1110 = vmatpush.bf16.msrb.mxu0 %v2103_v49  ;;  %v1624_v49 = vor.u32 %v2033_v42, %v1621_v43  ;;  %v2050_v14 = vld [vmem:[%s2919_s0 + $0x18c] sm:$0xf]  ;;  %v1723_v24 = vld [vmem:[%s2919_s0 + $0x1c8] sm:$0xf] }
  0x27   :  { %1159 = vmatpush.bf16.msrb.mxu1 %v2111_v51  ;;  %v1632_v51 = vor.u32 %v2034_v46, %v1629_v47  ;;  %v1693_v15 = vld [vmem:[%s2919_s0 + $0x1a8] sm:$0xf0]  ;;  %v2062_v25 = vld [vmem:[%s2919_s0 + $0x1e4] sm:$0xf0] }
  0x28   :  { %1208 = vmatpush.bf16.msrb.mxu2 %v2119_v48  ;;  %v1620_v48 = vor.u32 %v2037_v41, %v1619_v40  ;;  %v2058_v26 = vld [vmem:[%s2919_s0 + $0x1cc] sm:$0xf]  ;;  %v1724_v30 = vor.u32 %v2062_v25, %v1723_v24 }
  0x29   :  { %1257 = vmatpush.bf16.msrb.mxu3 %v2127_v50  ;;  %v1628_v50 = vor.u32 %v2038_v45, %v1627_v44  ;;  %v1725_v27 = vld [vmem:[%s2919_s0 + $0x1e8] sm:$0xf0] }
  0x2a   :  { %1111 = vmatpush.bf16.msrb.mxu0 %v2102_v53  ;;  %v2098_v53 = vld [vmem:[%s2918_s1 + $0x108] sm:$0xff]  ;;  %v1728_v31 = vor.u32 %v2058_v26, %v1725_v27 }
  0x2b   :  { %1160 = vmatpush.bf16.msrb.mxu1 %v2110_v55  ;;  %v2106_v55 = vld [vmem:[%s2918_s1 + $0x148] sm:$0xff] }
  0x2c   :  { %1209 = vmatpush.bf16.msrb.mxu2 %v2118_v52  ;;  %v2114_v52 = vld [vmem:[%s2918_s1 + $0x188] sm:$0xff] }
  0x2d   :  { %1258 = vmatpush.bf16.msrb.mxu3 %v2126_v54  ;;  %v2122_v54 = vld [vmem:[%s2918_s1 + $0x1c8] sm:$0xff] }
  0x2e   :  { %1112 = vmatpush.bf16.msrb.mxu0 %v2101_v5  ;;  %v2097_v5 = vld [vmem:[%s2918_s1 + $0x100] sm:$0xff] }
  0x2f   :  { %1161 = vmatpush.bf16.msrb.mxu1 %v2109_v7  ;;  %v2105_v7 = vld [vmem:[%s2918_s1 + $0x140] sm:$0xff] }
  0x30   :  { %1210 = vmatpush.bf16.msrb.mxu2 %v2117_v4  ;;  %v2113_v4 = vld [vmem:[%s2918_s1 + $0x180] sm:$0xff] }
  0x31   :  { %926 = vmatmul.bf16.gmra.mxu0 %v1524_v0  ;;  %1259 = vmatpush.bf16.msrb.mxu3 %v2125_v6  ;;  %v1652_v0 = vor.u32 %v2045_v57, %v1651_v56  ;;  %v2121_v6 = vld [vmem:[%s2918_s1 + $0x1c0] sm:$0xff]  ;;  %v2011_v56 = vld [vmem:[%s2919_s0 + $0x54] sm:$0xf] }
  0x32   :  { %975 = vmatmul.bf16.gmra.mxu1 %v1528_v1  ;;  %1113 = vmatpush.bf16.msrb.mxu0 %v2100_v21  ;;  %v1656_v1 = vor.u32 %v2041_v58, %v1653_v59  ;;  %v2061_v21 = vld [vmem:[%s2919_s0 + $0x1dc] sm:$0xf0]  ;;  %v1541_v57 = vld [vmem:[%s2919_s0 + $0x70] sm:$0xf0]  ;;  %v1547_v58 = vld [vmem:[%s2919_s0 + $0x58] sm:$0xf] }
  0x33   :  { %1024 = vmatmul.bf16.gmra.mxu2 %v1532_v2  ;;  %1162 = vmatpush.bf16.msrb.mxu1 %v2108_v23  ;;  %v1660_v2 = vor.u32 %v2046_v61, %v1659_v60  ;;  %v1717_v23 = vld [vmem:[%s2919_s0 + $0x1e0] sm:$0xf0]  ;;  %v2016_v59 = vld [vmem:[%s2919_s0 + $0x74] sm:$0xf0]  ;;  %v2012_v60 = vld [vmem:[%s2919_s0 + $0x5c] sm:$0xf] }
  0x34   :  { %1073 = vmatmul.bf16.gmra.mxu3 %v1536_v3  ;;  %1211 = vmatpush.bf16.msrb.mxu2 %v2116_v20  ;;  %v1664_v3 = vor.u32 %v2042_v62, %v1661_v63  ;;  %v1715_v20 = vld [vmem:[%s2919_s0 + $0x1c0] sm:$0xf]  ;;  %v1549_v61 = vld [vmem:[%s2919_s0 + $0x78] sm:$0xf0] }
  0x35   :  { %1260 = vmatpush.bf16.msrb.mxu3 %v2124_v22  ;;  %v2057_v22 = vld [vmem:[%s2919_s0 + $0x1c4] sm:$0xf]  ;;  %v1716_v28 = vor.u32 %v2061_v21, %v1715_v20  ;;  %v1579_v20 = vld [vmem:[%s2919_s0 + $0x98] sm:$0xf] }
  0x36   :  { %1114 = vmatpush.bf16.msrb.mxu0 %v2099_v37  ;;  %v1720_v29 = vor.u32 %v2057_v22, %v1717_v23  ;;  %v2008_v37 = vld [vmem:[%s2919_s0 + $0x34] sm:$0xf0]  ;;  %v2020_v22 = vld [vmem:[%s2919_s0 + $0x9c] sm:$0xf] }
  0x37   :  { %1163 = vmatpush.bf16.msrb.mxu1 %v2107_v39  ;;  %v1517_v39 = vld [vmem:[%s2919_s0 + $0x38] sm:$0xf0]  ;;  %v2024_v21 = vld [vmem:[%s2919_s0 + $0xb4] sm:$0xf0] }
  0x38   :  { %1212 = vmatpush.bf16.msrb.mxu2 %v2115_v36  ;;  %v1515_v36 = vld [vmem:[%s2919_s0 + $0x18] sm:$0xf]  ;;  %v1581_v23 = vld [vmem:[%s2919_s0 + $0xb8] sm:$0xf0] }
  0x39   :  { %1261 = vmatpush.bf16.msrb.mxu3 %v2123_v38  ;;  %v2004_v38 = vld [vmem:[%s2919_s0 + $0x1c] sm:$0xf]  ;;  %v1516_v44 = vor.u32 %v2008_v37, %v1515_v36 }
  0x3a   :  { %1115 = vmatpush.bf16.msrb.mxu0 %v2098_v53  ;;  %v1520_v45 = vor.u32 %v2004_v38, %v1517_v39 }
  0x3b   :  { %1164 = vmatpush.bf16.msrb.mxu1 %v2106_v55  ;;  %v2015_v55 = vld [vmem:[%s2919_s0 + $0x6c] sm:$0xf0] }
  0x3c   :  { %1213 = vmatpush.bf16.msrb.mxu2 %v2114_v52 }
  0x3d   :  { %1262 = vmatpush.bf16.msrb.mxu3 %v2122_v54  ;;  %v1539_v54 = vld [vmem:[%s2919_s0 + $0x50] sm:$0xf] }
  0x3e   :  { %1116 = vmatpush.bf16.msrb.mxu0 %v2097_v5  ;;  %v1548_v5 = vor.u32 %v2016_v59, %v1547_v58 }
  0x3f   :  { %1165 = vmatpush.bf16.msrb.mxu1 %v2105_v7 }
  0x40   :  { %1214 = vmatpush.bf16.msrb.mxu2 %v2113_v4 }
  0x41   :  { %931 = vmatmul.bf16.gmra.mxu0 %v1556_v16  ;;  %1263 = vmatpush.bf16.msrb.mxu3 %v2121_v6  ;;  %v1684_v16 = vor.u32 %v2053_v9, %v1683_v8  ;;  %v1552_v6 = vor.u32 %v2012_v60, %v1549_v61 }
  0x42   :  { %980 = vmatmul.bf16.gmra.mxu1 %v1560_v17  ;;  %v1688_v17 = vor.u32 %v2049_v10, %v1685_v11 }
  0x43   :  { %1029 = vmatmul.bf16.gmra.mxu2 %v1564_v18  ;;  %v1692_v18 = vor.u32 %v2054_v13, %v1691_v12 }
  0x44   :  { %1078 = vmatmul.bf16.gmra.mxu3 %v1568_v19  ;;  %v1696_v19 = vor.u32 %v2050_v14, %v1693_v15 }
  0x51   :  { %936 = vmatmul.bf16.gmra.mxu0 %v1588_v32  ;;  %v1507_v32 = vld [vmem:[%s2919_s0 + $0x10] sm:$0xf] }
  0x52   :  { %985 = vmatmul.bf16.gmra.mxu1 %v1592_v33  ;;  %v2007_v33 = vld [vmem:[%s2919_s0 + $0x2c] sm:$0xf0] }
  0x53   :  { %1034 = vmatmul.bf16.gmra.mxu2 %v1596_v34  ;;  %v2003_v34 = vld [vmem:[%s2919_s0 + $0x14] sm:$0xf]  ;;  %v1508_v40 = vor.u32 %v2007_v33, %v1507_v32  ;;  %v1584_v32 = vor.u32 %v2020_v22, %v1581_v23 }
  0x54   :  { %1083 = vmatmul.bf16.gmra.mxu3 %v1600_v35  ;;  %v1509_v35 = vld [vmem:[%s2919_s0 + $0x30] sm:$0xf0] }
  0x55   :  { %v1512_v41 = vor.u32 %v2003_v34, %v1509_v35 }
  0x61   :  { %941 = vmatmul.bf16.gmra.mxu0 %v1620_v48 }
  0x62   :  { %990 = vmatmul.bf16.gmra.mxu1 %v1624_v49 }
  0x63   :  { %1039 = vmatmul.bf16.gmra.mxu2 %v1628_v50 }
  0x64   :  { %1088 = vmatmul.bf16.gmra.mxu3 %v1632_v51 }
  0x71   :  { %946 = vmatmul.bf16.gmra.mxu0 %v1652_v0  ;;  %v1540_v0 = vor.u32 %v2015_v55, %v1539_v54 }
  0x72   :  { %995 = vmatmul.bf16.gmra.mxu1 %v1656_v1  ;;  %v1544_v1 = vor.u32 %v2011_v56, %v1541_v57 }
  0x73   :  { %1044 = vmatmul.bf16.gmra.mxu2 %v1660_v2 }
  0x74   :  { %1093 = vmatmul.bf16.gmra.mxu3 %v1664_v3 }
  0x81   :  { %951 = vmatmul.bf16.gmra.mxu0 %v1684_v16  ;;  %v1571_v16 = vld [vmem:[%s2919_s0 + $0x90] sm:$0xf] }
  0x82   :  { %1000 = vmatmul.bf16.gmra.mxu1 %v1688_v17  ;;  %v2023_v17 = vld [vmem:[%s2919_s0 + $0xac] sm:$0xf0] }
  0x83   :  { %1049 = vmatmul.bf16.gmra.mxu2 %v1692_v18  ;;  %v2019_v18 = vld [vmem:[%s2919_s0 + $0x94] sm:$0xf]  ;;  %v1572_v26 = vor.u32 %v2023_v17, %v1571_v16 }
  0x84   :  { %1098 = vmatmul.bf16.gmra.mxu3 %v1696_v19  ;;  %v1573_v19 = vld [vmem:[%s2919_s0 + $0xb0] sm:$0xf0] }
  0x85   :  { %v1576_v27 = vor.u32 %v2019_v18, %v1573_v19 }
  0x91   :  { %956 = vmatmul.bf16.gmra.mxu0 %v1716_v28 }
  0x92   :  { %1005 = vmatmul.bf16.gmra.mxu1 %v1720_v29 }
  0x93   :  { %1054 = vmatmul.bf16.gmra.mxu2 %v1724_v30 }
  0x94   :  { %1103 = vmatmul.bf16.gmra.mxu3 %v1728_v31  ;;  %v1580_v31 = vor.u32 %v2024_v21, %v1579_v20 }
  0x9e   :  { %v922_v42 = vpop.f32.mrf.mxu0 }
  0x9f   :  { %v971_v43 = vpop.f32.mrf.mxu1 }
  0xa0   :  { %v972_v46 = vadd.f32 %v971_v43, %v922_v42  ;;  %v1603_v42 = vld [vmem:[%s2919_s0 + $0xd0] sm:$0xf] }
  0xa1   :  { %1117 = vmatmul.bf16.vlgmr.msrb.gmra.mxu0 %v1508_v40  ;;  %v2031_v43 = vld [vmem:[%s2919_s0 + $0xec] sm:$0xf0] }
  0xa2   :  { %1166 = vmatmul.bf16.vlgmr.msrb.gmra.mxu1 %v1512_v41 }
  0xa3   :  { %1215 = vmatmul.bf16.vlgmr.msrb.gmra.mxu2 %v1516_v44  ;;  %v2027_v44 = vld [vmem:[%s2919_s0 + $0xd4] sm:$0xf] }
  0xa4   :  { %1264 = vmatmul.bf16.vlgmr.msrb.gmra.mxu3 %v1520_v45  ;;  %v1605_v45 = vld [vmem:[%s2919_s0 + $0xf0] sm:$0xf0] }
  0xa5   :  { %v1608_v54 = vor.u32 %v2027_v44, %v1605_v45 }
  0xa6   :  { %v1020_v47 = vpop.f32.mrf.mxu2  ;;  %v924_v50 = vpop.f32.mrf.mxu0 }
  0xa7   :  { %v1069_v48 = vpop.f32.mrf.mxu3  ;;  %v1021_v49 = vadd.f32 %v1020_v47, %v972_v46  ;;  %v973_v51 = vpop.f32.mrf.mxu1  ;;  %v1611_v46 = vld [vmem:[%s2919_s0 + $0xd8] sm:$0xf] }
  0xa8   :  { %v974_v52 = vadd.f32 %v973_v51, %v924_v50  ;;  %v2032_v47 = vld [vmem:[%s2919_s0 + $0xf4] sm:$0xf0] }
  0xa9   :  { %v2564_v53 = vadd.f32 %v1069_v48, %v1021_v49  ;;  %v2028_v48 = vld [vmem:[%s2919_s0 + $0xdc] sm:$0xf]  ;;  %v1612_v58 = vor.u32 %v2032_v47, %v1611_v46 }
  0xaa   :  { %v1613_v49 = vld [vmem:[%s2919_s0 + $0xf8] sm:$0xf0] }
  0xab   :  { %v1616_v59 = vor.u32 %v2028_v48, %v1613_v49 }
  0xae   :  { %v1022_v62 = vpop.f32.mrf.mxu2  ;;  %v927_v3 = vpop.f32.mrf.mxu0 }
  0xaf   :  { %v1071_v63 = vpop.f32.mrf.mxu3  ;;  %v1023_v2 = vadd.f32 %v1022_v62, %v974_v52  ;;  %v976_v4 = vpop.f32.mrf.mxu1  ;;  %v1604_v52 = vor.u32 %v2031_v43, %v1603_v42  ;;  %v1677_v42 = vld [vmem:[%s2919_s0 + $0x178] sm:$0xf0] }
  0xb0   :  { %v977_v7 = vadd.f32 %v976_v4, %v927_v3 }
  0xb1   :  { %v2590_v8 = vadd.f32 %v1071_v63, %v1023_v2  ;;  %1122 = vmatmul.bf16.gmra.mxu0 %v1540_v0 }
  0xb2   :  { %1171 = vmatmul.bf16.gmra.mxu1 %v1544_v1 }
  0xb3   :  { %1220 = vmatmul.bf16.gmra.mxu2 %v1548_v5  ;;  %v1635_v5 = vld [vmem:[%s2919_s0 + $0x110] sm:$0xf] }
  0xb4   :  { %1269 = vmatmul.bf16.gmra.mxu3 %v1552_v6  ;;  %v2039_v6 = vld [vmem:[%s2919_s0 + $0x12c] sm:$0xf0] }
  0xb5   :  { %v1636_v17 = vor.u32 %v2039_v6, %v1635_v5  ;;  %v2056_v5 = vld [vmem:[%s2919_s0 + $0x1b4] sm:$0xf0]  ;;  %v2052_v6 = vld [vmem:[%s2919_s0 + $0x19c] sm:$0xf] }
  0xb6   :  { %v1025_v9 = vpop.f32.mrf.mxu2  ;;  %v929_v12 = vpop.f32.mrf.mxu0 }
  0xb7   :  { %v1074_v10 = vpop.f32.mrf.mxu3  ;;  %v1026_v11 = vadd.f32 %v1025_v9, %v977_v7  ;;  %v978_v13 = vpop.f32.mrf.mxu1  ;;  %v2035_v7 = vld [vmem:[%s2919_s0 + $0x114] sm:$0xf] }
  0xb8   :  { %v979_v14 = vadd.f32 %v978_v13, %v929_v12  ;;  %v1637_v9 = vld [vmem:[%s2919_s0 + $0x130] sm:$0xf0]  ;;  %v2036_v12 = vld [vmem:[%s2919_s0 + $0x11c] sm:$0xf] }
  0xb9   :  { %v2592_v15 = vadd.f32 %v1074_v10, %v1026_v11  ;;  %v1643_v10 = vld [vmem:[%s2919_s0 + $0x118] sm:$0xf]  ;;  %v1645_v13 = vld [vmem:[%s2919_s0 + $0x138] sm:$0xf0]  ;;  %v1640_v18 = vor.u32 %v2035_v7, %v1637_v9 }
  0xba   :  { %v2040_v11 = vld [vmem:[%s2919_s0 + $0x134] sm:$0xf0]  ;;  %v1648_v23 = vor.u32 %v2036_v12, %v1645_v13  ;;  %v1709_v7 = vld [vmem:[%s2919_s0 + $0x1b8] sm:$0xf0] }
  0xbb   :  { %v1644_v22 = vor.u32 %v2040_v11, %v1643_v10 }
  0xbe   :  { %v1027_v24 = vpop.f32.mrf.mxu2  ;;  %v932_v29 = vpop.f32.mrf.mxu0 }
  0xbf   :  { %v1076_v25 = vpop.f32.mrf.mxu3  ;;  %v1028_v28 = vadd.f32 %v1027_v24, %v979_v14  ;;  %v981_v30 = vpop.f32.mrf.mxu1 }
  0xc0   :  { %v982_v33 = vadd.f32 %v981_v30, %v932_v29 }
  0xc1   :  { %v2618_v34 = vadd.f32 %v1076_v25, %v1028_v28  ;;  %1127 = vmatmul.bf16.gmra.mxu0 %v1572_v26 }
  0xc2   :  { %1176 = vmatmul.bf16.gmra.mxu1 %v1576_v27 }
  0xc3   :  { %1225 = vmatmul.bf16.gmra.mxu2 %v1580_v31 }
  0xc4   :  { %1274 = vmatmul.bf16.gmra.mxu3 %v1584_v32 }
  0xc6   :  { %v1030_v35 = vpop.f32.mrf.mxu2  ;;  %v934_v38 = vpop.f32.mrf.mxu0 }
  0xc7   :  { %v1079_v36 = vpop.f32.mrf.mxu3  ;;  %v1031_v37 = vadd.f32 %v1030_v35, %v982_v33  ;;  %v983_v39 = vpop.f32.mrf.mxu1  ;;  %v1667_v33 = vld [vmem:[%s2919_s0 + $0x150] sm:$0xf] }
  0xc8   :  { %v984_v40 = vadd.f32 %v983_v39, %v934_v38  ;;  %v2047_v35 = vld [vmem:[%s2919_s0 + $0x16c] sm:$0xf0]  ;;  %v1675_v38 = vld [vmem:[%s2919_s0 + $0x158] sm:$0xf] }
  0xc9   :  { %v2620_v41 = vadd.f32 %v1079_v36, %v1031_v37  ;;  %v2043_v36 = vld [vmem:[%s2919_s0 + $0x154] sm:$0xf]  ;;  %v2048_v39 = vld [vmem:[%s2919_s0 + $0x174] sm:$0xf0]  ;;  %v1668_v45 = vor.u32 %v2047_v35, %v1667_v33 }
  0xca   :  { %v1669_v37 = vld [vmem:[%s2919_s0 + $0x170] sm:$0xf0]  ;;  %v1739_v35 = vld [vmem:[%s2919_s0 + $0x1d8] sm:$0xf] }
  0xcb   :  { %v1672_v46 = vor.u32 %v2043_v36, %v1669_v37  ;;  %v1733_v33 = vld [vmem:[%s2919_s0 + $0x1f0] sm:$0xf0]  ;;  %v2064_v36 = vld [vmem:[%s2919_s0 + $0x1f4] sm:$0xf0]  ;;  %v2060_v37 = vld [vmem:[%s2919_s0 + $0x1dc] sm:$0xf] }
  0xce   :  { %v1032_v50 = vpop.f32.mrf.mxu2  ;;  %v937_v56 = vpop.f32.mrf.mxu0 }
  0xcf   :  { %v1081_v51 = vpop.f32.mrf.mxu3  ;;  %v1033_v55 = vadd.f32 %v1032_v50, %v984_v40  ;;  %v986_v57 = vpop.f32.mrf.mxu1  ;;  %v2044_v40 = vld [vmem:[%s2919_s0 + $0x15c] sm:$0xf]  ;;  %v1676_v50 = vor.u32 %v2048_v39, %v1675_v38 }
  0xd0   :  { %v987_v60 = vadd.f32 %v986_v57, %v937_v56  ;;  %v1741_v38 = vld [vmem:[%s2919_s0 + $0x1f8] sm:$0xf0] }
  0xd1   :  { %v2646_v61 = vadd.f32 %v1081_v51, %v1033_v55  ;;  %1132 = vmatmul.bf16.gmra.mxu0 %v1604_v52  ;;  %v1680_v51 = vor.u32 %v2044_v40, %v1677_v42 }
  0xd2   :  { %1181 = vmatmul.bf16.gmra.mxu1 %v1608_v54 }
  0xd3   :  { %1230 = vmatmul.bf16.gmra.mxu2 %v1612_v58 }
  0xd4   :  { %1279 = vmatmul.bf16.gmra.mxu3 %v1616_v59 }
  0xd6   :  { %v1035_v62 = vpop.f32.mrf.mxu2  ;;  %v939_v1 = vpop.f32.mrf.mxu0 }
  0xd7   :  { %v1084_v63 = vpop.f32.mrf.mxu3  ;;  %v1036_v0 = vadd.f32 %v1035_v62, %v987_v60  ;;  %v988_v2 = vpop.f32.mrf.mxu1 }
  0xd8   :  { %v989_v3 = vadd.f32 %v988_v2, %v939_v1  ;;  %v2051_v1 = vld [vmem:[%s2919_s0 + $0x194] sm:$0xf] }
  0xd9   :  { %v2648_v4 = vadd.f32 %v1084_v63, %v1036_v0  ;;  %v1699_v63 = vld [vmem:[%s2919_s0 + $0x190] sm:$0xf]  ;;  %v1701_v2 = vld [vmem:[%s2919_s0 + $0x1b0] sm:$0xf0] }
  0xda   :  { %v2055_v0 = vld [vmem:[%s2919_s0 + $0x1ac] sm:$0xf0]  ;;  %v1704_v12 = vor.u32 %v2051_v1, %v1701_v2 }
  0xdb   :  { %v1700_v11 = vor.u32 %v2055_v0, %v1699_v63 }
  0xde   :  { %v1037_v14 = vpop.f32.mrf.mxu2  ;;  %v942_v20 = vpop.f32.mrf.mxu0 }
  0xdf   :  { %v1086_v16 = vpop.f32.mrf.mxu3  ;;  %v1038_v19 = vadd.f32 %v1037_v14, %v989_v3  ;;  %v991_v21 = vpop.f32.mrf.mxu1  ;;  %v1707_v3 = vld [vmem:[%s2919_s0 + $0x198] sm:$0xf] }
  0xe0   :  { %v992_v24 = vadd.f32 %v991_v21, %v942_v20 }
  0xe1   :  { %v2674_v25 = vadd.f32 %v1086_v16, %v1038_v19  ;;  %1137 = vmatmul.bf16.gmra.mxu0 %v1636_v17  ;;  %v1708_v17 = vor.u32 %v2056_v5, %v1707_v3 }
  0xe2   :  { %1186 = vmatmul.bf16.gmra.mxu1 %v1640_v18  ;;  %v1712_v18 = vor.u32 %v2052_v6, %v1709_v7 }
  0xe3   :  { %1235 = vmatmul.bf16.gmra.mxu2 %v1644_v22 }
  0xe4   :  { %1284 = vmatmul.bf16.gmra.mxu3 %v1648_v23 }
  0xe6   :  { %v1040_v26 = vpop.f32.mrf.mxu2  ;;  %v944_v29 = vpop.f32.mrf.mxu0 }
  0xe7   :  { %v1089_v27 = vpop.f32.mrf.mxu3  ;;  %v1041_v28 = vadd.f32 %v1040_v26, %v992_v24  ;;  %v993_v30 = vpop.f32.mrf.mxu1 }
  0xe8   :  { %v994_v31 = vadd.f32 %v993_v30, %v944_v29  ;;  %v1731_v29 = vld [vmem:[%s2919_s0 + $0x1d0] sm:$0xf] }
  0xe9   :  { %v2676_v32 = vadd.f32 %v1089_v27, %v1041_v28  ;;  %v2063_v30 = vld [vmem:[%s2919_s0 + $0x1ec] sm:$0xf0] }
  0xea   :  { %v1732_v42 = vor.u32 %v2063_v30, %v1731_v29 }
  0xee   :  { %v1042_v43 = vpop.f32.mrf.mxu2  ;;  %v947_v48 = vpop.f32.mrf.mxu0 }
  0xef   :  { %v1091_v44 = vpop.f32.mrf.mxu3  ;;  %v1043_v47 = vadd.f32 %v1042_v43, %v994_v31  ;;  %v996_v49 = vpop.f32.mrf.mxu1  ;;  %v2059_v31 = vld [vmem:[%s2919_s0 + $0x1d4] sm:$0xf] }
  0xf0   :  { %v997_v52 = vadd.f32 %v996_v49, %v947_v48  ;;  %v1736_v43 = vor.u32 %v2059_v31, %v1733_v33  ;;  %v1744_v48 = vor.u32 %v2060_v37, %v1741_v38 }
  0xf1   :  { %v2702_v54 = vadd.f32 %v1091_v44, %v1043_v47  ;;  %1142 = vmatmul.bf16.gmra.mxu0 %v1668_v45  ;;  %v1740_v47 = vor.u32 %v2064_v36, %v1739_v35 }
  0xf2   :  { %1191 = vmatmul.bf16.gmra.mxu1 %v1672_v46 }
  0xf3   :  { %1240 = vmatmul.bf16.gmra.mxu2 %v1676_v50 }
  0xf4   :  { %1289 = vmatmul.bf16.gmra.mxu3 %v1680_v51 }
  0xf6   :  { %v1045_v55 = vpop.f32.mrf.mxu2  ;;  %v949_v58 = vpop.f32.mrf.mxu0 }
  0xf7   :  { %v1094_v56 = vpop.f32.mrf.mxu3  ;;  %v1046_v57 = vadd.f32 %v1045_v55, %v997_v52  ;;  %v998_v59 = vpop.f32.mrf.mxu1 }
  0xf8   :  { %v999_v60 = vadd.f32 %v998_v59, %v949_v58 }
  0xf9   :  { %v2704_v62 = vadd.f32 %v1094_v56, %v1046_v57 }
  0xfe   :  { %v1047_v9 = vpop.f32.mrf.mxu2  ;;  %v952_v14 = vpop.f32.mrf.mxu0 }
  0xff   :  { %v1096_v10 = vpop.f32.mrf.mxu3  ;;  %v1048_v13 = vadd.f32 %v1047_v9, %v999_v60  ;;  %v1001_v16 = vpop.f32.mrf.mxu1 }
 0x100   :  { %v1002_v19 = vadd.f32 %v1001_v16, %v952_v14 }
 0x101   :  { %v2730_v20 = vadd.f32 %v1096_v10, %v1048_v13  ;;  %1147 = vmatmul.bf16.gmra.mxu0 %v1700_v11 }
 0x102   :  { %1196 = vmatmul.bf16.gmra.mxu1 %v1704_v12 }
 0x103   :  { %1245 = vmatmul.bf16.gmra.mxu2 %v1708_v17 }
 0x104   :  { %1294 = vmatmul.bf16.gmra.mxu3 %v1712_v18 }
 0x106   :  { %v1050_v21 = vpop.f32.mrf.mxu2  ;;  %v954_v24 = vpop.f32.mrf.mxu0 }
 0x107   :  { %v1099_v22 = vpop.f32.mrf.mxu3  ;;  %v1051_v23 = vadd.f32 %v1050_v21, %v1002_v19  ;;  %v1003_v26 = vpop.f32.mrf.mxu1 }
 0x108   :  { %v1004_v27 = vadd.f32 %v1003_v26, %v954_v24 }
 0x109   :  { %v2732_v28 = vadd.f32 %v1099_v22, %v1051_v23 }
 0x10e   :  { %v1052_v39 = vpop.f32.mrf.mxu2  ;;  %v957_v45 = vpop.f32.mrf.mxu0 }
 0x10f   :  { %v1101_v40 = vpop.f32.mrf.mxu3  ;;  %v1053_v44 = vadd.f32 %v1052_v39, %v1004_v27  ;;  %v1006_v46 = vpop.f32.mrf.mxu1 }
 0x110   :  { %v1007_v49 = vadd.f32 %v1006_v46, %v957_v45 }
 0x111   :  { %v2758_v50 = vadd.f32 %v1101_v40, %v1053_v44  ;;  %1152 = vmatmul.bf16.gmra.mxu0 %v1732_v42 }
 0x112   :  { %1201 = vmatmul.bf16.gmra.mxu1 %v1736_v43 }
 0x113   :  { %1250 = vmatmul.bf16.gmra.mxu2 %v1740_v47 }
 0x114   :  { %1299 = vmatmul.bf16.gmra.mxu3 %v1744_v48 }
 0x116   :  { %v1055_v51 = vpop.f32.mrf.mxu2  ;;  %v959_v56 = vpop.f32.mrf.mxu0 }
 0x117   :  { %v1104_v52 = vpop.f32.mrf.mxu3  ;;  %v1056_v55 = vadd.f32 %v1055_v51, %v1007_v49  ;;  %v1008_v57 = vpop.f32.mrf.mxu1 }
 0x118   :  { %v1009_v58 = vadd.f32 %v1008_v57, %v959_v56 }
 0x119   :  { %v2760_v59 = vadd.f32 %v1104_v52, %v1056_v55 }
 0x11e   :  { %v1057_v60 = vpop.f32.mrf.mxu2  ;;  %v1118_v1 = vpop.f32.mrf.mxu0 }
 0x11f   :  { %v1106_v63 = vpop.f32.mrf.mxu3  ;;  %v1058_v0 = vadd.f32 %v1057_v60, %v1009_v58  ;;  %v1167_v2 = vpop.f32.mrf.mxu1  ;;  %v1119_v3 = vadd.f32 %v1118_v1, %v2564_v53 }
 0x121   :  { %v2763_v5 = vadd.f32 %v1106_v63, %v1058_v0  ;;  %v1168_v6 = vadd.f32 %v1167_v2, %v1119_v3 }
 0x126   :  { %v1216_v7 = vpop.f32.mrf.mxu2  ;;  %v1120_v11 = vpop.f32.mrf.mxu0 }
 0x127   :  { %v1265_v9 = vpop.f32.mrf.mxu3  ;;  %v1217_v10 = vadd.f32 %v1216_v7, %v1168_v6  ;;  %v1169_v12 = vpop.f32.mrf.mxu1  ;;  %v1121_v13 = vadd.f32 %v1120_v11, %v2590_v8 }
 0x129   :  { %v2766_v14 = vadd.f32 %v1265_v9, %v1217_v10  ;;  %v1170_v16 = vadd.f32 %v1169_v12, %v1121_v13 }
 0x12e   :  { %v1218_v17 = vpop.f32.mrf.mxu2  ;;  %v1123_v21 = vpop.f32.mrf.mxu0 }
 0x12f   :  { %v1267_v18 = vpop.f32.mrf.mxu3  ;;  %v1219_v19 = vadd.f32 %v1218_v17, %v1170_v16  ;;  %v1172_v22 = vpop.f32.mrf.mxu1  ;;  %v1124_v53 = vadd.f32 %v1123_v21, %v2592_v15 }
 0x131   :  { %v2769_v23 = vadd.f32 %v1267_v18, %v1219_v19  ;;  %v1173_v24 = vadd.f32 %v1172_v22, %v1124_v53 }
 0x136   :  { %v1221_v26 = vpop.f32.mrf.mxu2  ;;  %v1125_v30 = vpop.f32.mrf.mxu0 }
 0x137   :  { %v1270_v27 = vpop.f32.mrf.mxu3  ;;  %v1222_v29 = vadd.f32 %v1221_v26, %v1173_v24  ;;  %v1174_v31 = vpop.f32.mrf.mxu1  ;;  %v1126_v8 = vadd.f32 %v1125_v30, %v2618_v34  ;;  %v1328_v24 = vmul.f32 %v2769_v23, %v2769_v23 }
 0x139   :  { %v2772_v33 = vadd.f32 %v1270_v27, %v1222_v29  ;;  %v1175_v35 = vadd.f32 %v1174_v31, %v1126_v8  ;;  %v1327_v8 = vmul.f32 %v2766_v14, %v2766_v14 }
 0x13e   :  { %v1223_v36 = vpop.f32.mrf.mxu2  ;;  %v1128_v39 = vpop.f32.mrf.mxu0 }
 0x13f   :  { %v1272_v37 = vpop.f32.mrf.mxu3  ;;  %v1224_v38 = vadd.f32 %v1223_v36, %v1175_v35  ;;  %v1177_v40 = vpop.f32.mrf.mxu1  ;;  %v1129_v15 = vadd.f32 %v1128_v39, %v2620_v41 }
 0x141   :  { %v2775_v42 = vadd.f32 %v1272_v37, %v1224_v38  ;;  %v1178_v43 = vadd.f32 %v1177_v40, %v1129_v15  ;;  %v1343_v38 = vadd.f32 %v1328_v24, %v1327_v8 }
 0x146   :  { %v1226_v44 = vpop.f32.mrf.mxu2  ;;  %v1130_v47 = vpop.f32.mrf.mxu0 }
 0x147   :  { %v1275_v45 = vpop.f32.mrf.mxu3  ;;  %v1227_v46 = vadd.f32 %v1226_v44, %v1178_v43  ;;  %v1179_v48 = vpop.f32.mrf.mxu1  ;;  %v1131_v19 = vadd.f32 %v1130_v47, %v2646_v61  ;;  %v1329_v61 = vmul.f32 %v2772_v33, %v2772_v33 }
 0x149   :  { %v2777_v49 = vadd.f32 %v1275_v45, %v1227_v46  ;;  %v1180_v22 = vadd.f32 %v1179_v48, %v1131_v19  ;;  %v1344_v46 = vadd.f32 %v1343_v38, %v1329_v61 }
 0x14b   :  { %v1331_v47 = vmul.f32 %v2777_v49, %v2777_v49 }
 0x14e   :  { %v1228_v34 = vpop.f32.mrf.mxu2  ;;  %v1133_v52 = vpop.f32.mrf.mxu0 }
 0x14f   :  { %v1277_v51 = vpop.f32.mrf.mxu3  ;;  %v1182_v55 = vpop.f32.mrf.mxu1  ;;  %v1134_v21 = vadd.f32 %v1133_v52, %v2648_v4  ;;  %v1229_v26 = vadd.f32 %v1228_v34, %v1180_v22 }
 0x151   :  { %v1183_v27 = vadd.f32 %v1182_v55, %v1134_v21  ;;  %v2794_v40 = vadd.f32 %v1277_v51, %v1229_v26 }
 0x156   :  { %v1231_v56 = vpop.f32.mrf.mxu2  ;;  %v1135_v58 = vpop.f32.mrf.mxu0 }
 0x157   :  { %v1280_v57 = vpop.f32.mrf.mxu3  ;;  %v1184_v60 = vpop.f32.mrf.mxu1  ;;  %v1136_v53 = vadd.f32 %v1135_v58, %v2674_v25  ;;  %v1232_v4 = vadd.f32 %v1231_v56, %v1183_v27  ;;  %v1305_v25 = vadd.f32 %v2769_v23, %v2766_v14  ;;  %v1332_v56 = vmul.f32 %v2794_v40, %v2794_v40 }
 0x159   :  { %v1185_v37 = vadd.f32 %v1184_v60, %v1136_v53  ;;  %v1306_v44 = vadd.f32 %v1305_v25, %v2772_v33  ;;  %v2800_v48 = vadd.f32 %v1280_v57, %v1232_v4 }
 0x15e   :  { %v1233_v63 = vpop.f32.mrf.mxu2  ;;  %v1138_v0 = vpop.f32.mrf.mxu0 }
 0x15f   :  { %v1282_v41 = vpop.f32.mrf.mxu3  ;;  %v1187_v1 = vpop.f32.mrf.mxu1  ;;  %v1139_v29 = vadd.f32 %v1138_v0, %v2676_v32  ;;  %v1330_v32 = vmul.f32 %v2775_v42, %v2775_v42  ;;  %v1234_v15 = vadd.f32 %v1233_v63, %v1185_v37 }
 0x161   :  { %v1188_v43 = vadd.f32 %v1187_v1, %v1139_v29  ;;  %v1345_v51 = vadd.f32 %v1344_v46, %v1330_v32  ;;  %v2806_v58 = vadd.f32 %v1282_v41, %v1234_v15 }
 0x166   :  { %v1236_v2 = vpop.f32.mrf.mxu2  ;;  %v1140_v6 = vpop.f32.mrf.mxu0 }
 0x167   :  { %v1285_v3 = vpop.f32.mrf.mxu3  ;;  %v1189_v7 = vpop.f32.mrf.mxu1  ;;  %v1141_v39 = vadd.f32 %v1140_v6, %v2702_v54  ;;  %v1237_v34 = vadd.f32 %v1236_v2, %v1188_v43  ;;  %v1307_v54 = vadd.f32 %v1306_v44, %v2775_v42  ;;  %v1346_v6 = vadd.f32 %v1345_v51, %v1331_v47 }
 0x169   :  { %v1190_v52 = vadd.f32 %v1189_v7, %v1141_v39  ;;  %v1308_v63 = vadd.f32 %v1307_v54, %v2777_v49  ;;  %v1333_v7 = vmul.f32 %v2800_v48, %v2800_v48  ;;  %v1347_v22 = vadd.f32 %v1346_v6, %v1332_v56 }
 0x16b   :  { %v1348_v26 = vadd.f32 %v1347_v22, %v1333_v7 }
 0x16e   :  { %v1238_v9 = vpop.f32.mrf.mxu2  ;;  %v1143_v11 = vpop.f32.mrf.mxu0 }
 0x16f   :  { %v1287_v10 = vpop.f32.mrf.mxu3  ;;  %v1192_v12 = vpop.f32.mrf.mxu1  ;;  %v1144_v45 = vadd.f32 %v1143_v11, %v2704_v62  ;;  %v1239_v0 = vadd.f32 %v1238_v9, %v1190_v52  ;;  %v1334_v9 = vmul.f32 %v2806_v58, %v2806_v58 }
 0x171   :  { %v1193_v1 = vadd.f32 %v1192_v12, %v1144_v45  ;;  %v2819_v12 = vadd.f32 %v1287_v10, %v1239_v0  ;;  %v1349_v29 = vadd.f32 %v1348_v26, %v1334_v9 }
 0x173   :  { %v1336_v10 = vmul.f32 %v2819_v12, %v2819_v12 }
 0x176   :  { %v1241_v13 = vpop.f32.mrf.mxu2  ;;  %v1145_v17 = vpop.f32.mrf.mxu0 }
 0x177   :  { %v1290_v16 = vpop.f32.mrf.mxu3  ;;  %v1194_v18 = vpop.f32.mrf.mxu1  ;;  %v1146_v55 = vadd.f32 %v1145_v17, %v2730_v20  ;;  %v2812_v20 = vadd.f32 %v1285_v3, %v1237_v34  ;;  %v1309_v17 = vadd.f32 %v1308_v63, %v2794_v40  ;;  %v1242_v41 = vadd.f32 %v1241_v13, %v1193_v1 }
 0x179   :  { %v1195_v19 = vadd.f32 %v1194_v18, %v1146_v55  ;;  %v1335_v3 = vmul.f32 %v2812_v20, %v2812_v20  ;;  %v2824_v13 = vadd.f32 %v1290_v16, %v1242_v41 }
 0x17b   :  { %v1350_v37 = vadd.f32 %v1349_v29, %v1335_v3  ;;  %v1337_v16 = vmul.f32 %v2824_v13, %v2824_v13 }
 0x17d   :  { %v1351_v15 = vadd.f32 %v1350_v37, %v1336_v10 }
 0x17e   :  { %v1243_v30 = vpop.f32.mrf.mxu2  ;;  %v1148_v35 = vpop.f32.mrf.mxu0 }
 0x17f   :  { %v1292_v31 = vpop.f32.mrf.mxu3  ;;  %v1197_v36 = vpop.f32.mrf.mxu1  ;;  %v1149_v57 = vadd.f32 %v1148_v35, %v2732_v28  ;;  %v1310_v28 = vadd.f32 %v1309_v17, %v2800_v48  ;;  %v1244_v53 = vadd.f32 %v1243_v30, %v1195_v19  ;;  %v1352_v45 = vadd.f32 %v1351_v15, %v1337_v16 }
 0x181   :  { %v1198_v24 = vadd.f32 %v1197_v36, %v1149_v57  ;;  %v1311_v27 = vadd.f32 %v1310_v28, %v2806_v58  ;;  %v2829_v30 = vadd.f32 %v1292_v31, %v1244_v53 }
 0x183   :  { %v1312_v61 = vadd.f32 %v1311_v27, %v2812_v20  ;;  %v1338_v31 = vmul.f32 %v2829_v30, %v2829_v30 }
 0x185   :  { %v1313_v25 = vadd.f32 %v1312_v61, %v2819_v12  ;;  %v1353_v55 = vadd.f32 %v1352_v45, %v1338_v31  ;;  %v1367_v45 = vld [vmem:[%s2920_s2] sm:$0x1] }
 0x186   :  { %v1246_v60 = vpop.f32.mrf.mxu2  ;;  %v1150_v2 = vpop.f32.mrf.mxu0 }
 0x187   :  { %v1295_v62 = vpop.f32.mrf.mxu3  ;;  %v1199_v11 = vpop.f32.mrf.mxu1  ;;  %v1151_v21 = vadd.f32 %v1150_v2, %v2758_v50  ;;  %v1247_v18 = vadd.f32 %v1246_v60, %v1198_v24  ;;  %v1314_v43 = vadd.f32 %v1313_v25, %v2824_v13 }
 0x189   :  { %v1200_v50 = vadd.f32 %v1199_v11, %v1151_v21  ;;  %v2834_v38 = vadd.f32 %v1295_v62, %v1247_v18  ;;  %v1315_v46 = vadd.f32 %v1314_v43, %v2829_v30 }
 0x18b   :  { %v1339_v47 = vmul.f32 %v2834_v38, %v2834_v38 }
 0x18d   :  { %v1354_v62 = vadd.f32 %v1353_v55, %v1339_v47 }
 0x18e   :  { %v1248_v8 = vpop.f32.mrf.mxu2  ;;  %v1153_v4 = vpop.f32.mrf.mxu0 }
 0x18f   :  { %v1297_v35 = vpop.f32.mrf.mxu3  ;;  %v1249_v36 = vadd.f32 %v1248_v8, %v1200_v50  ;;  %v1154_v39 = vadd.f32 %v1153_v4, %v2760_v59  ;;  %v1202_v32 = vpop.f32.mrf.mxu1  ;;  %v1316_v59 = vadd.f32 %v1315_v46, %v2834_v38 }
 0x191   :  { %v2840_v44 = vadd.f32 %v1297_v35, %v1249_v36  ;;  %v1203_v34 = vadd.f32 %v1202_v32, %v1154_v39 }
 0x193   :  { %v1340_v51 = vmul.f32 %v2840_v44, %v2840_v44  ;;  %v1317_v63 = vadd.f32 %v1316_v59, %v2840_v44 }
 0x195   :  { %v1355_v57 = vadd.f32 %v1354_v62, %v1340_v51 }
 0x196   :  { %v1251_v54 = vpop.f32.mrf.mxu2  ;;  %v1155_v60 = vpop.f32.mrf.mxu0 }
 0x197   :  { %v1300_v52 = vpop.f32.mrf.mxu3  ;;  %v1252_v56 = vadd.f32 %v1251_v54, %v1203_v34  ;;  %v1156_v1 = vadd.f32 %v1155_v60, %v2763_v5  ;;  %v1204_v7 = vpop.f32.mrf.mxu1  ;;  %v1380_v54 = vld [vmem:[%s2921_s3] sm:$0x1] }
 0x199   :  { %v1301_v0 = vadd.f32 %v1300_v52, %v1252_v56  ;;  %v1205_v17 = vadd.f32 %v1204_v7, %v1156_v1 }
 0x19b   :  { %v1318_v2 = vadd.f32 %v1317_v63, %v1301_v0  ;;  %v1341_v6 = vmul.f32 %v1301_v0, %v1301_v0 }
 0x19d   :  { %v1356_v11 = vadd.f32 %v1355_v57, %v1341_v6 }
 0x19e   :  { %v1253_v41 = vpop.f32.mrf.mxu2 }
 0x19f   :  { %v1254_v19 = vadd.f32 %v1253_v41, %v1205_v17  ;;  %v1302_v21 = vpop.f32.mrf.mxu3 }
 0x1a1   :  { %v1303_v22 = vadd.f32 %v1302_v21, %v1254_v19 }
 0x1a3   :  { %v1319_v9 = vadd.f32 %v1318_v2, %v1303_v22  ;;  %v1342_v28 = vmul.f32 %v1303_v22, %v1303_v22 }
 0x1a5   :  { %v1320_v53 = vrot.slane %v1319_v9, 4  ;;  %v1357_v24 = vadd.f32 %v1356_v11, %v1342_v28 }
 0x1a7   :  { %v1321_v26 = vadd.f32 %v1320_v53, %v1319_v9  ;;  %v1358_v3 = vrot.slane %v1357_v24, 4 }
 0x1a9   :  { %v1322_v27 = vrot.slane %v1321_v26, 2  ;;  %v1359_v18 = vadd.f32 %v1358_v3, %v1357_v24 }
 0x1ab   :  { %v1323_v50 = vadd.f32 %v1322_v27, %v1321_v26  ;;  %v1360_v5 = vrot.slane %v1359_v18, 2 }
 0x1ad   :  { %v1324_v29 = vrot.slane %v1323_v50, 1  ;;  %v1361_v8 = vadd.f32 %v1360_v5, %v1359_v18 }
 0x1af   :  { %v1325_v35 = vadd.f32 %v1324_v29, %v1323_v50  ;;  %v1362_v61 = vrot.slane %v1361_v8, 1 }
 0x1b1   :  { %v1326_v10 = vmul.f32 0.03125, %v1325_v35  ;;  %v1363_v36 = vadd.f32 %v1362_v61, %v1361_v8 }
 0x1b3   :  { %v1364_v4 = vmul.f32 0.03125, %v1363_v36  ;;  %v1365_v37 = vmul.f32 %v1326_v10, %v1326_v10 }
 0x1b5   :  { %v1366_v25 = vsub.f32 %v1364_v4, %v1365_v37 }
 0x1b7   :  { %v1368_v16 = vadd.f32 1e-05, %v1366_v25 }
 0x1b9   :  { %2129 = vrsqrt.f32 %v1368_v16  ;;  %vm1375_vm1 = vweird.f32 %v1368_v16 }
 0x1bf   :  { %v2130_v39 = vpop.eup %2129 }
 0x1c0   :  { %v1370_v32 = vmul.f32 %v2130_v39, %v1368_v16  ;;  %vm1376_vm0 = vweird.f32 %v2130_v39 }
 0x1c1   :  { %vm1377_vm2 = vmor %vm1375_vm1, %vm1376_vm0 }
 0x1c2   :  { %v1371_v15 = vmul.f32 %v2130_v39, %v1370_v32 }
 0x1c4   :  { %v1372_v43 = vmul.f32 0.5, %v1371_v15 }
 0x1c6   :  { %v1373_v31 = vsub.f32 1.5, %v1372_v43 }
 0x1c8   :  { %v1374_v46 = vmul.f32 %v2130_v39, %v1373_v31 }
 0x1ca   :  { %v1378_v47 = vsel %vm1377_vm2, %v2130_v39, %v1374_v46 }
 0x1cb   :  { %v1379_v34 = vmul.f32 %v1378_v47, %v1367_v45 }
 0x1cd   :  { %v1381_v52 = vmul.f32 %v1379_v34, %v1326_v10  ;;  %v1384_v55 = vperm.slane %v1379_v34, 0 }
 0x1cf   :  { %v1382_v59 = vsub.f32 %v1380_v54, %v1381_v52  ;;  %v1386_v51 = vmul.f32 %v1384_v55, %v2766_v14  ;;  %v1387_v56 = vmul.f32 %v1384_v55, %v2769_v23  ;;  %v1388_v60 = vmul.f32 %v1384_v55, %v2772_v33 }
 0x1d0   :  { %v1389_v62 = vmul.f32 %v1384_v55, %v2775_v42  ;;  %v1390_v63 = vmul.f32 %v1384_v55, %v2777_v49  ;;  %v1391_v1 = vmul.f32 %v1384_v55, %v2794_v40  ;;  %v1392_v57 = vmul.f32 %v1384_v55, %v2800_v48 }
 0x1d1   :  { %v1399_v2 = vmul.f32 %v1384_v55, %v2840_v44  ;;  %v1400_v6 = vmul.f32 %v1384_v55, %v1301_v0  ;;  %v1393_v7 = vmul.f32 %v1384_v55, %v2806_v58  ;;  %v1394_v11 = vmul.f32 %v1384_v55, %v2812_v20 }
 0x1d2   :  { %v1401_v14 = vmul.f32 %v1384_v55, %v1303_v22  ;;  %v1403_v17 = vperm.slane %v1382_v59, 0  ;;  %v1395_v23 = vmul.f32 %v1384_v55, %v2819_v12  ;;  %v1396_v33 = vmul.f32 %v1384_v55, %v2824_v13 }
 0x1d3   :  { %v1397_v42 = vmul.f32 %v1384_v55, %v2829_v30  ;;  %v1398_v49 = vmul.f32 %v1384_v55, %v2834_v38 }
 0x1d4   :  { %v1405_v40 = vadd.f32 %v1403_v17, %v1386_v51  ;;  %v1406_v41 = vadd.f32 %v1403_v17, %v1387_v56  ;;  %v1407_v48 = vadd.f32 %v1403_v17, %v1388_v60  ;;  %v1408_v19 = vadd.f32 %v1403_v17, %v1389_v62 }
 0x1d5   :  { %v1409_v44 = vadd.f32 %v1403_v17, %v1390_v63  ;;  %v1410_v0 = vadd.f32 %v1403_v17, %v1391_v1  ;;  %v1411_v21 = vadd.f32 %v1403_v17, %v1392_v57  ;;  %v1412_v58 = vadd.f32 %v1403_v17, %v1393_v7 }
 0x1d6   :  { %v1413_v9 = vadd.f32 %v1403_v17, %v1394_v11  ;;  %v1414_v20 = vadd.f32 %v1403_v17, %v1395_v23  ;;  %v1415_v22 = vadd.f32 %v1403_v17, %v1396_v33  ;;  %v1416_v28 = vadd.f32 %v1403_v17, %v1397_v42 }
 0x1d7   :  { %v1417_v53 = vadd.f32 %v1403_v17, %v1398_v49  ;;  %v1418_v12 = vadd.f32 %v1403_v17, %v1399_v2  ;;  %v1419_v24 = vadd.f32 %v1403_v17, %v1400_v6  ;;  %v1420_v13 = vadd.f32 %v1403_v17, %v1401_v14 }
 0x1d8   :  { %vm1421_vm3 = vcmp.ge.f32.partialorder %v1405_v40, 0.0  ;;  %vm1422_vm4 = vcmp.ge.f32.partialorder %v1406_v41, 0.0  ;;  %v1437_v30 = vmul.f32 0.2, %v1405_v40  ;;  %v1438_v38 = vmul.f32 0.2, %v1406_v41 }
 0x1d9   :  { %v1439_v26 = vmul.f32 0.2, %v1407_v48  ;;  %vm1423_vm5 = vcmp.ge.f32.partialorder %v1407_v48, 0.0  ;;  %v1440_v3 = vmul.f32 0.2, %v1408_v19  ;;  %vm1424_vm6 = vcmp.ge.f32.partialorder %v1408_v19, 0.0 }
 0x1da   :  { %v1441_v27 = vmul.f32 0.2, %v1409_v44  ;;  %vm1425_vm7 = vcmp.ge.f32.partialorder %v1409_v44, 0.0  ;;  %v1442_v18 = vmul.f32 0.2, %v1410_v0  ;;  %v1453_v50 = vsel %vm1421_vm3, %v1405_v40, %v1437_v30 }
 0x1db   :  { %vm1426_vm8 = vcmp.ge.f32.partialorder %v1410_v0, 0.0  ;;  %v1443_v5 = vmul.f32 0.2, %v1411_v21  ;;  %v1454_v29 = vsel %vm1422_vm4, %v1406_v41, %v1438_v38  ;;  %1469 = vst [vmem:[%s2922_s4] sm:$0xff] %v1453_v50  ;;  %vm1427_vm9 = vcmp.ge.f32.partialorder %v1411_v21, 0.0 }
 0x1dc   :  { %v1444_v8 = vmul.f32 0.2, %v1412_v58  ;;  %v1455_v35 = vsel %vm1423_vm5, %v1407_v48, %v1439_v26  ;;  %vm1428_vm10 = vcmp.ge.f32.partialorder %v1412_v58, 0.0  ;;  %v1445_v61 = vmul.f32 0.2, %v1413_v9  ;;  %1470 = vst [vmem:[%s2922_s4 + $0x8] sm:$0xff] %v1454_v29 }
 0x1dd   :  { %v1456_v10 = vsel %vm1424_vm6, %v1408_v19, %v1440_v3  ;;  %v1457_v36 = vsel %vm1425_vm7, %v1409_v44, %v1441_v27  ;;  %vm1429_vm11 = vcmp.ge.f32.partialorder %v1413_v9, 0.0  ;;  %v1446_v4 = vmul.f32 0.2, %v1414_v20  ;;  %1471 = vst [vmem:[%s2922_s4 + $0x10] sm:$0xff] %v1455_v35 }
 0x1de   :  { %v1458_v37 = vsel %vm1426_vm8, %v1410_v0, %v1442_v18  ;;  %vm1430_vm12 = vcmp.ge.f32.partialorder %v1414_v20, 0.0  ;;  %v1447_v25 = vmul.f32 0.2, %v1415_v22  ;;  %v1459_v16 = vsel %vm1427_vm9, %v1411_v21, %v1443_v5  ;;  %1472 = vst [vmem:[%s2922_s4 + $0x18] sm:$0xff] %v1456_v10 }
 0x1df   :  { %vm1431_vm13 = vcmp.ge.f32.partialorder %v1415_v22, 0.0  ;;  %v1448_v39 = vmul.f32 0.2, %v1416_v28  ;;  %v1460_v32 = vsel %vm1428_vm10, %v1412_v58, %v1444_v8  ;;  %1473 = vst [vmem:[%s2922_s4 + $0x20] sm:$0xff] %v1457_v36  ;;  %vm1432_vm14 = vcmp.ge.f32.partialorder %v1416_v28, 0.0 }
 0x1e0   :  { %v1449_v15 = vmul.f32 0.2, %v1417_v53  ;;  %v1461_v43 = vsel %vm1429_vm11, %v1413_v9, %v1445_v61  ;;  %1474 = vst [vmem:[%s2922_s4 + $0x28] sm:$0xff] %v1458_v37  ;;  %vm1433_vm15 = vcmp.ge.f32.partialorder %v1417_v53, 0.0  ;;  %v1450_v31 = vmul.f32 0.2, %v1418_v12 }
 0x1e1   :  { %v1462_v45 = vsel %vm1430_vm12, %v1414_v20, %v1446_v4  ;;  %1475 = vst [vmem:[%s2922_s4 + $0x30] sm:$0xff] %v1459_v16  ;;  %vm1434_vm0 = vcmp.ge.f32.partialorder %v1418_v12, 0.0  ;;  %v1451_v46 = vmul.f32 0.2, %v1419_v24  ;;  %v1463_v47 = vsel %vm1431_vm13, %v1415_v22, %v1447_v25 }
 0x1e2   :  { %1476 = vst [vmem:[%s2922_s4 + $0x38] sm:$0xff] %v1460_v32  ;;  %vm1435_vm1 = vcmp.ge.f32.partialorder %v1419_v24, 0.0  ;;  %v1452_v34 = vmul.f32 0.2, %v1420_v13  ;;  %v1464_v54 = vsel %vm1432_vm14, %v1416_v28, %v1448_v39  ;;  %vm1436_vm2 = vcmp.ge.f32.partialorder %v1420_v13, 0.0 }
 0x1e3   :  { %1477 = vst [vmem:[%s2922_s4 + $0x40] sm:$0xff] %v1461_v43  ;;  %v1465_v52 = vsel %vm1433_vm15, %v1417_v53, %v1449_v15  ;;  %v1466_v55 = vsel %vm1434_vm0, %v1418_v12, %v1450_v31  ;;  %v1467_v59 = vsel %vm1435_vm1, %v1419_v24, %v1451_v46 }
 0x1e4   :  { %1478 = vst [vmem:[%s2922_s4 + $0x48] sm:$0xff] %v1462_v45  ;;  %v1468_v51 = vsel %vm1436_vm2, %v1420_v13, %v1452_v34 }
 0x1e5   :  { %1479 = vst [vmem:[%s2922_s4 + $0x50] sm:$0xff] %v1463_v47 }
 0x1e6   :  { %1480 = vst [vmem:[%s2922_s4 + $0x58] sm:$0xff] %v1464_v54 }
 0x1e7   :  { %1481 = vst [vmem:[%s2922_s4 + $0x60] sm:$0xff] %v1465_v52 }
 0x1e8   :  { %1482 = vst [vmem:[%s2922_s4 + $0x68] sm:$0xff] %v1466_v55 }
 0x1e9   :  { %1483 = vst [vmem:[%s2922_s4 + $0x70] sm:$0xff] %v1467_v59 }
 0x1ea   :  { %1484 = vst [vmem:[%s2922_s4 + $0x78] sm:$0xff] %v1468_v51 }

// kernel: discriminator_forward.9
= control target key start
LH: loop header
LB: loop body
LE: loop exit
PB: predicated region body
PF: predicated region fallthrough
CT: control target
= control target key end

     0   :  { %s5621_s1 = inlined_call_operand.vmem [shape: bf16[2048,128], index: 1, kind: input, shape index: {}]   ;;  %s5622_s0 = inlined_call_operand.vmem [shape: bf16[128,2048], index: 0, kind: input, shape index: {}]   ;;  %s5623_s2 = inlined_call_operand.vmem [shape: f32[128,128], index: 2, kind: output, shape index: {}]  }
   0x1   :  { %v4070_v0 = vld [vmem:[%s5621_s1 + $0x38] sm:$0xff]  ;;  %v4069_v4 = vld [vmem:[%s5621_s1 + $0x30] sm:$0xff]  ;;  %v4068_v8 = vld [vmem:[%s5621_s1 + $0x28] sm:$0xff] }
   0x2   :  { %v4078_v1 = vld [vmem:[%s5621_s1 + $0x78] sm:$0xff]  ;;  %1803 = vmatpush.bf16.msra.mxu0 %v4070_v0  ;;  %v4077_v5 = vld [vmem:[%s5621_s1 + $0x70] sm:$0xff]  ;;  %v4076_v9 = vld [vmem:[%s5621_s1 + $0x68] sm:$0xff] }
   0x3   :  { %v4086_v2 = vld [vmem:[%s5621_s1 + $0xb8] sm:$0xff]  ;;  %1852 = vmatpush.bf16.msra.mxu1 %v4078_v1  ;;  %v4085_v6 = vld [vmem:[%s5621_s1 + $0xb0] sm:$0xff]  ;;  %v4084_v10 = vld [vmem:[%s5621_s1 + $0xa8] sm:$0xff] }
   0x4   :  { %v4094_v3 = vld [vmem:[%s5621_s1 + $0xf8] sm:$0xff]  ;;  %1901 = vmatpush.bf16.msra.mxu2 %v4086_v2  ;;  %v4093_v7 = vld [vmem:[%s5621_s1 + $0xf0] sm:$0xff]  ;;  %v4092_v11 = vld [vmem:[%s5621_s1 + $0xe8] sm:$0xff] }
   0x5   :  { %1950 = vmatpush.bf16.msra.mxu3 %v4094_v3  ;;  %v4067_v12 = vld [vmem:[%s5621_s1 + $0x20] sm:$0xff]  ;;  %v4066_v16 = vld [vmem:[%s5621_s1 + $0x18] sm:$0xff]  ;;  %v4065_v20 = vld [vmem:[%s5621_s1 + $0x10] sm:$0xff] }
   0x6   :  { %1804 = vmatpush.bf16.msra.mxu0 %v4069_v4  ;;  %v4075_v13 = vld [vmem:[%s5621_s1 + $0x60] sm:$0xff]  ;;  %v4074_v17 = vld [vmem:[%s5621_s1 + $0x58] sm:$0xff]  ;;  %v4073_v21 = vld [vmem:[%s5621_s1 + $0x50] sm:$0xff] }
   0x7   :  { %1853 = vmatpush.bf16.msra.mxu1 %v4077_v5  ;;  %v4083_v14 = vld [vmem:[%s5621_s1 + $0xa0] sm:$0xff]  ;;  %v4082_v18 = vld [vmem:[%s5621_s1 + $0x98] sm:$0xff]  ;;  %v4081_v22 = vld [vmem:[%s5621_s1 + $0x90] sm:$0xff] }
   0x8   :  { %1902 = vmatpush.bf16.msra.mxu2 %v4085_v6  ;;  %v4091_v15 = vld [vmem:[%s5621_s1 + $0xe0] sm:$0xff]  ;;  %v4090_v19 = vld [vmem:[%s5621_s1 + $0xd8] sm:$0xff]  ;;  %v4089_v23 = vld [vmem:[%s5621_s1 + $0xd0] sm:$0xff] }
   0x9   :  { %1951 = vmatpush.bf16.msra.mxu3 %v4093_v7  ;;  %v4064_v24 = vld [vmem:[%s5621_s1 + $0x8] sm:$0xff]  ;;  %v4063_v28 = vld [vmem:[%s5621_s1] sm:$0xff]  ;;  %v4118_v40 = vld [vmem:[%s5621_s1 + $0x1b8] sm:$0xff] }
   0xa   :  { %1805 = vmatpush.bf16.msra.mxu0 %v4068_v8  ;;  %v4072_v25 = vld [vmem:[%s5621_s1 + $0x48] sm:$0xff]  ;;  %v4071_v29 = vld [vmem:[%s5621_s1 + $0x40] sm:$0xff]  ;;  %v4102_v41 = vld [vmem:[%s5621_s1 + $0x138] sm:$0xff] }
   0xb   :  { %1854 = vmatpush.bf16.msra.mxu1 %v4076_v9  ;;  %v4080_v26 = vld [vmem:[%s5621_s1 + $0x88] sm:$0xff]  ;;  %v4079_v30 = vld [vmem:[%s5621_s1 + $0x80] sm:$0xff]  ;;  %v4126_v46 = vld [vmem:[%s5621_s1 + $0x1f8] sm:$0xff] }
   0xc   :  { %1903 = vmatpush.bf16.msra.mxu2 %v4084_v10  ;;  %v4088_v27 = vld [vmem:[%s5621_s1 + $0xc8] sm:$0xff]  ;;  %v4087_v31 = vld [vmem:[%s5621_s1 + $0xc0] sm:$0xff]  ;;  %v4110_v47 = vld [vmem:[%s5621_s1 + $0x178] sm:$0xff] }
   0xd   :  { %1952 = vmatpush.bf16.msra.mxu3 %v4092_v11  ;;  %v2913_v32 = vld [vmem:[%s5622_s0] sm:$0xf]  ;;  %v3935_v34 = vld [vmem:[%s5622_s0 + $0x4] sm:$0xf]  ;;  %v2921_v36 = vld [vmem:[%s5622_s0 + $0x8] sm:$0xf] }
   0xe   :  { %1806 = vmatpush.bf16.msra.mxu0 %v4067_v12  ;;  %v3943_v33 = vld [vmem:[%s5622_s0 + $0x3c] sm:$0xf0]  ;;  %v2915_v35 = vld [vmem:[%s5622_s0 + $0x40] sm:$0xf0]  ;;  %v3944_v37 = vld [vmem:[%s5622_s0 + $0x44] sm:$0xf0] }
   0xf   :  { %1855 = vmatpush.bf16.msra.mxu1 %v4075_v13  ;;  %v3936_v38 = vld [vmem:[%s5622_s0 + $0xc] sm:$0xf]  ;;  %v2914_v42 = vor.u32 %v3943_v33, %v2913_v32  ;;  %v2918_v43 = vor.u32 %v3935_v34, %v2915_v35  ;;  %v2922_v44 = vor.u32 %v3944_v37, %v2921_v36  ;;  %v4117_v48 = vld [vmem:[%s5621_s1 + $0x1b0] sm:$0xff]  ;;  %v2977_v56 = vld [vmem:[%s5622_s0 + $0x80] sm:$0xf] }
  0x10   :  { %1904 = vmatpush.bf16.msra.mxu2 %v4083_v14  ;;  %v2923_v39 = vld [vmem:[%s5622_s0 + $0x48] sm:$0xf0]  ;;  %v4101_v49 = vld [vmem:[%s5621_s1 + $0x130] sm:$0xff]  ;;  %v3959_v57 = vld [vmem:[%s5622_s0 + $0xbc] sm:$0xf0] }
  0x11   :  { %1953 = vmatpush.bf16.msra.mxu3 %v4091_v15  ;;  %v2926_v45 = vor.u32 %v3936_v38, %v2923_v39  ;;  %v4125_v50 = vld [vmem:[%s5621_s1 + $0x1f0] sm:$0xff]  ;;  %v4116_v52 = vld [vmem:[%s5621_s1 + $0x1a8] sm:$0xff]  ;;  %v3951_v58 = vld [vmem:[%s5622_s0 + $0x84] sm:$0xf]  ;;  %v2978_v0 = vor.u32 %v3959_v57, %v2977_v56 }
  0x12   :  { %1807 = vmatpush.bf16.msra.mxu0 %v4066_v16  ;;  %v4109_v51 = vld [vmem:[%s5621_s1 + $0x170] sm:$0xff]  ;;  %v4100_v53 = vld [vmem:[%s5621_s1 + $0x128] sm:$0xff]  ;;  %v2979_v59 = vld [vmem:[%s5622_s0 + $0xc0] sm:$0xf0] }
  0x13   :  { %1856 = vmatpush.bf16.msra.mxu1 %v4074_v17  ;;  %v4124_v54 = vld [vmem:[%s5621_s1 + $0x1e8] sm:$0xff]  ;;  %v2982_v1 = vor.u32 %v3951_v58, %v2979_v59  ;;  %v4115_v4 = vld [vmem:[%s5621_s1 + $0x1a0] sm:$0xff]  ;;  %v4113_v36 = vld [vmem:[%s5621_s1 + $0x190] sm:$0xff] }
  0x14   :  { %1905 = vmatpush.bf16.msra.mxu2 %v4082_v18  ;;  %v4108_v55 = vld [vmem:[%s5621_s1 + $0x168] sm:$0xff]  ;;  %v4099_v5 = vld [vmem:[%s5621_s1 + $0x120] sm:$0xff]  ;;  %v4097_v37 = vld [vmem:[%s5621_s1 + $0x110] sm:$0xff] }
  0x15   :  { %1954 = vmatpush.bf16.msra.mxu3 %v4090_v19  ;;  %v2985_v60 = vld [vmem:[%s5622_s0 + $0x88] sm:$0xf]  ;;  %v3952_v62 = vld [vmem:[%s5622_s0 + $0x8c] sm:$0xf]  ;;  %v4123_v6 = vld [vmem:[%s5621_s1 + $0x1e0] sm:$0xff] }
  0x16   :  { %1808 = vmatpush.bf16.msra.mxu0 %v4065_v20  ;;  %v3960_v61 = vld [vmem:[%s5622_s0 + $0xc4] sm:$0xf0]  ;;  %v2987_v63 = vld [vmem:[%s5622_s0 + $0xc8] sm:$0xf0]  ;;  %v4107_v7 = vld [vmem:[%s5621_s1 + $0x160] sm:$0xff] }
  0x17   :  { %1857 = vmatpush.bf16.msra.mxu1 %v4073_v21  ;;  %v2986_v2 = vor.u32 %v3960_v61, %v2985_v60  ;;  %v2990_v3 = vor.u32 %v3952_v62, %v2987_v63  ;;  %v3041_v8 = vld [vmem:[%s5622_s0 + $0x100] sm:$0xf]  ;;  %v3967_v10 = vld [vmem:[%s5622_s0 + $0x104] sm:$0xf]  ;;  %v3049_v12 = vld [vmem:[%s5622_s0 + $0x108] sm:$0xf] }
  0x18   :  { %1906 = vmatpush.bf16.msra.mxu2 %v4081_v22  ;;  %v3975_v9 = vld [vmem:[%s5622_s0 + $0x13c] sm:$0xf0]  ;;  %v3043_v11 = vld [vmem:[%s5622_s0 + $0x140] sm:$0xf0]  ;;  %v3976_v13 = vld [vmem:[%s5622_s0 + $0x144] sm:$0xf0] }
  0x19   :  { %1955 = vmatpush.bf16.msra.mxu3 %v4089_v23  ;;  %v3968_v14 = vld [vmem:[%s5622_s0 + $0x10c] sm:$0xf]  ;;  %v3042_v16 = vor.u32 %v3975_v9, %v3041_v8  ;;  %v3046_v17 = vor.u32 %v3967_v10, %v3043_v11  ;;  %v3050_v18 = vor.u32 %v3976_v13, %v3049_v12  ;;  %v4114_v20 = vld [vmem:[%s5621_s1 + $0x198] sm:$0xff]  ;;  %v4121_v38 = vld [vmem:[%s5621_s1 + $0x1d0] sm:$0xff] }
  0x1a   :  { %1809 = vmatpush.bf16.msra.mxu0 %v4064_v24  ;;  %v3051_v15 = vld [vmem:[%s5622_s0 + $0x148] sm:$0xf0]  ;;  %v4098_v21 = vld [vmem:[%s5621_s1 + $0x118] sm:$0xff]  ;;  %v3105_v24 = vld [vmem:[%s5622_s0 + $0x180] sm:$0xf] }
  0x1b   :  { %1858 = vmatpush.bf16.msra.mxu1 %v4072_v25  ;;  %v3054_v19 = vor.u32 %v3968_v14, %v3051_v15  ;;  %v4122_v22 = vld [vmem:[%s5621_s1 + $0x1d8] sm:$0xff]  ;;  %v3991_v25 = vld [vmem:[%s5622_s0 + $0x1bc] sm:$0xf0]  ;;  %v4105_v39 = vld [vmem:[%s5621_s1 + $0x150] sm:$0xff] }
  0x1c   :  { %1907 = vmatpush.bf16.msra.mxu2 %v4080_v26  ;;  %v4106_v23 = vld [vmem:[%s5621_s1 + $0x158] sm:$0xff]  ;;  %v3983_v26 = vld [vmem:[%s5622_s0 + $0x184] sm:$0xf]  ;;  %v3106_v32 = vor.u32 %v3991_v25, %v3105_v24  ;;  %v3233_v56 = vld [vmem:[%s5622_s0 + $0x280] sm:$0xf] }
  0x1d   :  { %1956 = vmatpush.bf16.msra.mxu3 %v4088_v27  ;;  %v3107_v27 = vld [vmem:[%s5622_s0 + $0x1c0] sm:$0xf0]  ;;  %v4023_v57 = vld [vmem:[%s5622_s0 + $0x2bc] sm:$0xf0]  ;;  %v3241_v60 = vld [vmem:[%s5622_s0 + $0x288] sm:$0xf] }
  0x1e   :  { %1810 = vmatpush.bf16.msra.mxu0 %v4063_v28  ;;  %v3113_v28 = vld [vmem:[%s5622_s0 + $0x188] sm:$0xf]  ;;  %v3110_v33 = vor.u32 %v3983_v26, %v3107_v27  ;;  %v4015_v58 = vld [vmem:[%s5622_s0 + $0x284] sm:$0xf]  ;;  %v4016_v62 = vld [vmem:[%s5622_s0 + $0x28c] sm:$0xf] }
  0x1f   :  { %1859 = vmatpush.bf16.msra.mxu1 %v4071_v29  ;;  %v3992_v29 = vld [vmem:[%s5622_s0 + $0x1c4] sm:$0xf0]  ;;  %v3235_v59 = vld [vmem:[%s5622_s0 + $0x2c0] sm:$0xf0]  ;;  %v3243_v63 = vld [vmem:[%s5622_s0 + $0x2c8] sm:$0xf0] }
  0x20   :  { %1908 = vmatpush.bf16.msra.mxu2 %v4079_v30  ;;  %v3984_v30 = vld [vmem:[%s5622_s0 + $0x18c] sm:$0xf]  ;;  %v3114_v34 = vor.u32 %v3992_v29, %v3113_v28  ;;  %v4024_v61 = vld [vmem:[%s5622_s0 + $0x2c4] sm:$0xf0]  ;;  %v3297_v8 = vld [vmem:[%s5622_s0 + $0x300] sm:$0xf] }
  0x21   :  { %1957 = vmatpush.bf16.msra.mxu3 %v4087_v31  ;;  %1811 = vmatmul.bf16.vlgmr.msra.gmra.mxu0 %v2914_v42  ;;  %v3115_v31 = vld [vmem:[%s5622_s0 + $0x1c8] sm:$0xf0]  ;;  %v3999_v42 = vld [vmem:[%s5622_s0 + $0x204] sm:$0xf]  ;;  %v4039_v9 = vld [vmem:[%s5622_s0 + $0x33c] sm:$0xf0] }
  0x22   :  { %1999 = vmatpush.bf16.msrb.mxu0 %v4102_v41  ;;  %1860 = vmatmul.bf16.vlgmr.msra.gmra.mxu1 %v2918_v43  ;;  %v3118_v35 = vor.u32 %v3984_v30, %v3115_v31  ;;  %v4007_v41 = vld [vmem:[%s5622_s0 + $0x23c] sm:$0xf0]  ;;  %v3171_v43 = vld [vmem:[%s5622_s0 + $0x240] sm:$0xf0]  ;;  %v3305_v12 = vld [vmem:[%s5622_s0 + $0x308] sm:$0xf] }
  0x23   :  { %1909 = vmatmul.bf16.vlgmr.msra.gmra.mxu2 %v2922_v44  ;;  %2048 = vmatpush.bf16.msrb.mxu1 %v4110_v47  ;;  %v3177_v44 = vld [vmem:[%s5622_s0 + $0x208] sm:$0xf]  ;;  %v3179_v47 = vld [vmem:[%s5622_s0 + $0x248] sm:$0xf0]  ;;  %v4031_v10 = vld [vmem:[%s5622_s0 + $0x304] sm:$0xf] }
  0x24   :  { %2097 = vmatpush.bf16.msrb.mxu2 %v4118_v40  ;;  %1958 = vmatmul.bf16.vlgmr.msra.gmra.mxu3 %v2926_v45  ;;  %v3169_v40 = vld [vmem:[%s5622_s0 + $0x200] sm:$0xf]  ;;  %v4008_v45 = vld [vmem:[%s5622_s0 + $0x244] sm:$0xf0]  ;;  %v3299_v11 = vld [vmem:[%s5622_s0 + $0x340] sm:$0xf0] }
  0x25   :  { %2146 = vmatpush.bf16.msrb.mxu3 %v4126_v46  ;;  %v4000_v46 = vld [vmem:[%s5622_s0 + $0x20c] sm:$0xf]  ;;  %v4040_v13 = vld [vmem:[%s5622_s0 + $0x344] sm:$0xf0]  ;;  %v3361_v24 = vld [vmem:[%s5622_s0 + $0x380] sm:$0xf] }
  0x26   :  { %2000 = vmatpush.bf16.msrb.mxu0 %v4101_v49  ;;  %v3174_v49 = vor.u32 %v3999_v42, %v3171_v43  ;;  %v4032_v14 = vld [vmem:[%s5622_s0 + $0x30c] sm:$0xf]  ;;  %v4055_v25 = vld [vmem:[%s5622_s0 + $0x3bc] sm:$0xf0]  ;;  %v4047_v26 = vld [vmem:[%s5622_s0 + $0x384] sm:$0xf] }
  0x27   :  { %2049 = vmatpush.bf16.msrb.mxu1 %v4109_v51  ;;  %v3182_v51 = vor.u32 %v4000_v46, %v3179_v47  ;;  %v3307_v15 = vld [vmem:[%s5622_s0 + $0x348] sm:$0xf0]  ;;  %v3363_v27 = vld [vmem:[%s5622_s0 + $0x3c0] sm:$0xf0]  ;;  %v3369_v28 = vld [vmem:[%s5622_s0 + $0x388] sm:$0xf] }
  0x28   :  { %2098 = vmatpush.bf16.msrb.mxu2 %v4117_v48  ;;  %v3170_v48 = vor.u32 %v4007_v41, %v3169_v40  ;;  %v4056_v29 = vld [vmem:[%s5622_s0 + $0x3c4] sm:$0xf0]  ;;  %v4048_v30 = vld [vmem:[%s5622_s0 + $0x38c] sm:$0xf]  ;;  %v2929_v40 = vld [vmem:[%s5622_s0 + $0x10] sm:$0xf] }
  0x29   :  { %2147 = vmatpush.bf16.msrb.mxu3 %v4125_v50  ;;  %v3178_v50 = vor.u32 %v4008_v45, %v3177_v44  ;;  %v3371_v31 = vld [vmem:[%s5622_s0 + $0x3c8] sm:$0xf0]  ;;  %v3945_v41 = vld [vmem:[%s5622_s0 + $0x4c] sm:$0xf0]  ;;  %v3937_v42 = vld [vmem:[%s5622_s0 + $0x14] sm:$0xf] }
  0x2a   :  { %2001 = vmatpush.bf16.msrb.mxu0 %v4100_v53  ;;  %v4096_v53 = vld [vmem:[%s5621_s1 + $0x108] sm:$0xff]  ;;  %v2931_v43 = vld [vmem:[%s5622_s0 + $0x50] sm:$0xf0]  ;;  %v2937_v44 = vld [vmem:[%s5622_s0 + $0x18] sm:$0xf] }
  0x2b   :  { %2050 = vmatpush.bf16.msrb.mxu1 %v4108_v55  ;;  %v4104_v55 = vld [vmem:[%s5621_s1 + $0x148] sm:$0xff]  ;;  %v3946_v45 = vld [vmem:[%s5622_s0 + $0x54] sm:$0xf0]  ;;  %v3938_v46 = vld [vmem:[%s5622_s0 + $0x1c] sm:$0xf] }
  0x2c   :  { %2099 = vmatpush.bf16.msrb.mxu2 %v4116_v52  ;;  %v4112_v52 = vld [vmem:[%s5621_s1 + $0x188] sm:$0xff]  ;;  %v2939_v47 = vld [vmem:[%s5622_s0 + $0x58] sm:$0xf0] }
  0x2d   :  { %2148 = vmatpush.bf16.msrb.mxu3 %v4124_v54  ;;  %v4120_v54 = vld [vmem:[%s5621_s1 + $0x1c8] sm:$0xff] }
  0x2e   :  { %2002 = vmatpush.bf16.msrb.mxu0 %v4099_v5  ;;  %v4095_v5 = vld [vmem:[%s5621_s1 + $0x100] sm:$0xff] }
  0x2f   :  { %2051 = vmatpush.bf16.msrb.mxu1 %v4107_v7  ;;  %v4103_v7 = vld [vmem:[%s5621_s1 + $0x140] sm:$0xff] }
  0x30   :  { %2100 = vmatpush.bf16.msrb.mxu2 %v4115_v4  ;;  %v4111_v4 = vld [vmem:[%s5621_s1 + $0x180] sm:$0xff] }
  0x31   :  { %1816 = vmatmul.bf16.gmra.mxu0 %v2978_v0  ;;  %2149 = vmatpush.bf16.msrb.mxu3 %v4123_v6  ;;  %v3234_v0 = vor.u32 %v4023_v57, %v3233_v56  ;;  %v4119_v6 = vld [vmem:[%s5621_s1 + $0x1c0] sm:$0xff]  ;;  %v4132_v56 = vld [vmem:[%s5621_s1 + $0x228] sm:$0xff] }
  0x32   :  { %1865 = vmatmul.bf16.gmra.mxu1 %v2982_v1  ;;  %2003 = vmatpush.bf16.msrb.mxu0 %v4098_v21  ;;  %v3238_v1 = vor.u32 %v4015_v58, %v3235_v59  ;;  %v4134_v21 = vld [vmem:[%s5621_s1 + $0x238] sm:$0xff]  ;;  %v4156_v57 = vld [vmem:[%s5621_s1 + $0x2e8] sm:$0xff] }
  0x33   :  { %1914 = vmatmul.bf16.gmra.mxu2 %v2986_v2  ;;  %2052 = vmatpush.bf16.msrb.mxu1 %v4106_v23  ;;  %v3242_v2 = vor.u32 %v4024_v61, %v3241_v60  ;;  %v4142_v23 = vld [vmem:[%s5621_s1 + $0x278] sm:$0xff] }
  0x34   :  { %1963 = vmatmul.bf16.gmra.mxu3 %v2990_v3  ;;  %2101 = vmatpush.bf16.msrb.mxu2 %v4114_v20  ;;  %v3246_v3 = vor.u32 %v4016_v62, %v3243_v63  ;;  %v4150_v20 = vld [vmem:[%s5621_s1 + $0x2b8] sm:$0xff] }
  0x35   :  { %2150 = vmatpush.bf16.msrb.mxu3 %v4122_v22  ;;  %v4158_v22 = vld [vmem:[%s5621_s1 + $0x2f8] sm:$0xff] }
  0x36   :  { %2004 = vmatpush.bf16.msrb.mxu0 %v4097_v37  ;;  %v4133_v37 = vld [vmem:[%s5621_s1 + $0x230] sm:$0xff] }
  0x37   :  { %2053 = vmatpush.bf16.msrb.mxu1 %v4105_v39  ;;  %v4141_v39 = vld [vmem:[%s5621_s1 + $0x270] sm:$0xff] }
  0x38   :  { %2102 = vmatpush.bf16.msrb.mxu2 %v4113_v36  ;;  %v4149_v36 = vld [vmem:[%s5621_s1 + $0x2b0] sm:$0xff] }
  0x39   :  { %2151 = vmatpush.bf16.msrb.mxu3 %v4121_v38  ;;  %v4157_v38 = vld [vmem:[%s5621_s1 + $0x2f0] sm:$0xff] }
  0x3a   :  { %2005 = vmatpush.bf16.msrb.mxu0 %v4096_v53  ;;  %v2942_v53 = vor.u32 %v3938_v46, %v2939_v47 }
  0x3b   :  { %2054 = vmatpush.bf16.msrb.mxu1 %v4104_v55  ;;  %v4148_v55 = vld [vmem:[%s5621_s1 + $0x2a8] sm:$0xff] }
  0x3c   :  { %2103 = vmatpush.bf16.msrb.mxu2 %v4112_v52  ;;  %v2938_v52 = vor.u32 %v3946_v45, %v2937_v44 }
  0x3d   :  { %2152 = vmatpush.bf16.msrb.mxu3 %v4120_v54 }
  0x3e   :  { %2006 = vmatpush.bf16.msrb.mxu0 %v4095_v5  ;;  %v2995_v5 = vld [vmem:[%s5622_s0 + $0xd0] sm:$0xf0] }
  0x3f   :  { %2055 = vmatpush.bf16.msrb.mxu1 %v4103_v7  ;;  %v3962_v7 = vld [vmem:[%s5622_s0 + $0xd4] sm:$0xf0] }
  0x40   :  { %2104 = vmatpush.bf16.msrb.mxu2 %v4111_v4  ;;  %v3953_v4 = vld [vmem:[%s5622_s0 + $0x94] sm:$0xf] }
  0x41   :  { %1821 = vmatmul.bf16.gmra.mxu0 %v3042_v16  ;;  %2153 = vmatpush.bf16.msrb.mxu3 %v4119_v6  ;;  %v3298_v16 = vor.u32 %v4039_v9, %v3297_v8  ;;  %v3001_v6 = vld [vmem:[%s5622_s0 + $0x98] sm:$0xf]  ;;  %v3954_v8 = vld [vmem:[%s5622_s0 + $0x9c] sm:$0xf] }
  0x42   :  { %1870 = vmatmul.bf16.gmra.mxu1 %v3046_v17  ;;  %v3302_v17 = vor.u32 %v4031_v10, %v3299_v11  ;;  %2195 = vmatpush.bf16.msra.mxu0 %v4134_v21  ;;  %v3003_v9 = vld [vmem:[%s5622_s0 + $0xd8] sm:$0xf0]  ;;  %v4147_v21 = vld [vmem:[%s5621_s1 + $0x2a0] sm:$0xff] }
  0x43   :  { %1919 = vmatmul.bf16.gmra.mxu2 %v3050_v18  ;;  %v3306_v18 = vor.u32 %v4040_v13, %v3305_v12  ;;  %2244 = vmatpush.bf16.msra.mxu1 %v4142_v23  ;;  %v2998_v13 = vor.u32 %v3953_v4, %v2995_v5  ;;  %v4155_v23 = vld [vmem:[%s5621_s1 + $0x2e0] sm:$0xff]  ;;  %v3994_v4 = vld [vmem:[%s5622_s0 + $0x1d4] sm:$0xf0]  ;;  %v3986_v5 = vld [vmem:[%s5622_s0 + $0x19c] sm:$0xf] }
  0x44   :  { %1968 = vmatmul.bf16.gmra.mxu3 %v3054_v19  ;;  %v3310_v19 = vor.u32 %v4032_v14, %v3307_v15  ;;  %2293 = vmatpush.bf16.msra.mxu2 %v4150_v20 }
  0x45   :  { %2342 = vmatpush.bf16.msra.mxu3 %v4158_v22  ;;  %v4131_v22 = vld [vmem:[%s5621_s1 + $0x220] sm:$0xff] }
  0x46   :  { %2196 = vmatpush.bf16.msra.mxu0 %v4133_v37  ;;  %v3978_v37 = vld [vmem:[%s5622_s0 + $0x154] sm:$0xf0] }
  0x47   :  { %2245 = vmatpush.bf16.msra.mxu1 %v4141_v39  ;;  %v3067_v39 = vld [vmem:[%s5622_s0 + $0x158] sm:$0xf0] }
  0x48   :  { %2294 = vmatpush.bf16.msra.mxu2 %v4149_v36  ;;  %v3065_v36 = vld [vmem:[%s5622_s0 + $0x118] sm:$0xf] }
  0x49   :  { %2343 = vmatpush.bf16.msra.mxu3 %v4157_v38  ;;  %v3970_v38 = vld [vmem:[%s5622_s0 + $0x11c] sm:$0xf]  ;;  %v3066_v47 = vor.u32 %v3978_v37, %v3065_v36  ;;  %v4010_v36 = vld [vmem:[%s5622_s0 + $0x254] sm:$0xf0] }
  0x4a   :  { %2197 = vmatpush.bf16.msra.mxu0 %v4132_v56  ;;  %v4002_v37 = vld [vmem:[%s5622_s0 + $0x21c] sm:$0xf] }
  0x4c   :  { %2295 = vmatpush.bf16.msra.mxu2 %v4148_v55 }
  0x4d   :  { %2344 = vmatpush.bf16.msra.mxu3 %v4156_v57 }
  0x4e   :  { %2198 = vmatpush.bf16.msra.mxu0 %v4131_v22 }
  0x50   :  { %2296 = vmatpush.bf16.msra.mxu2 %v4147_v21  ;;  %v4153_v21 = vld [vmem:[%s5621_s1 + $0x2d0] sm:$0xff] }
  0x51   :  { %1826 = vmatmul.bf16.gmra.mxu0 %v3106_v32  ;;  %v3362_v32 = vor.u32 %v4055_v25, %v3361_v24  ;;  %2345 = vmatpush.bf16.msra.mxu3 %v4155_v23 }
  0x52   :  { %1875 = vmatmul.bf16.gmra.mxu1 %v3110_v33  ;;  %v3366_v33 = vor.u32 %v4047_v26, %v3363_v27 }
  0x53   :  { %1924 = vmatmul.bf16.gmra.mxu2 %v3114_v34  ;;  %v3370_v34 = vor.u32 %v4056_v29, %v3369_v28 }
  0x54   :  { %1973 = vmatmul.bf16.gmra.mxu3 %v3118_v35  ;;  %v3374_v35 = vor.u32 %v4048_v30, %v3371_v31  ;;  %v4139_v31 = vld [vmem:[%s5621_s1 + $0x260] sm:$0xff] }
  0x61   :  { %1831 = vmatmul.bf16.gmra.mxu0 %v3170_v48  ;;  %v2930_v48 = vor.u32 %v3945_v41, %v2929_v40 }
  0x62   :  { %1880 = vmatmul.bf16.gmra.mxu1 %v3174_v49  ;;  %v2934_v49 = vor.u32 %v3937_v42, %v2931_v43 }
  0x63   :  { %1929 = vmatmul.bf16.gmra.mxu2 %v3178_v50 }
  0x64   :  { %1978 = vmatmul.bf16.gmra.mxu3 %v3182_v51 }
  0x71   :  { %1836 = vmatmul.bf16.gmra.mxu0 %v3234_v0 }
  0x72   :  { %1885 = vmatmul.bf16.gmra.mxu1 %v3238_v1  ;;  %v4140_v1 = vld [vmem:[%s5621_s1 + $0x268] sm:$0xff] }
  0x73   :  { %1934 = vmatmul.bf16.gmra.mxu2 %v3242_v2  ;;  %v2993_v2 = vld [vmem:[%s5622_s0 + $0x90] sm:$0xf]  ;;  %2246 = vmatpush.bf16.msra.mxu1 %v4140_v1  ;;  %v3985_v1 = vld [vmem:[%s5622_s0 + $0x194] sm:$0xf] }
  0x74   :  { %1983 = vmatmul.bf16.gmra.mxu3 %v3246_v3  ;;  %v3961_v3 = vld [vmem:[%s5622_s0 + $0xcc] sm:$0xf0] }
  0x75   :  { %v2994_v12 = vor.u32 %v3961_v3, %v2993_v2  ;;  %v3123_v2 = vld [vmem:[%s5622_s0 + $0x1d0] sm:$0xf0]  ;;  %v3129_v3 = vld [vmem:[%s5622_s0 + $0x198] sm:$0xf] }
  0x77   :  { %2247 = vmatpush.bf16.msra.mxu1 %v4139_v31  ;;  %v3185_v31 = vld [vmem:[%s5622_s0 + $0x210] sm:$0xf] }
  0x81   :  { %1841 = vmatmul.bf16.gmra.mxu0 %v3298_v16 }
  0x82   :  { %1890 = vmatmul.bf16.gmra.mxu1 %v3302_v17  ;;  %v3002_v17 = vor.u32 %v3962_v7, %v3001_v6  ;;  %v3131_v6 = vld [vmem:[%s5622_s0 + $0x1d8] sm:$0xf0] }
  0x83   :  { %1939 = vmatmul.bf16.gmra.mxu2 %v3306_v18  ;;  %v3006_v18 = vor.u32 %v3954_v8, %v3003_v9 }
  0x84   :  { %1988 = vmatmul.bf16.gmra.mxu3 %v3310_v19 }
  0x91   :  { %1846 = vmatmul.bf16.gmra.mxu0 %v3362_v32  ;;  %v3057_v32 = vld [vmem:[%s5622_s0 + $0x110] sm:$0xf] }
  0x92   :  { %1895 = vmatmul.bf16.gmra.mxu1 %v3366_v33  ;;  %v3977_v33 = vld [vmem:[%s5622_s0 + $0x14c] sm:$0xf0] }
  0x93   :  { %1944 = vmatmul.bf16.gmra.mxu2 %v3370_v34  ;;  %v3969_v34 = vld [vmem:[%s5622_s0 + $0x114] sm:$0xf]  ;;  %v3058_v42 = vor.u32 %v3977_v33, %v3057_v32  ;;  %v4009_v32 = vld [vmem:[%s5622_s0 + $0x24c] sm:$0xf0] }
  0x94   :  { %1993 = vmatmul.bf16.gmra.mxu3 %v3374_v35  ;;  %v3059_v35 = vld [vmem:[%s5622_s0 + $0x150] sm:$0xf0] }
  0x95   :  { %v3062_v43 = vor.u32 %v3969_v34, %v3059_v35  ;;  %v4001_v33 = vld [vmem:[%s5622_s0 + $0x214] sm:$0xf]  ;;  %v3193_v35 = vld [vmem:[%s5622_s0 + $0x218] sm:$0xf] }
  0x96   :  { %v3187_v34 = vld [vmem:[%s5622_s0 + $0x250] sm:$0xf0] }
  0x9e   :  { %v1812_v50 = vpop.f32.mrf.mxu0 }
  0x9f   :  { %v1861_v51 = vpop.f32.mrf.mxu1 }
  0xa0   :  { %v1862_v54 = vadd.f32 %v1861_v51, %v1812_v50  ;;  %v4146_v51 = vld [vmem:[%s5621_s1 + $0x298] sm:$0xff] }
  0xa1   :  { %2007 = vmatmul.bf16.vlgmr.msrb.gmra.mxu0 %v2930_v48  ;;  %v3070_v48 = vor.u32 %v3970_v38, %v3067_v39  ;;  %2297 = vmatpush.bf16.msra.mxu2 %v4146_v51  ;;  %v3195_v38 = vld [vmem:[%s5622_s0 + $0x258] sm:$0xf0]  ;;  %v4144_v51 = vld [vmem:[%s5621_s1 + $0x288] sm:$0xff] }
  0xa2   :  { %2056 = vmatmul.bf16.vlgmr.msrb.gmra.mxu1 %v2934_v49 }
  0xa3   :  { %2105 = vmatmul.bf16.vlgmr.msrb.gmra.mxu2 %v2938_v52  ;;  %v4130_v52 = vld [vmem:[%s5621_s1 + $0x218] sm:$0xff] }
  0xa4   :  { %2154 = vmatmul.bf16.vlgmr.msrb.gmra.mxu3 %v2942_v53  ;;  %v4154_v53 = vld [vmem:[%s5621_s1 + $0x2d8] sm:$0xff]  ;;  %2199 = vmatpush.bf16.msra.mxu0 %v4130_v52  ;;  %v4128_v52 = vld [vmem:[%s5621_s1 + $0x208] sm:$0xff] }
  0xa5   :  { %2346 = vmatpush.bf16.msra.mxu3 %v4154_v53  ;;  %v4152_v53 = vld [vmem:[%s5621_s1 + $0x2c8] sm:$0xff] }
  0xa6   :  { %v1910_v58 = vpop.f32.mrf.mxu2  ;;  %v1814_v61 = vpop.f32.mrf.mxu0 }
  0xa7   :  { %v1959_v59 = vpop.f32.mrf.mxu3  ;;  %v1911_v60 = vadd.f32 %v1910_v58, %v1862_v54  ;;  %v1863_v62 = vpop.f32.mrf.mxu1 }
  0xa8   :  { %v1864_v63 = vadd.f32 %v1863_v62, %v1814_v61  ;;  %v4138_v61 = vld [vmem:[%s5621_s1 + $0x258] sm:$0xff]  ;;  %v3121_v62 = vld [vmem:[%s5622_s0 + $0x190] sm:$0xf] }
  0xa9   :  { %v4711_v0 = vadd.f32 %v1959_v59, %v1911_v60  ;;  %2248 = vmatpush.bf16.msra.mxu1 %v4138_v61  ;;  %2347 = vmatpush.bf16.msra.mxu3 %v4153_v21  ;;  %v4143_v21 = vld [vmem:[%s5621_s1 + $0x280] sm:$0xff] }
  0xad   :  { %2348 = vmatpush.bf16.msra.mxu3 %v4152_v53 }
  0xae   :  { %v1912_v10 = vpop.f32.mrf.mxu2  ;;  %v1817_v15 = vpop.f32.mrf.mxu0 }
  0xaf   :  { %v1961_v11 = vpop.f32.mrf.mxu3  ;;  %v1913_v14 = vadd.f32 %v1912_v10, %v1864_v63  ;;  %v1866_v16 = vpop.f32.mrf.mxu1  ;;  %v3993_v63 = vld [vmem:[%s5622_s0 + $0x1cc] sm:$0xf0]  ;;  %v3126_v10 = vor.u32 %v3985_v1, %v3123_v2  ;;  %v4017_v2 = vld [vmem:[%s5622_s0 + $0x294] sm:$0xf] }
  0xb0   :  { %v1867_v19 = vadd.f32 %v1866_v16, %v1817_v15  ;;  %v3122_v9 = vor.u32 %v3993_v63, %v3121_v62  ;;  %v3134_v15 = vor.u32 %v3986_v5, %v3131_v6  ;;  %v4136_v62 = vld [vmem:[%s5621_s1 + $0x248] sm:$0xff]  ;;  %v3249_v63 = vld [vmem:[%s5622_s0 + $0x290] sm:$0xf]  ;;  %v4026_v5 = vld [vmem:[%s5622_s0 + $0x2d4] sm:$0xf0] }
  0xb1   :  { %v4740_v20 = vadd.f32 %v1961_v11, %v1913_v14  ;;  %2012 = vmatmul.bf16.gmra.mxu0 %v2994_v12  ;;  %v3130_v14 = vor.u32 %v3994_v4, %v3129_v3  ;;  %v4025_v1 = vld [vmem:[%s5622_s0 + $0x2cc] sm:$0xf0]  ;;  %v3251_v3 = vld [vmem:[%s5622_s0 + $0x2d0] sm:$0xf0]  ;;  %v3257_v4 = vld [vmem:[%s5622_s0 + $0x298] sm:$0xf] }
  0xb2   :  { %2061 = vmatmul.bf16.gmra.mxu1 %v2998_v13  ;;  %v4018_v6 = vld [vmem:[%s5622_s0 + $0x29c] sm:$0xf] }
  0xb3   :  { %2110 = vmatmul.bf16.gmra.mxu2 %v3002_v17 }
  0xb4   :  { %2159 = vmatmul.bf16.gmra.mxu3 %v3006_v18  ;;  %v4145_v18 = vld [vmem:[%s5621_s1 + $0x290] sm:$0xff] }
  0xb5   :  { %2298 = vmatpush.bf16.msra.mxu2 %v4145_v18 }
  0xb6   :  { %v1915_v24 = vpop.f32.mrf.mxu2  ;;  %v1819_v27 = vpop.f32.mrf.mxu0 }
  0xb7   :  { %v1964_v25 = vpop.f32.mrf.mxu3  ;;  %v1916_v26 = vadd.f32 %v1915_v24, %v1867_v19  ;;  %v1868_v28 = vpop.f32.mrf.mxu1  ;;  %v4129_v19 = vld [vmem:[%s5621_s1 + $0x210] sm:$0xff] }
  0xb8   :  { %v1869_v29 = vadd.f32 %v1868_v28, %v1819_v27  ;;  %2200 = vmatpush.bf16.msra.mxu0 %v4129_v19 }
  0xb9   :  { %v4751_v30 = vadd.f32 %v1964_v25, %v1916_v26  ;;  %2299 = vmatpush.bf16.msra.mxu2 %v4144_v51 }
  0xbc   :  { %2201 = vmatpush.bf16.msra.mxu0 %v4128_v52 }
  0xbd   :  { %2300 = vmatpush.bf16.msra.mxu2 %v4143_v21 }
  0xbe   :  { %v1917_v40 = vpop.f32.mrf.mxu2  ;;  %v1822_v45 = vpop.f32.mrf.mxu0 }
  0xbf   :  { %v1966_v41 = vpop.f32.mrf.mxu3  ;;  %v1918_v44 = vadd.f32 %v1917_v40, %v1869_v29  ;;  %v1871_v46 = vpop.f32.mrf.mxu1  ;;  %v4137_v29 = vld [vmem:[%s5621_s1 + $0x250] sm:$0xff] }
  0xc0   :  { %v1872_v49 = vadd.f32 %v1871_v46, %v1822_v45  ;;  %2249 = vmatpush.bf16.msra.mxu1 %v4137_v29  ;;  %v3194_v46 = vor.u32 %v4010_v36, %v3193_v35  ;;  %v4041_v35 = vld [vmem:[%s5622_s0 + $0x34c] sm:$0xf0]  ;;  %v4033_v36 = vld [vmem:[%s5622_s0 + $0x314] sm:$0xf] }
  0xc1   :  { %v4780_v50 = vadd.f32 %v1966_v41, %v1918_v44  ;;  %2017 = vmatmul.bf16.gmra.mxu0 %v3058_v42  ;;  %v3186_v41 = vor.u32 %v4009_v32, %v3185_v31  ;;  %v3190_v42 = vor.u32 %v4001_v33, %v3187_v34  ;;  %v4135_v33 = vld [vmem:[%s5621_s1 + $0x240] sm:$0xff]  ;;  %v3313_v34 = vld [vmem:[%s5622_s0 + $0x310] sm:$0xf] }
  0xc2   :  { %2066 = vmatmul.bf16.gmra.mxu1 %v3062_v43 }
  0xc3   :  { %2115 = vmatmul.bf16.gmra.mxu2 %v3066_v47  ;;  %v3198_v47 = vor.u32 %v4002_v37, %v3195_v38  ;;  %v3315_v37 = vld [vmem:[%s5622_s0 + $0x350] sm:$0xf0]  ;;  %v3321_v38 = vld [vmem:[%s5622_s0 + $0x318] sm:$0xf] }
  0xc4   :  { %2164 = vmatmul.bf16.gmra.mxu3 %v3070_v48  ;;  %2250 = vmatpush.bf16.msra.mxu1 %v4136_v62 }
  0xc6   :  { %v1920_v54 = vpop.f32.mrf.mxu2  ;;  %v1824_v57 = vpop.f32.mrf.mxu0 }
  0xc7   :  { %v1969_v55 = vpop.f32.mrf.mxu3  ;;  %v1921_v56 = vadd.f32 %v1920_v54, %v1872_v49  ;;  %v1873_v58 = vpop.f32.mrf.mxu1 }
  0xc8   :  { %v1874_v59 = vadd.f32 %v1873_v58, %v1824_v57  ;;  %2251 = vmatpush.bf16.msra.mxu1 %v4135_v33 }
  0xc9   :  { %v4791_v60 = vadd.f32 %v1969_v55, %v1921_v56 }
  0xce   :  { %v1922_v7 = vpop.f32.mrf.mxu2  ;;  %v1827_v12 = vpop.f32.mrf.mxu0 }
  0xcf   :  { %v1971_v8 = vpop.f32.mrf.mxu3  ;;  %v1923_v11 = vadd.f32 %v1922_v7, %v1874_v59  ;;  %v1876_v13 = vpop.f32.mrf.mxu1  ;;  %v3259_v7 = vld [vmem:[%s5622_s0 + $0x2d8] sm:$0xf0] }
  0xd0   :  { %v1877_v16 = vadd.f32 %v1876_v13, %v1827_v12 }
  0xd1   :  { %v4820_v17 = vadd.f32 %v1971_v8, %v1923_v11  ;;  %2022 = vmatmul.bf16.gmra.mxu0 %v3122_v9  ;;  %v3254_v11 = vor.u32 %v4017_v2, %v3251_v3 }
  0xd2   :  { %2071 = vmatmul.bf16.gmra.mxu1 %v3126_v10  ;;  %v3250_v10 = vor.u32 %v4025_v1, %v3249_v63 }
  0xd3   :  { %2120 = vmatmul.bf16.gmra.mxu2 %v3130_v14 }
  0xd4   :  { %2169 = vmatmul.bf16.gmra.mxu3 %v3134_v15  ;;  %v3258_v15 = vor.u32 %v4026_v5, %v3257_v4  ;;  %v4174_v4 = vld [vmem:[%s5621_s1 + $0x378] sm:$0xff]  ;;  %v3377_v5 = vld [vmem:[%s5622_s0 + $0x390] sm:$0xf] }
  0xd5   :  { %2440 = vmatpush.bf16.msrb.mxu1 %v4174_v4  ;;  %v4180_v4 = vld [vmem:[%s5621_s1 + $0x3a8] sm:$0xff] }
  0xd6   :  { %v1925_v22 = vpop.f32.mrf.mxu2  ;;  %v1829_v25 = vpop.f32.mrf.mxu0 }
  0xd7   :  { %v1974_v23 = vpop.f32.mrf.mxu3  ;;  %v1926_v24 = vadd.f32 %v1925_v22, %v1877_v16  ;;  %v1878_v26 = vpop.f32.mrf.mxu1  ;;  %v3262_v16 = vor.u32 %v4018_v6, %v3259_v7  ;;  %v4127_v22 = vld [vmem:[%s5621_s1 + $0x200] sm:$0xff]  ;;  %v4057_v6 = vld [vmem:[%s5622_s0 + $0x3cc] sm:$0xf0]  ;;  %v4049_v7 = vld [vmem:[%s5622_s0 + $0x394] sm:$0xf] }
  0xd8   :  { %v1879_v27 = vadd.f32 %v1878_v26, %v1829_v25  ;;  %2202 = vmatpush.bf16.msra.mxu0 %v4127_v22 }
  0xd9   :  { %v4831_v28 = vadd.f32 %v1974_v23, %v1926_v24  ;;  %v4151_v23 = vld [vmem:[%s5621_s1 + $0x2c0] sm:$0xff] }
  0xda   :  { %2349 = vmatpush.bf16.msra.mxu3 %v4151_v23 }
  0xde   :  { %v1927_v39 = vpop.f32.mrf.mxu2  ;;  %v1832_v44 = vpop.f32.mrf.mxu0 }
  0xdf   :  { %v1976_v40 = vpop.f32.mrf.mxu3  ;;  %v1928_v43 = vadd.f32 %v1927_v39, %v1879_v27  ;;  %v1881_v45 = vpop.f32.mrf.mxu1  ;;  %v4042_v39 = vld [vmem:[%s5622_s0 + $0x354] sm:$0xf0] }
  0xe0   :  { %v1882_v48 = vadd.f32 %v1881_v45, %v1832_v44  ;;  %v3314_v44 = vor.u32 %v4041_v35, %v3313_v34  ;;  %v3318_v45 = vor.u32 %v4033_v36, %v3315_v37  ;;  %v3322_v51 = vor.u32 %v4042_v39, %v3321_v38 }
  0xe1   :  { %v4860_v49 = vadd.f32 %v1976_v40, %v1928_v43  ;;  %2027 = vmatmul.bf16.gmra.mxu0 %v3186_v41  ;;  %v4034_v40 = vld [vmem:[%s5622_s0 + $0x31c] sm:$0xf] }
  0xe2   :  { %2076 = vmatmul.bf16.gmra.mxu1 %v3190_v42  ;;  %v3323_v41 = vld [vmem:[%s5622_s0 + $0x358] sm:$0xf0] }
  0xe3   :  { %2125 = vmatmul.bf16.gmra.mxu2 %v3194_v46  ;;  %v3326_v52 = vor.u32 %v4034_v40, %v3323_v41  ;;  %v4173_v40 = vld [vmem:[%s5621_s1 + $0x370] sm:$0xff]  ;;  %v2945_v41 = vld [vmem:[%s5622_s0 + $0x20] sm:$0xf] }
  0xe4   :  { %2174 = vmatmul.bf16.gmra.mxu3 %v3198_v47  ;;  %2441 = vmatpush.bf16.msrb.mxu1 %v4173_v40 }
  0xe6   :  { %v1930_v54 = vpop.f32.mrf.mxu2  ;;  %v1834_v57 = vpop.f32.mrf.mxu0 }
  0xe7   :  { %v1979_v55 = vpop.f32.mrf.mxu3  ;;  %v1931_v56 = vadd.f32 %v1930_v54, %v1882_v48  ;;  %v1883_v58 = vpop.f32.mrf.mxu1 }
  0xe8   :  { %v1884_v59 = vadd.f32 %v1883_v58, %v1834_v57  ;;  %v4190_v57 = vld [vmem:[%s5621_s1 + $0x3f8] sm:$0xff] }
  0xe9   :  { %v4871_v61 = vadd.f32 %v1979_v55, %v1931_v56  ;;  %v4182_v55 = vld [vmem:[%s5621_s1 + $0x3b8] sm:$0xff]  ;;  %2538 = vmatpush.bf16.msrb.mxu3 %v4190_v57 }
  0xea   :  { %v4166_v56 = vld [vmem:[%s5621_s1 + $0x338] sm:$0xff]  ;;  %2489 = vmatpush.bf16.msrb.mxu2 %v4182_v55 }
  0xeb   :  { %2391 = vmatpush.bf16.msrb.mxu0 %v4166_v56 }
  0xee   :  { %v1932_v8 = vpop.f32.mrf.mxu2  ;;  %v1837_v13 = vpop.f32.mrf.mxu0 }
  0xef   :  { %v1981_v9 = vpop.f32.mrf.mxu3  ;;  %v1933_v12 = vadd.f32 %v1932_v8, %v1884_v59  ;;  %v1886_v14 = vpop.f32.mrf.mxu1  ;;  %v3379_v8 = vld [vmem:[%s5622_s0 + $0x3d0] sm:$0xf0] }
  0xf0   :  { %v1887_v18 = vadd.f32 %v1886_v14, %v1837_v13 }
  0xf1   :  { %v4900_v19 = vadd.f32 %v1981_v9, %v1933_v12  ;;  %2032 = vmatmul.bf16.gmra.mxu0 %v3250_v10  ;;  %v3385_v9 = vld [vmem:[%s5622_s0 + $0x398] sm:$0xf]  ;;  %v3387_v12 = vld [vmem:[%s5622_s0 + $0x3d8] sm:$0xf0] }
  0xf2   :  { %2081 = vmatmul.bf16.gmra.mxu1 %v3254_v11  ;;  %v4058_v10 = vld [vmem:[%s5622_s0 + $0x3d4] sm:$0xf0]  ;;  %v4050_v11 = vld [vmem:[%s5622_s0 + $0x39c] sm:$0xf] }
  0xf3   :  { %2130 = vmatmul.bf16.gmra.mxu2 %v3258_v15  ;;  %v3378_v15 = vor.u32 %v4057_v6, %v3377_v5  ;;  %v3386_v23 = vor.u32 %v4058_v10, %v3385_v9  ;;  %v4164_v5 = vld [vmem:[%s5621_s1 + $0x328] sm:$0xff] }
  0xf4   :  { %2179 = vmatmul.bf16.gmra.mxu3 %v3262_v16  ;;  %v3382_v16 = vor.u32 %v4049_v7, %v3379_v8  ;;  %v4188_v6 = vld [vmem:[%s5621_s1 + $0x3e8] sm:$0xff] }
  0xf6   :  { %v1935_v24 = vpop.f32.mrf.mxu2  ;;  %v1839_v27 = vpop.f32.mrf.mxu0 }
  0xf7   :  { %v1984_v25 = vpop.f32.mrf.mxu3  ;;  %v1936_v26 = vadd.f32 %v1935_v24, %v1887_v18  ;;  %v1888_v29 = vpop.f32.mrf.mxu1  ;;  %v3390_v24 = vor.u32 %v4050_v11, %v3387_v12 }
  0xf8   :  { %v1889_v31 = vadd.f32 %v1888_v29, %v1839_v27  ;;  %v4181_v27 = vld [vmem:[%s5621_s1 + $0x3b0] sm:$0xff] }
  0xf9   :  { %v4911_v32 = vadd.f32 %v1984_v25, %v1936_v26  ;;  %v4165_v29 = vld [vmem:[%s5621_s1 + $0x330] sm:$0xff]  ;;  %2490 = vmatpush.bf16.msrb.mxu2 %v4181_v27 }
  0xfa   :  { %2392 = vmatpush.bf16.msrb.mxu0 %v4165_v29 }
  0xfd   :  { %2491 = vmatpush.bf16.msrb.mxu2 %v4180_v4 }
  0xfe   :  { %v1937_v42 = vpop.f32.mrf.mxu2  ;;  %v1842_v47 = vpop.f32.mrf.mxu0  ;;  %2393 = vmatpush.bf16.msrb.mxu0 %v4164_v5 }
  0xff   :  { %v1986_v43 = vpop.f32.mrf.mxu3  ;;  %v1938_v46 = vadd.f32 %v1937_v42, %v1889_v31  ;;  %v1891_v48 = vpop.f32.mrf.mxu1  ;;  %v4189_v31 = vld [vmem:[%s5621_s1 + $0x3f0] sm:$0xff]  ;;  %v3947_v42 = vld [vmem:[%s5622_s0 + $0x5c] sm:$0xf0] }
 0x100   :  { %v1892_v53 = vadd.f32 %v1891_v48, %v1842_v47  ;;  %2539 = vmatpush.bf16.msrb.mxu3 %v4189_v31  ;;  %v3940_v47 = vld [vmem:[%s5622_s0 + $0x2c] sm:$0xf] }
 0x101   :  { %v4940_v54 = vadd.f32 %v1986_v43, %v1938_v46  ;;  %2037 = vmatmul.bf16.gmra.mxu0 %v3314_v44  ;;  %v3939_v43 = vld [vmem:[%s5622_s0 + $0x24] sm:$0xf]  ;;  %v3948_v46 = vld [vmem:[%s5622_s0 + $0x64] sm:$0xf0]  ;;  %v2955_v48 = vld [vmem:[%s5622_s0 + $0x68] sm:$0xf0] }
 0x102   :  { %2086 = vmatmul.bf16.gmra.mxu1 %v3318_v45  ;;  %v2947_v44 = vld [vmem:[%s5622_s0 + $0x60] sm:$0xf0]  ;;  %v2953_v45 = vld [vmem:[%s5622_s0 + $0x28] sm:$0xf] }
 0x103   :  { %2135 = vmatmul.bf16.gmra.mxu2 %v3322_v51  ;;  %v2950_v55 = vor.u32 %v3939_v43, %v2947_v44  ;;  %v4163_v43 = vld [vmem:[%s5621_s1 + $0x320] sm:$0xff] }
 0x104   :  { %2184 = vmatmul.bf16.gmra.mxu3 %v3326_v52  ;;  %v4187_v44 = vld [vmem:[%s5621_s1 + $0x3e0] sm:$0xff]  ;;  %2394 = vmatpush.bf16.msrb.mxu0 %v4163_v43 }
 0x105   :  { %2540 = vmatpush.bf16.msrb.mxu3 %v4188_v6 }
 0x106   :  { %v1940_v58 = vpop.f32.mrf.mxu2  ;;  %v1844_v63 = vpop.f32.mrf.mxu0 }
 0x107   :  { %v1989_v59 = vpop.f32.mrf.mxu3  ;;  %v1941_v62 = vadd.f32 %v1940_v58, %v1892_v53  ;;  %v1893_v1 = vpop.f32.mrf.mxu1  ;;  %v2946_v53 = vor.u32 %v3947_v42, %v2945_v41  ;;  %v4179_v42 = vld [vmem:[%s5621_s1 + $0x3a0] sm:$0xff] }
 0x108   :  { %v1894_v2 = vadd.f32 %v1893_v1, %v1844_v63  ;;  %2492 = vmatpush.bf16.msrb.mxu2 %v4179_v42 }
 0x109   :  { %v4951_v3 = vadd.f32 %v1989_v59, %v1941_v62  ;;  %v2954_v59 = vor.u32 %v3948_v46, %v2953_v45  ;;  %v2958_v62 = vor.u32 %v3940_v47, %v2955_v48  ;;  %2541 = vmatpush.bf16.msrb.mxu3 %v4187_v44 }
 0x10e   :  { %v1942_v13 = vpop.f32.mrf.mxu2  ;;  %v1847_v21 = vpop.f32.mrf.mxu0 }
 0x10f   :  { %v1991_v14 = vpop.f32.mrf.mxu3  ;;  %v1943_v18 = vadd.f32 %v1942_v13, %v1894_v2  ;;  %v1896_v22 = vpop.f32.mrf.mxu1  ;;  %v4172_v13 = vld [vmem:[%s5621_s1 + $0x368] sm:$0xff] }
 0x110   :  { %v1897_v25 = vadd.f32 %v1896_v22, %v1847_v21  ;;  %v3017_v21 = vld [vmem:[%s5622_s0 + $0xa8] sm:$0xf]  ;;  %2442 = vmatpush.bf16.msrb.mxu1 %v4172_v13 }
 0x111   :  { %v4980_v26 = vadd.f32 %v1991_v14, %v1943_v18  ;;  %2042 = vmatmul.bf16.gmra.mxu0 %v3378_v15  ;;  %v3009_v15 = vld [vmem:[%s5622_s0 + $0xa0] sm:$0xf]  ;;  %v3955_v18 = vld [vmem:[%s5622_s0 + $0xa4] sm:$0xf]  ;;  %v3964_v22 = vld [vmem:[%s5622_s0 + $0xe4] sm:$0xf0] }
 0x112   :  { %2091 = vmatmul.bf16.gmra.mxu1 %v3382_v16  ;;  %v3963_v16 = vld [vmem:[%s5622_s0 + $0xdc] sm:$0xf0] }
 0x113   :  { %2140 = vmatmul.bf16.gmra.mxu2 %v3386_v23  ;;  %v3956_v23 = vld [vmem:[%s5622_s0 + $0xac] sm:$0xf]  ;;  %v3010_v29 = vor.u32 %v3963_v16, %v3009_v15  ;;  %v4178_v16 = vld [vmem:[%s5621_s1 + $0x398] sm:$0xff] }
 0x114   :  { %2189 = vmatmul.bf16.gmra.mxu3 %v3390_v24  ;;  %v3019_v24 = vld [vmem:[%s5622_s0 + $0xe8] sm:$0xf0]  ;;  %2493 = vmatpush.bf16.msrb.mxu2 %v4178_v16 }
 0x116   :  { %v1945_v33 = vpop.f32.mrf.mxu2  ;;  %v1849_v36 = vpop.f32.mrf.mxu0 }
 0x117   :  { %v1994_v34 = vpop.f32.mrf.mxu3  ;;  %v1946_v35 = vadd.f32 %v1945_v33, %v1897_v25  ;;  %v1898_v37 = vpop.f32.mrf.mxu1 }
 0x118   :  { %v1899_v38 = vadd.f32 %v1898_v37, %v1849_v36  ;;  %v3018_v36 = vor.u32 %v3964_v22, %v3017_v21  ;;  %v3022_v37 = vor.u32 %v3956_v23, %v3019_v24 }
 0x119   :  { %v4991_v39 = vadd.f32 %v1994_v34, %v1946_v35 }
 0x11e   :  { %v1947_v51 = vpop.f32.mrf.mxu2  ;;  %v2008_v57 = vpop.f32.mrf.mxu0 }
 0x11f   :  { %v1996_v52 = vpop.f32.mrf.mxu3  ;;  %v1948_v56 = vadd.f32 %v1947_v51, %v1899_v38  ;;  %v2057_v58 = vpop.f32.mrf.mxu1  ;;  %v2009_v63 = vadd.f32 %v2008_v57, %v4711_v0  ;;  %v3979_v57 = vld [vmem:[%s5622_s0 + $0x15c] sm:$0xf0] }
 0x121   :  { %v5021_v1 = vadd.f32 %v1996_v52, %v1948_v56  ;;  %v2058_v2 = vadd.f32 %v2057_v58, %v2009_v63  ;;  %2203 = vmatmul.bf16.vlgmr.msra.gmra.mxu0 %v2946_v53  ;;  %v4171_v53 = vld [vmem:[%s5621_s1 + $0x360] sm:$0xff]  ;;  %v3972_v63 = vld [vmem:[%s5622_s0 + $0x12c] sm:$0xf] }
 0x122   :  { %2252 = vmatmul.bf16.vlgmr.msra.gmra.mxu1 %v2950_v55  ;;  %v3073_v56 = vld [vmem:[%s5622_s0 + $0x120] sm:$0xf]  ;;  %v3971_v58 = vld [vmem:[%s5622_s0 + $0x124] sm:$0xf] }
 0x123   :  { %2301 = vmatmul.bf16.vlgmr.msra.gmra.mxu2 %v2954_v59  ;;  %v3081_v59 = vld [vmem:[%s5622_s0 + $0x128] sm:$0xf]  ;;  %2443 = vmatpush.bf16.msrb.mxu1 %v4171_v53  ;;  %v3074_v6 = vor.u32 %v3979_v57, %v3073_v56  ;;  %v4177_v57 = vld [vmem:[%s5621_s1 + $0x390] sm:$0xff] }
 0x124   :  { %2350 = vmatmul.bf16.vlgmr.msra.gmra.mxu3 %v2958_v62  ;;  %v3980_v62 = vld [vmem:[%s5622_s0 + $0x164] sm:$0xf0]  ;;  %2494 = vmatpush.bf16.msrb.mxu2 %v4177_v57 }
 0x126   :  { %v2106_v0 = vpop.f32.mrf.mxu2  ;;  %v2010_v9 = vpop.f32.mrf.mxu0 }
 0x127   :  { %v2155_v7 = vpop.f32.mrf.mxu3  ;;  %v2107_v8 = vadd.f32 %v2106_v0, %v2058_v2  ;;  %v2059_v10 = vpop.f32.mrf.mxu1  ;;  %v2011_v11 = vadd.f32 %v2010_v9, %v4740_v20  ;;  %v3011_v20 = vld [vmem:[%s5622_s0 + $0xe0] sm:$0xf0]  ;;  %v3083_v2 = vld [vmem:[%s5622_s0 + $0x168] sm:$0xf0] }
 0x128   :  { %v3014_v31 = vor.u32 %v3955_v18, %v3011_v20  ;;  %v4162_v18 = vld [vmem:[%s5621_s1 + $0x318] sm:$0xff] }
 0x129   :  { %v5033_v12 = vadd.f32 %v2155_v7, %v2107_v8  ;;  %v2060_v14 = vadd.f32 %v2059_v10, %v2011_v11  ;;  %v3082_v10 = vor.u32 %v3980_v62, %v3081_v59  ;;  %v3086_v11 = vor.u32 %v3972_v63, %v3083_v2  ;;  %v4186_v20 = vld [vmem:[%s5621_s1 + $0x3d8] sm:$0xff]  ;;  %2395 = vmatpush.bf16.msrb.mxu0 %v4162_v18 }
 0x12a   :  { %2542 = vmatpush.bf16.msrb.mxu3 %v4186_v20 }
 0x12e   :  { %v2108_v25 = vpop.f32.mrf.mxu2  ;;  %v2013_v34 = vpop.f32.mrf.mxu0 }
 0x12f   :  { %v2157_v27 = vpop.f32.mrf.mxu3  ;;  %v2109_v33 = vadd.f32 %v2108_v25, %v2060_v14  ;;  %v2062_v35 = vpop.f32.mrf.mxu1  ;;  %v2014_v38 = vadd.f32 %v2013_v34, %v4751_v30  ;;  %v3995_v34 = vld [vmem:[%s5622_s0 + $0x1dc] sm:$0xf0] }
 0x131   :  { %v5063_v40 = vadd.f32 %v2157_v27, %v2109_v33  ;;  %v2063_v41 = vadd.f32 %v2062_v35, %v2014_v38  ;;  %2208 = vmatmul.bf16.gmra.mxu0 %v3010_v29  ;;  %v4170_v29 = vld [vmem:[%s5621_s1 + $0x358] sm:$0xff]  ;;  %v3137_v33 = vld [vmem:[%s5622_s0 + $0x1a0] sm:$0xf]  ;;  %v3987_v35 = vld [vmem:[%s5622_s0 + $0x1a4] sm:$0xf] }
 0x132   :  { %2257 = vmatmul.bf16.gmra.mxu1 %v3014_v31  ;;  %v3988_v38 = vld [vmem:[%s5622_s0 + $0x1ac] sm:$0xf]  ;;  %v3138_v44 = vor.u32 %v3995_v34, %v3137_v33 }
 0x133   :  { %2306 = vmatmul.bf16.gmra.mxu2 %v3018_v36  ;;  %v3145_v36 = vld [vmem:[%s5622_s0 + $0x1a8] sm:$0xf]  ;;  %2444 = vmatpush.bf16.msrb.mxu1 %v4170_v29 }
 0x134   :  { %2355 = vmatmul.bf16.gmra.mxu3 %v3022_v37  ;;  %v3996_v37 = vld [vmem:[%s5622_s0 + $0x1e4] sm:$0xf0] }
 0x135   :  { %v4176_v34 = vld [vmem:[%s5621_s1 + $0x388] sm:$0xff] }
 0x136   :  { %v2111_v30 = vpop.f32.mrf.mxu2  ;;  %v2015_v47 = vpop.f32.mrf.mxu0  ;;  %2495 = vmatpush.bf16.msrb.mxu2 %v4176_v34 }
 0x137   :  { %v2160_v45 = vpop.f32.mrf.mxu3  ;;  %v2112_v46 = vadd.f32 %v2111_v30, %v2063_v41  ;;  %v2064_v48 = vpop.f32.mrf.mxu1  ;;  %v2016_v51 = vadd.f32 %v2015_v47, %v4780_v50  ;;  %v3075_v50 = vld [vmem:[%s5622_s0 + $0x160] sm:$0xf0]  ;;  %v3147_v41 = vld [vmem:[%s5622_s0 + $0x1e8] sm:$0xf0] }
 0x138   :  { %v3078_v0 = vor.u32 %v3971_v58, %v3075_v50  ;;  %v4161_v58 = vld [vmem:[%s5621_s1 + $0x310] sm:$0xff] }
 0x139   :  { %v5075_v52 = vadd.f32 %v2160_v45, %v2112_v46  ;;  %v2065_v55 = vadd.f32 %v2064_v48, %v2016_v51  ;;  %v3146_v48 = vor.u32 %v3996_v37, %v3145_v36  ;;  %v3150_v51 = vor.u32 %v3988_v38, %v3147_v41  ;;  %v4185_v50 = vld [vmem:[%s5621_s1 + $0x3d0] sm:$0xff]  ;;  %2396 = vmatpush.bf16.msrb.mxu0 %v4161_v58 }
 0x13a   :  { %2543 = vmatpush.bf16.msrb.mxu3 %v4185_v50 }
 0x13e   :  { %v2113_v4 = vpop.f32.mrf.mxu2  ;;  %v2018_v8 = vpop.f32.mrf.mxu0 }
 0x13f   :  { %v2162_v5 = vpop.f32.mrf.mxu3  ;;  %v2114_v7 = vadd.f32 %v2113_v4, %v2065_v55  ;;  %v2067_v9 = vpop.f32.mrf.mxu1  ;;  %v2019_v13 = vadd.f32 %v2018_v8, %v4791_v60  ;;  %v4011_v8 = vld [vmem:[%s5622_s0 + $0x25c] sm:$0xf0] }
 0x141   :  { %v5105_v14 = vadd.f32 %v2162_v5, %v2114_v7  ;;  %v2068_v15 = vadd.f32 %v2067_v9, %v2019_v13  ;;  %2213 = vmatmul.bf16.gmra.mxu0 %v3074_v6  ;;  %v4169_v6 = vld [vmem:[%s5621_s1 + $0x350] sm:$0xff]  ;;  %v3201_v7 = vld [vmem:[%s5622_s0 + $0x220] sm:$0xf]  ;;  %v4003_v9 = vld [vmem:[%s5622_s0 + $0x224] sm:$0xf] }
 0x142   :  { %2262 = vmatmul.bf16.gmra.mxu1 %v3078_v0  ;;  %v4004_v13 = vld [vmem:[%s5622_s0 + $0x22c] sm:$0xf]  ;;  %v3202_v20 = vor.u32 %v4011_v8, %v3201_v7  ;;  %v4175_v8 = vld [vmem:[%s5621_s1 + $0x380] sm:$0xff] }
 0x143   :  { %2311 = vmatmul.bf16.gmra.mxu2 %v3082_v10  ;;  %v3209_v10 = vld [vmem:[%s5622_s0 + $0x228] sm:$0xf]  ;;  %2445 = vmatpush.bf16.msrb.mxu1 %v4169_v6 }
 0x144   :  { %2360 = vmatmul.bf16.gmra.mxu3 %v3086_v11  ;;  %v4012_v11 = vld [vmem:[%s5622_s0 + $0x264] sm:$0xf0]  ;;  %2496 = vmatpush.bf16.msrb.mxu2 %v4175_v8 }
 0x146   :  { %v2116_v60 = vpop.f32.mrf.mxu2  ;;  %v2020_v23 = vpop.f32.mrf.mxu0 }
 0x147   :  { %v2165_v21 = vpop.f32.mrf.mxu3  ;;  %v2117_v22 = vadd.f32 %v2116_v60, %v2068_v15  ;;  %v2069_v24 = vpop.f32.mrf.mxu1  ;;  %v2021_v25 = vadd.f32 %v2020_v23, %v4820_v17  ;;  %v3139_v17 = vld [vmem:[%s5622_s0 + $0x1e0] sm:$0xf0]  ;;  %v3211_v15 = vld [vmem:[%s5622_s0 + $0x268] sm:$0xf0] }
 0x148   :  { %v3142_v30 = vor.u32 %v3987_v35, %v3139_v17  ;;  %v4160_v35 = vld [vmem:[%s5621_s1 + $0x308] sm:$0xff] }
 0x149   :  { %v5117_v27 = vadd.f32 %v2165_v21, %v2117_v22  ;;  %v2070_v31 = vadd.f32 %v2069_v24, %v2021_v25  ;;  %v3210_v24 = vor.u32 %v4012_v11, %v3209_v10  ;;  %v3214_v25 = vor.u32 %v4004_v13, %v3211_v15  ;;  %v4184_v17 = vld [vmem:[%s5621_s1 + $0x3c8] sm:$0xff]  ;;  %2397 = vmatpush.bf16.msrb.mxu0 %v4160_v35 }
 0x14a   :  { %2544 = vmatpush.bf16.msrb.mxu3 %v4184_v17 }
 0x14e   :  { %v2118_v42 = vpop.f32.mrf.mxu2  ;;  %v2023_v46 = vpop.f32.mrf.mxu0 }
 0x14f   :  { %v2167_v43 = vpop.f32.mrf.mxu3  ;;  %v2119_v45 = vadd.f32 %v2118_v42, %v2070_v31  ;;  %v2072_v47 = vpop.f32.mrf.mxu1  ;;  %v2024_v53 = vadd.f32 %v2023_v46, %v4831_v28  ;;  %v4027_v46 = vld [vmem:[%s5622_s0 + $0x2dc] sm:$0xf0] }
 0x151   :  { %v5147_v55 = vadd.f32 %v2167_v43, %v2119_v45  ;;  %v2073_v56 = vadd.f32 %v2072_v47, %v2024_v53  ;;  %2218 = vmatmul.bf16.gmra.mxu0 %v3138_v44  ;;  %v4168_v44 = vld [vmem:[%s5621_s1 + $0x348] sm:$0xff]  ;;  %v3265_v45 = vld [vmem:[%s5622_s0 + $0x2a0] sm:$0xf]  ;;  %v4019_v47 = vld [vmem:[%s5622_s0 + $0x2a4] sm:$0xf] }
 0x152   :  { %2267 = vmatmul.bf16.gmra.mxu1 %v3142_v30  ;;  %v4020_v53 = vld [vmem:[%s5622_s0 + $0x2ac] sm:$0xf]  ;;  %v3266_v50 = vor.u32 %v4027_v46, %v3265_v45 }
 0x153   :  { %2316 = vmatmul.bf16.gmra.mxu2 %v3146_v48  ;;  %v3273_v48 = vld [vmem:[%s5622_s0 + $0x2a8] sm:$0xf]  ;;  %2446 = vmatpush.bf16.msrb.mxu1 %v4168_v44 }
 0x154   :  { %2365 = vmatmul.bf16.gmra.mxu3 %v3150_v51  ;;  %v4028_v51 = vld [vmem:[%s5622_s0 + $0x2e4] sm:$0xf0] }
 0x156   :  { %v2121_v28 = vpop.f32.mrf.mxu2  ;;  %v2025_v63 = vpop.f32.mrf.mxu0 }
 0x157   :  { %v2170_v59 = vpop.f32.mrf.mxu3  ;;  %v2122_v62 = vadd.f32 %v2121_v28, %v2073_v56  ;;  %v2074_v2 = vpop.f32.mrf.mxu1  ;;  %v2026_v4 = vadd.f32 %v2025_v63, %v4860_v49  ;;  %v3203_v49 = vld [vmem:[%s5622_s0 + $0x260] sm:$0xf0]  ;;  %v3275_v56 = vld [vmem:[%s5622_s0 + $0x2e8] sm:$0xf0] }
 0x158   :  { %v3206_v60 = vor.u32 %v4003_v9, %v3203_v49  ;;  %v4159_v9 = vld [vmem:[%s5621_s1 + $0x300] sm:$0xff] }
 0x159   :  { %v5159_v5 = vadd.f32 %v2170_v59, %v2122_v62  ;;  %v2075_v0 = vadd.f32 %v2074_v2, %v2026_v4  ;;  %v3274_v2 = vor.u32 %v4028_v51, %v3273_v48  ;;  %v3278_v4 = vor.u32 %v4020_v53, %v3275_v56  ;;  %v4183_v49 = vld [vmem:[%s5621_s1 + $0x3c0] sm:$0xff]  ;;  %2398 = vmatpush.bf16.msrb.mxu0 %v4159_v9 }
 0x15a   :  { %2545 = vmatpush.bf16.msrb.mxu3 %v4183_v49 }
 0x15e   :  { %v2123_v16 = vpop.f32.mrf.mxu2  ;;  %v2028_v22 = vpop.f32.mrf.mxu0 }
 0x15f   :  { %v2172_v18 = vpop.f32.mrf.mxu3  ;;  %v2124_v21 = vadd.f32 %v2123_v16, %v2075_v0  ;;  %v2077_v23 = vpop.f32.mrf.mxu1  ;;  %v2029_v29 = vadd.f32 %v2028_v22, %v4871_v61  ;;  %v4043_v22 = vld [vmem:[%s5622_s0 + $0x35c] sm:$0xf0] }
 0x161   :  { %v5189_v31 = vadd.f32 %v2172_v18, %v2124_v21  ;;  %v2078_v33 = vadd.f32 %v2077_v23, %v2029_v29  ;;  %2223 = vmatmul.bf16.gmra.mxu0 %v3202_v20  ;;  %v4167_v20 = vld [vmem:[%s5621_s1 + $0x340] sm:$0xff]  ;;  %v4036_v29 = vld [vmem:[%s5622_s0 + $0x32c] sm:$0xf] }
 0x162   :  { %2272 = vmatmul.bf16.gmra.mxu1 %v3206_v60  ;;  %v3329_v21 = vld [vmem:[%s5622_s0 + $0x320] sm:$0xf]  ;;  %v4035_v23 = vld [vmem:[%s5622_s0 + $0x324] sm:$0xf] }
 0x163   :  { %2321 = vmatmul.bf16.gmra.mxu2 %v3210_v24  ;;  %v3337_v24 = vld [vmem:[%s5622_s0 + $0x328] sm:$0xf]  ;;  %2447 = vmatpush.bf16.msrb.mxu1 %v4167_v20  ;;  %v3330_v17 = vor.u32 %v4043_v22, %v3329_v21 }
 0x164   :  { %2370 = vmatmul.bf16.gmra.mxu3 %v3214_v25  ;;  %v4044_v25 = vld [vmem:[%s5622_s0 + $0x364] sm:$0xf0] }
 0x166   :  { %v2126_v61 = vpop.f32.mrf.mxu2  ;;  %v2030_v38 = vpop.f32.mrf.mxu0 }
 0x167   :  { %v2175_v36 = vpop.f32.mrf.mxu3  ;;  %v2127_v37 = vadd.f32 %v2126_v61, %v2078_v33  ;;  %v2079_v41 = vpop.f32.mrf.mxu1  ;;  %v2031_v42 = vadd.f32 %v2030_v38, %v4900_v19  ;;  %v3267_v19 = vld [vmem:[%s5622_s0 + $0x2e0] sm:$0xf0]  ;;  %v3339_v33 = vld [vmem:[%s5622_s0 + $0x368] sm:$0xf0] }
 0x168   :  { %v3270_v28 = vor.u32 %v4019_v47, %v3267_v19 }
 0x169   :  { %v5201_v43 = vadd.f32 %v2175_v36, %v2127_v37  ;;  %v2080_v30 = vadd.f32 %v2079_v41, %v2031_v42  ;;  %v3338_v41 = vor.u32 %v4044_v25, %v3337_v24  ;;  %v3342_v42 = vor.u32 %v4036_v29, %v3339_v33  ;;  %v3949_v25 = vld [vmem:[%s5622_s0 + $0x6c] sm:$0xf0]  ;;  %v3941_v29 = vld [vmem:[%s5622_s0 + $0x34] sm:$0xf] }
 0x16a   :  { %v2963_v33 = vld [vmem:[%s5622_s0 + $0x70] sm:$0xf0] }
 0x16e   :  { %v2128_v57 = vpop.f32.mrf.mxu2  ;;  %v2033_v62 = vpop.f32.mrf.mxu0 }
 0x16f   :  { %v2177_v58 = vpop.f32.mrf.mxu3  ;;  %v2129_v59 = vadd.f32 %v2128_v57, %v2080_v30  ;;  %v2082_v63 = vpop.f32.mrf.mxu1  ;;  %v2034_v6 = vadd.f32 %v2033_v62, %v4911_v32  ;;  %v4052_v62 = vld [vmem:[%s5622_s0 + $0x3ac] sm:$0xf] }
 0x171   :  { %v5231_v0 = vadd.f32 %v2177_v58, %v2129_v59  ;;  %v2083_v7 = vadd.f32 %v2082_v63, %v2034_v6  ;;  %2228 = vmatmul.bf16.gmra.mxu0 %v3266_v50  ;;  %v4059_v58 = vld [vmem:[%s5622_s0 + $0x3dc] sm:$0xf0]  ;;  %v4051_v50 = vld [vmem:[%s5622_s0 + $0x3a4] sm:$0xf]  ;;  %v4060_v59 = vld [vmem:[%s5622_s0 + $0x3e4] sm:$0xf0] }
 0x172   :  { %2277 = vmatmul.bf16.gmra.mxu1 %v3270_v28  ;;  %v3395_v28 = vld [vmem:[%s5622_s0 + $0x3e0] sm:$0xf0]  ;;  %v3403_v63 = vld [vmem:[%s5622_s0 + $0x3e8] sm:$0xf0] }
 0x173   :  { %2326 = vmatmul.bf16.gmra.mxu2 %v3274_v2 }
 0x174   :  { %2375 = vmatmul.bf16.gmra.mxu3 %v3278_v4 }
 0x176   :  { %v2131_v32 = vpop.f32.mrf.mxu2  ;;  %v2035_v13 = vpop.f32.mrf.mxu0 }
 0x177   :  { %v2180_v10 = vpop.f32.mrf.mxu3  ;;  %v2132_v11 = vadd.f32 %v2131_v32, %v2083_v7  ;;  %v2084_v15 = vpop.f32.mrf.mxu1  ;;  %v2036_v16 = vadd.f32 %v2035_v13, %v4940_v54  ;;  %v3331_v54 = vld [vmem:[%s5622_s0 + $0x360] sm:$0xf0]  ;;  %v3398_v7 = vor.u32 %v4051_v50, %v3395_v28 }
 0x178   :  { %v3334_v61 = vor.u32 %v4035_v23, %v3331_v54 }
 0x179   :  { %v5243_v18 = vadd.f32 %v2180_v10, %v2132_v11  ;;  %v2085_v60 = vadd.f32 %v2084_v15, %v2036_v16  ;;  %v3406_v10 = vor.u32 %v4052_v62, %v3403_v63  ;;  %v3957_v62 = vld [vmem:[%s5622_s0 + $0xb4] sm:$0xf] }
 0x17a   :  { %v3027_v63 = vld [vmem:[%s5622_s0 + $0xf0] sm:$0xf0] }
 0x17e   :  { %v2133_v34 = vpop.f32.mrf.mxu2  ;;  %v2038_v37 = vpop.f32.mrf.mxu0 }
 0x17f   :  { %v2182_v35 = vpop.f32.mrf.mxu3  ;;  %v2134_v36 = vadd.f32 %v2133_v34, %v2085_v60  ;;  %v2087_v38 = vpop.f32.mrf.mxu1  ;;  %v2039_v44 = vadd.f32 %v2038_v37, %v4951_v3  ;;  %v3393_v3 = vld [vmem:[%s5622_s0 + $0x3a0] sm:$0xf]  ;;  %v3950_v34 = vld [vmem:[%s5622_s0 + $0x74] sm:$0xf0] }
 0x180   :  { %v3394_v6 = vor.u32 %v4059_v58, %v3393_v3 }
 0x181   :  { %v5273_v30 = vadd.f32 %v2182_v35, %v2134_v36  ;;  %v2088_v45 = vadd.f32 %v2087_v38, %v2039_v44  ;;  %2233 = vmatmul.bf16.gmra.mxu0 %v3330_v17  ;;  %v3942_v35 = vld [vmem:[%s5622_s0 + $0x3c] sm:$0xf]  ;;  %v2966_v38 = vor.u32 %v3941_v29, %v2963_v33 }
 0x182   :  { %2282 = vmatmul.bf16.gmra.mxu1 %v3334_v61  ;;  %v2971_v17 = vld [vmem:[%s5622_s0 + $0x78] sm:$0xf0] }
 0x183   :  { %2331 = vmatmul.bf16.gmra.mxu2 %v3338_v41 }
 0x184   :  { %2380 = vmatmul.bf16.gmra.mxu3 %v3342_v42 }
 0x186   :  { %v2136_v46 = vpop.f32.mrf.mxu2  ;;  %v2040_v48 = vpop.f32.mrf.mxu0 }
 0x187   :  { %v2185_v47 = vpop.f32.mrf.mxu3  ;;  %v2137_v19 = vadd.f32 %v2136_v46, %v2088_v45  ;;  %v2089_v51 = vpop.f32.mrf.mxu1  ;;  %v2041_v53 = vadd.f32 %v2040_v48, %v4980_v26  ;;  %v3401_v26 = vld [vmem:[%s5622_s0 + $0x3a8] sm:$0xf]  ;;  %v2974_v46 = vor.u32 %v3942_v35, %v2971_v17  ;;  %v3973_v35 = vld [vmem:[%s5622_s0 + $0x134] sm:$0xf] }
 0x188   :  { %v3402_v32 = vor.u32 %v4060_v59, %v3401_v26  ;;  %v3965_v59 = vld [vmem:[%s5622_s0 + $0xec] sm:$0xf0]  ;;  %v3091_v17 = vld [vmem:[%s5622_s0 + $0x170] sm:$0xf0] }
 0x189   :  { %v5276_v56 = vadd.f32 %v2185_v47, %v2137_v19  ;;  %v2090_v57 = vadd.f32 %v2089_v51, %v2041_v53 }
 0x18e   :  { %v2138_v2 = vpop.f32.mrf.mxu2  ;;  %v2043_v9 = vpop.f32.mrf.mxu0 }
 0x18f   :  { %v2187_v4 = vpop.f32.mrf.mxu3  ;;  %v2139_v8 = vadd.f32 %v2138_v2, %v2090_v57  ;;  %v2092_v49 = vpop.f32.mrf.mxu1  ;;  %v2044_v11 = vadd.f32 %v2043_v9, %v4991_v39  ;;  %v2961_v39 = vld [vmem:[%s5622_s0 + $0x30] sm:$0xf]  ;;  %v3966_v2 = vld [vmem:[%s5622_s0 + $0xf4] sm:$0xf0] }
 0x190   :  { %v2962_v37 = vor.u32 %v3949_v25, %v2961_v39 }
 0x191   :  { %v5303_v13 = vadd.f32 %v2187_v4, %v2139_v8  ;;  %v2093_v15 = vadd.f32 %v2092_v49, %v2044_v11  ;;  %2238 = vmatmul.bf16.gmra.mxu0 %v3394_v6  ;;  %v3958_v4 = vld [vmem:[%s5622_s0 + $0xbc] sm:$0xf]  ;;  %v3030_v49 = vor.u32 %v3957_v62, %v3027_v63 }
 0x192   :  { %2287 = vmatmul.bf16.gmra.mxu1 %v3398_v7  ;;  %v3035_v6 = vld [vmem:[%s5622_s0 + $0xf8] sm:$0xf0] }
 0x193   :  { %2336 = vmatmul.bf16.gmra.mxu2 %v3402_v32 }
 0x194   :  { %2385 = vmatmul.bf16.gmra.mxu3 %v3406_v10 }
 0x196   :  { %v2141_v16 = vpop.f32.mrf.mxu2  ;;  %v2045_v21 = vpop.f32.mrf.mxu0 }
 0x197   :  { %v2190_v20 = vpop.f32.mrf.mxu3  ;;  %v2142_v60 = vadd.f32 %v2141_v16, %v2093_v15  ;;  %v2094_v22 = vpop.f32.mrf.mxu1  ;;  %v2046_v23 = vadd.f32 %v2045_v21, %v5021_v1  ;;  %v2969_v1 = vld [vmem:[%s5622_s0 + $0x38] sm:$0xf]  ;;  %v3038_v16 = vor.u32 %v3958_v4, %v3035_v6  ;;  %v3989_v4 = vld [vmem:[%s5622_s0 + $0x1b4] sm:$0xf] }
 0x198   :  { %v2970_v45 = vor.u32 %v3950_v34, %v2969_v1  ;;  %v3981_v34 = vld [vmem:[%s5622_s0 + $0x16c] sm:$0xf0]  ;;  %v3155_v6 = vld [vmem:[%s5622_s0 + $0x1f0] sm:$0xf0] }
 0x199   :  { %v5306_v54 = vadd.f32 %v2190_v20, %v2142_v60  ;;  %v2095_v24 = vadd.f32 %v2094_v22, %v2046_v23 }
 0x19e   :  { %v2143_v61 = vpop.f32.mrf.mxu2  ;;  %v2204_v42 = vpop.f32.mrf.mxu0 }
 0x19f   :  { %v2192_v36 = vpop.f32.mrf.mxu3  ;;  %v2144_v41 = vadd.f32 %v2143_v61, %v2095_v24  ;;  %v2253_v44 = vpop.f32.mrf.mxu1  ;;  %v2205_v47 = vadd.f32 %v2204_v42, %v5033_v12  ;;  %v3025_v12 = vld [vmem:[%s5622_s0 + $0xb0] sm:$0xf]  ;;  %v3982_v61 = vld [vmem:[%s5622_s0 + $0x174] sm:$0xf0] }
 0x1a0   :  { %v3026_v9 = vor.u32 %v3965_v59, %v3025_v12 }
 0x1a1   :  { %v5333_v19 = vadd.f32 %v2192_v36, %v2144_v41  ;;  %v2254_v48 = vadd.f32 %v2253_v44, %v2205_v47  ;;  %2399 = vmatmul.bf16.vlgmr.msrb.gmra.mxu0 %v2962_v37  ;;  %v3974_v36 = vld [vmem:[%s5622_s0 + $0x13c] sm:$0xf]  ;;  %v3094_v44 = vor.u32 %v3973_v35, %v3091_v17 }
 0x1a2   :  { %2448 = vmatmul.bf16.vlgmr.msrb.gmra.mxu1 %v2966_v38  ;;  %v3099_v37 = vld [vmem:[%s5622_s0 + $0x178] sm:$0xf0] }
 0x1a3   :  { %2497 = vmatmul.bf16.vlgmr.msrb.gmra.mxu2 %v2970_v45 }
 0x1a4   :  { %2546 = vmatmul.bf16.vlgmr.msrb.gmra.mxu3 %v2974_v46 }
 0x1a6   :  { %v2302_v51 = vpop.f32.mrf.mxu2  ;;  %v2206_v3 = vpop.f32.mrf.mxu0 }
 0x1a7   :  { %v2351_v53 = vpop.f32.mrf.mxu3  ;;  %v2303_v57 = vadd.f32 %v2302_v51, %v2254_v48  ;;  %v2255_v58 = vpop.f32.mrf.mxu1  ;;  %v2207_v50 = vadd.f32 %v2206_v3, %v5063_v40  ;;  %v3033_v40 = vld [vmem:[%s5622_s0 + $0xb8] sm:$0xf]  ;;  %v3102_v51 = vor.u32 %v3974_v36, %v3099_v37  ;;  %v4005_v36 = vld [vmem:[%s5622_s0 + $0x234] sm:$0xf] }
 0x1a8   :  { %v3034_v15 = vor.u32 %v3966_v2, %v3033_v40  ;;  %v3997_v2 = vld [vmem:[%s5622_s0 + $0x1ec] sm:$0xf0]  ;;  %v3219_v37 = vld [vmem:[%s5622_s0 + $0x270] sm:$0xf0] }
 0x1a9   :  { %v5336_v28 = vadd.f32 %v2351_v53, %v2303_v57  ;;  %v2256_v26 = vadd.f32 %v2255_v58, %v2207_v50 }
 0x1ae   :  { %v2304_v7 = vpop.f32.mrf.mxu2  ;;  %v2209_v10 = vpop.f32.mrf.mxu0 }
 0x1af   :  { %v2353_v8 = vpop.f32.mrf.mxu3  ;;  %v2305_v32 = vadd.f32 %v2304_v7, %v2256_v26  ;;  %v2258_v11 = vpop.f32.mrf.mxu1  ;;  %v2210_v20 = vadd.f32 %v2209_v10, %v5075_v52  ;;  %v3089_v52 = vld [vmem:[%s5622_s0 + $0x130] sm:$0xf]  ;;  %v3998_v7 = vld [vmem:[%s5622_s0 + $0x1f4] sm:$0xf0] }
 0x1b0   :  { %v3090_v42 = vor.u32 %v3981_v34, %v3089_v52 }
 0x1b1   :  { %v5363_v60 = vadd.f32 %v2353_v8, %v2305_v32  ;;  %v2259_v21 = vadd.f32 %v2258_v11, %v2210_v20  ;;  %2404 = vmatmul.bf16.gmra.mxu0 %v3026_v9  ;;  %v3990_v8 = vld [vmem:[%s5622_s0 + $0x1bc] sm:$0xf]  ;;  %v3158_v11 = vor.u32 %v3989_v4, %v3155_v6 }
 0x1b2   :  { %2453 = vmatmul.bf16.gmra.mxu1 %v3030_v49  ;;  %v3163_v9 = vld [vmem:[%s5622_s0 + $0x1f8] sm:$0xf0] }
 0x1b3   :  { %2502 = vmatmul.bf16.gmra.mxu2 %v3034_v15 }
 0x1b4   :  { %2551 = vmatmul.bf16.gmra.mxu3 %v3038_v16 }
 0x1b6   :  { %v2307_v22 = vpop.f32.mrf.mxu2  ;;  %v2211_v39 = vpop.f32.mrf.mxu0 }
 0x1b7   :  { %v2356_v23 = vpop.f32.mrf.mxu3  ;;  %v2308_v24 = vadd.f32 %v2307_v22, %v2259_v21  ;;  %v2260_v25 = vpop.f32.mrf.mxu1  ;;  %v2212_v29 = vadd.f32 %v2211_v39, %v5105_v14  ;;  %v3097_v14 = vld [vmem:[%s5622_s0 + $0x138] sm:$0xf]  ;;  %v3166_v22 = vor.u32 %v3990_v8, %v3163_v9  ;;  %v4021_v8 = vld [vmem:[%s5622_s0 + $0x2b4] sm:$0xf] }
 0x1b8   :  { %v3098_v48 = vor.u32 %v3982_v61, %v3097_v14  ;;  %v4013_v61 = vld [vmem:[%s5622_s0 + $0x26c] sm:$0xf0]  ;;  %v3283_v9 = vld [vmem:[%s5622_s0 + $0x2f0] sm:$0xf0] }
 0x1b9   :  { %v5366_v33 = vadd.f32 %v2356_v23, %v2308_v24  ;;  %v2261_v1 = vadd.f32 %v2260_v25, %v2212_v29 }
 0x1be   :  { %v2309_v38 = vpop.f32.mrf.mxu2  ;;  %v2214_v46 = vpop.f32.mrf.mxu0 }
 0x1bf   :  { %v2358_v41 = vpop.f32.mrf.mxu3  ;;  %v2310_v45 = vadd.f32 %v2309_v38, %v2261_v1  ;;  %v2263_v47 = vpop.f32.mrf.mxu1  ;;  %v2215_v53 = vadd.f32 %v2214_v46, %v5117_v27  ;;  %v3153_v27 = vld [vmem:[%s5622_s0 + $0x1b0] sm:$0xf]  ;;  %v4014_v38 = vld [vmem:[%s5622_s0 + $0x274] sm:$0xf0] }
 0x1c0   :  { %v3154_v10 = vor.u32 %v3997_v2, %v3153_v27 }
 0x1c1   :  { %v5393_v57 = vadd.f32 %v2358_v41, %v2310_v45  ;;  %v2264_v3 = vadd.f32 %v2263_v47, %v2215_v53  ;;  %2409 = vmatmul.bf16.gmra.mxu0 %v3090_v42  ;;  %v4006_v41 = vld [vmem:[%s5622_s0 + $0x23c] sm:$0xf]  ;;  %v3222_v47 = vor.u32 %v4005_v36, %v3219_v37 }
 0x1c2   :  { %2458 = vmatmul.bf16.gmra.mxu1 %v3094_v44  ;;  %v3227_v42 = vld [vmem:[%s5622_s0 + $0x278] sm:$0xf0] }
 0x1c3   :  { %2507 = vmatmul.bf16.gmra.mxu2 %v3098_v48 }
 0x1c4   :  { %2556 = vmatmul.bf16.gmra.mxu3 %v3102_v51 }
 0x1c6   :  { %v2312_v58 = vpop.f32.mrf.mxu2  ;;  %v2216_v12 = vpop.f32.mrf.mxu0 }
 0x1c7   :  { %v2361_v50 = vpop.f32.mrf.mxu3  ;;  %v2313_v26 = vadd.f32 %v2312_v58, %v2264_v3  ;;  %v2265_v59 = vpop.f32.mrf.mxu1  ;;  %v2217_v62 = vadd.f32 %v2216_v12, %v5147_v55  ;;  %v3161_v55 = vld [vmem:[%s5622_s0 + $0x1b8] sm:$0xf]  ;;  %v3230_v58 = vor.u32 %v4006_v41, %v3227_v42  ;;  %v4037_v41 = vld [vmem:[%s5622_s0 + $0x334] sm:$0xf] }
 0x1c8   :  { %v3162_v21 = vor.u32 %v3998_v7, %v3161_v55  ;;  %v4029_v7 = vld [vmem:[%s5622_s0 + $0x2ec] sm:$0xf0]  ;;  %v3347_v42 = vld [vmem:[%s5622_s0 + $0x370] sm:$0xf0] }
 0x1c9   :  { %v5396_v63 = vadd.f32 %v2361_v50, %v2313_v26  ;;  %v2266_v40 = vadd.f32 %v2265_v59, %v2217_v62 }
 0x1ce   :  { %v2314_v49 = vpop.f32.mrf.mxu2  ;;  %v2219_v16 = vpop.f32.mrf.mxu0 }
 0x1cf   :  { %v2363_v32 = vpop.f32.mrf.mxu3  ;;  %v2315_v15 = vadd.f32 %v2314_v49, %v2266_v40  ;;  %v2268_v20 = vpop.f32.mrf.mxu1  ;;  %v2220_v23 = vadd.f32 %v2219_v16, %v5159_v5  ;;  %v3217_v5 = vld [vmem:[%s5622_s0 + $0x230] sm:$0xf]  ;;  %v4030_v49 = vld [vmem:[%s5622_s0 + $0x2f4] sm:$0xf0] }
 0x1d0   :  { %v3218_v46 = vor.u32 %v4013_v61, %v3217_v5 }
 0x1d1   :  { %v5423_v24 = vadd.f32 %v2363_v32, %v2315_v15  ;;  %v2269_v39 = vadd.f32 %v2268_v20, %v2220_v23  ;;  %2414 = vmatmul.bf16.gmra.mxu0 %v3154_v10  ;;  %v4022_v32 = vld [vmem:[%s5622_s0 + $0x2bc] sm:$0xf]  ;;  %v3286_v20 = vor.u32 %v4021_v8, %v3283_v9 }
 0x1d2   :  { %2463 = vmatmul.bf16.gmra.mxu1 %v3158_v11  ;;  %v3291_v10 = vld [vmem:[%s5622_s0 + $0x2f8] sm:$0xf0] }
 0x1d3   :  { %2512 = vmatmul.bf16.gmra.mxu2 %v3162_v21 }
 0x1d4   :  { %2561 = vmatmul.bf16.gmra.mxu3 %v3166_v22 }
 0x1d6   :  { %v2317_v25 = vpop.f32.mrf.mxu2  ;;  %v2221_v52 = vpop.f32.mrf.mxu0 }
 0x1d7   :  { %v2366_v29 = vpop.f32.mrf.mxu3  ;;  %v2318_v1 = vadd.f32 %v2317_v25, %v2269_v39  ;;  %v2270_v34 = vpop.f32.mrf.mxu1  ;;  %v2222_v35 = vadd.f32 %v2221_v52, %v5189_v31  ;;  %v3225_v31 = vld [vmem:[%s5622_s0 + $0x238] sm:$0xf]  ;;  %v3294_v25 = vor.u32 %v4022_v32, %v3291_v10  ;;  %v4053_v32 = vld [vmem:[%s5622_s0 + $0x3b4] sm:$0xf] }
 0x1d8   :  { %v3226_v3 = vor.u32 %v4014_v38, %v3225_v31  ;;  %v4045_v38 = vld [vmem:[%s5622_s0 + $0x36c] sm:$0xf0]  ;;  %v3411_v10 = vld [vmem:[%s5622_s0 + $0x3f0] sm:$0xf0] }
 0x1d9   :  { %v5426_v17 = vadd.f32 %v2366_v29, %v2318_v1  ;;  %v2271_v14 = vadd.f32 %v2270_v34, %v2222_v35 }
 0x1de   :  { %v2319_v44 = vpop.f32.mrf.mxu2  ;;  %v2224_v51 = vpop.f32.mrf.mxu0 }
 0x1df   :  { %v2368_v45 = vpop.f32.mrf.mxu3  ;;  %v2320_v48 = vadd.f32 %v2319_v44, %v2271_v14  ;;  %v2273_v53 = vpop.f32.mrf.mxu1  ;;  %v2225_v50 = vadd.f32 %v2224_v51, %v5201_v43  ;;  %v3281_v43 = vld [vmem:[%s5622_s0 + $0x2b0] sm:$0xf]  ;;  %v4046_v44 = vld [vmem:[%s5622_s0 + $0x374] sm:$0xf0] }
 0x1e0   :  { %v3282_v16 = vor.u32 %v4029_v7, %v3281_v43 }
 0x1e1   :  { %v5453_v26 = vadd.f32 %v2368_v45, %v2320_v48  ;;  %v2274_v12 = vadd.f32 %v2273_v53, %v2225_v50  ;;  %2419 = vmatmul.bf16.gmra.mxu0 %v3218_v46  ;;  %v4038_v45 = vld [vmem:[%s5622_s0 + $0x33c] sm:$0xf]  ;;  %v3350_v53 = vor.u32 %v4037_v41, %v3347_v42 }
 0x1e2   :  { %2468 = vmatmul.bf16.gmra.mxu1 %v3222_v47  ;;  %v3355_v46 = vld [vmem:[%s5622_s0 + $0x378] sm:$0xf0] }
 0x1e3   :  { %2517 = vmatmul.bf16.gmra.mxu2 %v3226_v3 }
 0x1e4   :  { %2566 = vmatmul.bf16.gmra.mxu3 %v3230_v58 }
 0x1e6   :  { %v2322_v59 = vpop.f32.mrf.mxu2  ;;  %v2226_v27 = vpop.f32.mrf.mxu0 }
 0x1e7   :  { %v2371_v62 = vpop.f32.mrf.mxu3  ;;  %v2323_v40 = vadd.f32 %v2322_v59, %v2274_v12  ;;  %v2275_v2 = vpop.f32.mrf.mxu1  ;;  %v2227_v4 = vadd.f32 %v2226_v27, %v5231_v0  ;;  %v3289_v0 = vld [vmem:[%s5622_s0 + $0x2b8] sm:$0xf]  ;;  %v3358_v59 = vor.u32 %v4038_v45, %v3355_v46 }
 0x1e8   :  { %v3290_v39 = vor.u32 %v4030_v49, %v3289_v0  ;;  %v4061_v49 = vld [vmem:[%s5622_s0 + $0x3ec] sm:$0xf0] }
 0x1e9   :  { %v5456_v6 = vadd.f32 %v2371_v62, %v2323_v40  ;;  %v2276_v55 = vadd.f32 %v2275_v2, %v2227_v4 }
 0x1ee   :  { %v2324_v11 = vpop.f32.mrf.mxu2  ;;  %v2229_v22 = vpop.f32.mrf.mxu0 }
 0x1ef   :  { %v2373_v15 = vpop.f32.mrf.mxu3  ;;  %v2325_v21 = vadd.f32 %v2324_v11, %v2276_v55  ;;  %v2278_v23 = vpop.f32.mrf.mxu1  ;;  %v2230_v29 = vadd.f32 %v2229_v22, %v5243_v18  ;;  %v3345_v18 = vld [vmem:[%s5622_s0 + $0x330] sm:$0xf]  ;;  %v4062_v11 = vld [vmem:[%s5622_s0 + $0x3f4] sm:$0xf0] }
 0x1f0   :  { %v3346_v51 = vor.u32 %v4045_v38, %v3345_v18 }
 0x1f1   :  { %v5483_v1 = vadd.f32 %v2373_v15, %v2325_v21  ;;  %v2279_v52 = vadd.f32 %v2278_v23, %v2230_v29  ;;  %2424 = vmatmul.bf16.gmra.mxu0 %v3282_v16  ;;  %v4054_v15 = vld [vmem:[%s5622_s0 + $0x3bc] sm:$0xf]  ;;  %v3414_v23 = vor.u32 %v4053_v32, %v3411_v10 }
 0x1f2   :  { %2473 = vmatmul.bf16.gmra.mxu1 %v3286_v20  ;;  %v3419_v16 = vld [vmem:[%s5622_s0 + $0x3f8] sm:$0xf0] }
 0x1f3   :  { %2522 = vmatmul.bf16.gmra.mxu2 %v3290_v39 }
 0x1f4   :  { %2571 = vmatmul.bf16.gmra.mxu3 %v3294_v25 }
 0x1f6   :  { %v2327_v34 = vpop.f32.mrf.mxu2  ;;  %v2231_v5 = vpop.f32.mrf.mxu0 }
 0x1f7   :  { %v2376_v35 = vpop.f32.mrf.mxu3  ;;  %v2328_v14 = vadd.f32 %v2327_v34, %v2279_v52  ;;  %v2280_v61 = vpop.f32.mrf.mxu1  ;;  %v2232_v36 = vadd.f32 %v2231_v5, %v5273_v30  ;;  %v3353_v30 = vld [vmem:[%s5622_s0 + $0x338] sm:$0xf]  ;;  %v3422_v34 = vor.u32 %v4054_v15, %v3419_v16 }
 0x1f8   :  { %v3354_v12 = vor.u32 %v4046_v44, %v3353_v30 }
 0x1f9   :  { %v5486_v37 = vadd.f32 %v2376_v35, %v2328_v14  ;;  %v2281_v31 = vadd.f32 %v2280_v61, %v2232_v36 }
 0x1fe   :  { %v2329_v47 = vpop.f32.mrf.mxu2  ;;  %v2234_v58 = vpop.f32.mrf.mxu0 }
 0x1ff   :  { %v2378_v48 = vpop.f32.mrf.mxu3  ;;  %v2330_v3 = vadd.f32 %v2329_v47, %v2281_v31  ;;  %v2283_v50 = vpop.f32.mrf.mxu1  ;;  %v2235_v62 = vadd.f32 %v2234_v58, %v5276_v56  ;;  %v3409_v56 = vld [vmem:[%s5622_s0 + $0x3b0] sm:$0xf] }
 0x200   :  { %v3410_v22 = vor.u32 %v4061_v49, %v3409_v56 }
 0x201   :  { %v5513_v40 = vadd.f32 %v2378_v48, %v2330_v3  ;;  %v2284_v27 = vadd.f32 %v2283_v50, %v2235_v62  ;;  %2429 = vmatmul.bf16.gmra.mxu0 %v3346_v51 }
 0x202   :  { %2478 = vmatmul.bf16.gmra.mxu1 %v3350_v53 }
 0x203   :  { %2527 = vmatmul.bf16.gmra.mxu2 %v3354_v12 }
 0x204   :  { %2576 = vmatmul.bf16.gmra.mxu3 %v3358_v59 }
 0x206   :  { %v2332_v2 = vpop.f32.mrf.mxu2  ;;  %v2236_v43 = vpop.f32.mrf.mxu0 }
 0x207   :  { %v2381_v4 = vpop.f32.mrf.mxu3  ;;  %v2333_v55 = vadd.f32 %v2332_v2, %v2284_v27  ;;  %v2285_v7 = vpop.f32.mrf.mxu1  ;;  %v2237_v8 = vadd.f32 %v2236_v43, %v5303_v13  ;;  %v3417_v13 = vld [vmem:[%s5622_s0 + $0x3b8] sm:$0xf] }
 0x208   :  { %v3418_v52 = vor.u32 %v4062_v11, %v3417_v13 }
 0x209   :  { %v5516_v9 = vadd.f32 %v2381_v4, %v2333_v55  ;;  %v2286_v0 = vadd.f32 %v2285_v7, %v2237_v8 }
 0x20e   :  { %v2334_v20 = vpop.f32.mrf.mxu2  ;;  %v2239_v25 = vpop.f32.mrf.mxu0 }
 0x20f   :  { %v2383_v21 = vpop.f32.mrf.mxu3  ;;  %v2335_v39 = vadd.f32 %v2334_v20, %v2286_v0  ;;  %v2288_v29 = vpop.f32.mrf.mxu1  ;;  %v2240_v35 = vadd.f32 %v2239_v25, %v5306_v54 }
 0x211   :  { %v5543_v14 = vadd.f32 %v2383_v21, %v2335_v39  ;;  %v2289_v5 = vadd.f32 %v2288_v29, %v2240_v35  ;;  %2434 = vmatmul.bf16.gmra.mxu0 %v3410_v22 }
 0x212   :  { %2483 = vmatmul.bf16.gmra.mxu1 %v3414_v23 }
 0x213   :  { %2532 = vmatmul.bf16.gmra.mxu2 %v3418_v52 }
 0x214   :  { %2581 = vmatmul.bf16.gmra.mxu3 %v3422_v34 }
 0x216   :  { %v2337_v61 = vpop.f32.mrf.mxu2  ;;  %v2241_v18 = vpop.f32.mrf.mxu0 }
 0x217   :  { %v2386_v36 = vpop.f32.mrf.mxu3  ;;  %v2338_v31 = vadd.f32 %v2337_v61, %v2289_v5  ;;  %v2290_v38 = vpop.f32.mrf.mxu1  ;;  %v2242_v41 = vadd.f32 %v2241_v18, %v5333_v19 }
 0x219   :  { %v5546_v42 = vadd.f32 %v2386_v36, %v2338_v31  ;;  %v2291_v30 = vadd.f32 %v2290_v38, %v2242_v41 }
 0x21e   :  { %v2339_v44 = vpop.f32.mrf.mxu2  ;;  %v2400_v46 = vpop.f32.mrf.mxu0 }
 0x21f   :  { %v2388_v45 = vpop.f32.mrf.mxu3  ;;  %v2340_v54 = vadd.f32 %v2339_v44, %v2291_v30  ;;  %v2449_v47 = vpop.f32.mrf.mxu1  ;;  %v2401_v51 = vadd.f32 %v2400_v46, %v5336_v28 }
 0x221   :  { %v5548_v48 = vadd.f32 %v2388_v45, %v2340_v54  ;;  %v2450_v53 = vadd.f32 %v2449_v47, %v2401_v51 }
 0x226   :  { %v2498_v3 = vpop.f32.mrf.mxu2  ;;  %v2402_v12 = vpop.f32.mrf.mxu0 }
 0x227   :  { %v2547_v58 = vpop.f32.mrf.mxu3  ;;  %v2499_v50 = vadd.f32 %v2498_v3, %v2450_v53  ;;  %v2451_v59 = vpop.f32.mrf.mxu1  ;;  %v2403_v19 = vadd.f32 %v2402_v12, %v5363_v60 }
 0x229   :  { %v2548_v62 = vadd.f32 %v2547_v58, %v2499_v50  ;;  %v2452_v4 = vadd.f32 %v2451_v59, %v2403_v19 }
 0x22b   :  { %v2587_v27 = vsub.f32 0.0, %v2548_v62 }
 0x22d   :  { %v2603_v2 = vmul.f32 1.442695, %v2587_v27 }
 0x22e   :  { %v2500_v55 = vpop.f32.mrf.mxu2  ;;  %v2405_v8 = vpop.f32.mrf.mxu0 }
 0x22f   :  { %v2549_v43 = vpop.f32.mrf.mxu3  ;;  %4191 = vpow2.f32 %v2603_v2  ;;  %v2501_v7 = vadd.f32 %v2500_v55, %v2452_v4  ;;  %v2454_v0 = vpop.f32.mrf.mxu1  ;;  %v2406_v28 = vadd.f32 %v2405_v8, %v5366_v33 }
 0x231   :  { %v2550_v56 = vadd.f32 %v2549_v43, %v2501_v7  ;;  %v2455_v13 = vadd.f32 %v2454_v0, %v2406_v28 }
 0x233   :  { %v2588_v49 = vsub.f32 0.0, %v2550_v56 }
 0x235   :  { %v4192_v32 = vpop.eup %4191  ;;  %v2605_v10 = vmul.f32 1.442695, %v2588_v49 }
 0x236   :  { %v2635_v11 = vadd.f32 1.0, %v4192_v32  ;;  %v2503_v15 = vpop.f32.mrf.mxu2  ;;  %v2407_v20 = vpop.f32.mrf.mxu0 }
 0x237   :  { %v2552_v16 = vpop.f32.mrf.mxu3  ;;  %4193 = vpow2.f32 %v2605_v10  ;;  %v2504_v60 = vadd.f32 %v2503_v15, %v2455_v13  ;;  %v2456_v21 = vpop.f32.mrf.mxu1  ;;  %v2408_v23 = vadd.f32 %v2407_v20, %v5393_v57 }
 0x238   :  { %4195 = vrcp.f32 %v2635_v11  ;;  %v2660_v30 = vand.u32 2147483647, %v2635_v11  ;;  %v2662_v44 = vand.u32 2147483648, %v2635_v11  ;;  %vm2656_vm1 = vweird.f32 %v2635_v11 }
 0x239   :  { %v2553_v22 = vadd.f32 %v2552_v16, %v2504_v60  ;;  %v2457_v52 = vadd.f32 %v2456_v21, %v2408_v23 }
 0x23a   :  { %vm2661_vm3 = vcmp.eq.f32.partialorder %v2660_v30, 8.507059e+37  ;;  %v2663_v3 = vor.u32 1.1754944e-38, %v2662_v44 }
 0x23b   :  { %v2589_v39 = vsub.f32 0.0, %v2553_v22 }
 0x23d   :  { %v4194_v25 = vpop.eup %4193  ;;  %v2607_v29 = vmul.f32 1.442695, %v2589_v39 }
 0x23e   :  { %v4196_v33 = vpop.eup %4195  ;;  %v2636_v34 = vadd.f32 1.0, %v4194_v25  ;;  %v2505_v35 = vpop.f32.mrf.mxu2 }
 0x23f   :  { %v2554_v5 = vpop.f32.mrf.mxu3  ;;  %v2652_v61 = vmul.f32 %v4196_v33, %v2635_v11  ;;  %4197 = vpow2.f32 %v2607_v29  ;;  %v2506_v36 = vadd.f32 %v2505_v35, %v2457_v52  ;;  %v2410_v31 = vpop.f32.mrf.mxu0  ;;  %vm2657_vm0 = vweird.f32 %v4196_v33 }
 0x240   :  { %v2459_v18 = vpop.f32.mrf.mxu1  ;;  %4199 = vrcp.f32 %v2636_v34  ;;  %v2411_v54 = vadd.f32 %v2410_v31, %v5396_v63  ;;  %vm2658_vm2 = vmor %vm2656_vm1, %vm2657_vm0  ;;  %v2675_v43 = vand.u32 2147483647, %v2636_v34  ;;  %v2677_v7 = vand.u32 2147483648, %v2636_v34 }
 0x241   :  { %v2653_v38 = vsub.f32 1.0, %v2652_v61  ;;  %v2555_v41 = vadd.f32 %v2554_v5, %v2506_v36  ;;  %vm2671_vm5 = vweird.f32 %v2636_v34 }
 0x242   :  { %v2460_v19 = vadd.f32 %v2459_v18, %v2411_v54  ;;  %vm2676_vm7 = vcmp.eq.f32.partialorder %v2675_v43, 8.507059e+37  ;;  %v2678_v13 = vor.u32 1.1754944e-38, %v2677_v7 }
 0x243   :  { %v2654_v45 = vmul.f32 %v4196_v33, %v2653_v38  ;;  %v2590_v57 = vsub.f32 0.0, %v2555_v41 }
 0x245   :  { %v4198_v46 = vpop.eup %4197  ;;  %v2655_v47 = vadd.f32 %v4196_v33, %v2654_v45  ;;  %v2609_v51 = vmul.f32 1.442695, %v2590_v57 }
 0x246   :  { %v4200_v53 = vpop.eup %4199  ;;  %v2637_v58 = vadd.f32 1.0, %v4198_v46  ;;  %v2508_v50 = vpop.f32.mrf.mxu2 }
 0x247   :  { %v2557_v12 = vpop.f32.mrf.mxu3  ;;  %v2659_v59 = vsel %vm2658_vm2, %v4196_v33, %v2655_v47  ;;  %v2667_v62 = vmul.f32 %v4200_v53, %v2636_v34  ;;  %4201 = vpow2.f32 %v2609_v51  ;;  %v2412_v27 = vpop.f32.mrf.mxu0  ;;  %v2509_v55 = vadd.f32 %v2508_v50, %v2460_v19 }
 0x248   :  { %v2461_v2 = vpop.f32.mrf.mxu1  ;;  %v2664_v4 = vsel %vm2661_vm3, %v2663_v3, %v2659_v59  ;;  %4203 = vrcp.f32 %v2637_v58  ;;  %vm2672_vm4 = vweird.f32 %v4200_v53  ;;  %v2413_v56 = vadd.f32 %v2412_v27, %v5423_v24 }
 0x249   :  { %2891 = vst [vmem:[%s5623_s2] sm:$0xff] %v2664_v4  ;;  %v2668_v63 = vsub.f32 1.0, %v2667_v62  ;;  %v2558_v0 = vadd.f32 %v2557_v12, %v2509_v55  ;;  %vm2673_vm6 = vmor %vm2671_vm5, %vm2672_vm4  ;;  %v2692_v52 = vand.u32 2147483648, %v2637_v58  ;;  %v2690_v35 = vand.u32 2147483647, %v2637_v58 }
 0x24a   :  { %v2462_v22 = vadd.f32 %v2461_v2, %v2413_v56  ;;  %vm2686_vm9 = vweird.f32 %v2637_v58 }
 0x24b   :  { %v2669_v8 = vmul.f32 %v4200_v53, %v2668_v63  ;;  %v2591_v32 = vsub.f32 0.0, %v2558_v0  ;;  %v2693_v18 = vor.u32 1.1754944e-38, %v2692_v52  ;;  %vm2691_vm11 = vcmp.eq.f32.partialorder %v2690_v35, 8.507059e+37 }
 0x24d   :  { %v4202_v28 = vpop.eup %4201  ;;  %v2670_v49 = vadd.f32 %v4200_v53, %v2669_v8  ;;  %v2611_v21 = vmul.f32 1.442695, %v2591_v32 }
 0x24e   :  { %v4204_v10 = vpop.eup %4203  ;;  %v2638_v11 = vadd.f32 1.0, %v4202_v28  ;;  %v2510_v15 = vpop.f32.mrf.mxu2 }
 0x24f   :  { %v2559_v16 = vpop.f32.mrf.mxu3  ;;  %v2674_v60 = vsel %vm2673_vm6, %v4200_v53, %v2670_v49  ;;  %v2682_v20 = vmul.f32 %v4204_v10, %v2637_v58  ;;  %v2415_v23 = vpop.f32.mrf.mxu0  ;;  %v2511_v29 = vadd.f32 %v2510_v15, %v2462_v22  ;;  %vm2687_vm8 = vweird.f32 %v4204_v10 }
 0x250   :  { %v2464_v39 = vpop.f32.mrf.mxu1  ;;  %v2679_v25 = vsel %vm2676_vm7, %v2678_v13, %v2674_v60  ;;  %4205 = vrcp.f32 %v2638_v11  ;;  %v2416_v33 = vadd.f32 %v2415_v23, %v5426_v17  ;;  %vm2688_vm10 = vmor %vm2686_vm9, %vm2687_vm8  ;;  %v2707_v50 = vand.u32 2147483648, %v2638_v11 }
 0x251   :  { %2892 = vst [vmem:[%s5623_s2 + $0x8] sm:$0xff] %v2679_v25  ;;  %v2683_v24 = vsub.f32 1.0, %v2682_v20  ;;  %4207 = vpow2.f32 %v2611_v21  ;;  %v2560_v5 = vadd.f32 %v2559_v16, %v2511_v29  ;;  %v2705_v59 = vand.u32 2147483647, %v2638_v11 }
 0x252   :  { %v2465_v38 = vadd.f32 %v2464_v39, %v2416_v33  ;;  %vm2701_vm13 = vweird.f32 %v2638_v11  ;;  %v2708_v4 = vor.u32 1.1754944e-38, %v2707_v50 }
 0x253   :  { %v2684_v34 = vmul.f32 %v4204_v10, %v2683_v24  ;;  %v2592_v36 = vsub.f32 0.0, %v2560_v5  ;;  %vm2706_vm15 = vcmp.eq.f32.partialorder %v2705_v59, 8.507059e+37 }
 0x255   :  { %v2685_v61 = vadd.f32 %v4204_v10, %v2684_v34  ;;  %v2613_v54 = vmul.f32 1.442695, %v2592_v36 }
 0x256   :  { %v4206_v31 = vpop.eup %4205  ;;  %v2513_v41 = vpop.f32.mrf.mxu2 }
 0x257   :  { %v2562_v30 = vpop.f32.mrf.mxu3  ;;  %v4208_v44 = vpop.eup %4207  ;;  %v2689_v45 = vsel %vm2688_vm10, %v4204_v10, %v2685_v61  ;;  %v2697_v57 = vmul.f32 %v4206_v31, %v2638_v11  ;;  %v2514_v53 = vadd.f32 %v2513_v41, %v2465_v38  ;;  %4209 = vpow2.f32 %v2613_v54 }
 0x258   :  { %v2417_v46 = vpop.f32.mrf.mxu0  ;;  %v2466_v17 = vpop.f32.mrf.mxu1  ;;  %v2694_v47 = vsel %vm2691_vm11, %v2693_v18, %v2689_v45  ;;  %v2639_v51 = vadd.f32 1.0, %v4208_v44  ;;  %vm2702_vm12 = vweird.f32 %v4206_v31 }
 0x259   :  { %2893 = vst [vmem:[%s5623_s2 + $0x10] sm:$0xff] %v2694_v47  ;;  %v2698_v3 = vsub.f32 1.0, %v2697_v57  ;;  %v2418_v58 = vadd.f32 %v2417_v46, %v5453_v26  ;;  %v2563_v62 = vadd.f32 %v2562_v30, %v2514_v53  ;;  %vm2703_vm14 = vmor %vm2701_vm13, %vm2702_vm12 }
 0x25a   :  { %4211 = vrcp.f32 %v2639_v51  ;;  %v2720_v60 = vand.u32 2147483647, %v2639_v51  ;;  %v2722_v20 = vand.u32 2147483648, %v2639_v51  ;;  %vm2716_vm1 = vweird.f32 %v2639_v51 }
 0x25b   :  { %v2699_v12 = vmul.f32 %v4206_v31, %v2698_v3  ;;  %v2593_v27 = vsub.f32 0.0, %v2563_v62  ;;  %v2467_v2 = vadd.f32 %v2466_v17, %v2418_v58 }
 0x25c   :  { %vm2721_vm3 = vcmp.eq.f32.partialorder %v2720_v60, 8.507059e+37 }
 0x25d   :  { %v2700_v19 = vadd.f32 %v4206_v31, %v2699_v12  ;;  %v4210_v43 = vpop.eup %4209  ;;  %v2615_v8 = vmul.f32 1.442695, %v2593_v27 }
 0x25e   :  { %v2515_v63 = vpop.f32.mrf.mxu2  ;;  %v2640_v32 = vadd.f32 1.0, %v4210_v43 }
 0x25f   :  { %v2564_v55 = vpop.f32.mrf.mxu3  ;;  %v2704_v7 = vsel %vm2703_vm14, %v4206_v31, %v2700_v19  ;;  %v2516_v0 = vadd.f32 %v2515_v63, %v2467_v2  ;;  %4213 = vpow2.f32 %v2615_v8 }
 0x260   :  { %v2420_v26 = vpop.f32.mrf.mxu0  ;;  %v2469_v56 = vpop.f32.mrf.mxu1  ;;  %v2709_v49 = vsel %vm2706_vm15, %v2708_v4, %v2704_v7  ;;  %4215 = vrcp.f32 %v2640_v32  ;;  %v2735_v44 = vand.u32 2147483647, %v2640_v32  ;;  %v2737_v45 = vand.u32 2147483648, %v2640_v32 }
 0x261   :  { %v4212_v28 = vpop.eup %4211  ;;  %2894 = vst [vmem:[%s5623_s2 + $0x18] sm:$0xff] %v2709_v49  ;;  %v2565_v13 = vadd.f32 %v2564_v55, %v2516_v0  ;;  %v2421_v11 = vadd.f32 %v2420_v26, %v5456_v6  ;;  %v2723_v6 = vor.u32 1.1754944e-38, %v2722_v20  ;;  %vm2731_vm5 = vweird.f32 %v2640_v32 }
 0x262   :  { %v2712_v10 = vmul.f32 %v4212_v28, %v2639_v51  ;;  %vm2717_vm0 = vweird.f32 %v4212_v28  ;;  %v2738_v59 = vor.u32 1.1754944e-38, %v2737_v45  ;;  %vm2736_vm7 = vcmp.eq.f32.partialorder %v2735_v44, 8.507059e+37 }
 0x263   :  { %v2594_v16 = vsub.f32 0.0, %v2565_v13  ;;  %v2470_v23 = vadd.f32 %v2469_v56, %v2421_v11  ;;  %vm2718_vm2 = vmor %vm2716_vm1, %vm2717_vm0 }
 0x264   :  { %v2713_v15 = vsub.f32 1.0, %v2712_v10 }
 0x265   :  { %v2617_v22 = vmul.f32 1.442695, %v2594_v16  ;;  %v4214_v24 = vpop.eup %4213 }
 0x266   :  { %v2714_v21 = vmul.f32 %v4212_v28, %v2713_v15  ;;  %v2518_v39 = vpop.f32.mrf.mxu2  ;;  %v4216_v35 = vpop.eup %4215  ;;  %v2641_v5 = vadd.f32 1.0, %v4214_v24 }
 0x267   :  { %v2567_v25 = vpop.f32.mrf.mxu3  ;;  %4217 = vpow2.f32 %v2617_v22  ;;  %v2519_v52 = vadd.f32 %v2518_v39, %v2470_v23  ;;  %v2727_v36 = vmul.f32 %v4216_v35, %v2640_v32  ;;  %vm2732_vm4 = vweird.f32 %v4216_v35 }
 0x268   :  { %v2715_v29 = vadd.f32 %v4212_v28, %v2714_v21  ;;  %v2422_v33 = vpop.f32.mrf.mxu0  ;;  %v2471_v34 = vpop.f32.mrf.mxu1  ;;  %4219 = vrcp.f32 %v2641_v5  ;;  %vm2733_vm6 = vmor %vm2731_vm5, %vm2732_vm4  ;;  %v2752_v43 = vand.u32 2147483648, %v2641_v5  ;;  %v2750_v0 = vand.u32 2147483647, %v2641_v5 }
 0x269   :  { %v2568_v31 = vadd.f32 %v2567_v25, %v2519_v52  ;;  %v2423_v18 = vadd.f32 %v2422_v33, %v5483_v1  ;;  %v2728_v41 = vsub.f32 1.0, %v2727_v36  ;;  %vm2746_vm9 = vweird.f32 %v2641_v5 }
 0x26a   :  { %v2719_v61 = vsel %vm2718_vm2, %v4212_v28, %v2715_v29  ;;  %vm2751_vm11 = vcmp.eq.f32.partialorder %v2750_v0, 8.507059e+37 }
 0x26b   :  { %v2724_v38 = vsel %vm2721_vm3, %v2723_v6, %v2719_v61  ;;  %v2595_v30 = vsub.f32 0.0, %v2568_v31  ;;  %v2729_v54 = vmul.f32 %v4216_v35, %v2728_v41  ;;  %v2472_v17 = vadd.f32 %v2471_v34, %v2423_v18 }
 0x26c   :  { %2895 = vst [vmem:[%s5623_s2 + $0x20] sm:$0xff] %v2724_v38 }
 0x26d   :  { %v4218_v57 = vpop.eup %4217  ;;  %v2619_v46 = vmul.f32 1.442695, %v2595_v30  ;;  %v2730_v3 = vadd.f32 %v4216_v35, %v2729_v54 }
 0x26e   :  { %v2642_v47 = vadd.f32 1.0, %v4218_v57  ;;  %v2520_v51 = vpop.f32.mrf.mxu2  ;;  %v4220_v12 = vpop.eup %4219 }
 0x26f   :  { %v2569_v53 = vpop.f32.mrf.mxu3  ;;  %4221 = vpow2.f32 %v2619_v46  ;;  %v2521_v1 = vadd.f32 %v2520_v51, %v2472_v17  ;;  %v2734_v62 = vsel %vm2733_vm6, %v4216_v35, %v2730_v3  ;;  %v2742_v19 = vmul.f32 %v4220_v12, %v2641_v5 }
 0x270   :  { %v2425_v58 = vpop.f32.mrf.mxu0  ;;  %v2474_v50 = vpop.f32.mrf.mxu1  ;;  %4223 = vrcp.f32 %v2642_v47  ;;  %v2739_v2 = vsel %vm2736_vm7, %v2738_v59, %v2734_v62  ;;  %vm2747_vm8 = vweird.f32 %v4220_v12  ;;  %v2765_v23 = vand.u32 2147483647, %v2642_v47 }
 0x271   :  { %v2570_v27 = vadd.f32 %v2569_v53, %v2521_v1  ;;  %2896 = vst [vmem:[%s5623_s2 + $0x28] sm:$0xff] %v2739_v2  ;;  %v2743_v4 = vsub.f32 1.0, %v2742_v19  ;;  %v2426_v55 = vadd.f32 %v2425_v58, %v5486_v37  ;;  %vm2748_vm10 = vmor %vm2746_vm9, %vm2747_vm8  ;;  %v2753_v37 = vor.u32 1.1754944e-38, %v2752_v43 }
 0x272   :  { %v2767_v39 = vand.u32 2147483648, %v2642_v47  ;;  %vm2761_vm13 = vweird.f32 %v2642_v47  ;;  %vm2766_vm15 = vcmp.eq.f32.partialorder %v2765_v23, 8.507059e+37 }
 0x273   :  { %v2596_v63 = vsub.f32 0.0, %v2570_v27  ;;  %v2744_v8 = vmul.f32 %v4220_v12, %v2743_v4  ;;  %v2475_v11 = vadd.f32 %v2474_v50, %v2426_v55 }
 0x274   :  { %v2768_v6 = vor.u32 1.1754944e-38, %v2767_v39 }
 0x275   :  { %v4222_v7 = vpop.eup %4221  ;;  %v2621_v26 = vmul.f32 1.442695, %v2596_v63  ;;  %v2745_v10 = vadd.f32 %v4220_v12, %v2744_v8 }
 0x276   :  { %v4224_v56 = vpop.eup %4223  ;;  %v5579_v28 = vadd.f32 1.0, %v4222_v7  ;;  %v2523_v49 = vpop.f32.mrf.mxu2 }
 0x277   :  { %v2572_v32 = vpop.f32.mrf.mxu3  ;;  %v2757_v13 = vmul.f32 %v4224_v56, %v2642_v47  ;;  %4225 = vpow2.f32 %v2621_v26  ;;  %v2749_v60 = vsel %vm2748_vm10, %v4220_v12, %v2745_v10  ;;  %v2524_v21 = vadd.f32 %v2523_v49, %v2475_v11 }
 0x278   :  { %v2427_v15 = vpop.f32.mrf.mxu0  ;;  %v2476_v16 = vpop.f32.mrf.mxu1  ;;  %4227 = vrcp.f32 %v5579_v28  ;;  %v2754_v22 = vsel %vm2751_vm11, %v2753_v37, %v2749_v60  ;;  %vm2762_vm12 = vweird.f32 %v4224_v56  ;;  %v2782_v54 = vand.u32 2147483648, %v5579_v28 }
 0x279   :  { %v2758_v20 = vsub.f32 1.0, %v2757_v13  ;;  %2897 = vst [vmem:[%s5623_s2 + $0x30] sm:$0xff] %v2754_v22  ;;  %v2573_v24 = vadd.f32 %v2572_v32, %v2524_v21  ;;  %v2428_v29 = vadd.f32 %v2427_v15, %v5513_v40  ;;  %vm2763_vm14 = vmor %vm2761_vm13, %vm2762_vm12  ;;  %v2780_v47 = vand.u32 2147483647, %v5579_v28 }
 0x27a   :  { %vm2776_vm1 = vweird.f32 %v5579_v28  ;;  %v2783_v58 = vor.u32 1.1754944e-38, %v2782_v54 }
 0x27b   :  { %v2759_v25 = vmul.f32 %v4224_v56, %v2758_v20  ;;  %v2597_v34 = vsub.f32 0.0, %v2573_v24  ;;  %v2477_v41 = vadd.f32 %v2476_v16, %v2428_v29  ;;  %vm2781_vm3 = vcmp.eq.f32.partialorder %v2780_v47, 8.507059e+37 }
 0x27d   :  { %v4226_v52 = vpop.eup %4225  ;;  %v2760_v33 = vadd.f32 %v4224_v56, %v2759_v25  ;;  %v2623_v38 = vmul.f32 1.442695, %v2597_v34 }
 0x27e   :  { %v4228_v35 = vpop.eup %4227  ;;  %v2644_v5 = vadd.f32 1.0, %v4226_v52  ;;  %v2525_v61 = vpop.f32.mrf.mxu2 }
 0x27f   :  { %v2574_v36 = vpop.f32.mrf.mxu3  ;;  %v2764_v31 = vsel %vm2763_vm14, %v4224_v56, %v2760_v33  ;;  %v2772_v18 = vmul.f32 %v4228_v35, %v5579_v28  ;;  %v2526_v57 = vadd.f32 %v2525_v61, %v2477_v41  ;;  %vm2777_vm0 = vweird.f32 %v4228_v35 }
 0x280   :  { %v2430_v30 = vpop.f32.mrf.mxu0  ;;  %v2479_v44 = vpop.f32.mrf.mxu1  ;;  %v2769_v45 = vsel %vm2766_vm15, %v2768_v6, %v2764_v31  ;;  %4229 = vrcp.f32 %v2644_v5  ;;  %vm2778_vm2 = vmor %vm2776_vm1, %vm2777_vm0  ;;  %v2797_v0 = vand.u32 2147483648, %v2644_v5  ;;  %v2795_v56 = vand.u32 2147483647, %v2644_v5 }
 0x281   :  { %2898 = vst [vmem:[%s5623_s2 + $0x38] sm:$0xff] %v2769_v45  ;;  %v2773_v40 = vsub.f32 1.0, %v2772_v18  ;;  %4231 = vpow2.f32 %v2623_v38  ;;  %v2431_v46 = vadd.f32 %v2430_v30, %v5516_v9  ;;  %v2575_v51 = vadd.f32 %v2574_v36, %v2526_v57 }
 0x282   :  { %vm2791_vm5 = vweird.f32 %v2644_v5  ;;  %v2798_v13 = vor.u32 1.1754944e-38, %v2797_v0  ;;  %vm2796_vm7 = vcmp.eq.f32.partialorder %v2795_v56, 8.507059e+37 }
 0x283   :  { %v2774_v17 = vmul.f32 %v4228_v35, %v2773_v40  ;;  %v2598_v3 = vsub.f32 0.0, %v2575_v51  ;;  %v2480_v50 = vadd.f32 %v2479_v44, %v2431_v46 }
 0x285   :  { %v2775_v53 = vadd.f32 %v4228_v35, %v2774_v17  ;;  %v2625_v9 = vmul.f32 1.442695, %v2598_v3 }
 0x286   :  { %v4230_v1 = vpop.eup %4229  ;;  %v2528_v12 = vpop.f32.mrf.mxu2 }
 0x287   :  { %v2577_v59 = vpop.f32.mrf.mxu3  ;;  %v4232_v62 = vpop.eup %4231  ;;  %v2779_v19 = vsel %vm2778_vm2, %v4228_v35, %v2775_v53  ;;  %v2787_v27 = vmul.f32 %v4230_v1, %v2644_v5  ;;  %v2529_v55 = vadd.f32 %v2528_v12, %v2480_v50  ;;  %4233 = vpow2.f32 %v2625_v9 }
 0x288   :  { %v2432_v2 = vpop.f32.mrf.mxu0  ;;  %v2784_v4 = vsel %vm2781_vm3, %v2783_v58, %v2779_v19  ;;  %v2645_v63 = vadd.f32 1.0, %v4232_v62  ;;  %v2481_v43 = vpop.f32.mrf.mxu1  ;;  %vm2792_vm4 = vweird.f32 %v4230_v1 }
 0x289   :  { %2899 = vst [vmem:[%s5623_s2 + $0x40] sm:$0xff] %v2784_v4  ;;  %v2788_v7 = vsub.f32 1.0, %v2787_v27  ;;  %v2433_v8 = vadd.f32 %v2432_v2, %v5543_v14  ;;  %v2578_v28 = vadd.f32 %v2577_v59, %v2529_v55  ;;  %vm2793_vm6 = vmor %vm2791_vm5, %vm2792_vm4 }
 0x28a   :  { %4235 = vrcp.f32 %v2645_v63  ;;  %v2810_v34 = vand.u32 2147483647, %v2645_v63  ;;  %v2812_v35 = vand.u32 2147483648, %v2645_v63  ;;  %vm2806_vm9 = vweird.f32 %v2645_v63 }
 0x28b   :  { %v2789_v26 = vmul.f32 %v4230_v1, %v2788_v7  ;;  %v2599_v32 = vsub.f32 0.0, %v2578_v28  ;;  %v2482_v10 = vadd.f32 %v2481_v43, %v2433_v8 }
 0x28c   :  { %vm2811_vm11 = vcmp.eq.f32.partialorder %v2810_v34, 8.507059e+37 }
 0x28d   :  { %v2790_v49 = vadd.f32 %v4230_v1, %v2789_v26  ;;  %v4234_v16 = vpop.eup %4233  ;;  %v2627_v60 = vmul.f32 1.442695, %v2599_v32 }
 0x28e   :  { %v2530_v11 = vpop.f32.mrf.mxu2  ;;  %v2646_v23 = vadd.f32 1.0, %v4234_v16 }
 0x28f   :  { %v2579_v15 = vpop.f32.mrf.mxu3  ;;  %v2794_v37 = vsel %vm2793_vm6, %v4230_v1, %v2790_v49  ;;  %v2531_v20 = vadd.f32 %v2530_v11, %v2482_v10  ;;  %4237 = vpow2.f32 %v2627_v60 }
 0x290   :  { %v2435_v14 = vpop.f32.mrf.mxu0  ;;  %v4236_v21 = vpop.eup %4235  ;;  %v2799_v22 = vsel %vm2796_vm7, %v2798_v13, %v2794_v37  ;;  %4239 = vrcp.f32 %v2646_v23  ;;  %v2825_v53 = vand.u32 2147483647, %v2646_v23  ;;  %v2827_v3 = vand.u32 2147483648, %v2646_v23 }
 0x291   :  { %2900 = vst [vmem:[%s5623_s2 + $0x48] sm:$0xff] %v2799_v22  ;;  %v2802_v39 = vmul.f32 %v4236_v21, %v2645_v63  ;;  %v2580_v25 = vadd.f32 %v2579_v15, %v2531_v20  ;;  %v2436_v24 = vadd.f32 %v2435_v14, %v5546_v42  ;;  %v2484_v29 = vpop.f32.mrf.mxu1  ;;  %vm2807_vm8 = vweird.f32 %v4236_v21 }
 0x292   :  { %vm2808_vm10 = vmor %vm2806_vm9, %vm2807_vm8  ;;  %v2813_v42 = vor.u32 1.1754944e-38, %v2812_v35  ;;  %vm2821_vm13 = vweird.f32 %v2646_v23  ;;  %v2828_v2 = vor.u32 1.1754944e-38, %v2827_v3  ;;  %vm2826_vm15 = vcmp.eq.f32.partialorder %v2825_v53, 8.507059e+37 }
 0x293   :  { %v2803_v52 = vsub.f32 1.0, %v2802_v39  ;;  %v2600_v33 = vsub.f32 0.0, %v2580_v25  ;;  %v2485_v61 = vadd.f32 %v2484_v29, %v2436_v24 }
 0x295   :  { %v2804_v6 = vmul.f32 %v4236_v21, %v2803_v52  ;;  %v2629_v5 = vmul.f32 1.442695, %v2600_v33  ;;  %v4238_v18 = vpop.eup %4237 }
 0x296   :  { %v2533_v36 = vpop.f32.mrf.mxu2  ;;  %v4240_v44 = vpop.eup %4239  ;;  %v2647_v45 = vadd.f32 1.0, %v4238_v18 }
 0x297   :  { %v2582_v31 = vpop.f32.mrf.mxu3  ;;  %v2805_v38 = vadd.f32 %v4236_v21, %v2804_v6  ;;  %4241 = vpow2.f32 %v2629_v5  ;;  %v2534_v41 = vadd.f32 %v2533_v36, %v2485_v61  ;;  %v2817_v57 = vmul.f32 %v4240_v44, %v2646_v23 }
 0x298   :  { %v2437_v30 = vpop.f32.mrf.mxu0  ;;  %4243 = vrcp.f32 %v2647_v45  ;;  %vm2822_vm12 = vweird.f32 %v4240_v44  ;;  %v2842_v26 = vand.u32 2147483648, %v2647_v45  ;;  %v2840_v49 = vand.u32 2147483647, %v2647_v45 }
 0x299   :  { %v2809_v40 = vsel %vm2808_vm10, %v4236_v21, %v2805_v38  ;;  %v2583_v54 = vadd.f32 %v2582_v31, %v2534_v41  ;;  %v2438_v46 = vadd.f32 %v2437_v30, %v5548_v48  ;;  %v2818_v47 = vsub.f32 1.0, %v2817_v57  ;;  %v2486_v1 = vpop.f32.mrf.mxu1  ;;  %vm2823_vm14 = vmor %vm2821_vm13, %vm2822_vm12 }
 0x29a   :  { %v2814_v17 = vsel %vm2811_vm11, %v2813_v42, %v2809_v40  ;;  %vm2836_vm1 = vweird.f32 %v2647_v45  ;;  %v2843_v16 = vor.u32 1.1754944e-38, %v2842_v26  ;;  %vm2841_vm3 = vcmp.eq.f32.partialorder %v2840_v49, 8.507059e+37 }
 0x29b   :  { %2901 = vst [vmem:[%s5623_s2 + $0x50] sm:$0xff] %v2814_v17  ;;  %v2601_v51 = vsub.f32 0.0, %v2583_v54  ;;  %v2819_v50 = vmul.f32 %v4240_v44, %v2818_v47  ;;  %v2487_v59 = vadd.f32 %v2486_v1, %v2438_v46 }
 0x29d   :  { %v4242_v58 = vpop.eup %4241  ;;  %v2631_v12 = vmul.f32 1.442695, %v2601_v51  ;;  %v2820_v27 = vadd.f32 %v4240_v44, %v2819_v50 }
 0x29e   :  { %v2648_v62 = vadd.f32 1.0, %v4242_v58  ;;  %v2535_v19 = vpop.f32.mrf.mxu2  ;;  %v4244_v9 = vpop.eup %4243 }
 0x29f   :  { %4245 = vpow2.f32 %v2631_v12  ;;  %v2536_v48 = vadd.f32 %v2535_v19, %v2487_v59  ;;  %v2584_v4 = vpop.f32.mrf.mxu3  ;;  %v2824_v63 = vsel %vm2823_vm14, %v4240_v44, %v2820_v27  ;;  %v2832_v55 = vmul.f32 %v4244_v9, %v2647_v45 }
 0x2a0   :  { %4247 = vrcp.f32 %v2648_v62  ;;  %v2829_v7 = vsel %vm2826_vm15, %v2828_v2, %v2824_v63  ;;  %vm2837_vm0 = vweird.f32 %v4244_v9  ;;  %v2857_v14 = vand.u32 2147483648, %v2648_v62 }
 0x2a1   :  { %v2585_v43 = vadd.f32 %v2584_v4, %v2536_v48  ;;  %2902 = vst [vmem:[%s5623_s2 + $0x58] sm:$0xff] %v2829_v7  ;;  %v2833_v8 = vsub.f32 1.0, %v2832_v55  ;;  %vm2838_vm2 = vmor %vm2836_vm1, %vm2837_vm0  ;;  %v2855_v22 = vand.u32 2147483647, %v2648_v62  ;;  %vm2851_vm5 = vweird.f32 %v2648_v62 }
 0x2a2   :  { %v2858_v24 = vor.u32 1.1754944e-38, %v2857_v14 }
 0x2a3   :  { %v2602_v0 = vsub.f32 0.0, %v2585_v43  ;;  %v2834_v28 = vmul.f32 %v4244_v9, %v2833_v8  ;;  %vm2856_vm7 = vcmp.eq.f32.partialorder %v2855_v22, 8.507059e+37 }
 0x2a5   :  { %v4246_v56 = vpop.eup %4245  ;;  %v2633_v32 = vmul.f32 1.442695, %v2602_v0  ;;  %v2835_v11 = vadd.f32 %v4244_v9, %v2834_v28 }
 0x2a6   :  { %v4248_v10 = vpop.eup %4247  ;;  %v2649_v13 = vadd.f32 1.0, %v4246_v56 }
 0x2a7   :  { %v2847_v15 = vmul.f32 %v4248_v10, %v2648_v62  ;;  %4249 = vpow2.f32 %v2633_v32  ;;  %v2839_v37 = vsel %vm2838_vm2, %v4244_v9, %v2835_v11  ;;  %vm2852_vm4 = vweird.f32 %v4248_v10 }
 0x2a8   :  { %4251 = vrcp.f32 %v2649_v13  ;;  %v2844_v20 = vsel %vm2841_vm3, %v2843_v16, %v2839_v37  ;;  %vm2853_vm6 = vmor %vm2851_vm5, %vm2852_vm4  ;;  %v2872_v6 = vand.u32 2147483648, %v2649_v13  ;;  %v2870_v61 = vand.u32 2147483647, %v2649_v13 }
 0x2a9   :  { %v2848_v60 = vsub.f32 1.0, %v2847_v15  ;;  %2903 = vst [vmem:[%s5623_s2 + $0x60] sm:$0xff] %v2844_v20  ;;  %vm2866_vm9 = vweird.f32 %v2649_v13 }
 0x2aa   :  { %v2873_v18 = vor.u32 1.1754944e-38, %v2872_v6  ;;  %vm2871_vm11 = vcmp.eq.f32.partialorder %v2870_v61, 8.507059e+37 }
 0x2ab   :  { %v2849_v21 = vmul.f32 %v4248_v10, %v2848_v60 }
 0x2ad   :  { %v4250_v23 = vpop.eup %4249  ;;  %v2850_v39 = vadd.f32 %v4248_v10, %v2849_v21 }
 0x2ae   :  { %v4252_v25 = vpop.eup %4251  ;;  %v2650_v29 = vadd.f32 1.0, %v4250_v23 }
 0x2af   :  { %v2854_v52 = vsel %vm2853_vm6, %v4248_v10, %v2850_v39  ;;  %v2862_v33 = vmul.f32 %v4252_v25, %v2649_v13  ;;  %vm2867_vm8 = vweird.f32 %v4252_v25 }
 0x2b0   :  { %v2859_v34 = vsel %vm2856_vm7, %v2858_v24, %v2854_v52  ;;  %4253 = vrcp.f32 %v2650_v29  ;;  %vm2868_vm10 = vmor %vm2866_vm9, %vm2867_vm8  ;;  %v2887_v42 = vand.u32 2147483648, %v2650_v29  ;;  %v2885_v40 = vand.u32 2147483647, %v2650_v29 }
 0x2b1   :  { %2904 = vst [vmem:[%s5623_s2 + $0x68] sm:$0xff] %v2859_v34  ;;  %v2863_v35 = vsub.f32 1.0, %v2862_v33  ;;  %vm2881_vm13 = vweird.f32 %v2650_v29 }
 0x2b2   :  { %v2888_v54 = vor.u32 1.1754944e-38, %v2887_v42  ;;  %vm2886_vm15 = vcmp.eq.f32.partialorder %v2885_v40, 8.507059e+37 }
 0x2b3   :  { %v2864_v5 = vmul.f32 %v4252_v25, %v2863_v35 }
 0x2b5   :  { %v2865_v36 = vadd.f32 %v4252_v25, %v2864_v5 }
 0x2b6   :  { %v4254_v31 = vpop.eup %4253 }
 0x2b7   :  { %v2869_v38 = vsel %vm2868_vm10, %v4252_v25, %v2865_v36  ;;  %v2877_v41 = vmul.f32 %v4254_v31, %v2650_v29  ;;  %vm2882_vm12 = vweird.f32 %v4254_v31 }
 0x2b8   :  { %v2874_v30 = vsel %vm2871_vm11, %v2873_v18, %v2869_v38  ;;  %vm2883_vm14 = vmor %vm2881_vm13, %vm2882_vm12 }
 0x2b9   :  { %2905 = vst [vmem:[%s5623_s2 + $0x70] sm:$0xff] %v2874_v30  ;;  %v2878_v44 = vsub.f32 1.0, %v2877_v41 }
 0x2bb   :  { %v2879_v45 = vmul.f32 %v4254_v31, %v2878_v44 }
 0x2bd   :  { %v2880_v57 = vadd.f32 %v4254_v31, %v2879_v45 }
 0x2bf   :  { %v2884_v46 = vsel %vm2883_vm14, %v4254_v31, %v2880_v57 }
 0x2c0   :  { %v2889_v17 = vsel %vm2886_vm15, %v2888_v54, %v2884_v46 }
 0x2c1   :  { %2906 = vst [vmem:[%s5623_s2 + $0x78] sm:$0xff] %v2889_v17 }

</bundles_post_ra>
